<compile_context>
chip_gen: v7x
topology: tpu7x:2x2x1
jax: 0.10.0
libtpu: 0.0.40
codegen_flags: <defaults>
</compile_context>

<pallas_src>
import functools

import jax
import jax.numpy as jnp
from jax.experimental import pallas as pl
from jax.experimental.pallas import tpu as pltpu


def _round_up(x, m):
    return ((x + m - 1) // m) * m


# ---------------------------------------------------------------------------
# Fused (x @ w) * scale + bias  [+ ReLU]  Pallas kernel (MXU hot path)
# ---------------------------------------------------------------------------
def _fused_matmul_kernel(x_ref, w_ref, s_ref, b_ref, o_ref, acc_ref, *, do_relu):
    k = pl.program_id(2)

    @pl.when(k == 0)
    def _():
        acc_ref[...] = jnp.zeros_like(acc_ref)

    acc_ref[...] += jnp.dot(x_ref[...], w_ref[...],
                            preferred_element_type=jnp.float32)

    @pl.when(k == pl.num_programs(2) - 1)
    def _():
        y = acc_ref[...] * s_ref[...] + b_ref[...]
        if do_relu:
            y = jnp.maximum(y, 0.0)
        o_ref[...] = y.astype(o_ref.dtype)


def fused_matmul(x, w_pad, scale, bias, *, tm, tn, tk, do_relu=True,
                 out_dtype=jnp.float32):
    """act((x @ w) * scale + bias).

    x:      (M, K) activations (cast to bf16 at the kernel boundary).
    w_pad:  (Kp, Np) bf16, pre-transposed and pre-padded at init time.
    scale:  (1, Np) fp32 ; bias: (1, Np) fp32.
    """
    M, K = x.shape
    Kp, Np = w_pad.shape
    assert Kp % tk == 0 and Np % tn == 0 and Kp >= K

    Mp = _round_up(M, tm)
    if (M, K) == (Mp, Kp) and x.dtype == jnp.bfloat16:
        xp = x
    else:
        xp = jnp.zeros((Mp, Kp), jnp.bfloat16).at[:M, :K].set(
            x.astype(jnp.bfloat16))

    grid = (Mp // tm, Np // tn, Kp // tk)

    out = pl.pallas_call(
        functools.partial(_fused_matmul_kernel, do_relu=do_relu),
        out_shape=jax.ShapeDtypeStruct((Mp, Np), out_dtype),
        grid_spec=pltpu.PrefetchScalarGridSpec(
            num_scalar_prefetch=0,
            grid=grid,
            in_specs=[
                pl.BlockSpec((tm, tk), lambda i, j, k: (i, k)),
                pl.BlockSpec((tk, tn), lambda i, j, k: (k, j)),
                pl.BlockSpec((1, tn), lambda i, j, k: (0, j)),
                pl.BlockSpec((1, tn), lambda i, j, k: (0, j)),
            ],
            out_specs=pl.BlockSpec((tm, tn), lambda i, j, k: (i, j)),
            scratch_shapes=[pltpu.VMEM((tm, tn), jnp.float32)],
        ),
        compiler_params=pltpu.CompilerParams(
            dimension_semantics=("parallel", "parallel", "arbitrary")),
    )(xp, w_pad, scale, bias)
    return out if Mp == M else out[:M]


# ---------------------------------------------------------------------------
# Fused tail kernel: linear2 -> linear3 -> [adv|val] heads -> dueling combine
# (single kernel; all weights fit trivially in VMEM; batch M is tiny)
# ---------------------------------------------------------------------------
def _tail_kernel(x_ref, w2_ref, b2_ref, w3_ref, b3_ref, whv_ref, bhv_ref,
                 o_ref, *, n_valid):
    x = x_ref[...]                                               # (Mp, 512) bf16
    h2 = jnp.dot(x, w2_ref[...], preferred_element_type=jnp.float32) + b2_ref[...]
    h2 = jnp.maximum(h2, 0.0).astype(jnp.bfloat16)               # (Mp, 256)
    h3 = jnp.dot(h2, w3_ref[...], preferred_element_type=jnp.float32) + b3_ref[...]
    h3 = jnp.maximum(h3, 0.0).astype(jnp.bfloat16)               # (Mp, 64)
    hv = jnp.dot(h3, whv_ref[...], preferred_element_type=jnp.float32) + bhv_ref[...]
    hv = jnp.maximum(hv, 0.0)                                    # (Mp, 128)
    adv = hv[:, 0:2]                                             # relu(adv(x))
    val = hv[:, 2:3]                                             # relu(val(x))
    # val.mean() over the whole (valid) batch, matching torch's val.mean()
    rows = jax.lax.broadcasted_iota(jnp.int32, val.shape, 0)
    mask = (rows < n_valid).astype(jnp.float32)
    v_mean = jnp.sum(val * mask) / jnp.float32(n_valid)
    o_ref[...] = (val + adv - v_mean).astype(o_ref.dtype)


def tail_dueling(x, q):
    M, K = x.shape
    Mp = _round_up(M, 16)
    xp = jnp.zeros((Mp, K), jnp.bfloat16).at[:M].set(x.astype(jnp.bfloat16))
    out = pl.pallas_call(
        functools.partial(_tail_kernel, n_valid=M),
        out_shape=jax.ShapeDtypeStruct((Mp, 2), jnp.float32),
    )(xp, q['l2_w'], q['l2_b'], q['l3_w'], q['l3_b'], q['hv_w'], q['hv_b'])
    return out[:M]


# ---------------------------------------------------------------------------
# Conv lowering: im2col on NHWC (glue) + fused Pallas matmul (compute)
# ---------------------------------------------------------------------------
def im2col_nhwc(x, k, s):
    N, H, W, C = x.shape
    Ho = (H - k) // s + 1
    Wo = (W - k) // s + 1
    cols = []
    for i in range(k):
        for j in range(k):
            cols.append(x[:, i:i + s * Ho:s, j:j + s * Wo:s, :])   # (N,Ho,Wo,C)
    p = jnp.concatenate(cols, axis=-1)       # col index = (kh*k + kw)*C + c
    return p.reshape(N * Ho * Wo, k * k * C), Ho, Wo


def conv_bn_relu(x_nhwc, wp, sp, bp, k, stride):
    N = x_nhwc.shape[0]
    patches, Ho, Wo = im2col_nhwc(x_nhwc, k, stride)   # (N*Ho*Wo, k*k*Cin)
    Cout = wp.shape[1]
    out = fused_matmul(patches, wp, sp, bp,
                       tm=256, tn=Cout, tk=wp.shape[0],
                       do_relu=True, out_dtype=jnp.bfloat16)
    return out.reshape(N, Ho, Wo, Cout)                # stay NHWC


# ---------------------------------------------------------------------------
# Deterministic parameter initialization (shapes from the nn.Module __init__)
# ---------------------------------------------------------------------------
def init_params(key):
    ks = jax.random.split(key, 20)

    def w_init(k, shape, fan_in):
        return jax.random.normal(k, shape, jnp.float32) / jnp.sqrt(fan_in)

    def b_init(k, n):
        return 0.01 * jax.random.normal(k, (n,), jnp.float32)

    p = {}
    p['conv1_w'] = w_init(ks[0], (64, 4, 5, 5), 4 * 5 * 5)
    p['conv1_b'] = b_init(ks[1], 64)
    p['conv2_w'] = w_init(ks[2], (64, 64, 4, 4), 64 * 4 * 4)
    p['conv2_b'] = b_init(ks[3], 64)
    p['conv3_w'] = w_init(ks[4], (64, 64, 3, 3), 64 * 3 * 3)
    p['conv3_b'] = b_init(ks[5], 64)
    for i in (1, 2, 3):
        p[f'bn{i}_g'] = jnp.ones((64,), jnp.float32)
        p[f'bn{i}_b'] = jnp.zeros((64,), jnp.float32)
        p[f'bn{i}_m'] = jnp.zeros((64,), jnp.float32)
        p[f'bn{i}_v'] = jnp.ones((64,), jnp.float32)
    p['l1_w'] = w_init(ks[6], (512, 52992), 52992)
    p['l1_b'] = b_init(ks[7], 512)
    p['l2_w'] = w_init(ks[8], (256, 512), 512)
    p['l2_b'] = b_init(ks[9], 256)
    p['l3_w'] = w_init(ks[10], (64, 256), 256)
    p['l3_b'] = b_init(ks[11], 64)
    p['adv_w'] = w_init(ks[12], (2, 64), 64)
    p['adv_b'] = b_init(ks[13], 2)
    p['val_w'] = w_init(ks[14], (1, 64), 64)
    p['val_b'] = b_init(ks[15], 1)
    return p


# ---------------------------------------------------------------------------
# One-time parameter preparation: fold BN, transpose/pad/cast weights.
# ---------------------------------------------------------------------------
def prepare_params(p, eps=1e-5):
    q = {}
    for i, k in ((1, 5), (2, 4), (3, 3)):
        w = p[f'conv{i}_w']                                    # (Cout,Cin,kh,kw)
        Cout, Cin, kh, kw = w.shape
        # im2col (NHWC) order: rows indexed (kh, kw, cin)
        wm = jnp.transpose(w, (2, 3, 1, 0)).reshape(kh * kw * Cin, Cout)
        scale = p[f'bn{i}_g'] / jnp.sqrt(p[f'bn{i}_v'] + eps)
        bias = p[f'bn{i}_b'] + scale * (p[f'conv{i}_b'] - p[f'bn{i}_m'])
        K = kh * kw * Cin
        Kp = _round_up(K, 128)
        q[f'conv{i}_w'] = jnp.zeros((Kp, Cout), jnp.bfloat16).at[:K].set(
            wm.astype(jnp.bfloat16))
        q[f'conv{i}_s'] = scale.reshape(1, Cout).astype(jnp.float32)
        q[f'conv{i}_b'] = bias.reshape(1, Cout).astype(jnp.float32)

    # linear1: permute columns from PyTorch (C,H,W) flatten order to our
    # NHWC (H,W,C) flatten order, then pre-transpose to (K, N). 52992 = 18*46*64.
    C3, H3, W3 = 64, 18, 46
    w1 = p['l1_w'].reshape(512, C3, H3, W3).transpose(0, 2, 3, 1)
    w1 = w1.reshape(512, C3 * H3 * W3)
    q['l1_w'] = w1.T.astype(jnp.bfloat16)                 # (52992, 512), no pad
    q['l1_s'] = jnp.ones((1, 512), jnp.float32)
    q['l1_b'] = p['l1_b'].reshape(1, 512).astype(jnp.float32)

    # fused tail: linear2 -> linear3 -> [adv | val] heads
    q['l2_w'] = p['l2_w'].T.astype(jnp.bfloat16)          # (512, 256)
    q['l2_b'] = p['l2_b'].reshape(1, 256).astype(jnp.float32)
    q['l3_w'] = p['l3_w'].T.astype(jnp.bfloat16)          # (256, 64)
    q['l3_b'] = p['l3_b'].reshape(1, 64).astype(jnp.float32)
    w_hv = jnp.concatenate([p['adv_w'], p['val_w']], axis=0).T   # (64, 3)
    b_hv = jnp.concatenate([p['adv_b'], p['val_b']], axis=0)     # (3,)
    q['hv_w'] = jnp.zeros((64, 128), jnp.bfloat16).at[:, :3].set(
        w_hv.astype(jnp.bfloat16))
    q['hv_b'] = jnp.zeros((1, 128), jnp.float32).at[0, :3].set(
        b_hv.astype(jnp.float32))
    return q


# ---------------------------------------------------------------------------
# Forward pass (mirrors model.forward)
# ---------------------------------------------------------------------------
def forward(q, x):
    # Input is NCHW (PyTorch convention); switch to NHWC once (C=4, cheap).
    h = jnp.transpose(x, (0, 2, 3, 1)).astype(jnp.bfloat16)
    h = conv_bn_relu(h, q['conv1_w'], q['conv1_s'], q['conv1_b'], k=5, stride=3)
    h = conv_bn_relu(h, q['conv2_w'], q['conv2_s'], q['conv2_b'], k=4, stride=2)
    h = conv_bn_relu(h, q['conv3_w'], q['conv3_s'], q['conv3_b'], k=3, stride=1)
    N = h.shape[0]
    h = h.reshape(N, -1)                           # (N, 52992) in HWC order
    # linear1: big weight-streaming matmul. tk=2944 divides 52992 exactly,
    # tn=256 -> grid (1, 2, 18) = 36 steps; bf16 weight stream ~54 MB.
    h = fused_matmul(h, q['l1_w'], q['l1_s'], q['l1_b'],
                     tm=16, tn=256, tk=2944, do_relu=True,
                     out_dtype=jnp.bfloat16)
    # linear2 / linear3 / adv / val / dueling combine in one tiny kernel.
    return tail_dueling(h, q)


if __name__ == "__main__":
    key = jax.random.PRNGKey(0)
    k_in, k_par = jax.random.split(key)
    # Spatial size (128, 296) is the smallest-ish input consistent with
    # linear1's fixed in_features = 52992 = 64 * 18 * 46 after the three convs.
    x = jax.random.normal(k_in, (2, 4, 128, 296), jnp.float32)
    params = init_params(k_par)
    prepped = prepare_params(params)   # one-time weight layout/cast/fold

    out = jax.jit(forward)(prepped, x)
    out = jax.block_until_ready(out)
    assert out.shape == (2, 2), out.shape
    print("KERNEL_OK")
</pallas_src>

<mosaic_0001>
module attributes {stable_mosaic.version = 11 : i64} {
  func.func @_fused_matmul_kernel(%arg0: i32, %arg1: i32, %arg2: i32, %arg3: memref<256x128xbf16, #tpu.memory_space<vmem>>, %arg4: memref<128x64xbf16, #tpu.memory_space<vmem>>, %arg5: memref<1x64xf32, #tpu.memory_space<vmem>>, %arg6: memref<1x64xf32, #tpu.memory_space<vmem>>, %arg7: memref<256x64xbf16, #tpu.memory_space<vmem>>, %arg8: memref<256x64xf32, #tpu.memory_space<vmem>>) attributes {dimension_semantics = [#tpu.dimension_semantics<parallel>, #tpu.dimension_semantics<parallel>, #tpu.dimension_semantics<arbitrary>], iteration_bounds = array<i64: 33, 1, 1>, scalar_prefetch = 0 : i64, scratch_operands = 1 : i64, tpu.core_type = #tpu.core_type<tc>, window_params = [{transform_indices = @transform_0, window_bounds = array<i64: 256, 128>}, {transform_indices = @transform_1, window_bounds = array<i64: 128, 64>}, {transform_indices = @transform_2, window_bounds = array<i64: 1, 64>}, {transform_indices = @transform_3, window_bounds = array<i64: 1, 64>}, {transform_indices = @transform_4, window_bounds = array<i64: 256, 64>}]} {
    %c0_i32 = arith.constant 0 : i32
    %0 = arith.cmpi eq, %arg2, %c0_i32 : i32
    %1 = arith.extui %0 : i1 to i32
    %c0_i32_0 = arith.constant 0 : i32
    %2 = arith.cmpi ne, %1, %c0_i32_0 : i32
    scf.if %2 {
      %cst_10 = arith.constant 0.000000e+00 : f32
      %12 = vector.broadcast %cst_10 : f32 to vector<256x64xf32>
      %c0_11 = arith.constant 0 : index
      %c0_12 = arith.constant 0 : index
      %13 = vector.load %arg8[%c0_11, %c0_12] : memref<256x64xf32, #tpu.memory_space<vmem>>, vector<256x64xf32>
      tpu.vector_store %arg8[%c0_11, %c0_12], %12 {strides = array<i32>} : memref<256x64xf32, #tpu.memory_space<vmem>>, vector<256x64xf32>,
    } else {
    }
    %c0 = arith.constant 0 : index
    %c0_1 = arith.constant 0 : index
    %3 = vector.load %arg8[%c0, %c0_1] : memref<256x64xf32, #tpu.memory_space<vmem>>, vector<256x64xf32>
    %c0_2 = arith.constant 0 : index
    %c0_3 = arith.constant 0 : index
    %4 = vector.load %arg3[%c0_2, %c0_3] : memref<256x128xbf16, #tpu.memory_space<vmem>>, vector<256x128xbf16>
    %c0_4 = arith.constant 0 : index
    %c0_5 = arith.constant 0 : index
    %5 = vector.load %arg4[%c0_4, %c0_5] : memref<128x64xbf16, #tpu.memory_space<vmem>>, vector<128x64xbf16>
    %cst = arith.constant dense<0.000000e+00> : vector<256x64xf32>
    %6 = tpu.matmul %4, %5, %cst {dimension_numbers = #tpu.dot_dimension_numbers<[1], [0], [0], [1], [0, 0, 1, 1], [], []>} : vector<256x128xbf16>, vector<128x64xbf16>, vector<256x64xf32> -> vector<256x64xf32>
    %7 = arith.addf %3, %6 : vector<256x64xf32>
    %c0_6 = arith.constant 0 : index
    %c0_7 = arith.constant 0 : index
    %8 = vector.load %arg8[%c0_6, %c0_7] : memref<256x64xf32, #tpu.memory_space<vmem>>, vector<256x64xf32>
    tpu.vector_store %arg8[%c0_6, %c0_7], %7 {strides = array<i32>} : memref<256x64xf32, #tpu.memory_space<vmem>>, vector<256x64xf32>,
    %c0_i32_8 = arith.constant 0 : i32
    %9 = arith.cmpi eq, %arg2, %c0_i32_8 : i32
    %10 = arith.extui %9 : i1 to i32
    %c0_i32_9 = arith.constant 0 : i32
    %11 = arith.cmpi ne, %10, %c0_i32_9 : i32
    scf.if %11 {
      %c0_10 = arith.constant 0 : index
      %c0_11 = arith.constant 0 : index
      %12 = vector.load %arg8[%c0_10, %c0_11] : memref<256x64xf32, #tpu.memory_space<vmem>>, vector<256x64xf32>
      %c0_12 = arith.constant 0 : index
      %c0_13 = arith.constant 0 : index
      %13 = vector.load %arg5[%c0_12, %c0_13] : memref<1x64xf32, #tpu.memory_space<vmem>>, vector<1x64xf32>
      %14 = vector.broadcast %13 : vector<1x64xf32> to vector<256x64xf32>
      %15 = arith.mulf %12, %14 : vector<256x64xf32>
      %c0_14 = arith.constant 0 : index
      %c0_15 = arith.constant 0 : index
      %16 = vector.load %arg6[%c0_14, %c0_15] : memref<1x64xf32, #tpu.memory_space<vmem>>, vector<1x64xf32>
      %17 = vector.broadcast %16 : vector<1x64xf32> to vector<256x64xf32>
      %18 = arith.addf %15, %17 : vector<256x64xf32>
      %cst_16 = arith.constant 0.000000e+00 : f32
      %19 = vector.broadcast %cst_16 : f32 to vector<256x64xf32>
      %20 = arith.maximumf %18, %19 : vector<256x64xf32>
      %21 = arith.truncf %20 : vector<256x64xf32> to vector<256x64xbf16>
      %c0_17 = arith.constant 0 : index
      %c0_18 = arith.constant 0 : index
      %22 = vector.load %arg7[%c0_17, %c0_18] : memref<256x64xbf16, #tpu.memory_space<vmem>>, vector<256x64xbf16>
      tpu.vector_store %arg7[%c0_17, %c0_18], %21 {strides = array<i32>} : memref<256x64xbf16, #tpu.memory_space<vmem>>, vector<256x64xbf16>,
    } else {
    }
    return
  }
  func.func @transform_0(%arg0: i32, %arg1: i32, %arg2: i32) -> (i32, i32) {
    %c0_i32 = arith.constant 0 : i32
    return %arg0, %arg2 : i32, i32
  }
  func.func @transform_1(%arg0: i32, %arg1: i32, %arg2: i32) -> (i32, i32) {
    %c0_i32 = arith.constant 0 : i32
    return %arg2, %arg1 : i32, i32
  }
  func.func @transform_2(%arg0: i32, %arg1: i32, %arg2: i32) -> (i32, i32) {
    %c0_i32 = arith.constant 0 : i32
    %c0_i32_0 = arith.constant 0 : i32
    return %c0_i32, %arg1 : i32, i32
  }
  func.func @transform_3(%arg0: i32, %arg1: i32, %arg2: i32) -> (i32, i32) {
    %c0_i32 = arith.constant 0 : i32
    %c0_i32_0 = arith.constant 0 : i32
    return %c0_i32, %arg1 : i32, i32
  }
  func.func @transform_4(%arg0: i32, %arg1: i32, %arg2: i32) -> (i32, i32) {
    %c0_i32 = arith.constant 0 : i32
    return %arg0, %arg1 : i32, i32
  }
}

module attributes {stable_mosaic.version = 11 : i64} {
  func.func @_fused_matmul_kernel(%arg0: i32, %arg1: i32, %arg2: i32, %arg3: memref<256x1024xbf16, #tpu.memory_space<vmem>>, %arg4: memref<1024x64xbf16, #tpu.memory_space<vmem>>, %arg5: memref<1x64xf32, #tpu.memory_space<vmem>>, %arg6: memref<1x64xf32, #tpu.memory_space<vmem>>, %arg7: memref<256x64xbf16, #tpu.memory_space<vmem>>, %arg8: memref<256x64xf32, #tpu.memory_space<vmem>>) attributes {dimension_semantics = [#tpu.dimension_semantics<parallel>, #tpu.dimension_semantics<parallel>, #tpu.dimension_semantics<arbitrary>], iteration_bounds = array<i64: 8, 1, 1>, scalar_prefetch = 0 : i64, scratch_operands = 1 : i64, tpu.core_type = #tpu.core_type<tc>, window_params = [{transform_indices = @transform_0, window_bounds = array<i64: 256, 1024>}, {transform_indices = @transform_1, window_bounds = array<i64: 1024, 64>}, {transform_indices = @transform_2, window_bounds = array<i64: 1, 64>}, {transform_indices = @transform_3, window_bounds = array<i64: 1, 64>}, {transform_indices = @transform_4, window_bounds = array<i64: 256, 64>}]} {
    %c0_i32 = arith.constant 0 : i32
    %0 = arith.cmpi eq, %arg2, %c0_i32 : i32
    %1 = arith.extui %0 : i1 to i32
    %c0_i32_0 = arith.constant 0 : i32
    %2 = arith.cmpi ne, %1, %c0_i32_0 : i32
    scf.if %2 {
      %cst_10 = arith.constant 0.000000e+00 : f32
      %12 = vector.broadcast %cst_10 : f32 to vector<256x64xf32>
      %c0_11 = arith.constant 0 : index
      %c0_12 = arith.constant 0 : index
      %13 = vector.load %arg8[%c0_11, %c0_12] : memref<256x64xf32, #tpu.memory_space<vmem>>, vector<256x64xf32>
      tpu.vector_store %arg8[%c0_11, %c0_12], %12 {strides = array<i32>} : memref<256x64xf32, #tpu.memory_space<vmem>>, vector<256x64xf32>,
    } else {
    }
    %c0 = arith.constant 0 : index
    %c0_1 = arith.constant 0 : index
    %3 = vector.load %arg8[%c0, %c0_1] : memref<256x64xf32, #tpu.memory_space<vmem>>, vector<256x64xf32>
    %c0_2 = arith.constant 0 : index
    %c0_3 = arith.constant 0 : index
    %4 = vector.load %arg3[%c0_2, %c0_3] : memref<256x1024xbf16, #tpu.memory_space<vmem>>, vector<256x1024xbf16>
    %c0_4 = arith.constant 0 : index
    %c0_5 = arith.constant 0 : index
    %5 = vector.load %arg4[%c0_4, %c0_5] : memref<1024x64xbf16, #tpu.memory_space<vmem>>, vector<1024x64xbf16>
    %cst = arith.constant dense<0.000000e+00> : vector<256x64xf32>
    %6 = tpu.matmul %4, %5, %cst {dimension_numbers = #tpu.dot_dimension_numbers<[1], [0], [0], [1], [0, 0, 1, 1], [], []>} : vector<256x1024xbf16>, vector<1024x64xbf16>, vector<256x64xf32> -> vector<256x64xf32>
    %7 = arith.addf %3, %6 : vector<256x64xf32>
    %c0_6 = arith.constant 0 : index
    %c0_7 = arith.constant 0 : index
    %8 = vector.load %arg8[%c0_6, %c0_7] : memref<256x64xf32, #tpu.memory_space<vmem>>, vector<256x64xf32>
    tpu.vector_store %arg8[%c0_6, %c0_7], %7 {strides = array<i32>} : memref<256x64xf32, #tpu.memory_space<vmem>>, vector<256x64xf32>,
    %c0_i32_8 = arith.constant 0 : i32
    %9 = arith.cmpi eq, %arg2, %c0_i32_8 : i32
    %10 = arith.extui %9 : i1 to i32
    %c0_i32_9 = arith.constant 0 : i32
    %11 = arith.cmpi ne, %10, %c0_i32_9 : i32
    scf.if %11 {
      %c0_10 = arith.constant 0 : index
      %c0_11 = arith.constant 0 : index
      %12 = vector.load %arg8[%c0_10, %c0_11] : memref<256x64xf32, #tpu.memory_space<vmem>>, vector<256x64xf32>
      %c0_12 = arith.constant 0 : index
      %c0_13 = arith.constant 0 : index
      %13 = vector.load %arg5[%c0_12, %c0_13] : memref<1x64xf32, #tpu.memory_space<vmem>>, vector<1x64xf32>
      %14 = vector.broadcast %13 : vector<1x64xf32> to vector<256x64xf32>
      %15 = arith.mulf %12, %14 : vector<256x64xf32>
      %c0_14 = arith.constant 0 : index
      %c0_15 = arith.constant 0 : index
      %16 = vector.load %arg6[%c0_14, %c0_15] : memref<1x64xf32, #tpu.memory_space<vmem>>, vector<1x64xf32>
      %17 = vector.broadcast %16 : vector<1x64xf32> to vector<256x64xf32>
      %18 = arith.addf %15, %17 : vector<256x64xf32>
      %cst_16 = arith.constant 0.000000e+00 : f32
      %19 = vector.broadcast %cst_16 : f32 to vector<256x64xf32>
      %20 = arith.maximumf %18, %19 : vector<256x64xf32>
      %21 = arith.truncf %20 : vector<256x64xf32> to vector<256x64xbf16>
      %c0_17 = arith.constant 0 : index
      %c0_18 = arith.constant 0 : index
      %22 = vector.load %arg7[%c0_17, %c0_18] : memref<256x64xbf16, #tpu.memory_space<vmem>>, vector<256x64xbf16>
      tpu.vector_store %arg7[%c0_17, %c0_18], %21 {strides = array<i32>} : memref<256x64xbf16, #tpu.memory_space<vmem>>, vector<256x64xbf16>,
    } else {
    }
    return
  }
  func.func @transform_0(%arg0: i32, %arg1: i32, %arg2: i32) -> (i32, i32) {
    %c0_i32 = arith.constant 0 : i32
    return %arg0, %arg2 : i32, i32
  }
  func.func @transform_1(%arg0: i32, %arg1: i32, %arg2: i32) -> (i32, i32) {
    %c0_i32 = arith.constant 0 : i32
    return %arg2, %arg1 : i32, i32
  }
  func.func @transform_2(%arg0: i32, %arg1: i32, %arg2: i32) -> (i32, i32) {
    %c0_i32 = arith.constant 0 : i32
    %c0_i32_0 = arith.constant 0 : i32
    return %c0_i32, %arg1 : i32, i32
  }
  func.func @transform_3(%arg0: i32, %arg1: i32, %arg2: i32) -> (i32, i32) {
    %c0_i32 = arith.constant 0 : i32
    %c0_i32_0 = arith.constant 0 : i32
    return %c0_i32, %arg1 : i32, i32
  }
  func.func @transform_4(%arg0: i32, %arg1: i32, %arg2: i32) -> (i32, i32) {
    %c0_i32 = arith.constant 0 : i32
    return %arg0, %arg1 : i32, i32
  }
}

module attributes {stable_mosaic.version = 11 : i64} {
  func.func @_fused_matmul_kernel(%arg0: i32, %arg1: i32, %arg2: i32, %arg3: memref<256x640xbf16, #tpu.memory_space<vmem>>, %arg4: memref<640x64xbf16, #tpu.memory_space<vmem>>, %arg5: memref<1x64xf32, #tpu.memory_space<vmem>>, %arg6: memref<1x64xf32, #tpu.memory_space<vmem>>, %arg7: memref<256x64xbf16, #tpu.memory_space<vmem>>, %arg8: memref<256x64xf32, #tpu.memory_space<vmem>>) attributes {dimension_semantics = [#tpu.dimension_semantics<parallel>, #tpu.dimension_semantics<parallel>, #tpu.dimension_semantics<arbitrary>], iteration_bounds = array<i64: 7, 1, 1>, scalar_prefetch = 0 : i64, scratch_operands = 1 : i64, tpu.core_type = #tpu.core_type<tc>, window_params = [{transform_indices = @transform_0, window_bounds = array<i64: 256, 640>}, {transform_indices = @transform_1, window_bounds = array<i64: 640, 64>}, {transform_indices = @transform_2, window_bounds = array<i64: 1, 64>}, {transform_indices = @transform_3, window_bounds = array<i64: 1, 64>}, {transform_indices = @transform_4, window_bounds = array<i64: 256, 64>}]} {
    %c0_i32 = arith.constant 0 : i32
    %0 = arith.cmpi eq, %arg2, %c0_i32 : i32
    %1 = arith.extui %0 : i1 to i32
    %c0_i32_0 = arith.constant 0 : i32
    %2 = arith.cmpi ne, %1, %c0_i32_0 : i32
    scf.if %2 {
      %cst_10 = arith.constant 0.000000e+00 : f32
      %12 = vector.broadcast %cst_10 : f32 to vector<256x64xf32>
      %c0_11 = arith.constant 0 : index
      %c0_12 = arith.constant 0 : index
      %13 = vector.load %arg8[%c0_11, %c0_12] : memref<256x64xf32, #tpu.memory_space<vmem>>, vector<256x64xf32>
      tpu.vector_store %arg8[%c0_11, %c0_12], %12 {strides = array<i32>} : memref<256x64xf32, #tpu.memory_space<vmem>>, vector<256x64xf32>,
    } else {
    }
    %c0 = arith.constant 0 : index
    %c0_1 = arith.constant 0 : index
    %3 = vector.load %arg8[%c0, %c0_1] : memref<256x64xf32, #tpu.memory_space<vmem>>, vector<256x64xf32>
    %c0_2 = arith.constant 0 : index
    %c0_3 = arith.constant 0 : index
    %4 = vector.load %arg3[%c0_2, %c0_3] : memref<256x640xbf16, #tpu.memory_space<vmem>>, vector<256x640xbf16>
    %c0_4 = arith.constant 0 : index
    %c0_5 = arith.constant 0 : index
    %5 = vector.load %arg4[%c0_4, %c0_5] : memref<640x64xbf16, #tpu.memory_space<vmem>>, vector<640x64xbf16>
    %cst = arith.constant dense<0.000000e+00> : vector<256x64xf32>
    %6 = tpu.matmul %4, %5, %cst {dimension_numbers = #tpu.dot_dimension_numbers<[1], [0], [0], [1], [0, 0, 1, 1], [], []>} : vector<256x640xbf16>, vector<640x64xbf16>, vector<256x64xf32> -> vector<256x64xf32>
    %7 = arith.addf %3, %6 : vector<256x64xf32>
    %c0_6 = arith.constant 0 : index
    %c0_7 = arith.constant 0 : index
    %8 = vector.load %arg8[%c0_6, %c0_7] : memref<256x64xf32, #tpu.memory_space<vmem>>, vector<256x64xf32>
    tpu.vector_store %arg8[%c0_6, %c0_7], %7 {strides = array<i32>} : memref<256x64xf32, #tpu.memory_space<vmem>>, vector<256x64xf32>,
    %c0_i32_8 = arith.constant 0 : i32
    %9 = arith.cmpi eq, %arg2, %c0_i32_8 : i32
    %10 = arith.extui %9 : i1 to i32
    %c0_i32_9 = arith.constant 0 : i32
    %11 = arith.cmpi ne, %10, %c0_i32_9 : i32
    scf.if %11 {
      %c0_10 = arith.constant 0 : index
      %c0_11 = arith.constant 0 : index
      %12 = vector.load %arg8[%c0_10, %c0_11] : memref<256x64xf32, #tpu.memory_space<vmem>>, vector<256x64xf32>
      %c0_12 = arith.constant 0 : index
      %c0_13 = arith.constant 0 : index
      %13 = vector.load %arg5[%c0_12, %c0_13] : memref<1x64xf32, #tpu.memory_space<vmem>>, vector<1x64xf32>
      %14 = vector.broadcast %13 : vector<1x64xf32> to vector<256x64xf32>
      %15 = arith.mulf %12, %14 : vector<256x64xf32>
      %c0_14 = arith.constant 0 : index
      %c0_15 = arith.constant 0 : index
      %16 = vector.load %arg6[%c0_14, %c0_15] : memref<1x64xf32, #tpu.memory_space<vmem>>, vector<1x64xf32>
      %17 = vector.broadcast %16 : vector<1x64xf32> to vector<256x64xf32>
      %18 = arith.addf %15, %17 : vector<256x64xf32>
      %cst_16 = arith.constant 0.000000e+00 : f32
      %19 = vector.broadcast %cst_16 : f32 to vector<256x64xf32>
      %20 = arith.maximumf %18, %19 : vector<256x64xf32>
      %21 = arith.truncf %20 : vector<256x64xf32> to vector<256x64xbf16>
      %c0_17 = arith.constant 0 : index
      %c0_18 = arith.constant 0 : index
      %22 = vector.load %arg7[%c0_17, %c0_18] : memref<256x64xbf16, #tpu.memory_space<vmem>>, vector<256x64xbf16>
      tpu.vector_store %arg7[%c0_17, %c0_18], %21 {strides = array<i32>} : memref<256x64xbf16, #tpu.memory_space<vmem>>, vector<256x64xbf16>,
    } else {
    }
    return
  }
  func.func @transform_0(%arg0: i32, %arg1: i32, %arg2: i32) -> (i32, i32) {
    %c0_i32 = arith.constant 0 : i32
    return %arg0, %arg2 : i32, i32
  }
  func.func @transform_1(%arg0: i32, %arg1: i32, %arg2: i32) -> (i32, i32) {
    %c0_i32 = arith.constant 0 : i32
    return %arg2, %arg1 : i32, i32
  }
  func.func @transform_2(%arg0: i32, %arg1: i32, %arg2: i32) -> (i32, i32) {
    %c0_i32 = arith.constant 0 : i32
    %c0_i32_0 = arith.constant 0 : i32
    return %c0_i32, %arg1 : i32, i32
  }
  func.func @transform_3(%arg0: i32, %arg1: i32, %arg2: i32) -> (i32, i32) {
    %c0_i32 = arith.constant 0 : i32
    %c0_i32_0 = arith.constant 0 : i32
    return %c0_i32, %arg1 : i32, i32
  }
  func.func @transform_4(%arg0: i32, %arg1: i32, %arg2: i32) -> (i32, i32) {
    %c0_i32 = arith.constant 0 : i32
    return %arg0, %arg1 : i32, i32
  }
}

module attributes {stable_mosaic.version = 11 : i64} {
  func.func @_fused_matmul_kernel(%arg0: i32, %arg1: i32, %arg2: i32, %arg3: memref<16x2944xbf16, #tpu.memory_space<vmem>>, %arg4: memref<2944x256xbf16, #tpu.memory_space<vmem>>, %arg5: memref<1x256xf32, #tpu.memory_space<vmem>>, %arg6: memref<1x256xf32, #tpu.memory_space<vmem>>, %arg7: memref<16x256xbf16, #tpu.memory_space<vmem>>, %arg8: memref<16x256xf32, #tpu.memory_space<vmem>>) attributes {dimension_semantics = [#tpu.dimension_semantics<parallel>, #tpu.dimension_semantics<parallel>, #tpu.dimension_semantics<arbitrary>], iteration_bounds = array<i64: 1, 2, 18>, scalar_prefetch = 0 : i64, scratch_operands = 1 : i64, tpu.core_type = #tpu.core_type<tc>, window_params = [{transform_indices = @transform_0, window_bounds = array<i64: 16, 2944>}, {transform_indices = @transform_1, window_bounds = array<i64: 2944, 256>}, {transform_indices = @transform_2, window_bounds = array<i64: 1, 256>}, {transform_indices = @transform_3, window_bounds = array<i64: 1, 256>}, {transform_indices = @transform_4, window_bounds = array<i64: 16, 256>}]} {
    %c0_i32 = arith.constant 0 : i32
    %0 = arith.cmpi eq, %arg2, %c0_i32 : i32
    %1 = arith.extui %0 : i1 to i32
    %c0_i32_0 = arith.constant 0 : i32
    %2 = arith.cmpi ne, %1, %c0_i32_0 : i32
    scf.if %2 {
      %cst_9 = arith.constant 0.000000e+00 : f32
      %12 = vector.broadcast %cst_9 : f32 to vector<16x256xf32>
      %c0_10 = arith.constant 0 : index
      %c0_11 = arith.constant 0 : index
      %13 = vector.load %arg8[%c0_10, %c0_11] : memref<16x256xf32, #tpu.memory_space<vmem>>, vector<16x256xf32>
      tpu.vector_store %arg8[%c0_10, %c0_11], %12 {strides = array<i32>} : memref<16x256xf32, #tpu.memory_space<vmem>>, vector<16x256xf32>,
    } else {
    }
    %c0 = arith.constant 0 : index
    %c0_1 = arith.constant 0 : index
    %3 = vector.load %arg8[%c0, %c0_1] : memref<16x256xf32, #tpu.memory_space<vmem>>, vector<16x256xf32>
    %c0_2 = arith.constant 0 : index
    %c0_3 = arith.constant 0 : index
    %4 = vector.load %arg3[%c0_2, %c0_3] : memref<16x2944xbf16, #tpu.memory_space<vmem>>, vector<16x2944xbf16>
    %c0_4 = arith.constant 0 : index
    %c0_5 = arith.constant 0 : index
    %5 = vector.load %arg4[%c0_4, %c0_5] : memref<2944x256xbf16, #tpu.memory_space<vmem>>, vector<2944x256xbf16>
    %cst = arith.constant dense<0.000000e+00> : vector<16x256xf32>
    %6 = tpu.matmul %4, %5, %cst {dimension_numbers = #tpu.dot_dimension_numbers<[1], [0], [0], [1], [0, 0, 1, 1], [], []>} : vector<16x2944xbf16>, vector<2944x256xbf16>, vector<16x256xf32> -> vector<16x256xf32>
    %7 = arith.addf %3, %6 : vector<16x256xf32>
    %c0_6 = arith.constant 0 : index
    %c0_7 = arith.constant 0 : index
    %8 = vector.load %arg8[%c0_6, %c0_7] : memref<16x256xf32, #tpu.memory_space<vmem>>, vector<16x256xf32>
    tpu.vector_store %arg8[%c0_6, %c0_7], %7 {strides = array<i32>} : memref<16x256xf32, #tpu.memory_space<vmem>>, vector<16x256xf32>,
    %c17_i32 = arith.constant 17 : i32
    %9 = arith.cmpi eq, %arg2, %c17_i32 : i32
    %10 = arith.extui %9 : i1 to i32
    %c0_i32_8 = arith.constant 0 : i32
    %11 = arith.cmpi ne, %10, %c0_i32_8 : i32
    scf.if %11 {
      %c0_9 = arith.constant 0 : index
      %c0_10 = arith.constant 0 : index
      %12 = vector.load %arg8[%c0_9, %c0_10] : memref<16x256xf32, #tpu.memory_space<vmem>>, vector<16x256xf32>
      %c0_11 = arith.constant 0 : index
      %c0_12 = arith.constant 0 : index
      %13 = vector.load %arg5[%c0_11, %c0_12] : memref<1x256xf32, #tpu.memory_space<vmem>>, vector<1x256xf32>
      %14 = vector.broadcast %13 : vector<1x256xf32> to vector<16x256xf32>
      %15 = arith.mulf %12, %14 : vector<16x256xf32>
      %c0_13 = arith.constant 0 : index
      %c0_14 = arith.constant 0 : index
      %16 = vector.load %arg6[%c0_13, %c0_14] : memref<1x256xf32, #tpu.memory_space<vmem>>, vector<1x256xf32>
      %17 = vector.broadcast %16 : vector<1x256xf32> to vector<16x256xf32>
      %18 = arith.addf %15, %17 : vector<16x256xf32>
      %cst_15 = arith.constant 0.000000e+00 : f32
      %19 = vector.broadcast %cst_15 : f32 to vector<16x256xf32>
      %20 = arith.maximumf %18, %19 : vector<16x256xf32>
      %21 = arith.truncf %20 : vector<16x256xf32> to vector<16x256xbf16>
      %c0_16 = arith.constant 0 : index
      %c0_17 = arith.constant 0 : index
      %22 = vector.load %arg7[%c0_16, %c0_17] : memref<16x256xbf16, #tpu.memory_space<vmem>>, vector<16x256xbf16>
      tpu.vector_store %arg7[%c0_16, %c0_17], %21 {strides = array<i32>} : memref<16x256xbf16, #tpu.memory_space<vmem>>, vector<16x256xbf16>,
    } else {
    }
    return
  }
  func.func @transform_0(%arg0: i32, %arg1: i32, %arg2: i32) -> (i32, i32) {
    %c0_i32 = arith.constant 0 : i32
    return %arg0, %arg2 : i32, i32
  }
  func.func @transform_1(%arg0: i32, %arg1: i32, %arg2: i32) -> (i32, i32) {
    %c0_i32 = arith.constant 0 : i32
    return %arg2, %arg1 : i32, i32
  }
  func.func @transform_2(%arg0: i32, %arg1: i32, %arg2: i32) -> (i32, i32) {
    %c0_i32 = arith.constant 0 : i32
    %c0_i32_0 = arith.constant 0 : i32
    return %c0_i32, %arg1 : i32, i32
  }
  func.func @transform_3(%arg0: i32, %arg1: i32, %arg2: i32) -> (i32, i32) {
    %c0_i32 = arith.constant 0 : i32
    %c0_i32_0 = arith.constant 0 : i32
    return %c0_i32, %arg1 : i32, i32
  }
  func.func @transform_4(%arg0: i32, %arg1: i32, %arg2: i32) -> (i32, i32) {
    %c0_i32 = arith.constant 0 : i32
    return %arg0, %arg1 : i32, i32
  }
}

module attributes {stable_mosaic.version = 11 : i64} {
  func.func @_tail_kernel(%arg0: memref<16x512xbf16, #tpu.memory_space<vmem>>, %arg1: memref<512x256xbf16, #tpu.memory_space<vmem>>, %arg2: memref<1x256xf32, #tpu.memory_space<vmem>>, %arg3: memref<256x64xbf16, #tpu.memory_space<vmem>>, %arg4: memref<1x64xf32, #tpu.memory_space<vmem>>, %arg5: memref<64x128xbf16, #tpu.memory_space<vmem>>, %arg6: memref<1x128xf32, #tpu.memory_space<vmem>>, %arg7: memref<16x2xf32, #tpu.memory_space<vmem>>) attributes {dimension_semantics = [], scalar_prefetch = 0 : i64, scratch_operands = 0 : i64, tpu.core_type = #tpu.core_type<tc>} {
    %c0 = arith.constant 0 : index
    %c0_0 = arith.constant 0 : index
    %0 = vector.load %arg0[%c0, %c0_0] : memref<16x512xbf16, #tpu.memory_space<vmem>>, vector<16x512xbf16>
    %c0_1 = arith.constant 0 : index
    %c0_2 = arith.constant 0 : index
    %1 = vector.load %arg1[%c0_1, %c0_2] : memref<512x256xbf16, #tpu.memory_space<vmem>>, vector<512x256xbf16>
    %cst = arith.constant dense<0.000000e+00> : vector<16x256xf32>
    %2 = tpu.matmul %0, %1, %cst {dimension_numbers = #tpu.dot_dimension_numbers<[1], [0], [0], [1], [0, 0, 1, 1], [], []>} : vector<16x512xbf16>, vector<512x256xbf16>, vector<16x256xf32> -> vector<16x256xf32>
    %c0_3 = arith.constant 0 : index
    %c0_4 = arith.constant 0 : index
    %3 = vector.load %arg2[%c0_3, %c0_4] : memref<1x256xf32, #tpu.memory_space<vmem>>, vector<1x256xf32>
    %4 = vector.broadcast %3 : vector<1x256xf32> to vector<16x256xf32>
    %5 = arith.addf %2, %4 : vector<16x256xf32>
    %cst_5 = arith.constant 0.000000e+00 : f32
    %6 = vector.broadcast %cst_5 : f32 to vector<16x256xf32>
    %7 = arith.maximumf %5, %6 : vector<16x256xf32>
    %8 = arith.truncf %7 : vector<16x256xf32> to vector<16x256xbf16>
    %c0_6 = arith.constant 0 : index
    %c0_7 = arith.constant 0 : index
    %9 = vector.load %arg3[%c0_6, %c0_7] : memref<256x64xbf16, #tpu.memory_space<vmem>>, vector<256x64xbf16>
    %cst_8 = arith.constant dense<0.000000e+00> : vector<16x64xf32>
    %10 = tpu.matmul %8, %9, %cst_8 {dimension_numbers = #tpu.dot_dimension_numbers<[1], [0], [0], [1], [0, 0, 1, 1], [], []>} : vector<16x256xbf16>, vector<256x64xbf16>, vector<16x64xf32> -> vector<16x64xf32>
    %c0_9 = arith.constant 0 : index
    %c0_10 = arith.constant 0 : index
    %11 = vector.load %arg4[%c0_9, %c0_10] : memref<1x64xf32, #tpu.memory_space<vmem>>, vector<1x64xf32>
    %12 = vector.broadcast %11 : vector<1x64xf32> to vector<16x64xf32>
    %13 = arith.addf %10, %12 : vector<16x64xf32>
    %cst_11 = arith.constant 0.000000e+00 : f32
    %14 = vector.broadcast %cst_11 : f32 to vector<16x64xf32>
    %15 = arith.maximumf %13, %14 : vector<16x64xf32>
    %16 = arith.truncf %15 : vector<16x64xf32> to vector<16x64xbf16>
    %c0_12 = arith.constant 0 : index
    %c0_13 = arith.constant 0 : index
    %17 = vector.load %arg5[%c0_12, %c0_13] : memref<64x128xbf16, #tpu.memory_space<vmem>>, vector<64x128xbf16>
    %cst_14 = arith.constant dense<0.000000e+00> : vector<16x128xf32>
    %18 = tpu.matmul %16, %17, %cst_14 {dimension_numbers = #tpu.dot_dimension_numbers<[1], [0], [0], [1], [0, 0, 1, 1], [], []>} : vector<16x64xbf16>, vector<64x128xbf16>, vector<16x128xf32> -> vector<16x128xf32>
    %c0_15 = arith.constant 0 : index
    %c0_16 = arith.constant 0 : index
    %19 = vector.load %arg6[%c0_15, %c0_16] : memref<1x128xf32, #tpu.memory_space<vmem>>, vector<1x128xf32>
    %20 = vector.broadcast %19 : vector<1x128xf32> to vector<16x128xf32>
    %21 = arith.addf %18, %20 : vector<16x128xf32>
    %cst_17 = arith.constant 0.000000e+00 : f32
    %22 = vector.broadcast %cst_17 : f32 to vector<16x128xf32>
    %23 = arith.maximumf %21, %22 : vector<16x128xf32>
    %24 = vector.extract_strided_slice %23 {offsets = [0, 0], sizes = [16, 2], strides = [1, 1]} : vector<16x128xf32> to vector<16x2xf32>
    %25 = vector.extract_strided_slice %23 {offsets = [0, 2], sizes = [16, 1], strides = [1, 1]} : vector<16x128xf32> to vector<16x1xf32>
    %26 = tpu.iota {dimensions = array<i32: 0>} : vector<16x1xi32>
    %c2_i32 = arith.constant 2 : i32
    %27 = vector.broadcast %c2_i32 : i32 to vector<16x1xi32>
    %28 = arith.cmpi slt, %26, %27 : vector<16x1xi32>
    %29 = arith.extui %28 : vector<16x1xi1> to vector<16x1xi32>
    %30 = arith.sitofp %29 : vector<16x1xi32> to vector<16x1xf32>
    %31 = arith.mulf %25, %30 : vector<16x1xf32>
    %32 = vector.shape_cast %31 : vector<16x1xf32> to vector<1x16x1xf32>
    %cst_18 = arith.constant dense<0.000000e+00> : vector<1xf32>
    %33 = vector.multi_reduction <add>, %32, %cst_18 [1, 2] : vector<1x16x1xf32> to vector<1xf32>
    %34 = vector.shape_cast %33 : vector<1xf32> to vector<1x1x1xf32>
    %35 = vector.extract %34[0, 0, 0] : f32 from vector<1x1x1xf32>
    %cst_19 = arith.constant 2.000000e+00 : f32
    %36 = arith.divf %35, %cst_19 : f32
    %37 = vector.broadcast %25 : vector<16x1xf32> to vector<16x2xf32>
    %38 = arith.addf %37, %24 : vector<16x2xf32>
    %39 = vector.broadcast %36 : f32 to vector<16x2xf32>
    %40 = arith.subf %38, %39 : vector<16x2xf32>
    %c0_20 = arith.constant 0 : index
    %c0_21 = arith.constant 0 : index
    %41 = vector.load %arg7[%c0_20, %c0_21] : memref<16x2xf32, #tpu.memory_space<vmem>>, vector<16x2xf32>
    tpu.vector_store %arg7[%c0_20, %c0_21], %40 {strides = array<i32>} : memref<16x2xf32, #tpu.memory_space<vmem>>, vector<16x2xf32>,
    return
  }
}

</mosaic_0001>

<bundles_post_ra>
// kernel: forward.5
= control target key start
LH: loop header
LB: loop body
LE: loop exit
PB: predicated region body
PF: predicated region fallthrough
CT: control target
= control target key end

     0   :  { %s1508_s15 = smov 0   ;;  %s1510_s16 = smov 0   ;;  %s1818_s0 = inlined_call_operand.vmem [shape: bf16[8448,128], index: 0, kind: input, shape index: {}]   ;;  %s1819_s1 = inlined_call_operand.vmem [shape: bf16[128,64], index: 1, kind: input, shape index: {}]   ;;  %s1820_s2 = inlined_call_operand.vmem [shape: f32[1,64], index: 2, kind: input, shape index: {}]   ;;  %s1821_s3 = inlined_call_operand.vmem [shape: f32[1,64], index: 3, kind: input, shape index: {}]   ;;  %s1822_s4 = inlined_call_operand.vmem [shape: bf16[8448,64], index: 4, kind: output, shape index: {}]  }
   0x1   :  { %s1512_s17 = smov 0  }
   0x2 LB: > { %s33_s18 = sadd.s32 1, %s1476_s16  ;;  %p1224_p0 = scmp.ge.s32.totalorder %s1480_s17, 1  ;;  %s1480_s17 = sphi %s1512_s17, %s14_s17   ;;  %s1476_s16 = sphi %s1510_s16, %s1824_s16   ;;  %s1472_s15 = sphi %s1508_s15, %s1823_s15  }
   0x3   : > { %p35_p1 = scmp.ge.s32.totalorder %s33_s18, 33  ;;  %p221_p2 = scmp.lt.s32.totalorder %s1480_s17, 34 }
   0x5   : > { %s1826_s18 = smov (%p35_p1, %s33_s18), 0  ;;  %p222_p3 = pnand %p1224_p0, %p221_p2 }
   0x6   : > { %v1434_v0 = vld [vmem:[%s1819_s1] sm:$0xff] (!%p222_p3)   ;;  %s1225_s21 = sshll.u32 (!%p222_p3), %s1472_s15, 5  ;;  %v1435_v1 = vld [vmem:[%s1819_s1 + $0x8] sm:$0xff] (!%p222_p3)   ;;  %vm305_vm0 = vcmask (!%p222_p3), 523264   ;;  %v1436_v2 = vld [vmem:[%s1819_s1 + $0x10] sm:$0xff] (!%p222_p3)   ;;  %v1482_v3 = vmov (!%p222_p3), 0.0  }
   0x7   : > { %225 = sbr.rel (%p222_p3) target bundleno = 312 (0x138), region = 36  ;;  %p268_p4 = scmp.lt.s32.totalorder (!%p222_p3), %s1225_s21, 1055  ;;  %1345 = vmatprep.subr.bf16.mxu0 (!%p222_p3), %v1434_v0  ;;  %1393 = vmatprep.subr.bf16.mxu1 (!%p222_p3), %v1434_v0  ;;  %308 = vst.msk [vmem:[#allocation2 + $0x10] sm:$0xff] (!%p222_p3), %vm305_vm0, %v1482_v3  ;;  %306 = vst.msk [vmem:[#allocation2] sm:$0xff] (!%p222_p3), %vm305_vm0, %v1482_v3  ;;  %v1437_v4 = vld [vmem:[%s1819_s1 + $0x18] sm:$0xff] (!%p222_p3)   ;;  %v1438_v7 = vld [vmem:[%s1819_s1 + $0x20] sm:$0xff] (!%p222_p3)  }
   0x8   : > { %1346 = vmatpush3.bf16.msra.mxu0 (!%p222_p3), %v1434_v0  ;;  %1401 = vmatpush3.bf16.msra.mxu1 (!%p222_p3), %v1434_v0  ;;  %307 = vst.msk [vmem:[#allocation2 + $0x8] sm:$0xff] (!%p222_p3), %vm305_vm0, %v1482_v3  ;;  %309 = vst.msk [vmem:[#allocation2 + $0x18] sm:$0xff] (!%p222_p3), %vm305_vm0, %v1482_v3  ;;  %v1439_v8 = vld [vmem:[%s1819_s1 + $0x28] sm:$0xff] (!%p222_p3)   ;;  %v1440_v9 = vld [vmem:[%s1819_s1 + $0x30] sm:$0xff] (!%p222_p3)   ;;  %vm1061_vm1 = vcmask (!%p222_p3), 519168  }
   0x9   : > { %1347 = vmatprep.subr.bf16.mxu0 (!%p222_p3), %v1435_v1  ;;  %1394 = vmatprep.subr.bf16.mxu1 (!%p222_p3), %v1435_v1  ;;  %310 = vst.msk [vmem:[#allocation2 + $0x20] sm:$0xff] (!%p222_p3), %vm305_vm0, %v1482_v3  ;;  %311 = vst.msk [vmem:[#allocation2 + $0x28] sm:$0xff] (!%p222_p3), %vm305_vm0, %v1482_v3  ;;  %v1441_v10 = vld [vmem:[%s1819_s1 + $0x38] sm:$0xff] (!%p222_p3)   ;;  %v1619_v53 = vld [vmem:[%s1820_s2] ss:$0 sm:$0xff] (!%p222_p3) }
   0xa   : > { %312 = vst.msk [vmem:[#allocation2 + $0x30] sm:$0xff] (!%p222_p3), %vm305_vm0, %v1482_v3  ;;  %313 = vst.msk [vmem:[#allocation2 + $0x38] sm:$0xff] (!%p222_p3), %vm305_vm0, %v1482_v3  ;;  %v1624_v58 = vld [vmem:[%s1821_s3] ss:$0 sm:$0xff] (!%p222_p3) }
   0xb   : > { %314 = vst.msk [vmem:[#allocation2 + $0x40] sm:$0xff] (!%p222_p3), %vm305_vm0, %v1482_v3  ;;  %315 = vst.msk [vmem:[#allocation2 + $0x48] sm:$0xff] (!%p222_p3), %vm305_vm0, %v1482_v3 }
   0xc   : > { %316 = vst.msk [vmem:[#allocation2 + $0x50] sm:$0xff] (!%p222_p3), %vm305_vm0, %v1482_v3  ;;  %317 = vst.msk [vmem:[#allocation2 + $0x58] sm:$0xff] (!%p222_p3), %vm305_vm0, %v1482_v3  ;;  %1348 = vmatpush3.bf16.msra.mxu0 (!%p222_p3), %v1435_v1  ;;  %1402 = vmatpush3.bf16.msra.mxu1 (!%p222_p3), %v1435_v1 }
   0xd   : > { %318 = vst.msk [vmem:[#allocation2 + $0x60] sm:$0xff] (!%p222_p3), %vm305_vm0, %v1482_v3  ;;  %319 = vst.msk [vmem:[#allocation2 + $0x68] sm:$0xff] (!%p222_p3), %vm305_vm0, %v1482_v3  ;;  %1349 = vmatprep.subr.bf16.mxu0 (!%p222_p3), %v1436_v2  ;;  %1395 = vmatprep.subr.bf16.mxu1 (!%p222_p3), %v1436_v2 }
   0xe   : > { %s1828_s21 = smov (!%p268_p4, %s1225_s21), 1055  ;;  %320 = vst.msk [vmem:[#allocation2 + $0x70] sm:$0xff] %vm305_vm0, %v1482_v3  ;;  %321 = vst.msk [vmem:[#allocation2 + $0x78] sm:$0xff] %vm305_vm0, %v1482_v3  ;;  %v340_v25 = vld [vmem:[#allocation2 + $0x10] sm:$0xff]  ;;  %v338_v27 = vld [vmem:[#allocation2] sm:$0xff] }
   0xf   : > { %s1226_s26 = sshll.u32 %s1828_s21, 2  ;;  %322 = vst.msk [vmem:[#allocation2 + $0x80] sm:$0xff] %vm305_vm0, %v1482_v3  ;;  %323 = vst.msk [vmem:[#allocation2 + $0x88] sm:$0xff] %vm305_vm0, %v1482_v3  ;;  %v341_v31 = vld [vmem:[#allocation2 + $0x18] sm:$0xff]  ;;  %v339_v37 = vld [vmem:[#allocation2 + $0x8] sm:$0xff] }
  0x10   : > { %324 = vst.msk [vmem:[#allocation2 + $0x90] sm:$0xff] %vm305_vm0, %v1482_v3  ;;  %325 = vst.msk [vmem:[#allocation2 + $0x98] sm:$0xff] %vm305_vm0, %v1482_v3  ;;  %s1575_s29 = scalar_lea.vmem %s1818_s0, %s1226_s26  ;;  %1350 = vmatpush3.bf16.msra.mxu0 %v1436_v2  ;;  %1403 = vmatpush3.bf16.msra.mxu1 %v1436_v2  ;;  %v342_v51 = vld [vmem:[#allocation2 + $0x20] sm:$0xff]  ;;  %v343_v63 = vld [vmem:[#allocation2 + $0x28] sm:$0xff]  ;;  %s1653_s24 = scalar_lea.vmem %s1822_s4, %s1226_s26 }
  0x11   : > { %326 = vst.msk [vmem:[#allocation2 + $0xa0] sm:$0xff] %vm305_vm0, %v1482_v3  ;;  %327 = vst.msk [vmem:[#allocation2 + $0xa8] sm:$0xff] %vm305_vm0, %v1482_v3  ;;  %v1442_v5 = vld [vmem:[%s1575_s29] sm:$0xff]   ;;  %1351 = vmatprep.subr.bf16.mxu0 %v1437_v4  ;;  %1396 = vmatprep.subr.bf16.mxu1 %v1437_v4  ;;  %v1444_v11 = vld [vmem:[%s1575_s29 + $0x8] sm:$0xff]  }
  0x12   : > { %328 = vst.msk [vmem:[#allocation2 + $0xb0] sm:$0xff] %vm305_vm0, %v1482_v3  ;;  %329 = vst.msk [vmem:[#allocation2 + $0xb8] sm:$0xff] %vm305_vm0, %v1482_v3  ;;  %v1443_v6 = vld [vmem:[%s1575_s29 + $0x40] sm:$0xff]   ;;  %1361 = vmatprep.mubr.bf16.mxu0 %v1442_v5  ;;  %v1445_v12 = vld [vmem:[%s1575_s29 + $0x48] sm:$0xff]  }
  0x13   : > { %330 = vst.msk [vmem:[#allocation2 + $0xc0] sm:$0xff] %vm305_vm0, %v1482_v3  ;;  %331 = vst.msk [vmem:[#allocation2 + $0xc8] sm:$0xff] %vm305_vm0, %v1482_v3  ;;  %1377 = vmatprep.mubr.bf16.mxu1 %v1443_v6  ;;  %v1446_v13 = vld [vmem:[%s1575_s29 + $0x10] sm:$0xff]   ;;  %v1448_v15 = vld [vmem:[%s1575_s29 + $0x18] sm:$0xff]  }
  0x14   : > { %332 = vst.msk [vmem:[#allocation2 + $0xd0] sm:$0xff] %vm305_vm0, %v1482_v3  ;;  %333 = vst.msk [vmem:[#allocation2 + $0xd8] sm:$0xff] %vm305_vm0, %v1482_v3  ;;  %1352 = vmatpush3.bf16.msra.mxu0 %v1437_v4  ;;  %1404 = vmatpush3.bf16.msra.mxu1 %v1437_v4  ;;  %v1447_v14 = vld [vmem:[%s1575_s29 + $0x50] sm:$0xff]   ;;  %v1449_v16 = vld [vmem:[%s1575_s29 + $0x58] sm:$0xff]  }
  0x15   : > { %334 = vst.msk [vmem:[#allocation2 + $0xe0] sm:$0xff] %vm305_vm0, %v1482_v3  ;;  %335 = vst.msk [vmem:[#allocation2 + $0xe8] sm:$0xff] %vm305_vm0, %v1482_v3  ;;  %1353 = vmatprep.subr.bf16.mxu0 %v1438_v7  ;;  %1397 = vmatprep.subr.bf16.mxu1 %v1438_v7  ;;  %v1450_v17 = vld [vmem:[%s1575_s29 + $0x20] sm:$0xff]   ;;  %v1452_v19 = vld [vmem:[%s1575_s29 + $0x28] sm:$0xff]  }
  0x16   : > { %336 = vst.msk [vmem:[#allocation2 + $0xf0] sm:$0xff] %vm305_vm0, %v1482_v3  ;;  %337 = vst.msk [vmem:[#allocation2 + $0xf8] sm:$0xff] %vm305_vm0, %v1482_v3  ;;  %v1451_v18 = vld [vmem:[%s1575_s29 + $0x60] sm:$0xff]   ;;  %v1453_v20 = vld [vmem:[%s1575_s29 + $0x68] sm:$0xff]  }
  0x17   : > { %v1454_v21 = vld [vmem:[%s1575_s29 + $0x30] sm:$0xff]   ;;  %v1456_v23 = vld [vmem:[%s1575_s29 + $0x38] sm:$0xff]   ;;  %v354_v28 = vld [vmem:[#allocation2 + $0x80] sm:$0xff] }
  0x18   : > { %1354 = vmatpush3.bf16.msra.mxu0 %v1438_v7  ;;  %1405 = vmatpush3.bf16.msra.mxu1 %v1438_v7  ;;  %v1455_v22 = vld [vmem:[%s1575_s29 + $0x70] sm:$0xff]   ;;  %v1457_v24 = vld [vmem:[%s1575_s29 + $0x78] sm:$0xff]   ;;  %v355_v38 = vld [vmem:[#allocation2 + $0x88] sm:$0xff] }
  0x19   : > { %1355 = vmatprep.subr.bf16.mxu0 %v1439_v8  ;;  %1398 = vmatprep.subr.bf16.mxu1 %v1439_v8  ;;  %v356_v26 = vld [vmem:[#allocation2 + $0x90] sm:$0xff]  ;;  %v357_v32 = vld [vmem:[#allocation2 + $0x98] sm:$0xff]  ;;  %v358_v52 = vld [vmem:[#allocation2 + $0xa0] sm:$0xff] }
  0x1a   : > { %v344_v49 = vld [vmem:[#allocation2 + $0x30] sm:$0xff]  ;;  %v345_v56 = vld [vmem:[#allocation2 + $0x38] sm:$0xff]  ;;  %v359_v0 = vld [vmem:[#allocation2 + $0xa8] sm:$0xff] }
  0x1b   : > { %v360_v50 = vld [vmem:[#allocation2 + $0xb0] sm:$0xff]  ;;  %v361_v57 = vld [vmem:[#allocation2 + $0xb8] sm:$0xff] }
  0x1c   : > { %1356 = vmatpush3.bf16.msra.mxu0 %v1439_v8  ;;  %1406 = vmatpush3.bf16.msra.mxu1 %v1439_v8 }
  0x1d   : > { %1357 = vmatprep.subr.bf16.mxu0 %v1440_v9  ;;  %1399 = vmatprep.subr.bf16.mxu1 %v1440_v9 }
  0x20   : > { %1358 = vmatpush3.bf16.msra.mxu0 %v1440_v9  ;;  %1407 = vmatpush3.bf16.msra.mxu1 %v1440_v9 }
  0x21   : > { %1359 = vmatprep.subr.bf16.mxu0 %v1441_v10  ;;  %1400 = vmatprep.subr.bf16.mxu1 %v1441_v10 }
  0x24   : > { %1360 = vmatpush3.bf16.msra.mxu0 %v1441_v10  ;;  %1408 = vmatpush3.bf16.msra.mxu1 %v1441_v10 }
  0x27   : > { %1362 = vmatmul.mubr.bf16.vlgmr.msra.gmra.mrb[0].mxu0 %v1444_v11  ;;  %1378 = vmatmul.mubr.bf16.vlgmr.msra.gmra.mrb[0].mxu1 %v1445_v12 }
  0x28   : > { %1365 = vmatprep.mubr.bf16.mxu0 %v1446_v13  ;;  %1381 = vmatprep.mubr.bf16.mxu1 %v1447_v14 }
  0x2f   : > { %1366 = vmatmul.mubr.bf16.gmra.mrb[4].mxu0 %v1448_v15  ;;  %1382 = vmatmul.mubr.bf16.gmra.mrb[4].mxu1 %v1449_v16 }
  0x30   : > { %1369 = vmatprep.mubr.bf16.mxu0 %v1450_v17  ;;  %1385 = vmatprep.mubr.bf16.mxu1 %v1451_v18 }
  0x37   : > { %1370 = vmatmul.mubr.bf16.gmra.mrb[8].mxu0 %v1452_v19  ;;  %1386 = vmatmul.mubr.bf16.gmra.mrb[8].mxu1 %v1453_v20 }
  0x38   : > { %1373 = vmatprep.mubr.bf16.mxu0 %v1454_v21  ;;  %1389 = vmatprep.mubr.bf16.mxu1 %v1455_v22 }
  0x3f   : > { %1374 = vmatmul.mubr.bf16.gmra.mrb[12].mxu0 %v1456_v23  ;;  %1390 = vmatmul.mubr.bf16.gmra.mrb[12].mxu1 %v1457_v24 }
  0xfa   : > { %v1363_v29 = vpop.f32.mrb[0].mxu0  ;;  %v1379_v30 = vpop.f32.mrb[0].mxu1 }
  0xfb   : > { %v725_v33 = vadd.f32 %v1363_v29, %v340_v25  ;;  %v741_v34 = vadd.f32 %v1379_v30, %v356_v26  ;;  %v596_v35 = vpop.f32.mrb[1].mxu0  ;;  %v660_v36 = vpop.f32.mrb[1].mxu1 }
  0xfc   : > { %v723_v39 = vadd.f32 %v596_v35, %v338_v27  ;;  %v739_v40 = vadd.f32 %v660_v36, %v354_v28  ;;  %v1364_v41 = vpop.f32.mrb[2].mxu0  ;;  %v1380_v42 = vpop.f32.mrb[2].mxu1 }
  0xfd   : > { %758 = vst.msk [vmem:[#allocation2 + $0x10] sm:$0xff] %vm305_vm0, %v725_v33  ;;  %774 = vst.msk [vmem:[#allocation2 + $0x90] sm:$0xff] %vm305_vm0, %v741_v34  ;;  %v726_v43 = vadd.f32 %v1364_v41, %v341_v31  ;;  %v742_v44 = vadd.f32 %v1380_v42, %v357_v32  ;;  %v599_v45 = vpop.f32.mrb[3].mxu0  ;;  %v663_v46 = vpop.f32.mrb[3].mxu1 }
  0xfe   : > { %756 = vst.msk [vmem:[#allocation2] sm:$0xff] %vm305_vm0, %v723_v39  ;;  %772 = vst.msk [vmem:[#allocation2 + $0x80] sm:$0xff] %vm305_vm0, %v739_v40  ;;  %v724_v47 = vadd.f32 %v599_v45, %v339_v37  ;;  %v740_v48 = vadd.f32 %v663_v46, %v355_v38 }
  0xff   : > { %759 = vst.msk [vmem:[#allocation2 + $0x18] sm:$0xff] %vm305_vm0, %v726_v43  ;;  %775 = vst.msk [vmem:[#allocation2 + $0x98] sm:$0xff] %vm305_vm0, %v742_v44 }
 0x100   : > { %757 = vst.msk [vmem:[#allocation2 + $0x8] sm:$0xff] %vm305_vm0, %v724_v47  ;;  %773 = vst.msk [vmem:[#allocation2 + $0x88] sm:$0xff] %vm305_vm0, %v740_v48 }
 0x102   : > { %v1367_v54 = vpop.f32.mrb[4].mxu0  ;;  %v1383_v55 = vpop.f32.mrb[4].mxu1 }
 0x103   : > { %v729_v59 = vadd.f32 %v1367_v54, %v344_v49  ;;  %v745_v60 = vadd.f32 %v1383_v55, %v360_v50  ;;  %v612_v61 = vpop.f32.mrb[5].mxu0  ;;  %v676_v62 = vpop.f32.mrb[5].mxu1 }
 0x104   : > { %v793_v1 = vld [vmem:[#allocation2 + $0x10] sm:$0xff]  ;;  %v727_v3 = vadd.f32 %v612_v61, %v342_v51  ;;  %v743_v4 = vadd.f32 %v676_v62, %v358_v52  ;;  %v1368_v5 = vpop.f32.mrb[6].mxu0  ;;  %v1384_v6 = vpop.f32.mrb[6].mxu1 }
 0x105   : > { %v809_v2 = vld [vmem:[#allocation2 + $0x90] sm:$0xff]  ;;  %v832_v7 = vmul.f32 %v1619_v53, %v793_v1  ;;  %v791_v9 = vld [vmem:[#allocation2] sm:$0xff]  ;;  %762 = vst.msk [vmem:[#allocation2 + $0x30] sm:$0xff] %vm305_vm0, %v729_v59  ;;  %778 = vst.msk [vmem:[#allocation2 + $0xb0] sm:$0xff] %vm305_vm0, %v745_v60  ;;  %v730_v11 = vadd.f32 %v1368_v5, %v345_v56  ;;  %v746_v12 = vadd.f32 %v1384_v6, %v361_v57  ;;  %v615_v13 = vpop.f32.mrb[7].mxu0  ;;  %v679_v14 = vpop.f32.mrb[7].mxu1 }
 0x106   : > { %v848_v8 = vmul.f32 %v1619_v53, %v809_v2  ;;  %v807_v10 = vld [vmem:[#allocation2 + $0x80] sm:$0xff]  ;;  %v830_v15 = vmul.f32 %v1619_v53, %v791_v9  ;;  %v794_v17 = vld [vmem:[#allocation2 + $0x18] sm:$0xff]  ;;  %760 = vst.msk [vmem:[#allocation2 + $0x20] sm:$0xff] %vm305_vm0, %v727_v3  ;;  %776 = vst.msk [vmem:[#allocation2 + $0xa0] sm:$0xff] %vm305_vm0, %v743_v4  ;;  %v728_v19 = vadd.f32 %v615_v13, %v343_v63 }
 0x107   : > { %v846_v16 = vmul.f32 %v1619_v53, %v807_v10  ;;  %v810_v18 = vld [vmem:[#allocation2 + $0x98] sm:$0xff]  ;;  %v744_v20 = vadd.f32 %v679_v14, %v359_v0  ;;  %v871_v21 = vadd.f32 %v1624_v58, %v832_v7  ;;  %v833_v23 = vmul.f32 %v1619_v53, %v794_v17  ;;  %v792_v25 = vld [vmem:[#allocation2 + $0x8] sm:$0xff]  ;;  %763 = vst.msk [vmem:[#allocation2 + $0x38] sm:$0xff] %vm305_vm0, %v730_v11  ;;  %v348_v17 = vld [vmem:[#allocation2 + $0x50] sm:$0xff] }
 0x108   : > { %v887_v22 = vadd.f32 %v1624_v58, %v848_v8  ;;  %v849_v24 = vmul.f32 %v1619_v53, %v810_v18  ;;  %v808_v26 = vld [vmem:[#allocation2 + $0x88] sm:$0xff]  ;;  %779 = vst.msk [vmem:[#allocation2 + $0xb8] sm:$0xff] %vm305_vm0, %v746_v12  ;;  %v869_v27 = vadd.f32 %v1624_v58, %v830_v15  ;;  %v831_v29 = vmul.f32 %v1619_v53, %v792_v25 }
 0x109   : > { %v885_v28 = vadd.f32 %v1624_v58, %v846_v16  ;;  %v847_v30 = vmul.f32 %v1619_v53, %v808_v26  ;;  %761 = vst.msk [vmem:[#allocation2 + $0x28] sm:$0xff] %vm305_vm0, %v728_v19  ;;  %777 = vst.msk [vmem:[#allocation2 + $0xa8] sm:$0xff] %vm305_vm0, %v744_v20  ;;  %v903_v31 = vmax.f32 %v871_v21, 0.0  ;;  %v872_v33 = vadd.f32 %v1624_v58, %v833_v23  ;;  %v346_v23 = vld [vmem:[#allocation2 + $0x40] sm:$0xff] }
 0x10a   : > { %v919_v32 = vmax.f32 %v887_v22, 0.0  ;;  %v888_v34 = vadd.f32 %v1624_v58, %v849_v24  ;;  %v901_v35 = vmax.f32 %v869_v27, 0.0  ;;  %v870_v37 = vadd.f32 %v1624_v58, %v831_v29  ;;  %v1657_v39 = vpop.f32.mrb[8].mxu0  ;;  %v1659_v40 = vpop.f32.mrb[8].mxu1  ;;  %v364_v22 = vld [vmem:[#allocation2 + $0xd0] sm:$0xff]  ;;  %v362_v24 = vld [vmem:[#allocation2 + $0xc0] sm:$0xff] }
 0x10b   : > { %v917_v36 = vmax.f32 %v885_v28, 0.0  ;;  %v886_v38 = vadd.f32 %v1624_v58, %v847_v30  ;;  %v1291_v41 = vpack.c.bf16 %v903_v31, %v903_v31  ;;  %v904_v43 = vmax.f32 %v872_v33, 0.0  ;;  %v1661_v45 = vpop.f32.mrb[9].mxu0  ;;  %v1663_v46 = vpop.f32.mrb[9].mxu1  ;;  %v349_v29 = vld [vmem:[#allocation2 + $0x58] sm:$0xff] }
 0x10c   : > { %v1307_v42 = vpack.c.bf16 %v919_v32, %v919_v32  ;;  %v920_v44 = vmax.f32 %v888_v34, 0.0  ;;  %v1289_v47 = vpack.c.bf16 %v901_v35, %v901_v35  ;;  %v902_v49 = vmax.f32 %v870_v37, 0.0  ;;  %v797_v51 = vld [vmem:[#allocation2 + $0x30] sm:$0xff]  ;;  %v1665_v54 = vpop.f32.mrb[10].mxu0  ;;  %v1667_v55 = vpop.f32.mrb[10].mxu1  ;;  %v365_v30 = vld [vmem:[#allocation2 + $0xd8] sm:$0xff] }
 0x10d   : > { %v1305_v48 = vpack.c.bf16 %v917_v36, %v917_v36  ;;  %v918_v50 = vmax.f32 %v886_v38, 0.0  ;;  %v813_v52 = vld [vmem:[#allocation2 + $0xb0] sm:$0xff]  ;;  %1064 = vst.msk [vmem:[%s1653_s24 + $0x8] sm:$0xf] %vm1061_vm1, %v1291_v41  ;;  %v1292_v56 = vpack.c.bf16 %v904_v43, %v904_v43  ;;  %v836_v59 = vmul.f32 %v1619_v53, %v797_v51  ;;  %v795_v61 = vld [vmem:[#allocation2 + $0x20] sm:$0xff]  ;;  %v1675_v63 = vpop.f32.mrb[11].mxu0 }
 0x10e   : > { %1080 = vst.msk [vmem:[%s1653_s24 + $0x48] sm:$0xf] %vm1061_vm1, %v1307_v42  ;;  %v1308_v57 = vpack.c.bf16 %v920_v44, %v920_v44  ;;  %v852_v60 = vmul.f32 %v1619_v53, %v813_v52  ;;  %v811_v62 = vld [vmem:[#allocation2 + $0xa0] sm:$0xff]  ;;  %v1677_v0 = vpop.f32.mrb[11].mxu1  ;;  %1062 = vst.msk [vmem:[%s1653_s24] sm:$0xf] %vm1061_vm1, %v1289_v47  ;;  %v1290_v1 = vpack.c.bf16 %v902_v49, %v902_v49 }
 0x10f   : > { %1078 = vst.msk [vmem:[%s1653_s24 + $0x40] sm:$0xf] %vm1061_vm1, %v1305_v48  ;;  %v1306_v2 = vpack.c.bf16 %v918_v50, %v918_v50  ;;  %v834_v3 = vmul.f32 %v1619_v53, %v795_v61  ;;  %v850_v4 = vmul.f32 %v1619_v53, %v811_v62  ;;  %v798_v5 = vld [vmem:[#allocation2 + $0x38] sm:$0xff]  ;;  %1065 = vst.msk [vmem:[%s1653_s24 + $0xc] sm:$0xf] %vm1061_vm1, %v1292_v56  ;;  %v347_v37 = vld [vmem:[#allocation2 + $0x48] sm:$0xff] }
 0x110   : > { %v814_v6 = vld [vmem:[#allocation2 + $0xb8] sm:$0xff]  ;;  %1081 = vst.msk [vmem:[%s1653_s24 + $0x4c] sm:$0xf] %vm1061_vm1, %v1308_v57  ;;  %v875_v7 = vadd.f32 %v1624_v58, %v836_v59  ;;  %v891_v8 = vadd.f32 %v1624_v58, %v852_v60  ;;  %v837_v9 = vmul.f32 %v1619_v53, %v798_v5  ;;  %v796_v11 = vld [vmem:[#allocation2 + $0x28] sm:$0xff]  ;;  %1063 = vst.msk [vmem:[%s1653_s24 + $0x4] sm:$0xf] %vm1061_vm1, %v1290_v1 }
 0x111   : > { %v853_v10 = vmul.f32 %v1619_v53, %v814_v6  ;;  %v812_v12 = vld [vmem:[#allocation2 + $0xa8] sm:$0xff]  ;;  %1079 = vst.msk [vmem:[%s1653_s24 + $0x44] sm:$0xf] %vm1061_vm1, %v1306_v2  ;;  %v873_v13 = vadd.f32 %v1624_v58, %v834_v3  ;;  %v889_v14 = vadd.f32 %v1624_v58, %v850_v4  ;;  %v835_v15 = vmul.f32 %v1619_v53, %v796_v11  ;;  %v352_v49 = vld [vmem:[#allocation2 + $0x70] sm:$0xff]  ;;  %v350_v61 = vld [vmem:[#allocation2 + $0x60] sm:$0xff] }
 0x112   : > { %v851_v16 = vmul.f32 %v1619_v53, %v812_v12  ;;  %v907_v18 = vmax.f32 %v875_v7, 0.0  ;;  %v923_v19 = vmax.f32 %v891_v8, 0.0  ;;  %v876_v20 = vadd.f32 %v1624_v58, %v837_v9  ;;  %v1375_v31 = vpop.f32.mrb[12].mxu0  ;;  %v1391_v32 = vpop.f32.mrb[12].mxu1  ;;  %v363_v38 = vld [vmem:[#allocation2 + $0xc8] sm:$0xff]  ;;  %v368_v50 = vld [vmem:[#allocation2 + $0xf0] sm:$0xff] }
 0x113   : > { %v892_v21 = vadd.f32 %v1624_v58, %v853_v10  ;;  %v905_v25 = vmax.f32 %v873_v13, 0.0  ;;  %v921_v26 = vmax.f32 %v889_v14, 0.0  ;;  %v874_v27 = vadd.f32 %v1624_v58, %v835_v15  ;;  %v644_v41 = vpop.f32.mrb[13].mxu0  ;;  %v708_v42 = vpop.f32.mrb[13].mxu1  ;;  %v366_v62 = vld [vmem:[#allocation2 + $0xe0] sm:$0xff]  ;;  %v353_v1 = vld [vmem:[#allocation2 + $0x78] sm:$0xff] }
 0x114   : > { %v890_v28 = vadd.f32 %v1624_v58, %v851_v16  ;;  %v1295_v33 = vpack.c.bf16 %v907_v18, %v907_v18  ;;  %v1311_v34 = vpack.c.bf16 %v923_v19, %v923_v19  ;;  %v908_v35 = vmax.f32 %v876_v20, 0.0  ;;  %v1376_v51 = vpop.f32.mrb[14].mxu0  ;;  %v1392_v52 = vpop.f32.mrb[14].mxu1  ;;  %v369_v7 = vld [vmem:[#allocation2 + $0xf8] sm:$0xff]  ;;  %v367_v8 = vld [vmem:[#allocation2 + $0xe8] sm:$0xff] }
 0x115   : > { %v924_v36 = vmax.f32 %v892_v21, 0.0  ;;  %v1293_v43 = vpack.c.bf16 %v905_v25, %v905_v25  ;;  %v1309_v44 = vpack.c.bf16 %v921_v26, %v921_v26  ;;  %v906_v47 = vmax.f32 %v874_v27, 0.0  ;;  %v647_v2 = vpop.f32.mrb[15].mxu0  ;;  %v711_v3 = vpop.f32.mrb[15].mxu1 }
 0x116   : > { %v922_v48 = vmax.f32 %v890_v28, 0.0  ;;  %1068 = vst.msk [vmem:[%s1653_s24 + $0x18] sm:$0xf] %vm1061_vm1, %v1295_v33  ;;  %1084 = vst.msk [vmem:[%s1653_s24 + $0x58] sm:$0xf] %vm1061_vm1, %v1311_v34  ;;  %v1296_v56 = vpack.c.bf16 %v908_v35, %v908_v35  ;;  %v733_v59 = vadd.f32 %v1657_v39, %v348_v17  ;;  %v749_v60 = vadd.f32 %v1659_v40, %v364_v22  ;;  %v351_v40 = vld [vmem:[#allocation2 + $0x68] sm:$0xff] }
 0x117   : > { %v1312_v57 = vpack.c.bf16 %v924_v36, %v924_v36  ;;  %1066 = vst.msk [vmem:[%s1653_s24 + $0x10] sm:$0xf] %vm1061_vm1, %v1293_v43  ;;  %1082 = vst.msk [vmem:[%s1653_s24 + $0x50] sm:$0xf] %vm1061_vm1, %v1309_v44  ;;  %v1294_v4 = vpack.c.bf16 %v906_v47, %v906_v47  ;;  %v731_v6 = vadd.f32 %v1661_v45, %v346_v23 }
 0x118   : > { %v1310_v5 = vpack.c.bf16 %v922_v48, %v922_v48  ;;  %v747_v39 = vadd.f32 %v1663_v46, %v362_v24  ;;  %1069 = vst.msk [vmem:[%s1653_s24 + $0x1c] sm:$0xf] %vm1061_vm1, %v1296_v56  ;;  %v734_v9 = vadd.f32 %v1665_v54, %v349_v29  ;;  %v750_v10 = vadd.f32 %v1667_v55, %v365_v30 }
 0x119   : > { %1085 = vst.msk [vmem:[%s1653_s24 + $0x5c] sm:$0xf] %vm1061_vm1, %v1312_v57  ;;  %v732_v11 = vadd.f32 %v1675_v63, %v347_v37  ;;  %v748_v45 = vadd.f32 %v1677_v0, %v363_v38  ;;  %1067 = vst.msk [vmem:[%s1653_s24 + $0x14] sm:$0xf] %vm1061_vm1, %v1294_v4  ;;  %v737_v46 = vadd.f32 %v1375_v31, %v352_v49 }
 0x11a   : > { %766 = vst.msk [vmem:[#allocation2 + $0x50] sm:$0xff] %vm305_vm0, %v733_v59  ;;  %782 = vst.msk [vmem:[#allocation2 + $0xd0] sm:$0xff] %vm305_vm0, %v749_v60  ;;  %v753_v12 = vadd.f32 %v1391_v32, %v368_v50  ;;  %v735_v13 = vadd.f32 %v644_v41, %v350_v61  ;;  %v751_v14 = vadd.f32 %v708_v42, %v366_v62 }
 0x11b   : > { %1083 = vst.msk [vmem:[%s1653_s24 + $0x54] sm:$0xf] %vm1061_vm1, %v1310_v5  ;;  %v738_v54 = vadd.f32 %v1376_v51, %v353_v1  ;;  %v754_v55 = vadd.f32 %v1392_v52, %v369_v7  ;;  %v736_v63 = vadd.f32 %v647_v2, %v351_v40  ;;  %v752_v0 = vadd.f32 %v711_v3, %v367_v8 }
 0x11c   : > { %764 = vst.msk [vmem:[#allocation2 + $0x40] sm:$0xff] %vm305_vm0, %v731_v6  ;;  %780 = vst.msk [vmem:[#allocation2 + $0xc0] sm:$0xff] %vm305_vm0, %v747_v39 }
 0x11d   : > { %767 = vst.msk [vmem:[#allocation2 + $0x58] sm:$0xff] %vm305_vm0, %v734_v9  ;;  %783 = vst.msk [vmem:[#allocation2 + $0xd8] sm:$0xff] %vm305_vm0, %v750_v10 }
 0x11e   : > { %765 = vst.msk [vmem:[#allocation2 + $0x48] sm:$0xff] %vm305_vm0, %v732_v11  ;;  %781 = vst.msk [vmem:[#allocation2 + $0xc8] sm:$0xff] %vm305_vm0, %v748_v45 }
 0x11f   : > { %770 = vst.msk [vmem:[#allocation2 + $0x70] sm:$0xff] %vm305_vm0, %v737_v46  ;;  %786 = vst.msk [vmem:[#allocation2 + $0xf0] sm:$0xff] %vm305_vm0, %v753_v12 }
 0x120   : > { %768 = vst.msk [vmem:[#allocation2 + $0x60] sm:$0xff] %vm305_vm0, %v735_v13  ;;  %784 = vst.msk [vmem:[#allocation2 + $0xe0] sm:$0xff] %vm305_vm0, %v751_v14 }
 0x121   : > { %771 = vst.msk [vmem:[#allocation2 + $0x78] sm:$0xff] %vm305_vm0, %v738_v54  ;;  %787 = vst.msk [vmem:[#allocation2 + $0xf8] sm:$0xff] %vm305_vm0, %v754_v55  ;;  %v801_v15 = vld [vmem:[#allocation2 + $0x50] sm:$0xff] }
 0x122   : > { %769 = vst.msk [vmem:[#allocation2 + $0x68] sm:$0xff] %vm305_vm0, %v736_v63  ;;  %785 = vst.msk [vmem:[#allocation2 + $0xe8] sm:$0xff] %vm305_vm0, %v752_v0  ;;  %v817_v16 = vld [vmem:[#allocation2 + $0xd0] sm:$0xff]  ;;  %v840_v17 = vmul.f32 %v1619_v53, %v801_v15 }
 0x123   : > { %v856_v18 = vmul.f32 %v1619_v53, %v817_v16  ;;  %v799_v19 = vld [vmem:[#allocation2 + $0x40] sm:$0xff] }
 0x124   : > { %v815_v20 = vld [vmem:[#allocation2 + $0xc0] sm:$0xff]  ;;  %v838_v21 = vmul.f32 %v1619_v53, %v799_v19  ;;  %v802_v23 = vld [vmem:[#allocation2 + $0x58] sm:$0xff]  ;;  %v879_v26 = vadd.f32 %v1624_v58, %v840_v17 }
 0x125   : > { %v854_v22 = vmul.f32 %v1619_v53, %v815_v20  ;;  %v818_v24 = vld [vmem:[#allocation2 + $0xd8] sm:$0xff]  ;;  %v800_v25 = vld [vmem:[#allocation2 + $0x48] sm:$0xff]  ;;  %v895_v27 = vadd.f32 %v1624_v58, %v856_v18  ;;  %v841_v28 = vmul.f32 %v1619_v53, %v802_v23 }
 0x126   : > { %v857_v29 = vmul.f32 %v1619_v53, %v818_v24  ;;  %v816_v30 = vld [vmem:[#allocation2 + $0xc8] sm:$0xff]  ;;  %v877_v31 = vadd.f32 %v1624_v58, %v838_v21  ;;  %v839_v33 = vmul.f32 %v1619_v53, %v800_v25  ;;  %v911_v35 = vmax.f32 %v879_v26, 0.0  ;;  %v805_v47 = vld [vmem:[#allocation2 + $0x70] sm:$0xff] }
 0x127   : > { %v893_v32 = vadd.f32 %v1624_v58, %v854_v22  ;;  %v855_v34 = vmul.f32 %v1619_v53, %v816_v30  ;;  %v927_v36 = vmax.f32 %v895_v27, 0.0  ;;  %v880_v37 = vadd.f32 %v1624_v58, %v841_v28  ;;  %v821_v48 = vld [vmem:[#allocation2 + $0xf0] sm:$0xff]  ;;  %v803_v56 = vld [vmem:[#allocation2 + $0x60] sm:$0xff] }
 0x128   : > { %v896_v38 = vadd.f32 %v1624_v58, %v857_v29  ;;  %v909_v41 = vmax.f32 %v877_v31, 0.0  ;;  %v878_v43 = vadd.f32 %v1624_v58, %v839_v33  ;;  %v1299_v49 = vpack.c.bf16 %v911_v35, %v911_v35  ;;  %v819_v57 = vld [vmem:[#allocation2 + $0xe0] sm:$0xff]  ;;  %v806_v1 = vld [vmem:[#allocation2 + $0x78] sm:$0xff] }
 0x129   : > { %v925_v42 = vmax.f32 %v893_v32, 0.0  ;;  %v894_v44 = vadd.f32 %v1624_v58, %v855_v34  ;;  %v1315_v50 = vpack.c.bf16 %v927_v36, %v927_v36  ;;  %v912_v51 = vmax.f32 %v880_v37, 0.0  ;;  %v822_v2 = vld [vmem:[#allocation2 + $0xf8] sm:$0xff]  ;;  %v804_v39 = vld [vmem:[#allocation2 + $0x68] sm:$0xff] }
 0x12a   : > { %v928_v52 = vmax.f32 %v896_v38, 0.0  ;;  %v1297_v59 = vpack.c.bf16 %v909_v41, %v909_v41  ;;  %v910_v61 = vmax.f32 %v878_v43, 0.0  ;;  %1072 = vst.msk [vmem:[%s1653_s24 + $0x28] sm:$0xf] %vm1061_vm1, %v1299_v49  ;;  %v844_v5 = vmul.f32 %v1619_v53, %v805_v47  ;;  %v820_v7 = vld [vmem:[#allocation2 + $0xe8] sm:$0xff] }
 0x12b   : > { %v1313_v60 = vpack.c.bf16 %v925_v42, %v925_v42  ;;  %v926_v62 = vmax.f32 %v894_v44, 0.0  ;;  %1088 = vst.msk [vmem:[%s1653_s24 + $0x68] sm:$0xf] %vm1061_vm1, %v1315_v50  ;;  %v1300_v3 = vpack.c.bf16 %v912_v51, %v912_v51  ;;  %v860_v6 = vmul.f32 %v1619_v53, %v821_v48 }
 0x12c   : > { %v1316_v4 = vpack.c.bf16 %v928_v52, %v928_v52  ;;  %1070 = vst.msk [vmem:[%s1653_s24 + $0x20] sm:$0xf] %vm1061_vm1, %v1297_v59  ;;  %v1298_v40 = vpack.c.bf16 %v910_v61, %v910_v61  ;;  %v842_v9 = vmul.f32 %v1619_v53, %v803_v56  ;;  %v858_v10 = vmul.f32 %v1619_v53, %v819_v57 }
 0x12d   : > { %1086 = vst.msk [vmem:[%s1653_s24 + $0x60] sm:$0xf] %vm1061_vm1, %v1313_v60  ;;  %v1314_v8 = vpack.c.bf16 %v926_v62, %v926_v62  ;;  %1073 = vst.msk [vmem:[%s1653_s24 + $0x2c] sm:$0xf] %vm1061_vm1, %v1300_v3  ;;  %v883_v11 = vadd.f32 %v1624_v58, %v844_v5  ;;  %v899_v45 = vadd.f32 %v1624_v58, %v860_v6 }
 0x12e   : > { %1089 = vst.msk [vmem:[%s1653_s24 + $0x6c] sm:$0xf] %vm1061_vm1, %v1316_v4  ;;  %v845_v46 = vmul.f32 %v1619_v53, %v806_v1  ;;  %v861_v12 = vmul.f32 %v1619_v53, %v822_v2  ;;  %1071 = vst.msk [vmem:[%s1653_s24 + $0x24] sm:$0xf] %vm1061_vm1, %v1298_v40  ;;  %v881_v13 = vadd.f32 %v1624_v58, %v842_v9 }
 0x12f   : > { %1087 = vst.msk [vmem:[%s1653_s24 + $0x64] sm:$0xf] %vm1061_vm1, %v1314_v8  ;;  %v897_v14 = vadd.f32 %v1624_v58, %v858_v10  ;;  %v843_v54 = vmul.f32 %v1619_v53, %v804_v39  ;;  %v859_v55 = vmul.f32 %v1619_v53, %v820_v7  ;;  %v915_v63 = vmax.f32 %v883_v11, 0.0 }
 0x130   : > { %v931_v0 = vmax.f32 %v899_v45, 0.0  ;;  %v884_v15 = vadd.f32 %v1624_v58, %v845_v46  ;;  %v900_v16 = vadd.f32 %v1624_v58, %v861_v12  ;;  %v913_v17 = vmax.f32 %v881_v13, 0.0 }
 0x131   : > { %v929_v18 = vmax.f32 %v897_v14, 0.0  ;;  %v882_v19 = vadd.f32 %v1624_v58, %v843_v54  ;;  %v898_v20 = vadd.f32 %v1624_v58, %v859_v55  ;;  %v1303_v21 = vpack.c.bf16 %v915_v63, %v915_v63 }
 0x132   : > { %v1319_v22 = vpack.c.bf16 %v931_v0, %v931_v0  ;;  %v916_v53 = vmax.f32 %v884_v15, 0.0  ;;  %v932_v23 = vmax.f32 %v900_v16, 0.0  ;;  %v1301_v24 = vpack.c.bf16 %v913_v17, %v913_v17 }
 0x133   : > { %v1317_v25 = vpack.c.bf16 %v929_v18, %v929_v18  ;;  %v914_v26 = vmax.f32 %v882_v19, 0.0  ;;  %v930_v27 = vmax.f32 %v898_v20, 0.0  ;;  %1076 = vst.msk [vmem:[%s1653_s24 + $0x38] sm:$0xf] %vm1061_vm1, %v1303_v21 }
 0x134   : > { %1092 = vst.msk [vmem:[%s1653_s24 + $0x78] sm:$0xf] %vm1061_vm1, %v1319_v22  ;;  %v1304_v28 = vpack.c.bf16 %v916_v53, %v916_v53  ;;  %v1320_v29 = vpack.c.bf16 %v932_v23, %v932_v23  ;;  %1074 = vst.msk [vmem:[%s1653_s24 + $0x30] sm:$0xf] %vm1061_vm1, %v1301_v24 }
 0x135   : > { %1090 = vst.msk [vmem:[%s1653_s24 + $0x70] sm:$0xf] %vm1061_vm1, %v1317_v25  ;;  %v1302_v58 = vpack.c.bf16 %v914_v26, %v914_v26  ;;  %v1318_v30 = vpack.c.bf16 %v930_v27, %v930_v27 }
 0x136   : > { %1077 = vst.msk [vmem:[%s1653_s24 + $0x3c] sm:$0xf] %vm1061_vm1, %v1304_v28  ;;  %1093 = vst.msk [vmem:[%s1653_s24 + $0x7c] sm:$0xf] %vm1061_vm1, %v1320_v29 }
 0x137   : > { %1075 = vst.msk [vmem:[%s1653_s24 + $0x34] sm:$0xf] %vm1061_vm1, %v1302_v58  ;;  %1091 = vst.msk [vmem:[%s1653_s24 + $0x74] sm:$0xf] %vm1061_vm1, %v1318_v30 }
 0x138 PF: > { %s14_s17 = sadd.s32 1, %s1480_s17   ;;  %s1823_s15 = smov %s1476_s16 }
 0x139   : > { %p11_p5 = scmp.ge.s32.totalorder %s14_s17, 35   ;;  %s1824_s16 = smov %s1826_s18 }
 0x13b   :  { %13 = sbr.rel (!%p11_p5) target bundleno = 2 (0x2), region = 83 }

// kernel: forward.6
= control target key start
LH: loop header
LB: loop body
LE: loop exit
PB: predicated region body
PF: predicated region fallthrough
CT: control target
= control target key end

     0   :  { %s3660_s15 = smov 0   ;;  %s3662_s16 = smov 0   ;;  %s4354_s0 = inlined_call_operand.vmem [shape: bf16[2048,1024], index: 0, kind: input, shape index: {}]   ;;  %s4355_s1 = inlined_call_operand.vmem [shape: bf16[1024,64], index: 1, kind: input, shape index: {}]   ;;  %s4356_s2 = inlined_call_operand.vmem [shape: f32[1,64], index: 2, kind: input, shape index: {}]   ;;  %s4357_s3 = inlined_call_operand.vmem [shape: f32[1,64], index: 3, kind: input, shape index: {}]   ;;  %s4358_s4 = inlined_call_operand.vmem [shape: bf16[2048,64], index: 4, kind: output, shape index: {}]  }
   0x1   :  { %s3664_s17 = smov 0  }
   0x2 LB: > { %s33_s18 = sadd.s32 1, %s3628_s16  ;;  %p2806_p0 = scmp.ge.s32.totalorder %s3632_s17, 1  ;;  %s3632_s17 = sphi %s3664_s17, %s14_s17   ;;  %s3628_s16 = sphi %s3662_s16, %s4360_s16   ;;  %s3624_s15 = sphi %s3660_s15, %s4359_s15  }
   0x3   : > { %p35_p1 = scmp.ge.s32.totalorder %s33_s18, 8  ;;  %p224_p2 = scmp.lt.s32.totalorder %s3632_s17, 9 }
   0x5   : > { %s4362_s18 = smov (%p35_p1, %s33_s18), 0  ;;  %p225_p3 = pnand %p2806_p0, %p224_p2 }
   0x6   : > { %v3546_v0 = vld [vmem:[%s4355_s1 + $0x40] sm:$0xff] (!%p225_p3)   ;;  %v3550_v4 = vld [vmem:[%s4355_s1 + $0x48] sm:$0xff] (!%p225_p3)   ;;  %v3554_v8 = vld [vmem:[%s4355_s1 + $0x50] sm:$0xff] (!%p225_p3)   ;;  %s2807_s29 = sshll.u32 (!%p225_p3), %s3624_s15, 5  ;;  %vm313_vm0 = vcmask (!%p225_p3), 523264   ;;  %vm2640_vm1 = vcmask (!%p225_p3), 519168  }
   0x7   : > { %228 = sbr.rel (%p225_p3) target bundleno = 529 (0x211), region = 36  ;;  %v3547_v1 = vld [vmem:[%s4355_s1 + $0xc0] sm:$0xff] (!%p225_p3)   ;;  %3073 = vmatprep.subr.bf16.mxu0 (!%p225_p3), %v3546_v0  ;;  %v3551_v5 = vld [vmem:[%s4355_s1 + $0xc8] sm:$0xff] (!%p225_p3)   ;;  %v3555_v9 = vld [vmem:[%s4355_s1 + $0xd0] sm:$0xff] (!%p225_p3)   ;;  %p274_p4 = scmp.lt.s32.totalorder (!%p225_p3), %s2807_s29, 255 }
   0x8   : > { %v3548_v2 = vld [vmem:[%s4355_s1] sm:$0xff] (!%p225_p3)   ;;  %3185 = vmatprep.subr.bf16.mxu1 (!%p225_p3), %v3547_v1  ;;  %v3552_v6 = vld [vmem:[%s4355_s1 + $0x8] sm:$0xff] (!%p225_p3)   ;;  %v3556_v10 = vld [vmem:[%s4355_s1 + $0x10] sm:$0xff] (!%p225_p3)  }
   0x9   : > { %v3549_v3 = vld [vmem:[%s4355_s1 + $0x80] sm:$0xff] (!%p225_p3)   ;;  %3074 = vmatpush3.bf16.msra.mxu0 (!%p225_p3), %v3548_v2  ;;  %v3553_v7 = vld [vmem:[%s4355_s1 + $0x88] sm:$0xff] (!%p225_p3)   ;;  %v3557_v11 = vld [vmem:[%s4355_s1 + $0x90] sm:$0xff] (!%p225_p3)  }
   0xa   : > { %3186 = vmatpush3.bf16.msra.mxu1 (!%p225_p3), %v3549_v3  ;;  %3075 = vmatprep.subr.bf16.mxu0 (!%p225_p3), %v3550_v4  ;;  %v3558_v12 = vld [vmem:[%s4355_s1 + $0x58] sm:$0xff] (!%p225_p3)   ;;  %v3562_v16 = vld [vmem:[%s4355_s1 + $0x60] sm:$0xff] (!%p225_p3)   ;;  %v3566_v20 = vld [vmem:[%s4355_s1 + $0x68] sm:$0xff] (!%p225_p3)  }
   0xb   : > { %3187 = vmatprep.subr.bf16.mxu1 (!%p225_p3), %v3551_v5  ;;  %v3559_v13 = vld [vmem:[%s4355_s1 + $0xd8] sm:$0xff] (!%p225_p3)   ;;  %v3563_v17 = vld [vmem:[%s4355_s1 + $0xe0] sm:$0xff] (!%p225_p3)   ;;  %v3567_v21 = vld [vmem:[%s4355_s1 + $0xe8] sm:$0xff] (!%p225_p3)  }
   0xc   : > { %v3560_v14 = vld [vmem:[%s4355_s1 + $0x18] sm:$0xff] (!%p225_p3)   ;;  %v3564_v18 = vld [vmem:[%s4355_s1 + $0x20] sm:$0xff] (!%p225_p3)   ;;  %v3568_v22 = vld [vmem:[%s4355_s1 + $0x28] sm:$0xff] (!%p225_p3)  }
   0xd   : > { %3076 = vmatpush3.bf16.msra.mxu0 (!%p225_p3), %v3552_v6  ;;  %v3561_v15 = vld [vmem:[%s4355_s1 + $0x98] sm:$0xff] (!%p225_p3)   ;;  %v3565_v19 = vld [vmem:[%s4355_s1 + $0xa0] sm:$0xff] (!%p225_p3)   ;;  %v3569_v23 = vld [vmem:[%s4355_s1 + $0xa8] sm:$0xff] (!%p225_p3)  }
   0xe   : > { %3188 = vmatpush3.bf16.msra.mxu1 %v3553_v7  ;;  %3077 = vmatprep.subr.bf16.mxu0 %v3554_v8  ;;  %s4364_s29 = smov (!%p274_p4, %s2807_s29), 255  ;;  %v3570_v24 = vld [vmem:[%s4355_s1 + $0x70] sm:$0xff]   ;;  %v3574_v28 = vld [vmem:[%s4355_s1 + $0x78] sm:$0xff]   ;;  %v3578_v40 = vld [vmem:[%s4355_s1 + $0x140] sm:$0xff]  }
   0xf   : > { %3189 = vmatprep.subr.bf16.mxu1 %v3555_v9  ;;  %v3571_v25 = vld [vmem:[%s4355_s1 + $0xf0] sm:$0xff]   ;;  %s3040_s30 = sshll.u32 %s4364_s29, 5  ;;  %v3575_v29 = vld [vmem:[%s4355_s1 + $0xf8] sm:$0xff]   ;;  %v3579_v41 = vld [vmem:[%s4355_s1 + $0x100] sm:$0xff]   ;;  %s2811_s25 = sshll.u32 %s4364_s29, 2 }
  0x10   : > { %v3572_v26 = vld [vmem:[%s4355_s1 + $0x30] sm:$0xff]   ;;  %s3777_s12 = scalar_lea.vmem %s4354_s0, %s3040_s30  ;;  %v3576_v30 = vld [vmem:[%s4355_s1 + $0x38] sm:$0xff]   ;;  %v3580_v42 = vld [vmem:[%s4355_s1 + $0x1c0] sm:$0xff]   ;;  %s4165_s27 = scalar_lea.vmem %s4358_s4, %s2811_s25 }
  0x11   : > { %3078 = vmatpush3.bf16.msra.mxu0 %v3556_v10  ;;  %v3573_v27 = vld [vmem:[%s4355_s1 + $0xb0] sm:$0xff]   ;;  %v3577_v31 = vld [vmem:[%s4355_s1 + $0xb8] sm:$0xff]   ;;  %v378_v32 = vld [vmem:[%s3777_s12] sm:$0xff] }
  0x12   : > { %3190 = vmatpush3.bf16.msra.mxu1 %v3557_v11  ;;  %3079 = vmatprep.subr.bf16.mxu0 %v3558_v12  ;;  %v382_v33 = vld [vmem:[%s3777_s12 + $0x20] sm:$0xff]  ;;  %v379_v34 = vld [vmem:[%s3777_s12 + $0x8] sm:$0xff]  ;;  %v3586_v2 = vld [vmem:[%s4355_s1 + $0x150] sm:$0xff]  }
  0x13   : > { %3191 = vmatprep.subr.bf16.mxu1 %v3559_v13  ;;  %v2812_v35 = vcombine.low %v378_v32, %v382_v33  ;;  %v2813_v36 = vcombine.high %v378_v32, %v382_v33  ;;  %v383_v37 = vld [vmem:[%s3777_s12 + $0x28] sm:$0xff]  ;;  %v3581_v43 = vld [vmem:[%s4355_s1 + $0x180] sm:$0xff]   ;;  %v3587_v4 = vld [vmem:[%s4355_s1 + $0x110] sm:$0xff]  }
  0x14   : > { %v2814_v38 = vcombine.low %v379_v34, %v383_v37  ;;  %v2815_v39 = vcombine.high %v379_v34, %v383_v37  ;;  %v386_v44 = vld [vmem:[%s3777_s12 + $0x40] sm:$0xff]  ;;  %v387_v47 = vld [vmem:[%s3777_s12 + $0x48] sm:$0xff]  ;;  %v3588_v7 = vld [vmem:[%s4355_s1 + $0x1d0] sm:$0xff]  }
  0x15   : > { %3080 = vmatpush3.bf16.msra.mxu0 %v3560_v14  ;;  %1690 = vmatprep.mubr.bf16.mxu0 %v2813_v36  ;;  %v390_v45 = vld [vmem:[%s3777_s12 + $0x60] sm:$0xff]  ;;  %v391_v48 = vld [vmem:[%s3777_s12 + $0x68] sm:$0xff]  ;;  %v3589_v9 = vld [vmem:[%s4355_s1 + $0x190] sm:$0xff]  }
  0x16   : > { %3192 = vmatpush3.bf16.msra.mxu1 %v3561_v15  ;;  %3081 = vmatprep.subr.bf16.mxu0 %v3562_v16  ;;  %v2821_v46 = vcombine.high %v386_v44, %v390_v45  ;;  %v394_v49 = vld [vmem:[%s3777_s12 + $0x80] sm:$0xff]  ;;  %v2823_v50 = vcombine.high %v387_v47, %v391_v48  ;;  %v395_v52 = vld [vmem:[%s3777_s12 + $0x88] sm:$0xff]  ;;  %v2820_v54 = vcombine.low %v386_v44, %v390_v45  ;;  %v3590_v14 = vld [vmem:[%s4355_s1 + $0x158] sm:$0xff]  }
  0x17   : > { %3193 = vmatprep.subr.bf16.mxu1 %v3563_v17  ;;  %1851 = vmatprep.mubr.bf16.mxu1 %v2815_v39  ;;  %v398_v51 = vld [vmem:[%s3777_s12 + $0xa0] sm:$0xff]  ;;  %v399_v53 = vld [vmem:[%s3777_s12 + $0xa8] sm:$0xff]  ;;  %v2822_v56 = vcombine.low %v387_v47, %v391_v48  ;;  %v3591_v15 = vld [vmem:[%s4355_s1 + $0x118] sm:$0xff]  }
  0x18   : > { %v3582_v55 = vld [vmem:[%s4355_s1 + $0x148] sm:$0xff]   ;;  %v2829_v57 = vcombine.high %v394_v49, %v398_v51  ;;  %v2831_v59 = vcombine.high %v395_v52, %v399_v53  ;;  %v402_v62 = vld [vmem:[%s3777_s12 + $0xc0] sm:$0xff]  ;;  %v2828_v3 = vcombine.low %v394_v49, %v398_v51  ;;  %v2830_v5 = vcombine.low %v395_v52, %v399_v53  ;;  %v3592_v17 = vld [vmem:[%s4355_s1 + $0x1d8] sm:$0xff]  }
  0x19   : > { %3082 = vmatpush3.bf16.msra.mxu0 %v3564_v18  ;;  %v3583_v58 = vld [vmem:[%s4355_s1 + $0x108] sm:$0xff]   ;;  %v406_v63 = vld [vmem:[%s3777_s12 + $0xe0] sm:$0xff]  ;;  %v3603_v47 = vld [vmem:[%s4355_s1 + $0x130] sm:$0xff]  }
  0x1a   : > { %3194 = vmatpush3.bf16.msra.mxu1 %v3565_v19  ;;  %3083 = vmatprep.subr.bf16.mxu0 %v3566_v20  ;;  %v3584_v60 = vld [vmem:[%s4355_s1 + $0x1c8] sm:$0xff]   ;;  %v2837_v6 = vcombine.high %v402_v62, %v406_v63  ;;  %v410_v10 = vld [vmem:[%s3777_s12 + $0x100] sm:$0xff]  ;;  %v2836_v16 = vcombine.low %v402_v62, %v406_v63  ;;  %v3593_v20 = vld [vmem:[%s4355_s1 + $0x198] sm:$0xff]  }
  0x1b   : > { %3195 = vmatprep.subr.bf16.mxu1 %v3567_v21  ;;  %v3585_v61 = vld [vmem:[%s4355_s1 + $0x188] sm:$0xff]   ;;  %v414_v11 = vld [vmem:[%s3777_s12 + $0x120] sm:$0xff]  ;;  %v3604_v48 = vld [vmem:[%s4355_s1 + $0x1f0] sm:$0xff]  }
  0x1c   : > { %v403_v0 = vld [vmem:[%s3777_s12 + $0xc8] sm:$0xff]  ;;  %v2845_v19 = vcombine.high %v410_v10, %v414_v11  ;;  %v3605_v49 = vld [vmem:[%s4355_s1 + $0x1b0] sm:$0xff]   ;;  %v438_v51 = vld [vmem:[%s3777_s12 + $0x1e0] sm:$0xff] }
  0x1d   : > { %3084 = vmatpush3.bf16.msra.mxu0 %v3568_v22  ;;  %v407_v1 = vld [vmem:[%s3777_s12 + $0xe8] sm:$0xff]  ;;  %v418_v22 = vld [vmem:[%s3777_s12 + $0x140] sm:$0xff] }
  0x1e   : > { %3196 = vmatpush3.bf16.msra.mxu1 %v3569_v23  ;;  %3085 = vmatprep.subr.bf16.mxu0 %v3570_v24  ;;  %v2839_v8 = vcombine.high %v403_v0, %v407_v1  ;;  %v411_v12 = vld [vmem:[%s3777_s12 + $0x108] sm:$0xff]  ;;  %v2838_v18 = vcombine.low %v403_v0, %v407_v1  ;;  %v422_v23 = vld [vmem:[%s3777_s12 + $0x160] sm:$0xff] }
  0x1f   : > { %3197 = vmatprep.subr.bf16.mxu1 %v3571_v25  ;;  %v415_v13 = vld [vmem:[%s3777_s12 + $0x128] sm:$0xff]  ;;  %v3594_v24 = vld [vmem:[%s4355_s1 + $0x160] sm:$0xff]   ;;  %v2853_v32 = vcombine.high %v418_v22, %v422_v23 }
  0x20   : > { %v2847_v21 = vcombine.high %v411_v12, %v415_v13  ;;  %v419_v25 = vld [vmem:[%s3777_s12 + $0x148] sm:$0xff]  ;;  %v442_v62 = vld [vmem:[%s3777_s12 + $0x200] sm:$0xff] }
  0x21   : > { %3086 = vmatpush3.bf16.msra.mxu0 %v3572_v26  ;;  %v423_v26 = vld [vmem:[%s3777_s12 + $0x168] sm:$0xff]  ;;  %v446_v63 = vld [vmem:[%s3777_s12 + $0x220] sm:$0xff] }
  0x22   : > { %3198 = vmatpush3.bf16.msra.mxu1 %v3573_v27  ;;  %3087 = vmatprep.subr.bf16.mxu0 %v3574_v28  ;;  %v3595_v27 = vld [vmem:[%s4355_s1 + $0x120] sm:$0xff]   ;;  %v2855_v33 = vcombine.high %v419_v25, %v423_v26  ;;  %v3598_v34 = vld [vmem:[%s4355_s1 + $0x168] sm:$0xff]  }
  0x23   : > { %3199 = vmatprep.subr.bf16.mxu1 %v3575_v29  ;;  %v3596_v28 = vld [vmem:[%s4355_s1 + $0x1e0] sm:$0xff]   ;;  %v3599_v36 = vld [vmem:[%s4355_s1 + $0x128] sm:$0xff]  }
  0x24   : > { %v3597_v29 = vld [vmem:[%s4355_s1 + $0x1a0] sm:$0xff]   ;;  %v3600_v37 = vld [vmem:[%s4355_s1 + $0x1e8] sm:$0xff]  }
  0x25   : > { %3088 = vmatpush3.bf16.msra.mxu0 %v3576_v30  ;;  %v2844_v30 = vcombine.low %v410_v10, %v414_v11  ;;  %v3601_v39 = vld [vmem:[%s4355_s1 + $0x1a8] sm:$0xff]   ;;  %v2876_v10 = vcombine.low %v442_v62, %v446_v63 }
  0x26   : > { %3200 = vmatpush3.bf16.msra.mxu1 %v3577_v31  ;;  %3297 = vmatprep.subr.bf16.mxu0 %v3578_v40  ;;  %v2846_v31 = vcombine.low %v411_v12, %v415_v13  ;;  %v427_v40 = vld [vmem:[%s3777_s12 + $0x188] sm:$0xff] }
  0x27   : > { %3409 = vmatprep.subr.bf16.mxu1 %v3580_v42  ;;  %v2852_v42 = vcombine.low %v418_v22, %v422_v23  ;;  %v435_v52 = vld [vmem:[%s3777_s12 + $0x1c8] sm:$0xff]  ;;  %v466_v22 = vld [vmem:[%s3777_s12 + $0x2c0] sm:$0xff] }
  0x28   : > { %1691 = vmatmul.mubr.bf16.vlgmr.msra.gmra.mrb[0].mxu0 %v2812_v35  ;;  %v426_v35 = vld [vmem:[%s3777_s12 + $0x180] sm:$0xff]  ;;  %v439_v53 = vld [vmem:[%s3777_s12 + $0x1e8] sm:$0xff] }
  0x29   : > { %1852 = vmatmul.mubr.bf16.vlgmr.msra.gmra.mrb[0].mxu1 %v2814_v38  ;;  %3298 = vmatpush3.bf16.msra.mxu0 %v3579_v41  ;;  %v430_v38 = vld [vmem:[%s3777_s12 + $0x1a0] sm:$0xff]  ;;  %v431_v41 = vld [vmem:[%s3777_s12 + $0x1a8] sm:$0xff] }
  0x2a   : > { %3410 = vmatpush3.bf16.msra.mxu1 %v3581_v43  ;;  %1698 = vmatprep.mubr.bf16.mxu0 %v2821_v46  ;;  %v2854_v43 = vcombine.low %v419_v25, %v423_v26  ;;  %v2861_v44 = vcombine.high %v426_v35, %v430_v38  ;;  %v2863_v45 = vcombine.high %v427_v40, %v431_v41  ;;  %v3602_v46 = vld [vmem:[%s4355_s1 + $0x170] sm:$0xff]   ;;  %v443_v0 = vld [vmem:[%s3777_s12 + $0x208] sm:$0xff]  ;;  %v470_v23 = vld [vmem:[%s3777_s12 + $0x2e0] sm:$0xff] }
  0x2b   : > { %1859 = vmatprep.mubr.bf16.mxu1 %v2823_v50  ;;  %3299 = vmatprep.subr.bf16.mxu0 %v3582_v55  ;;  %v434_v50 = vld [vmem:[%s3777_s12 + $0x1c0] sm:$0xff]  ;;  %v3606_v55 = vld [vmem:[%s4355_s1 + $0x178] sm:$0xff]   ;;  %v447_v1 = vld [vmem:[%s3777_s12 + $0x228] sm:$0xff] }
  0x2c   : > { %3411 = vmatprep.subr.bf16.mxu1 %v3584_v60  ;;  %v3608_v60 = vld [vmem:[%s4355_s1 + $0x1f8] sm:$0xff]   ;;  %v2878_v11 = vcombine.low %v443_v0, %v447_v1  ;;  %v471_v25 = vld [vmem:[%s3777_s12 + $0x2e8] sm:$0xff] }
  0x2d   : > { %3300 = vmatpush3.bf16.msra.mxu0 %v3583_v58  ;;  %v3607_v58 = vld [vmem:[%s4355_s1 + $0x138] sm:$0xff]  }
  0x2e   : > { %3412 = vmatpush3.bf16.msra.mxu1 %v3585_v61  ;;  %3301 = vmatprep.subr.bf16.mxu0 %v3586_v2  ;;  %v3609_v61 = vld [vmem:[%s4355_s1 + $0x1b8] sm:$0xff]   ;;  %v2868_v2 = vcombine.low %v434_v50, %v438_v51 }
  0x2f   : > { %3413 = vmatprep.subr.bf16.mxu1 %v3588_v7  ;;  %v454_v7 = vld [vmem:[%s3777_s12 + $0x260] sm:$0xff] }
  0x30   : > { %1699 = vmatmul.mubr.bf16.gmra.mrb[4].mxu0 %v2820_v54  ;;  %v2860_v54 = vcombine.low %v426_v35, %v430_v38  ;;  %v482_v38 = vld [vmem:[%s3777_s12 + $0x340] sm:$0xff] }
  0x31   : > { %1860 = vmatmul.mubr.bf16.gmra.mrb[4].mxu1 %v2822_v56  ;;  %1706 = vmatprep.mubr.bf16.mxu0 %v2829_v57  ;;  %v2862_v56 = vcombine.low %v427_v40, %v431_v41  ;;  %v2869_v57 = vcombine.high %v434_v50, %v438_v51  ;;  %v483_v40 = vld [vmem:[%s3777_s12 + $0x348] sm:$0xff] }
  0x32   : > { %1867 = vmatprep.mubr.bf16.mxu1 %v2831_v59  ;;  %3302 = vmatpush3.bf16.msra.mxu0 %v3587_v4  ;;  %v2871_v59 = vcombine.high %v435_v52, %v439_v53  ;;  %v2877_v4 = vcombine.high %v442_v62, %v446_v63  ;;  %v487_v41 = vld [vmem:[%s3777_s12 + $0x368] sm:$0xff]  ;;  %v380_v62 = vld [vmem:[%s3777_s12 + $0x10] sm:$0xff] }
  0x33   : > { %3414 = vmatpush3.bf16.msra.mxu1 %v3589_v9  ;;  %3303 = vmatprep.subr.bf16.mxu0 %v3590_v14  ;;  %v455_v9 = vld [vmem:[%s3777_s12 + $0x268] sm:$0xff]  ;;  %v458_v14 = vld [vmem:[%s3777_s12 + $0x280] sm:$0xff]  ;;  %v2918_v51 = vcombine.low %v483_v40, %v487_v41  ;;  %v384_v63 = vld [vmem:[%s3777_s12 + $0x30] sm:$0xff] }
  0x34   : > { %3415 = vmatprep.subr.bf16.mxu1 %v3592_v17  ;;  %v463_v17 = vld [vmem:[%s3777_s12 + $0x2a8] sm:$0xff] }
  0x36   : > { %3304 = vmatpush3.bf16.msra.mxu0 %v3591_v15  ;;  %v462_v15 = vld [vmem:[%s3777_s12 + $0x2a0] sm:$0xff] }
  0x37   : > { %3416 = vmatpush3.bf16.msra.mxu1 %v3593_v20  ;;  %3305 = vmatprep.subr.bf16.mxu0 %v3594_v24  ;;  %v2893_v20 = vcombine.high %v458_v14, %v462_v15  ;;  %v467_v24 = vld [vmem:[%s3777_s12 + $0x2c8] sm:$0xff]  ;;  %v2892_v26 = vcombine.low %v458_v14, %v462_v15  ;;  %v396_v14 = vld [vmem:[%s3777_s12 + $0x90] sm:$0xff] }
  0x38   : > { %1707 = vmatmul.mubr.bf16.gmra.mrb[8].mxu0 %v2828_v3  ;;  %3417 = vmatprep.subr.bf16.mxu1 %v3596_v28  ;;  %v2870_v3 = vcombine.low %v435_v52, %v439_v53  ;;  %v2901_v28 = vcombine.high %v466_v22, %v470_v23  ;;  %v2902_v35 = vcombine.low %v467_v24, %v471_v25  ;;  %v400_v15 = vld [vmem:[%s3777_s12 + $0xb0] sm:$0xff] }
  0x39   : > { %1868 = vmatmul.mubr.bf16.gmra.mrb[8].mxu1 %v2830_v5  ;;  %1714 = vmatprep.mubr.bf16.mxu0 %v2837_v6  ;;  %v2879_v5 = vcombine.high %v443_v0, %v447_v1  ;;  %v450_v6 = vld [vmem:[%s3777_s12 + $0x240] sm:$0xff]  ;;  %v381_v0 = vld [vmem:[%s3777_s12 + $0x18] sm:$0xff] }
  0x3a   : > { %1875 = vmatprep.mubr.bf16.mxu1 %v2839_v8  ;;  %3306 = vmatpush3.bf16.msra.mxu0 %v3595_v27  ;;  %v451_v8 = vld [vmem:[%s3777_s12 + $0x248] sm:$0xff]  ;;  %v2885_v12 = vcombine.high %v450_v6, %v454_v7  ;;  %v385_v1 = vld [vmem:[%s3777_s12 + $0x38] sm:$0xff] }
  0x3b   : > { %3418 = vmatpush3.bf16.msra.mxu1 %v3597_v29  ;;  %3307 = vmatprep.subr.bf16.mxu0 %v3598_v34  ;;  %v2887_v13 = vcombine.high %v451_v8, %v455_v9  ;;  %v2903_v29 = vcombine.high %v467_v24, %v471_v25  ;;  %v2900_v34 = vcombine.low %v466_v22, %v470_v23  ;;  %v404_v22 = vld [vmem:[%s3777_s12 + $0xd0] sm:$0xff]  ;;  %v405_v24 = vld [vmem:[%s3777_s12 + $0xd8] sm:$0xff] }
  0x3c   : > { %3419 = vmatprep.subr.bf16.mxu1 %v3600_v37  ;;  %v408_v23 = vld [vmem:[%s3777_s12 + $0xf0] sm:$0xff]  ;;  %v409_v25 = vld [vmem:[%s3777_s12 + $0xf8] sm:$0xff] }
  0x3e   : > { %3308 = vmatpush3.bf16.msra.mxu0 %v3599_v36 }
  0x3f   : > { %3420 = vmatpush3.bf16.msra.mxu1 %v3601_v39  ;;  %3309 = vmatprep.subr.bf16.mxu0 %v3602_v46  ;;  %v486_v39 = vld [vmem:[%s3777_s12 + $0x360] sm:$0xff] }
  0x40   : > { %1715 = vmatmul.mubr.bf16.gmra.mrb[12].mxu0 %v2836_v16  ;;  %3421 = vmatprep.subr.bf16.mxu1 %v3604_v48  ;;  %v459_v16 = vld [vmem:[%s3777_s12 + $0x288] sm:$0xff]  ;;  %v490_v46 = vld [vmem:[%s3777_s12 + $0x380] sm:$0xff]  ;;  %v2916_v50 = vcombine.low %v482_v38, %v486_v39 }
  0x41   : > { %1876 = vmatmul.mubr.bf16.gmra.mrb[12].mxu1 %v2838_v18  ;;  %1722 = vmatprep.mubr.bf16.mxu0 %v2845_v19  ;;  %v2884_v18 = vcombine.low %v450_v6, %v454_v7  ;;  %v2886_v19 = vcombine.low %v451_v8, %v455_v9  ;;  %v2894_v27 = vcombine.low %v459_v16, %v463_v17  ;;  %v491_v48 = vld [vmem:[%s3777_s12 + $0x388] sm:$0xff]  ;;  %v388_v6 = vld [vmem:[%s3777_s12 + $0x50] sm:$0xff]  ;;  %v389_v8 = vld [vmem:[%s3777_s12 + $0x58] sm:$0xff] }
  0x42   : > { %1883 = vmatprep.mubr.bf16.mxu1 %v2847_v21  ;;  %3310 = vmatpush3.bf16.msra.mxu0 %v3603_v47  ;;  %v2895_v21 = vcombine.high %v459_v16, %v463_v17  ;;  %v494_v47 = vld [vmem:[%s3777_s12 + $0x3a0] sm:$0xff]  ;;  %v392_v7 = vld [vmem:[%s3777_s12 + $0x70] sm:$0xff]  ;;  %v393_v9 = vld [vmem:[%s3777_s12 + $0x78] sm:$0xff] }
  0x43   : > { %3422 = vmatpush3.bf16.msra.mxu1 %v3605_v49  ;;  %3311 = vmatprep.subr.bf16.mxu0 %v3606_v55  ;;  %v495_v49 = vld [vmem:[%s3777_s12 + $0x3a8] sm:$0xff]  ;;  %v2925_v52 = vcombine.high %v490_v46, %v494_v47  ;;  %v502_v55 = vld [vmem:[%s3777_s12 + $0x3e0] sm:$0xff]  ;;  %v397_v16 = vld [vmem:[%s3777_s12 + $0x98] sm:$0xff] }
  0x44   : > { %3423 = vmatprep.subr.bf16.mxu1 %v3608_v60  ;;  %v2927_v53 = vcombine.high %v491_v48, %v495_v49  ;;  %v401_v17 = vld [vmem:[%s3777_s12 + $0xb8] sm:$0xff] }
  0x46   : > { %3312 = vmatpush3.bf16.msra.mxu0 %v3607_v58  ;;  %v2924_v58 = vcombine.low %v490_v46, %v494_v47  ;;  %v428_v46 = vld [vmem:[%s3777_s12 + $0x190] sm:$0xff] }
  0x47   : > { %3424 = vmatpush3.bf16.msra.mxu1 %v3609_v61  ;;  %v432_v47 = vld [vmem:[%s3777_s12 + $0x1b0] sm:$0xff] }
  0x48   : > { %1723 = vmatmul.mubr.bf16.gmra.mrb[16].mxu0 %v2844_v30  ;;  %v474_v30 = vld [vmem:[%s3777_s12 + $0x300] sm:$0xff] }
  0x49   : > { %1884 = vmatmul.mubr.bf16.gmra.mrb[16].mxu1 %v2846_v31  ;;  %1730 = vmatprep.mubr.bf16.mxu0 %v2853_v32  ;;  %v478_v31 = vld [vmem:[%s3777_s12 + $0x320] sm:$0xff]  ;;  %v475_v32 = vld [vmem:[%s3777_s12 + $0x308] sm:$0xff] }
  0x4a   : > { %1891 = vmatprep.mubr.bf16.mxu1 %v2855_v33  ;;  %v479_v33 = vld [vmem:[%s3777_s12 + $0x328] sm:$0xff]  ;;  %v2909_v36 = vcombine.high %v474_v30, %v478_v31 }
  0x4b   : > { %v2911_v37 = vcombine.high %v475_v32, %v479_v33 }
  0x50   : > { %1731 = vmatmul.mubr.bf16.gmra.mrb[20].mxu0 %v2852_v42  ;;  %v2908_v42 = vcombine.low %v474_v30, %v478_v31  ;;  %v412_v30 = vld [vmem:[%s3777_s12 + $0x110] sm:$0xff] }
  0x51   : > { %1892 = vmatmul.mubr.bf16.gmra.mrb[20].mxu1 %v2854_v43  ;;  %1738 = vmatprep.mubr.bf16.mxu0 %v2861_v44  ;;  %v2910_v43 = vcombine.low %v475_v32, %v479_v33  ;;  %v2917_v44 = vcombine.high %v482_v38, %v486_v39  ;;  %v416_v31 = vld [vmem:[%s3777_s12 + $0x130] sm:$0xff]  ;;  %v413_v32 = vld [vmem:[%s3777_s12 + $0x118] sm:$0xff] }
  0x52   : > { %1899 = vmatprep.mubr.bf16.mxu1 %v2863_v45  ;;  %v2919_v45 = vcombine.high %v483_v40, %v487_v41  ;;  %v417_v33 = vld [vmem:[%s3777_s12 + $0x138] sm:$0xff]  ;;  %v420_v38 = vld [vmem:[%s3777_s12 + $0x150] sm:$0xff] }
  0x53   : > { %v424_v39 = vld [vmem:[%s3777_s12 + $0x170] sm:$0xff]  ;;  %v421_v40 = vld [vmem:[%s3777_s12 + $0x158] sm:$0xff] }
  0x54   : > { %v425_v41 = vld [vmem:[%s3777_s12 + $0x178] sm:$0xff] }
  0x58   : > { %1739 = vmatmul.mubr.bf16.gmra.mrb[24].mxu0 %v2860_v54  ;;  %v498_v54 = vld [vmem:[%s3777_s12 + $0x3c0] sm:$0xff] }
  0x59   : > { %1900 = vmatmul.mubr.bf16.gmra.mrb[24].mxu1 %v2862_v56  ;;  %1746 = vmatprep.mubr.bf16.mxu0 %v2869_v57  ;;  %v499_v56 = vld [vmem:[%s3777_s12 + $0x3c8] sm:$0xff]  ;;  %v2933_v60 = vcombine.high %v498_v54, %v502_v55 }
  0x5a   : > { %1907 = vmatprep.mubr.bf16.mxu1 %v2871_v59  ;;  %v503_v57 = vld [vmem:[%s3777_s12 + $0x3e8] sm:$0xff]  ;;  %v2926_v59 = vcombine.low %v491_v48, %v495_v49  ;;  %v429_v48 = vld [vmem:[%s3777_s12 + $0x198] sm:$0xff] }
  0x5b   : > { %v2935_v61 = vcombine.high %v499_v56, %v503_v57  ;;  %v433_v49 = vld [vmem:[%s3777_s12 + $0x1b8] sm:$0xff] }
  0x60   : > { %1747 = vmatmul.mubr.bf16.gmra.mrb[28].mxu0 %v2868_v2  ;;  %v2932_v2 = vcombine.low %v498_v54, %v502_v55  ;;  %v436_v54 = vld [vmem:[%s3777_s12 + $0x1d0] sm:$0xff] }
  0x61   : > { %1908 = vmatmul.mubr.bf16.gmra.mrb[28].mxu1 %v2870_v3  ;;  %1754 = vmatprep.mubr.bf16.mxu0 %v2877_v4  ;;  %v2934_v3 = vcombine.low %v499_v56, %v503_v57  ;;  %v2817_v4 = vcombine.high %v380_v62, %v384_v63  ;;  %v440_v55 = vld [vmem:[%s3777_s12 + $0x1f0] sm:$0xff]  ;;  %v437_v56 = vld [vmem:[%s3777_s12 + $0x1d8] sm:$0xff] }
  0x62   : > { %1915 = vmatprep.mubr.bf16.mxu1 %v2879_v5  ;;  %v2819_v5 = vcombine.high %v381_v0, %v385_v1  ;;  %v441_v57 = vld [vmem:[%s3777_s12 + $0x1f8] sm:$0xff] }
  0x68   : > { %1755 = vmatmul.mubr.bf16.gmra.mrb[32].mxu0 %v2876_v10  ;;  %v2816_v10 = vcombine.low %v380_v62, %v384_v63  ;;  %v444_v62 = vld [vmem:[%s3777_s12 + $0x210] sm:$0xff] }
  0x69   : > { %1916 = vmatmul.mubr.bf16.gmra.mrb[32].mxu1 %v2878_v11  ;;  %1762 = vmatprep.mubr.bf16.mxu0 %v2885_v12  ;;  %v2818_v11 = vcombine.low %v381_v0, %v385_v1  ;;  %v2825_v12 = vcombine.high %v388_v6, %v392_v7  ;;  %v448_v63 = vld [vmem:[%s3777_s12 + $0x230] sm:$0xff]  ;;  %v445_v0 = vld [vmem:[%s3777_s12 + $0x218] sm:$0xff] }
  0x6a   : > { %1923 = vmatprep.mubr.bf16.mxu1 %v2887_v13  ;;  %v2827_v13 = vcombine.high %v389_v8, %v393_v9  ;;  %v449_v1 = vld [vmem:[%s3777_s12 + $0x238] sm:$0xff] }
  0x70   : > { %1763 = vmatmul.mubr.bf16.gmra.mrb[36].mxu0 %v2884_v18  ;;  %v2824_v18 = vcombine.low %v388_v6, %v392_v7  ;;  %v452_v6 = vld [vmem:[%s3777_s12 + $0x250] sm:$0xff] }
  0x71   : > { %1924 = vmatmul.mubr.bf16.gmra.mrb[36].mxu1 %v2886_v19  ;;  %1770 = vmatprep.mubr.bf16.mxu0 %v2893_v20  ;;  %v2826_v19 = vcombine.low %v389_v8, %v393_v9  ;;  %v2833_v20 = vcombine.high %v396_v14, %v400_v15  ;;  %v456_v7 = vld [vmem:[%s3777_s12 + $0x270] sm:$0xff]  ;;  %v453_v8 = vld [vmem:[%s3777_s12 + $0x258] sm:$0xff] }
  0x72   : > { %1931 = vmatprep.mubr.bf16.mxu1 %v2895_v21  ;;  %v2835_v21 = vcombine.high %v397_v16, %v401_v17  ;;  %v457_v9 = vld [vmem:[%s3777_s12 + $0x278] sm:$0xff] }
  0x78   : > { %1771 = vmatmul.mubr.bf16.gmra.mrb[40].mxu0 %v2892_v26  ;;  %v2832_v26 = vcombine.low %v396_v14, %v400_v15  ;;  %v460_v14 = vld [vmem:[%s3777_s12 + $0x290] sm:$0xff] }
  0x79   : > { %1932 = vmatmul.mubr.bf16.gmra.mrb[40].mxu1 %v2894_v27  ;;  %1778 = vmatprep.mubr.bf16.mxu0 %v2901_v28  ;;  %v2834_v27 = vcombine.low %v397_v16, %v401_v17  ;;  %v2841_v28 = vcombine.high %v404_v22, %v408_v23  ;;  %v464_v15 = vld [vmem:[%s3777_s12 + $0x2b0] sm:$0xff]  ;;  %v461_v16 = vld [vmem:[%s3777_s12 + $0x298] sm:$0xff] }
  0x7a   : > { %1939 = vmatprep.mubr.bf16.mxu1 %v2903_v29  ;;  %v2843_v29 = vcombine.high %v405_v24, %v409_v25  ;;  %v465_v17 = vld [vmem:[%s3777_s12 + $0x2b8] sm:$0xff] }
  0x80   : > { %1779 = vmatmul.mubr.bf16.gmra.mrb[44].mxu0 %v2900_v34  ;;  %v2840_v34 = vcombine.low %v404_v22, %v408_v23  ;;  %v3990_v22 = vld [vmem:[%s3777_s12 + $0x2d0] sm:$0xff] }
  0x81   : > { %1940 = vmatmul.mubr.bf16.gmra.mrb[44].mxu1 %v2902_v35  ;;  %1786 = vmatprep.mubr.bf16.mxu0 %v2909_v36  ;;  %v2842_v35 = vcombine.low %v405_v24, %v409_v25  ;;  %v2849_v36 = vcombine.high %v412_v30, %v416_v31  ;;  %v3993_v23 = vld [vmem:[%s3777_s12 + $0x2f0] sm:$0xff]  ;;  %v3996_v24 = vld [vmem:[%s3777_s12 + $0x2d8] sm:$0xff] }
  0x82   : > { %1947 = vmatprep.mubr.bf16.mxu1 %v2911_v37  ;;  %v2851_v37 = vcombine.high %v413_v32, %v417_v33  ;;  %v3999_v25 = vld [vmem:[%s3777_s12 + $0x2f8] sm:$0xff] }
  0x88   : > { %1787 = vmatmul.mubr.bf16.gmra.mrb[48].mxu0 %v2908_v42  ;;  %v2848_v42 = vcombine.low %v412_v30, %v416_v31  ;;  %v4006_v30 = vld [vmem:[%s3777_s12 + $0x310] sm:$0xff] }
  0x89   : > { %1948 = vmatmul.mubr.bf16.gmra.mrb[48].mxu1 %v2910_v43  ;;  %1794 = vmatprep.mubr.bf16.mxu0 %v2917_v44  ;;  %v2850_v43 = vcombine.low %v413_v32, %v417_v33  ;;  %v2857_v44 = vcombine.high %v420_v38, %v424_v39  ;;  %v4009_v31 = vld [vmem:[%s3777_s12 + $0x330] sm:$0xff]  ;;  %v4012_v33 = vld [vmem:[%s3777_s12 + $0x318] sm:$0xff] }
  0x8a   : > { %1955 = vmatprep.mubr.bf16.mxu1 %v2919_v45  ;;  %v2859_v45 = vcombine.high %v421_v40, %v425_v41 }
  0x90   : > { %1795 = vmatmul.mubr.bf16.gmra.mrb[52].mxu0 %v2916_v50  ;;  %v2856_v50 = vcombine.low %v420_v38, %v424_v39  ;;  %v3634_v38 = vmov 0.0  }
  0x91   : > { %1956 = vmatmul.mubr.bf16.gmra.mrb[52].mxu1 %v2918_v51  ;;  %1802 = vmatprep.mubr.bf16.mxu0 %v2925_v52  ;;  %v2858_v51 = vcombine.low %v421_v40, %v425_v41  ;;  %v2865_v52 = vcombine.high %v428_v46, %v432_v47  ;;  %314 = vst.msk [vmem:[#allocation2] sm:$0xff] %vm313_vm0, %v3634_v38  ;;  %315 = vst.msk [vmem:[#allocation2 + $0x8] sm:$0xff] %vm313_vm0, %v3634_v38 }
  0x92   : > { %1963 = vmatprep.mubr.bf16.mxu1 %v2927_v53  ;;  %v2867_v53 = vcombine.high %v429_v48, %v433_v49  ;;  %316 = vst.msk [vmem:[#allocation2 + $0x10] sm:$0xff] %vm313_vm0, %v3634_v38  ;;  %317 = vst.msk [vmem:[#allocation2 + $0x18] sm:$0xff] %vm313_vm0, %v3634_v38 }
  0x93   : > { %318 = vst.msk [vmem:[#allocation2 + $0x20] sm:$0xff] %vm313_vm0, %v3634_v38  ;;  %319 = vst.msk [vmem:[#allocation2 + $0x28] sm:$0xff] %vm313_vm0, %v3634_v38 }
  0x94   : > { %320 = vst.msk [vmem:[#allocation2 + $0x30] sm:$0xff] %vm313_vm0, %v3634_v38  ;;  %321 = vst.msk [vmem:[#allocation2 + $0x38] sm:$0xff] %vm313_vm0, %v3634_v38 }
  0x95   : > { %322 = vst.msk [vmem:[#allocation2 + $0x40] sm:$0xff] %vm313_vm0, %v3634_v38  ;;  %323 = vst.msk [vmem:[#allocation2 + $0x48] sm:$0xff] %vm313_vm0, %v3634_v38 }
  0x96   : > { %324 = vst.msk [vmem:[#allocation2 + $0x50] sm:$0xff] %vm313_vm0, %v3634_v38  ;;  %325 = vst.msk [vmem:[#allocation2 + $0x58] sm:$0xff] %vm313_vm0, %v3634_v38 }
  0x97   : > { %326 = vst.msk [vmem:[#allocation2 + $0x60] sm:$0xff] %vm313_vm0, %v3634_v38  ;;  %327 = vst.msk [vmem:[#allocation2 + $0x68] sm:$0xff] %vm313_vm0, %v3634_v38 }
  0x98   : > { %1803 = vmatmul.mubr.bf16.gmra.mrb[56].mxu0 %v2924_v58  ;;  %v2864_v58 = vcombine.low %v428_v46, %v432_v47  ;;  %328 = vst.msk [vmem:[#allocation2 + $0x70] sm:$0xff] %vm313_vm0, %v3634_v38  ;;  %329 = vst.msk [vmem:[#allocation2 + $0x78] sm:$0xff] %vm313_vm0, %v3634_v38 }
  0x99   : > { %1964 = vmatmul.mubr.bf16.gmra.mrb[56].mxu1 %v2926_v59  ;;  %1810 = vmatprep.mubr.bf16.mxu0 %v2933_v60  ;;  %v2866_v59 = vcombine.low %v429_v48, %v433_v49  ;;  %v2873_v60 = vcombine.high %v436_v54, %v440_v55  ;;  %330 = vst.msk [vmem:[#allocation2 + $0x80] sm:$0xff] %vm313_vm0, %v3634_v38  ;;  %331 = vst.msk [vmem:[#allocation2 + $0x88] sm:$0xff] %vm313_vm0, %v3634_v38 }
  0x9a   : > { %1971 = vmatprep.mubr.bf16.mxu1 %v2935_v61  ;;  %v2875_v61 = vcombine.high %v437_v56, %v441_v57  ;;  %332 = vst.msk [vmem:[#allocation2 + $0x90] sm:$0xff] %vm313_vm0, %v3634_v38  ;;  %333 = vst.msk [vmem:[#allocation2 + $0x98] sm:$0xff] %vm313_vm0, %v3634_v38 }
  0x9b   : > { %334 = vst.msk [vmem:[#allocation2 + $0xa0] sm:$0xff] %vm313_vm0, %v3634_v38  ;;  %335 = vst.msk [vmem:[#allocation2 + $0xa8] sm:$0xff] %vm313_vm0, %v3634_v38 }
  0x9c   : > { %336 = vst.msk [vmem:[#allocation2 + $0xb0] sm:$0xff] %vm313_vm0, %v3634_v38  ;;  %337 = vst.msk [vmem:[#allocation2 + $0xb8] sm:$0xff] %vm313_vm0, %v3634_v38 }
  0x9d   : > { %338 = vst.msk [vmem:[#allocation2 + $0xc0] sm:$0xff] %vm313_vm0, %v3634_v38  ;;  %339 = vst.msk [vmem:[#allocation2 + $0xc8] sm:$0xff] %vm313_vm0, %v3634_v38 }
  0x9e   : > { %340 = vst.msk [vmem:[#allocation2 + $0xd0] sm:$0xff] %vm313_vm0, %v3634_v38  ;;  %341 = vst.msk [vmem:[#allocation2 + $0xd8] sm:$0xff] %vm313_vm0, %v3634_v38 }
  0x9f   : > { %342 = vst.msk [vmem:[#allocation2 + $0xe0] sm:$0xff] %vm313_vm0, %v3634_v38  ;;  %343 = vst.msk [vmem:[#allocation2 + $0xe8] sm:$0xff] %vm313_vm0, %v3634_v38 }
  0xa0   : > { %1811 = vmatmul.mubr.bf16.gmra.mrb[60].mxu0 %v2932_v2  ;;  %v2872_v2 = vcombine.low %v436_v54, %v440_v55  ;;  %344 = vst.msk [vmem:[#allocation2 + $0xf0] sm:$0xff] %vm313_vm0, %v3634_v38  ;;  %345 = vst.msk [vmem:[#allocation2 + $0xf8] sm:$0xff] %vm313_vm0, %v3634_v38  ;;  %v488_v54 = vld [vmem:[%s3777_s12 + $0x370] sm:$0xff] }
  0xa1   : > { %1972 = vmatmul.mubr.bf16.gmra.mrb[60].mxu1 %v2934_v3  ;;  %2012 = vmatprep.mubr.bf16.mxu0 %v2817_v4  ;;  %v2874_v3 = vcombine.low %v437_v56, %v441_v57  ;;  %v2881_v4 = vcombine.high %v444_v62, %v448_v63  ;;  %v485_v56 = vld [vmem:[%s3777_s12 + $0x358] sm:$0xff] }
  0xa2   : > { %2173 = vmatprep.mubr.bf16.mxu1 %v2819_v5  ;;  %v2883_v5 = vcombine.high %v445_v0, %v449_v1  ;;  %v489_v57 = vld [vmem:[%s3777_s12 + $0x378] sm:$0xff] }
  0xa8   : > { %2013 = vmatmul.mubr.bf16.vlgmr.msra.gmra.mrb[64].mxu0 %v2816_v10  ;;  %v2880_v10 = vcombine.low %v444_v62, %v448_v63 }
  0xa9   : > { %2174 = vmatmul.mubr.bf16.vlgmr.msra.gmra.mrb[64].mxu1 %v2818_v11  ;;  %2020 = vmatprep.mubr.bf16.mxu0 %v2825_v12  ;;  %v2882_v11 = vcombine.low %v445_v0, %v449_v1  ;;  %v2889_v12 = vcombine.high %v452_v6, %v456_v7 }
  0xaa   : > { %2181 = vmatprep.mubr.bf16.mxu1 %v2827_v13  ;;  %v2891_v13 = vcombine.high %v453_v8, %v457_v9 }
  0xb0   : > { %2021 = vmatmul.mubr.bf16.gmra.mrb[68].mxu0 %v2824_v18  ;;  %v2888_v18 = vcombine.low %v452_v6, %v456_v7 }
  0xb1   : > { %2182 = vmatmul.mubr.bf16.gmra.mrb[68].mxu1 %v2826_v19  ;;  %2028 = vmatprep.mubr.bf16.mxu0 %v2833_v20  ;;  %v2890_v19 = vcombine.low %v453_v8, %v457_v9  ;;  %v2897_v20 = vcombine.high %v460_v14, %v464_v15 }
  0xb2   : > { %2189 = vmatprep.mubr.bf16.mxu1 %v2835_v21  ;;  %v2899_v21 = vcombine.high %v461_v16, %v465_v17 }
  0xb8   : > { %2029 = vmatmul.mubr.bf16.gmra.mrb[72].mxu0 %v2832_v26  ;;  %v2896_v26 = vcombine.low %v460_v14, %v464_v15  ;;  %v493_v14 = vld [vmem:[%s3777_s12 + $0x398] sm:$0xff] }
  0xb9   : > { %2190 = vmatmul.mubr.bf16.gmra.mrb[72].mxu1 %v2834_v27  ;;  %2036 = vmatprep.mubr.bf16.mxu0 %v2841_v28  ;;  %v2898_v27 = vcombine.low %v461_v16, %v465_v17  ;;  %v2905_v28 = vcombine.high %v3990_v22, %v3993_v23  ;;  %v497_v15 = vld [vmem:[%s3777_s12 + $0x3b8] sm:$0xff] }
  0xba   : > { %2197 = vmatprep.mubr.bf16.mxu1 %v2843_v29  ;;  %v2907_v29 = vcombine.high %v3996_v24, %v3999_v25 }
  0xc0   : > { %2037 = vmatmul.mubr.bf16.gmra.mrb[76].mxu0 %v2840_v34  ;;  %v4015_v34 = vld [vmem:[%s3777_s12 + $0x338] sm:$0xff] }
  0xc1   : > { %2198 = vmatmul.mubr.bf16.gmra.mrb[76].mxu1 %v2842_v35  ;;  %2044 = vmatprep.mubr.bf16.mxu0 %v2849_v36  ;;  %v2915_v47 = vcombine.high %v4012_v33, %v4015_v34  ;;  %v2914_v0 = vcombine.low %v4012_v33, %v4015_v34  ;;  %v500_v33 = vld [vmem:[%s3777_s12 + $0x3d0] sm:$0xff] }
  0xc2   : > { %2205 = vmatprep.mubr.bf16.mxu1 %v2851_v37  ;;  %v2904_v37 = vcombine.low %v3990_v22, %v3993_v23  ;;  %v2922_v22 = vcombine.low %v485_v56, %v489_v57  ;;  %v504_v34 = vld [vmem:[%s3777_s12 + $0x3f0] sm:$0xff] }
  0xc8   : > { %2045 = vmatmul.mubr.bf16.gmra.mrb[80].mxu0 %v2848_v42  ;;  %v2906_v42 = vcombine.low %v3996_v24, %v3999_v25 }
  0xc9   : > { %2206 = vmatmul.mubr.bf16.gmra.mrb[80].mxu1 %v2850_v43  ;;  %2052 = vmatprep.mubr.bf16.mxu0 %v2857_v44  ;;  %v2913_v43 = vcombine.high %v4006_v30, %v4009_v31 }
  0xca   : > { %2213 = vmatprep.mubr.bf16.mxu1 %v2859_v45 }
  0xd0   : > { %2053 = vmatmul.mubr.bf16.gmra.mrb[84].mxu0 %v2856_v50 }
  0xd1   : > { %2214 = vmatmul.mubr.bf16.gmra.mrb[84].mxu1 %v2858_v51  ;;  %2060 = vmatprep.mubr.bf16.mxu0 %v2865_v52 }
  0xd2   : > { %2221 = vmatprep.mubr.bf16.mxu1 %v2867_v53  ;;  %v484_v53 = vld [vmem:[%s3777_s12 + $0x350] sm:$0xff] }
  0xd3   : > { %v2921_v1 = vcombine.high %v484_v53, %v488_v54 }
  0xd8   : > { %2061 = vmatmul.mubr.bf16.gmra.mrb[88].mxu0 %v2864_v58 }
  0xd9   : > { %2222 = vmatmul.mubr.bf16.gmra.mrb[88].mxu1 %v2866_v59  ;;  %2068 = vmatprep.mubr.bf16.mxu0 %v2873_v60  ;;  %v2912_v60 = vcombine.low %v4006_v30, %v4009_v31 }
  0xda   : > { %2229 = vmatprep.mubr.bf16.mxu1 %v2875_v61 }
  0xe0   : > { %2069 = vmatmul.mubr.bf16.gmra.mrb[92].mxu0 %v2872_v2 }
  0xe1   : > { %2230 = vmatmul.mubr.bf16.gmra.mrb[92].mxu1 %v2874_v3  ;;  %2076 = vmatprep.mubr.bf16.mxu0 %v2881_v4 }
  0xe2   : > { %2237 = vmatprep.mubr.bf16.mxu1 %v2883_v5  ;;  %v2923_v5 = vcombine.high %v485_v56, %v489_v57 }
  0xe8   : > { %2077 = vmatmul.mubr.bf16.gmra.mrb[96].mxu0 %v2880_v10 }
  0xe9   : > { %2238 = vmatmul.mubr.bf16.gmra.mrb[96].mxu1 %v2882_v11  ;;  %2084 = vmatprep.mubr.bf16.mxu0 %v2889_v12  ;;  %v492_v11 = vld [vmem:[%s3777_s12 + $0x390] sm:$0xff] }
  0xea   : > { %2245 = vmatprep.mubr.bf16.mxu1 %v2891_v13  ;;  %v496_v12 = vld [vmem:[%s3777_s12 + $0x3b0] sm:$0xff] }
  0xeb   : > { %v2929_v23 = vcombine.high %v492_v11, %v496_v12 }
  0xf0   : > { %2085 = vmatmul.mubr.bf16.gmra.mrb[100].mxu0 %v2888_v18  ;;  %v2920_v18 = vcombine.low %v484_v53, %v488_v54 }
  0xf1   : > { %2246 = vmatmul.mubr.bf16.gmra.mrb[100].mxu1 %v2890_v19  ;;  %2092 = vmatprep.mubr.bf16.mxu0 %v2897_v20 }
  0xf2   : > { %2253 = vmatprep.mubr.bf16.mxu1 %v2899_v21 }
  0xf8   : > { %2093 = vmatmul.mubr.bf16.gmra.mrb[104].mxu0 %v2896_v26 }
  0xf9   : > { %2254 = vmatmul.mubr.bf16.gmra.mrb[104].mxu1 %v2898_v27  ;;  %2100 = vmatprep.mubr.bf16.mxu0 %v2905_v28  ;;  %v2931_v27 = vcombine.high %v493_v14, %v497_v15 }
  0xfa   : > { %2261 = vmatprep.mubr.bf16.mxu1 %v2907_v29 }
  0xfb   : > { %v3089_v32 = vpop.f32.mrb[0].mxu0 }
  0xfc   : > { %v3201_v35 = vpop.f32.mrb[0].mxu1  ;;  %v3090_v36 = vpop.f32.mrb[1].mxu0 }
  0xfd   : > { %v3091_v39 = vadd.f32 %v3090_v36, %v3089_v32  ;;  %v3202_v40 = vpop.f32.mrb[1].mxu1  ;;  %v3092_v41 = vpop.f32.mrb[2].mxu0  ;;  %v501_v36 = vld [vmem:[%s3777_s12 + $0x3d8] sm:$0xff] }
  0xfe   : > { %v3203_v44 = vadd.f32 %v3202_v40, %v3201_v35  ;;  %v3204_v45 = vpop.f32.mrb[2].mxu1  ;;  %v3093_v46 = vpop.f32.mrb[3].mxu0  ;;  %v2928_v40 = vcombine.low %v492_v11, %v496_v12 }
  0xff   : > { %v3094_v48 = vadd.f32 %v3093_v46, %v3092_v41  ;;  %v3205_v49 = vpop.f32.mrb[3].mxu1 }
 0x100   : > { %v4057_v50 = vadd.f32 %v3203_v44, %v3091_v39  ;;  %v3206_v51 = vadd.f32 %v3205_v49, %v3204_v45  ;;  %2101 = vmatmul.mubr.bf16.gmra.mrb[108].mxu0 %v2904_v37  ;;  %v505_v37 = vld [vmem:[%s3777_s12 + $0x3f8] sm:$0xff]  ;;  %v2930_v44 = vcombine.low %v493_v14, %v497_v15  ;;  %v2937_v45 = vcombine.high %v500_v33, %v504_v34 }
 0x101   : > { %2262 = vmatmul.mubr.bf16.gmra.mrb[108].mxu1 %v2906_v42  ;;  %2108 = vmatprep.mubr.bf16.mxu0 %v2913_v43  ;;  %v2939_v49 = vcombine.high %v501_v36, %v505_v37 }
 0x102   : > { %v4059_v52 = vadd.f32 %v3206_v51, %v3094_v48  ;;  %2269 = vmatprep.mubr.bf16.mxu1 %v2915_v47 }
 0x103   : > { %v3095_v55 = vpop.f32.mrb[4].mxu0 }
 0x104   : > { %v3207_v58 = vpop.f32.mrb[4].mxu1  ;;  %v3096_v59 = vpop.f32.mrb[5].mxu0 }
 0x105   : > { %v3097_v61 = vadd.f32 %v3096_v59, %v3095_v55  ;;  %v3208_v62 = vpop.f32.mrb[5].mxu1  ;;  %v3098_v63 = vpop.f32.mrb[6].mxu0 }
 0x106   : > { %v3209_v2 = vadd.f32 %v3208_v62, %v3207_v58  ;;  %v3210_v3 = vpop.f32.mrb[6].mxu1  ;;  %v3099_v4 = vpop.f32.mrb[7].mxu0 }
 0x107   : > { %v3100_v6 = vadd.f32 %v3099_v4, %v3098_v63  ;;  %v3211_v7 = vpop.f32.mrb[7].mxu1 }
 0x108   : > { %v4069_v8 = vadd.f32 %v3209_v2, %v3097_v61  ;;  %v3212_v9 = vadd.f32 %v3211_v7, %v3210_v3  ;;  %2109 = vmatmul.mubr.bf16.gmra.mrb[112].mxu0 %v2912_v60  ;;  %v2936_v60 = vcombine.low %v500_v33, %v504_v34 }
 0x109   : > { %2270 = vmatmul.mubr.bf16.gmra.mrb[112].mxu1 %v2914_v0  ;;  %2116 = vmatprep.mubr.bf16.mxu0 %v2921_v1  ;;  %v2938_v0 = vcombine.low %v501_v36, %v505_v37 }
 0x10a   : > { %v4071_v10 = vadd.f32 %v3212_v9, %v3100_v6  ;;  %2277 = vmatprep.mubr.bf16.mxu1 %v2923_v5 }
 0x10b   : > { %v3101_v13 = vpop.f32.mrb[8].mxu0 }
 0x10c   : > { %v3213_v16 = vpop.f32.mrb[8].mxu1  ;;  %v3102_v17 = vpop.f32.mrb[9].mxu0 }
 0x10d   : > { %v3103_v19 = vadd.f32 %v3102_v17, %v3101_v13  ;;  %v3214_v20 = vpop.f32.mrb[9].mxu1  ;;  %v3104_v21 = vpop.f32.mrb[10].mxu0 }
 0x10e   : > { %v3215_v24 = vadd.f32 %v3214_v20, %v3213_v16  ;;  %v3216_v25 = vpop.f32.mrb[10].mxu1  ;;  %v3105_v26 = vpop.f32.mrb[11].mxu0 }
 0x10f   : > { %v3106_v28 = vadd.f32 %v3105_v26, %v3104_v21  ;;  %v3217_v29 = vpop.f32.mrb[11].mxu1 }
 0x110   : > { %v4077_v30 = vadd.f32 %v3215_v24, %v3103_v19  ;;  %v3218_v31 = vadd.f32 %v3217_v29, %v3216_v25  ;;  %2117 = vmatmul.mubr.bf16.gmra.mrb[116].mxu0 %v2920_v18 }
 0x111   : > { %2278 = vmatmul.mubr.bf16.gmra.mrb[116].mxu1 %v2922_v22  ;;  %2124 = vmatprep.mubr.bf16.mxu0 %v2929_v23 }
 0x112   : > { %v4079_v32 = vadd.f32 %v3218_v31, %v3106_v28  ;;  %2285 = vmatprep.mubr.bf16.mxu1 %v2931_v27 }
 0x113   : > { %v3107_v35 = vpop.f32.mrb[12].mxu0 }
 0x114   : > { %v3219_v38 = vpop.f32.mrb[12].mxu1  ;;  %v3108_v39 = vpop.f32.mrb[13].mxu0 }
 0x115   : > { %v3109_v41 = vadd.f32 %v3108_v39, %v3107_v35  ;;  %v3220_v42 = vpop.f32.mrb[13].mxu1  ;;  %v3110_v43 = vpop.f32.mrb[14].mxu0 }
 0x116   : > { %v3221_v46 = vadd.f32 %v3220_v42, %v3219_v38  ;;  %v3222_v47 = vpop.f32.mrb[14].mxu1  ;;  %v3111_v48 = vpop.f32.mrb[15].mxu0 }
 0x117   : > { %v3112_v51 = vadd.f32 %v3111_v48, %v3110_v43  ;;  %v3223_v53 = vpop.f32.mrb[15].mxu1 }
 0x118   : > { %v4085_v54 = vadd.f32 %v3221_v46, %v3109_v41  ;;  %v3224_v55 = vadd.f32 %v3223_v53, %v3222_v47  ;;  %2125 = vmatmul.mubr.bf16.gmra.mrb[120].mxu0 %v2928_v40 }
 0x119   : > { %2286 = vmatmul.mubr.bf16.gmra.mrb[120].mxu1 %v2930_v44  ;;  %2132 = vmatprep.mubr.bf16.mxu0 %v2937_v45 }
 0x11a   : > { %v4087_v56 = vadd.f32 %v3224_v55, %v3112_v51  ;;  %2293 = vmatprep.mubr.bf16.mxu1 %v2939_v49 }
 0x11b   : > { %v3113_v57 = vpop.f32.mrb[16].mxu0 }
 0x11c   : > { %v3225_v58 = vpop.f32.mrb[16].mxu1  ;;  %v3114_v59 = vpop.f32.mrb[17].mxu0 }
 0x11d   : > { %v3115_v61 = vadd.f32 %v3114_v59, %v3113_v57  ;;  %v3226_v62 = vpop.f32.mrb[17].mxu1  ;;  %v3116_v63 = vpop.f32.mrb[18].mxu0 }
 0x11e   : > { %v3227_v1 = vadd.f32 %v3226_v62, %v3225_v58  ;;  %v3228_v2 = vpop.f32.mrb[18].mxu1  ;;  %v3117_v3 = vpop.f32.mrb[19].mxu0 }
 0x11f   : > { %v3118_v4 = vadd.f32 %v3117_v3, %v3116_v63  ;;  %v3229_v5 = vpop.f32.mrb[19].mxu1 }
 0x120   : > { %v4089_v6 = vadd.f32 %v3227_v1, %v3115_v61  ;;  %v3230_v7 = vadd.f32 %v3229_v5, %v3228_v2  ;;  %2133 = vmatmul.mubr.bf16.gmra.mrb[124].mxu0 %v2936_v60 }
 0x121   : > { %2294 = vmatmul.mubr.bf16.gmra.mrb[124].mxu1 %v2938_v0 }
 0x122   : > { %v4091_v9 = vadd.f32 %v3230_v7, %v3118_v4 }
 0x123   : > { %v3119_v11 = vpop.f32.mrb[20].mxu0 }
 0x124   : > { %v3231_v12 = vpop.f32.mrb[20].mxu1  ;;  %v3120_v13 = vpop.f32.mrb[21].mxu0 }
 0x125   : > { %v3121_v14 = vadd.f32 %v3120_v13, %v3119_v11  ;;  %v3232_v15 = vpop.f32.mrb[21].mxu1  ;;  %v3122_v16 = vpop.f32.mrb[22].mxu0 }
 0x126   : > { %v3233_v17 = vadd.f32 %v3232_v15, %v3231_v12  ;;  %v3234_v18 = vpop.f32.mrb[22].mxu1  ;;  %v3123_v19 = vpop.f32.mrb[23].mxu0 }
 0x127   : > { %v3124_v20 = vadd.f32 %v3123_v19, %v3122_v16  ;;  %v3235_v21 = vpop.f32.mrb[23].mxu1 }
 0x128   : > { %v4093_v22 = vadd.f32 %v3233_v17, %v3121_v14  ;;  %v3236_v23 = vadd.f32 %v3235_v21, %v3234_v18 }
 0x12a   : > { %v4095_v24 = vadd.f32 %v3236_v23, %v3124_v20 }
 0x12b   : > { %v3125_v25 = vpop.f32.mrb[24].mxu0 }
 0x12c   : > { %v3237_v26 = vpop.f32.mrb[24].mxu1  ;;  %v3126_v27 = vpop.f32.mrb[25].mxu0 }
 0x12d   : > { %v3127_v28 = vadd.f32 %v3126_v27, %v3125_v25  ;;  %v3238_v29 = vpop.f32.mrb[25].mxu1  ;;  %v3128_v31 = vpop.f32.mrb[26].mxu0 }
 0x12e   : > { %v3239_v33 = vadd.f32 %v3238_v29, %v3237_v26  ;;  %v3240_v34 = vpop.f32.mrb[26].mxu1  ;;  %v3129_v35 = vpop.f32.mrb[27].mxu0 }
 0x12f   : > { %v3130_v36 = vadd.f32 %v3129_v35, %v3128_v31  ;;  %v3241_v37 = vpop.f32.mrb[27].mxu1 }
 0x130   : > { %v4097_v38 = vadd.f32 %v3239_v33, %v3127_v28  ;;  %v3242_v39 = vadd.f32 %v3241_v37, %v3240_v34 }
 0x132   : > { %v4099_v40 = vadd.f32 %v3242_v39, %v3130_v36 }
 0x133   : > { %v3131_v41 = vpop.f32.mrb[28].mxu0 }
 0x134   : > { %v3243_v42 = vpop.f32.mrb[28].mxu1  ;;  %v3132_v43 = vpop.f32.mrb[29].mxu0 }
 0x135   : > { %v3133_v44 = vadd.f32 %v3132_v43, %v3131_v41  ;;  %v3244_v45 = vpop.f32.mrb[29].mxu1  ;;  %v3134_v46 = vpop.f32.mrb[30].mxu0 }
 0x136   : > { %v3245_v47 = vadd.f32 %v3244_v45, %v3243_v42  ;;  %v3246_v48 = vpop.f32.mrb[30].mxu1  ;;  %v3135_v49 = vpop.f32.mrb[31].mxu0 }
 0x137   : > { %v3136_v51 = vadd.f32 %v3135_v49, %v3134_v46  ;;  %v3247_v53 = vpop.f32.mrb[31].mxu1 }
 0x138   : > { %v4101_v55 = vadd.f32 %v3245_v47, %v3133_v44  ;;  %v3248_v57 = vadd.f32 %v3247_v53, %v3246_v48 }
 0x13a   : > { %v4103_v58 = vadd.f32 %v3248_v57, %v3136_v51 }
 0x13b   : > { %v3137_v59 = vpop.f32.mrb[32].mxu0 }
 0x13c   : > { %v3249_v60 = vpop.f32.mrb[32].mxu1  ;;  %v3138_v61 = vpop.f32.mrb[33].mxu0 }
 0x13d   : > { %v3139_v62 = vadd.f32 %v3138_v61, %v3137_v59  ;;  %v3250_v63 = vpop.f32.mrb[33].mxu1  ;;  %v3140_v0 = vpop.f32.mrb[34].mxu0 }
 0x13e   : > { %v3251_v1 = vadd.f32 %v3250_v63, %v3249_v60  ;;  %v3252_v2 = vpop.f32.mrb[34].mxu1  ;;  %v3141_v3 = vpop.f32.mrb[35].mxu0 }
 0x13f   : > { %v3142_v4 = vadd.f32 %v3141_v3, %v3140_v0  ;;  %v3253_v5 = vpop.f32.mrb[35].mxu1 }
 0x140   : > { %v4105_v7 = vadd.f32 %v3251_v1, %v3139_v62  ;;  %v3254_v11 = vadd.f32 %v3253_v5, %v3252_v2 }
 0x142   : > { %v4107_v12 = vadd.f32 %v3254_v11, %v3142_v4 }
 0x143   : > { %v3143_v13 = vpop.f32.mrb[36].mxu0 }
 0x144   : > { %v3255_v14 = vpop.f32.mrb[36].mxu1  ;;  %v3144_v15 = vpop.f32.mrb[37].mxu0 }
 0x145   : > { %v3145_v16 = vadd.f32 %v3144_v15, %v3143_v13  ;;  %v3256_v17 = vpop.f32.mrb[37].mxu1  ;;  %v3146_v18 = vpop.f32.mrb[38].mxu0 }
 0x146   : > { %v3257_v19 = vadd.f32 %v3256_v17, %v3255_v14  ;;  %v3258_v20 = vpop.f32.mrb[38].mxu1  ;;  %v3147_v21 = vpop.f32.mrb[39].mxu0 }
 0x147   : > { %v3148_v23 = vadd.f32 %v3147_v21, %v3146_v18  ;;  %v3259_v25 = vpop.f32.mrb[39].mxu1 }
 0x148   : > { %v4109_v26 = vadd.f32 %v3257_v19, %v3145_v16  ;;  %v3260_v27 = vadd.f32 %v3259_v25, %v3258_v20 }
 0x14a   : > { %v4111_v28 = vadd.f32 %v3260_v27, %v3148_v23 }
 0x14b   : > { %v3149_v29 = vpop.f32.mrb[40].mxu0 }
 0x14c   : > { %v3261_v31 = vpop.f32.mrb[40].mxu1  ;;  %v3150_v33 = vpop.f32.mrb[41].mxu0 }
 0x14d   : > { %v3151_v34 = vadd.f32 %v3150_v33, %v3149_v29  ;;  %v3262_v35 = vpop.f32.mrb[41].mxu1  ;;  %v3152_v36 = vpop.f32.mrb[42].mxu0 }
 0x14e   : > { %v3263_v37 = vadd.f32 %v3262_v35, %v3261_v31  ;;  %v3264_v39 = vpop.f32.mrb[42].mxu1  ;;  %v3153_v41 = vpop.f32.mrb[43].mxu0 }
 0x14f   : > { %v3154_v42 = vadd.f32 %v3153_v41, %v3152_v36  ;;  %v3265_v43 = vpop.f32.mrb[43].mxu1 }
 0x150   : > { %v4113_v44 = vadd.f32 %v3263_v37, %v3151_v34  ;;  %v3266_v45 = vadd.f32 %v3265_v43, %v3264_v39 }
 0x152   : > { %v4115_v46 = vadd.f32 %v3266_v45, %v3154_v42 }
 0x153   : > { %v3155_v47 = vpop.f32.mrb[44].mxu0 }
 0x154   : > { %v3267_v48 = vpop.f32.mrb[44].mxu1  ;;  %v3156_v49 = vpop.f32.mrb[45].mxu0 }
 0x155   : > { %v3157_v51 = vadd.f32 %v3156_v49, %v3155_v47  ;;  %v3268_v53 = vpop.f32.mrb[45].mxu1  ;;  %v3158_v57 = vpop.f32.mrb[46].mxu0 }
 0x156   : > { %v3269_v59 = vadd.f32 %v3268_v53, %v3267_v48  ;;  %v3270_v60 = vpop.f32.mrb[46].mxu1  ;;  %v3159_v61 = vpop.f32.mrb[47].mxu0 }
 0x157   : > { %v3160_v62 = vadd.f32 %v3159_v61, %v3158_v57  ;;  %v3271_v63 = vpop.f32.mrb[47].mxu1 }
 0x158   : > { %v4117_v0 = vadd.f32 %v3269_v59, %v3157_v51  ;;  %v3272_v1 = vadd.f32 %v3271_v63, %v3270_v60 }
 0x15a   : > { %v4119_v2 = vadd.f32 %v3272_v1, %v3160_v62 }
 0x15b   : > { %v3161_v3 = vpop.f32.mrb[48].mxu0 }
 0x15c   : > { %v3273_v4 = vpop.f32.mrb[48].mxu1  ;;  %v3162_v5 = vpop.f32.mrb[49].mxu0 }
 0x15d   : > { %v3163_v11 = vadd.f32 %v3162_v5, %v3161_v3  ;;  %v3274_v13 = vpop.f32.mrb[49].mxu1  ;;  %v3164_v14 = vpop.f32.mrb[50].mxu0 }
 0x15e   : > { %v3275_v15 = vadd.f32 %v3274_v13, %v3273_v4  ;;  %v3276_v16 = vpop.f32.mrb[50].mxu1  ;;  %v3165_v17 = vpop.f32.mrb[51].mxu0 }
 0x15f   : > { %v3166_v18 = vadd.f32 %v3165_v17, %v3164_v14  ;;  %v3277_v19 = vpop.f32.mrb[51].mxu1 }
 0x160   : > { %v4121_v20 = vadd.f32 %v3275_v15, %v3163_v11  ;;  %v3278_v21 = vadd.f32 %v3277_v19, %v3276_v16 }
 0x162   : > { %v4123_v23 = vadd.f32 %v3278_v21, %v3166_v18 }
 0x163   : > { %v3167_v25 = vpop.f32.mrb[52].mxu0 }
 0x164   : > { %v3279_v27 = vpop.f32.mrb[52].mxu1  ;;  %v3168_v29 = vpop.f32.mrb[53].mxu0 }
 0x165   : > { %v3169_v31 = vadd.f32 %v3168_v29, %v3167_v25  ;;  %v3280_v33 = vpop.f32.mrb[53].mxu1  ;;  %v3170_v34 = vpop.f32.mrb[54].mxu0 }
 0x166   : > { %v3281_v35 = vadd.f32 %v3280_v33, %v3279_v27  ;;  %v3282_v36 = vpop.f32.mrb[54].mxu1  ;;  %v3171_v37 = vpop.f32.mrb[55].mxu0 }
 0x167   : > { %v3172_v39 = vadd.f32 %v3171_v37, %v3170_v34  ;;  %v3283_v41 = vpop.f32.mrb[55].mxu1 }
 0x168   : > { %v4125_v42 = vadd.f32 %v3281_v35, %v3169_v31  ;;  %v3284_v43 = vadd.f32 %v3283_v41, %v3282_v36 }
 0x16a   : > { %v4127_v45 = vadd.f32 %v3284_v43, %v3172_v39 }
 0x16b   : > { %v3173_v47 = vpop.f32.mrb[56].mxu0 }
 0x16c   : > { %v3285_v48 = vpop.f32.mrb[56].mxu1  ;;  %v3174_v49 = vpop.f32.mrb[57].mxu0 }
 0x16d   : > { %v3175_v51 = vadd.f32 %v3174_v49, %v3173_v47  ;;  %v3286_v53 = vpop.f32.mrb[57].mxu1  ;;  %v3176_v57 = vpop.f32.mrb[58].mxu0 }
 0x16e   : > { %v3287_v59 = vadd.f32 %v3286_v53, %v3285_v48  ;;  %v3288_v60 = vpop.f32.mrb[58].mxu1  ;;  %v3177_v61 = vpop.f32.mrb[59].mxu0  ;;  %v346_v53 = vld [vmem:[#allocation2] sm:$0xff] }
 0x16f   : > { %v3178_v62 = vadd.f32 %v3177_v61, %v3176_v57  ;;  %v3289_v63 = vpop.f32.mrb[59].mxu1  ;;  %v347_v61 = vld [vmem:[#allocation2 + $0x8] sm:$0xff] }
 0x170   : > { %v4129_v1 = vadd.f32 %v3287_v59, %v3175_v51  ;;  %v3290_v3 = vadd.f32 %v3289_v63, %v3288_v60 }
 0x172   : > { %v4131_v4 = vadd.f32 %v3290_v3, %v3178_v62 }
 0x173   : > { %v3179_v5 = vpop.f32.mrb[60].mxu0 }
 0x174   : > { %v3291_v11 = vpop.f32.mrb[60].mxu1  ;;  %v3180_v13 = vpop.f32.mrb[61].mxu0 }
 0x175   : > { %v3181_v14 = vadd.f32 %v3180_v13, %v3179_v5  ;;  %v3292_v15 = vpop.f32.mrb[61].mxu1  ;;  %v3182_v16 = vpop.f32.mrb[62].mxu0 }
 0x176   : > { %v3293_v17 = vadd.f32 %v3292_v15, %v3291_v11  ;;  %v3294_v18 = vpop.f32.mrb[62].mxu1  ;;  %v3183_v19 = vpop.f32.mrb[63].mxu0 }
 0x177   : > { %v3184_v21 = vadd.f32 %v3183_v19, %v3182_v16  ;;  %v3295_v25 = vpop.f32.mrb[63].mxu1 }
 0x178   : > { %v4133_v27 = vadd.f32 %v3293_v17, %v3181_v14  ;;  %v3296_v29 = vadd.f32 %v3295_v25, %v3294_v18  ;;  %v348_v25 = vld [vmem:[#allocation2 + $0x10] sm:$0xff] }
 0x17a   : > { %v4135_v31 = vadd.f32 %v3296_v29, %v3184_v21 }
 0x17b   : > { %v3313_v33 = vpop.f32.mrb[64].mxu0 }
 0x17c   : > { %v3425_v34 = vpop.f32.mrb[64].mxu1  ;;  %v3314_v35 = vpop.f32.mrb[65].mxu0 }
 0x17d   : > { %v3315_v36 = vadd.f32 %v3314_v35, %v3313_v33  ;;  %v3426_v37 = vpop.f32.mrb[65].mxu1  ;;  %v3316_v39 = vpop.f32.mrb[66].mxu0  ;;  %v4146_v35 = vld [vmem:[%s4356_s2] ss:$0 sm:$0xff] }
 0x17e   : > { %v3427_v41 = vadd.f32 %v3426_v37, %v3425_v34  ;;  %v3428_v43 = vpop.f32.mrb[66].mxu1  ;;  %v3317_v47 = vpop.f32.mrb[67].mxu0 }
 0x17f   : > { %v2015_v48 = vadd.f32 %v3315_v36, %v4057_v50  ;;  %v3318_v49 = vadd.f32 %v3317_v47, %v3316_v39  ;;  %v3429_v51 = vpop.f32.mrb[67].mxu1  ;;  %v349_v36 = vld [vmem:[#allocation2 + $0x18] sm:$0xff] }
 0x180   : > { %v3430_v57 = vadd.f32 %v3429_v51, %v3428_v43 }
 0x181   : > { %v2176_v59 = vadd.f32 %v3427_v41, %v2015_v48  ;;  %v2018_v60 = vadd.f32 %v3318_v49, %v4059_v52 }
 0x183   : > { %v2302_v62 = vadd.f32 %v2176_v59, %v346_v53  ;;  %v2179_v63 = vadd.f32 %v3430_v57, %v2018_v60  ;;  %v3319_v3 = vpop.f32.mrb[68].mxu0 }
 0x184   : > { %v3431_v5 = vpop.f32.mrb[68].mxu1  ;;  %v3320_v11 = vpop.f32.mrb[69].mxu0 }
 0x185   : > { %2335 = vst.msk [vmem:[#allocation2] sm:$0xff] %vm313_vm0, %v2302_v62  ;;  %v2303_v13 = vadd.f32 %v2179_v63, %v347_v61  ;;  %v3321_v14 = vadd.f32 %v3320_v11, %v3319_v3  ;;  %v3432_v15 = vpop.f32.mrb[69].mxu1  ;;  %v3322_v16 = vpop.f32.mrb[70].mxu0 }
 0x186   : > { %v3433_v50 = vadd.f32 %v3432_v15, %v3431_v5  ;;  %v3434_v17 = vpop.f32.mrb[70].mxu1  ;;  %v3323_v18 = vpop.f32.mrb[71].mxu0 }
 0x187   : > { %2336 = vst.msk [vmem:[#allocation2 + $0x8] sm:$0xff] %vm313_vm0, %v2303_v13  ;;  %v2023_v19 = vadd.f32 %v3321_v14, %v4069_v8  ;;  %v3324_v52 = vadd.f32 %v3323_v18, %v3322_v16  ;;  %v3435_v21 = vpop.f32.mrb[71].mxu1  ;;  %v4151_v8 = vld [vmem:[%s4357_s3] ss:$0 sm:$0xff] }
 0x188   : > { %v3436_v29 = vadd.f32 %v3435_v21, %v3434_v17  ;;  %v350_v14 = vld [vmem:[#allocation2 + $0x20] sm:$0xff] }
 0x189   : > { %v2184_v33 = vadd.f32 %v3433_v50, %v2023_v19  ;;  %v2026_v34 = vadd.f32 %v3324_v52, %v4071_v10  ;;  %v351_v19 = vld [vmem:[#allocation2 + $0x28] sm:$0xff] }
 0x18b   : > { %v2304_v37 = vadd.f32 %v2184_v33, %v348_v25  ;;  %v2187_v39 = vadd.f32 %v3436_v29, %v2026_v34  ;;  %v3325_v41 = vpop.f32.mrb[72].mxu0 }
 0x18c   : > { %v2370_v43 = vld [vmem:[#allocation2] sm:$0xff]  ;;  %v3437_v47 = vpop.f32.mrb[72].mxu1  ;;  %v3326_v48 = vpop.f32.mrb[73].mxu0 }
 0x18d   : > { %v2409_v10 = vmul.f32 %v4146_v35, %v2370_v43  ;;  %2337 = vst.msk [vmem:[#allocation2 + $0x10] sm:$0xff] %vm313_vm0, %v2304_v37  ;;  %v2305_v49 = vadd.f32 %v2187_v39, %v349_v36  ;;  %v3327_v51 = vadd.f32 %v3326_v48, %v3325_v41  ;;  %v3438_v53 = vpop.f32.mrb[73].mxu1  ;;  %v3328_v57 = vpop.f32.mrb[74].mxu0 }
 0x18e   : > { %v2371_v59 = vld [vmem:[#allocation2 + $0x8] sm:$0xff]  ;;  %v3439_v60 = vadd.f32 %v3438_v53, %v3437_v47  ;;  %v3440_v61 = vpop.f32.mrb[74].mxu1  ;;  %v3329_v62 = vpop.f32.mrb[75].mxu0 }
 0x18f   : > { %v2448_v63 = vadd.f32 %v4151_v8, %v2409_v10  ;;  %v2410_v3 = vmul.f32 %v4146_v35, %v2371_v59  ;;  %2338 = vst.msk [vmem:[#allocation2 + $0x18] sm:$0xff] %vm313_vm0, %v2305_v49  ;;  %v2031_v5 = vadd.f32 %v3327_v51, %v4077_v30  ;;  %v3330_v11 = vadd.f32 %v3329_v62, %v3328_v57  ;;  %v3441_v13 = vpop.f32.mrb[75].mxu1  ;;  %v352_v62 = vld [vmem:[#allocation2 + $0x30] sm:$0xff] }
 0x190   : > { %v3442_v15 = vadd.f32 %v3441_v13, %v3440_v61 }
 0x191   : > { %v2480_v16 = vmax.f32 %v2448_v63, 0.0  ;;  %v2449_v50 = vadd.f32 %v4151_v8, %v2410_v3  ;;  %v2192_v17 = vadd.f32 %v3439_v60, %v2031_v5  ;;  %v2034_v18 = vadd.f32 %v3330_v11, %v4079_v32 }
 0x193   : > { %v3041_v52 = vpack.c.bf16 %v2480_v16, %v2480_v16  ;;  %v2481_v30 = vmax.f32 %v2449_v50, 0.0  ;;  %v2306_v21 = vadd.f32 %v2192_v17, %v350_v14  ;;  %v2195_v25 = vadd.f32 %v3442_v15, %v2034_v18  ;;  %v3331_v29 = vpop.f32.mrb[76].mxu0  ;;  %v353_v14 = vld [vmem:[#allocation2 + $0x38] sm:$0xff] }
 0x194   : > { %v2372_v33 = vld [vmem:[#allocation2 + $0x10] sm:$0xff]  ;;  %v3443_v34 = vpop.f32.mrb[76].mxu1  ;;  %v3332_v36 = vpop.f32.mrb[77].mxu0 }
 0x195   : > { %2641 = vst.msk [vmem:[%s4165_s27] sm:$0xf] %vm2640_vm1, %v3041_v52  ;;  %v3042_v32 = vpack.c.bf16 %v2481_v30, %v2481_v30  ;;  %v2411_v37 = vmul.f32 %v4146_v35, %v2372_v33  ;;  %v2307_v39 = vadd.f32 %v2195_v25, %v351_v19  ;;  %v3333_v41 = vadd.f32 %v3332_v36, %v3331_v29  ;;  %v3444_v43 = vpop.f32.mrb[77].mxu1  ;;  %v3334_v47 = vpop.f32.mrb[78].mxu0 }
 0x196   : > { %2339 = vst.msk [vmem:[#allocation2 + $0x20] sm:$0xff] %vm313_vm0, %v2306_v21  ;;  %v2373_v48 = vld [vmem:[#allocation2 + $0x18] sm:$0xff]  ;;  %v3445_v10 = vadd.f32 %v3444_v43, %v3443_v34  ;;  %v3446_v49 = vpop.f32.mrb[78].mxu1  ;;  %v3335_v51 = vpop.f32.mrb[79].mxu0 }
 0x197   : > { %2642 = vst.msk [vmem:[%s4165_s27 + $0x4] sm:$0xf] %vm2640_vm1, %v3042_v32  ;;  %v2450_v53 = vadd.f32 %v4151_v8, %v2411_v37  ;;  %v2412_v57 = vmul.f32 %v4146_v35, %v2373_v48  ;;  %v2039_v59 = vadd.f32 %v3333_v41, %v4085_v54  ;;  %v3336_v60 = vadd.f32 %v3335_v51, %v3334_v47  ;;  %v3447_v61 = vpop.f32.mrb[79].mxu1 }
 0x198   : > { %2340 = vst.msk [vmem:[#allocation2 + $0x28] sm:$0xff] %vm313_vm0, %v2307_v39  ;;  %v3448_v63 = vadd.f32 %v3447_v61, %v3446_v49 }
 0x199   : > { %v2482_v3 = vmax.f32 %v2450_v53, 0.0  ;;  %v2451_v5 = vadd.f32 %v4151_v8, %v2412_v57  ;;  %v2200_v11 = vadd.f32 %v3445_v10, %v2039_v59  ;;  %v2042_v13 = vadd.f32 %v3336_v60, %v4087_v56  ;;  %v354_v10 = vld [vmem:[#allocation2 + $0x40] sm:$0xff]  ;;  %v355_v60 = vld [vmem:[#allocation2 + $0x48] sm:$0xff] }
 0x19b   : > { %v3043_v15 = vpack.c.bf16 %v2482_v3, %v2482_v3  ;;  %v2483_v16 = vmax.f32 %v2451_v5, 0.0  ;;  %v2308_v50 = vadd.f32 %v2200_v11, %v352_v62  ;;  %v2203_v17 = vadd.f32 %v3448_v63, %v2042_v13  ;;  %v3337_v18 = vpop.f32.mrb[80].mxu0 }
 0x19c   : > { %v3449_v54 = vpop.f32.mrb[80].mxu1  ;;  %v3338_v52 = vpop.f32.mrb[81].mxu0 }
 0x19d   : > { %v2374_v19 = vld [vmem:[#allocation2 + $0x20] sm:$0xff]  ;;  %2643 = vst.msk [vmem:[%s4165_s27 + $0x8] sm:$0xf] %vm2640_vm1, %v3043_v15  ;;  %v3044_v30 = vpack.c.bf16 %v2483_v16, %v2483_v16  ;;  %v2309_v25 = vadd.f32 %v2203_v17, %v353_v14  ;;  %v3339_v29 = vadd.f32 %v3338_v52, %v3337_v18  ;;  %v3450_v56 = vpop.f32.mrb[81].mxu1  ;;  %v3340_v33 = vpop.f32.mrb[82].mxu0 }
 0x19e   : > { %v2413_v21 = vmul.f32 %v4146_v35, %v2374_v19  ;;  %2341 = vst.msk [vmem:[#allocation2 + $0x30] sm:$0xff] %vm313_vm0, %v2308_v50  ;;  %v3451_v36 = vadd.f32 %v3450_v56, %v3449_v54  ;;  %v3452_v32 = vpop.f32.mrb[82].mxu1  ;;  %v3341_v37 = vpop.f32.mrb[83].mxu0 }
 0x19f   : > { %v2375_v34 = vld [vmem:[#allocation2 + $0x28] sm:$0xff]  ;;  %2644 = vst.msk [vmem:[%s4165_s27 + $0xc] sm:$0xf] %vm2640_vm1, %v3044_v30  ;;  %v2047_v43 = vadd.f32 %v3339_v29, %v4089_v6  ;;  %v3342_v47 = vadd.f32 %v3341_v37, %v3340_v33  ;;  %v3453_v48 = vpop.f32.mrb[83].mxu1  ;;  %v356_v33 = vld [vmem:[#allocation2 + $0x50] sm:$0xff] }
 0x1a0   : > { %v2452_v39 = vadd.f32 %v4151_v8, %v2413_v21  ;;  %v2414_v41 = vmul.f32 %v4146_v35, %v2375_v34  ;;  %2342 = vst.msk [vmem:[#allocation2 + $0x38] sm:$0xff] %vm313_vm0, %v2309_v25  ;;  %v3454_v49 = vadd.f32 %v3453_v48, %v3452_v32 }
 0x1a1   : > { %v2208_v57 = vadd.f32 %v3451_v36, %v2047_v43  ;;  %v2050_v59 = vadd.f32 %v3342_v47, %v4091_v9 }
 0x1a2   : > { %v2484_v51 = vmax.f32 %v2452_v39, 0.0  ;;  %v2453_v53 = vadd.f32 %v4151_v8, %v2414_v41  ;;  %v357_v41 = vld [vmem:[#allocation2 + $0x58] sm:$0xff] }
 0x1a3   : > { %v2310_v63 = vadd.f32 %v2208_v57, %v354_v10  ;;  %v2211_v3 = vadd.f32 %v3454_v49, %v2050_v59  ;;  %v3343_v5 = vpop.f32.mrb[84].mxu0 }
 0x1a4   : > { %v3045_v61 = vpack.c.bf16 %v2484_v51, %v2484_v51  ;;  %v2485_v62 = vmax.f32 %v2453_v53, 0.0  ;;  %v3455_v6 = vpop.f32.mrb[84].mxu1  ;;  %v3344_v13 = vpop.f32.mrb[85].mxu0 }
 0x1a5   : > { %v2376_v11 = vld [vmem:[#allocation2 + $0x30] sm:$0xff]  ;;  %2343 = vst.msk [vmem:[#allocation2 + $0x40] sm:$0xff] %vm313_vm0, %v2310_v63  ;;  %v2311_v16 = vadd.f32 %v2211_v3, %v355_v60  ;;  %v3345_v50 = vadd.f32 %v3344_v13, %v3343_v5  ;;  %v3456_v9 = vpop.f32.mrb[85].mxu1  ;;  %v3346_v17 = vpop.f32.mrb[86].mxu0 }
 0x1a6   : > { %2645 = vst.msk [vmem:[%s4165_s27 + $0x10] sm:$0xf] %vm2640_vm1, %v3045_v61  ;;  %v3046_v14 = vpack.c.bf16 %v2485_v62, %v2485_v62  ;;  %v2415_v15 = vmul.f32 %v4146_v35, %v2376_v11  ;;  %v3457_v19 = vadd.f32 %v3456_v9, %v3455_v6  ;;  %v3458_v54 = vpop.f32.mrb[86].mxu1  ;;  %v3347_v52 = vpop.f32.mrb[87].mxu0 }
 0x1a7   : > { %v2377_v18 = vld [vmem:[#allocation2 + $0x38] sm:$0xff]  ;;  %2344 = vst.msk [vmem:[#allocation2 + $0x48] sm:$0xff] %vm313_vm0, %v2311_v16  ;;  %v2055_v25 = vadd.f32 %v3345_v50, %v4093_v22  ;;  %v3348_v29 = vadd.f32 %v3347_v52, %v3346_v17  ;;  %v3459_v56 = vpop.f32.mrb[87].mxu1  ;;  %v358_v50 = vld [vmem:[#allocation2 + $0x60] sm:$0xff]  ;;  %v359_v52 = vld [vmem:[#allocation2 + $0x68] sm:$0xff] }
 0x1a8   : > { %2646 = vst.msk [vmem:[%s4165_s27 + $0x14] sm:$0xf] %vm2640_vm1, %v3046_v14  ;;  %v2454_v30 = vadd.f32 %v4151_v8, %v2415_v15  ;;  %v2416_v21 = vmul.f32 %v4146_v35, %v2377_v18  ;;  %v3460_v34 = vadd.f32 %v3459_v56, %v3458_v54 }
 0x1a9   : > { %v2216_v37 = vadd.f32 %v3457_v19, %v2055_v25  ;;  %v2058_v39 = vadd.f32 %v3348_v29, %v4095_v24 }
 0x1aa   : > { %v2486_v36 = vmax.f32 %v2454_v30, 0.0  ;;  %v2455_v32 = vadd.f32 %v4151_v8, %v2416_v21 }
 0x1ab   : > { %v2312_v48 = vadd.f32 %v2216_v37, %v356_v33  ;;  %v2219_v10 = vadd.f32 %v3460_v34, %v2058_v39  ;;  %v3349_v49 = vpop.f32.mrb[88].mxu0 }
 0x1ac   : > { %v3047_v43 = vpack.c.bf16 %v2486_v36, %v2486_v36  ;;  %v2487_v47 = vmax.f32 %v2455_v32, 0.0  ;;  %v2378_v51 = vld [vmem:[#allocation2 + $0x40] sm:$0xff]  ;;  %v3461_v22 = vpop.f32.mrb[88].mxu1  ;;  %v3350_v53 = vpop.f32.mrb[89].mxu0 }
 0x1ad   : > { %v2417_v59 = vmul.f32 %v4146_v35, %v2378_v51  ;;  %2345 = vst.msk [vmem:[#allocation2 + $0x50] sm:$0xff] %vm313_vm0, %v2312_v48  ;;  %v2313_v60 = vadd.f32 %v2219_v10, %v357_v41  ;;  %v3351_v61 = vadd.f32 %v3350_v53, %v3349_v49  ;;  %v3462_v24 = vpop.f32.mrb[89].mxu1  ;;  %v3352_v62 = vpop.f32.mrb[90].mxu0 }
 0x1ae   : > { %2647 = vst.msk [vmem:[%s4165_s27 + $0x18] sm:$0xf] %vm2640_vm1, %v3047_v43  ;;  %v3048_v57 = vpack.c.bf16 %v2487_v47, %v2487_v47  ;;  %v2379_v63 = vld [vmem:[#allocation2 + $0x48] sm:$0xff]  ;;  %v3463_v3 = vadd.f32 %v3462_v24, %v3461_v22  ;;  %v3464_v5 = vpop.f32.mrb[90].mxu1  ;;  %v3353_v11 = vpop.f32.mrb[91].mxu0 }
 0x1af   : > { %v2456_v6 = vadd.f32 %v4151_v8, %v2417_v59  ;;  %v2418_v13 = vmul.f32 %v4146_v35, %v2379_v63  ;;  %2346 = vst.msk [vmem:[#allocation2 + $0x58] sm:$0xff] %vm313_vm0, %v2313_v60  ;;  %v2063_v14 = vadd.f32 %v3351_v61, %v4097_v38  ;;  %v3354_v15 = vadd.f32 %v3353_v11, %v3352_v62  ;;  %v3465_v16 = vpop.f32.mrb[91].mxu1  ;;  %v360_v59 = vld [vmem:[#allocation2 + $0x70] sm:$0xff] }
 0x1b0   : > { %2648 = vst.msk [vmem:[%s4165_s27 + $0x1c] sm:$0xf] %vm2640_vm1, %v3048_v57  ;;  %v3466_v9 = vadd.f32 %v3465_v16, %v3464_v5 }
 0x1b1   : > { %v2488_v17 = vmax.f32 %v2456_v6, 0.0  ;;  %v2457_v18 = vadd.f32 %v4151_v8, %v2418_v13  ;;  %v2224_v19 = vadd.f32 %v3463_v3, %v2063_v14  ;;  %v2066_v54 = vadd.f32 %v3354_v15, %v4099_v40  ;;  %v361_v3 = vld [vmem:[#allocation2 + $0x78] sm:$0xff] }
 0x1b3   : > { %v3049_v30 = vpack.c.bf16 %v2488_v17, %v2488_v17  ;;  %v2489_v21 = vmax.f32 %v2457_v18, 0.0  ;;  %v2314_v25 = vadd.f32 %v2224_v19, %v358_v50  ;;  %v2227_v29 = vadd.f32 %v3466_v9, %v2066_v54  ;;  %v3355_v56 = vpop.f32.mrb[92].mxu0 }
 0x1b4   : > { %v2380_v33 = vld [vmem:[#allocation2 + $0x50] sm:$0xff]  ;;  %v3467_v38 = vpop.f32.mrb[92].mxu1  ;;  %v3356_v34 = vpop.f32.mrb[93].mxu0 }
 0x1b5   : > { %2649 = vst.msk [vmem:[%s4165_s27 + $0x20] sm:$0xf] %vm2640_vm1, %v3049_v30  ;;  %v3050_v36 = vpack.c.bf16 %v2489_v21, %v2489_v21  ;;  %v2419_v32 = vmul.f32 %v4146_v35, %v2380_v33  ;;  %v2315_v37 = vadd.f32 %v2227_v29, %v359_v52  ;;  %v3357_v39 = vadd.f32 %v3356_v34, %v3355_v56  ;;  %v3468_v40 = vpop.f32.mrb[93].mxu1  ;;  %v3358_v41 = vpop.f32.mrb[94].mxu0  ;;  %v362_v34 = vld [vmem:[#allocation2 + $0x80] sm:$0xff] }
 0x1b6   : > { %2347 = vst.msk [vmem:[#allocation2 + $0x60] sm:$0xff] %vm313_vm0, %v2314_v25  ;;  %v2381_v43 = vld [vmem:[#allocation2 + $0x58] sm:$0xff]  ;;  %v3469_v47 = vadd.f32 %v3468_v40, %v3467_v38  ;;  %v3470_v48 = vpop.f32.mrb[94].mxu1  ;;  %v3359_v10 = vpop.f32.mrb[95].mxu0 }
 0x1b7   : > { %2650 = vst.msk [vmem:[%s4165_s27 + $0x24] sm:$0xf] %vm2640_vm1, %v3050_v36  ;;  %v2458_v49 = vadd.f32 %v4151_v8, %v2419_v32  ;;  %v2420_v51 = vmul.f32 %v4146_v35, %v2381_v43  ;;  %v2071_v22 = vadd.f32 %v3357_v39, %v4101_v55  ;;  %v3360_v53 = vadd.f32 %v3359_v10, %v3358_v41  ;;  %v3471_v57 = vpop.f32.mrb[95].mxu1  ;;  %v363_v41 = vld [vmem:[#allocation2 + $0x88] sm:$0xff] }
 0x1b8   : > { %2348 = vst.msk [vmem:[#allocation2 + $0x68] sm:$0xff] %vm313_vm0, %v2315_v37  ;;  %v3472_v60 = vadd.f32 %v3471_v57, %v3470_v48 }
 0x1b9   : > { %v2490_v61 = vmax.f32 %v2458_v49, 0.0  ;;  %v2459_v24 = vadd.f32 %v4151_v8, %v2420_v51  ;;  %v2232_v62 = vadd.f32 %v3469_v47, %v2071_v22  ;;  %v2074_v63 = vadd.f32 %v3360_v53, %v4103_v58 }
 0x1bb   : > { %v3051_v5 = vpack.c.bf16 %v2490_v61, %v2490_v61  ;;  %v2491_v11 = vmax.f32 %v2459_v24, 0.0  ;;  %v2316_v6 = vadd.f32 %v2232_v62, %v360_v59  ;;  %v2235_v13 = vadd.f32 %v3472_v60, %v2074_v63  ;;  %v3361_v14 = vpop.f32.mrb[96].mxu0 }
 0x1bc   : > { %v3473_v55 = vpop.f32.mrb[96].mxu1  ;;  %v3362_v16 = vpop.f32.mrb[97].mxu0 }
 0x1bd   : > { %v2382_v15 = vld [vmem:[#allocation2 + $0x60] sm:$0xff]  ;;  %2651 = vst.msk [vmem:[%s4165_s27 + $0x28] sm:$0xf] %vm2640_vm1, %v3051_v5  ;;  %v3052_v50 = vpack.c.bf16 %v2491_v11, %v2491_v11  ;;  %v2317_v17 = vadd.f32 %v2235_v13, %v361_v3  ;;  %v3363_v18 = vadd.f32 %v3362_v16, %v3361_v14  ;;  %v3474_v58 = vpop.f32.mrb[97].mxu1  ;;  %v3364_v19 = vpop.f32.mrb[98].mxu0 }
 0x1be   : > { %v2421_v9 = vmul.f32 %v4146_v35, %v2382_v15  ;;  %2349 = vst.msk [vmem:[#allocation2 + $0x70] sm:$0xff] %vm313_vm0, %v2316_v6  ;;  %v3475_v52 = vadd.f32 %v3474_v58, %v3473_v55  ;;  %v3476_v30 = vpop.f32.mrb[98].mxu1  ;;  %v3365_v21 = vpop.f32.mrb[99].mxu0  ;;  %v364_v15 = vld [vmem:[#allocation2 + $0x90] sm:$0xff] }
 0x1bf   : > { %v2383_v54 = vld [vmem:[#allocation2 + $0x68] sm:$0xff]  ;;  %2652 = vst.msk [vmem:[%s4165_s27 + $0x2c] sm:$0xf] %vm2640_vm1, %v3052_v50  ;;  %v2079_v56 = vadd.f32 %v3363_v18, %v4105_v7  ;;  %v3366_v33 = vadd.f32 %v3365_v21, %v3364_v19  ;;  %v3477_v38 = vpop.f32.mrb[99].mxu1  ;;  %v365_v18 = vld [vmem:[#allocation2 + $0x98] sm:$0xff] }
 0x1c0   : > { %v2460_v25 = vadd.f32 %v4151_v8, %v2421_v9  ;;  %v2422_v29 = vmul.f32 %v4146_v35, %v2383_v54  ;;  %2350 = vst.msk [vmem:[#allocation2 + $0x78] sm:$0xff] %vm313_vm0, %v2317_v17  ;;  %v3478_v36 = vadd.f32 %v3477_v38, %v3476_v30 }
 0x1c1   : > { %v2240_v39 = vadd.f32 %v3475_v52, %v2079_v56  ;;  %v2082_v40 = vadd.f32 %v3366_v33, %v4107_v12 }
 0x1c2   : > { %v2492_v32 = vmax.f32 %v2460_v25, 0.0  ;;  %v2461_v37 = vadd.f32 %v4151_v8, %v2422_v29 }
 0x1c3   : > { %v2318_v48 = vadd.f32 %v2240_v39, %v362_v34  ;;  %v2243_v10 = vadd.f32 %v3478_v36, %v2082_v40  ;;  %v3367_v49 = vpop.f32.mrb[100].mxu0 }
 0x1c4   : > { %v3053_v43 = vpack.c.bf16 %v2492_v32, %v2492_v32  ;;  %v2493_v47 = vmax.f32 %v2461_v37, 0.0  ;;  %v3479_v7 = vpop.f32.mrb[100].mxu1  ;;  %v3368_v22 = vpop.f32.mrb[101].mxu0 }
 0x1c5   : > { %v2384_v51 = vld [vmem:[#allocation2 + $0x70] sm:$0xff]  ;;  %2351 = vst.msk [vmem:[#allocation2 + $0x80] sm:$0xff] %vm313_vm0, %v2318_v48  ;;  %v2319_v59 = vadd.f32 %v2243_v10, %v363_v41  ;;  %v3369_v60 = vadd.f32 %v3368_v22, %v3367_v49  ;;  %v3480_v12 = vpop.f32.mrb[101].mxu1  ;;  %v3370_v61 = vpop.f32.mrb[102].mxu0  ;;  %v366_v10 = vld [vmem:[#allocation2 + $0xa0] sm:$0xff] }
 0x1c6   : > { %2653 = vst.msk [vmem:[%s4165_s27 + $0x30] sm:$0xf] %vm2640_vm1, %v3053_v43  ;;  %v3054_v53 = vpack.c.bf16 %v2493_v47, %v2493_v47  ;;  %v2423_v57 = vmul.f32 %v4146_v35, %v2384_v51  ;;  %v3481_v62 = vadd.f32 %v3480_v12, %v3479_v7  ;;  %v3482_v63 = vpop.f32.mrb[102].mxu1  ;;  %v3371_v3 = vpop.f32.mrb[103].mxu0 }
 0x1c7   : > { %v2385_v24 = vld [vmem:[#allocation2 + $0x78] sm:$0xff]  ;;  %2352 = vst.msk [vmem:[#allocation2 + $0x88] sm:$0xff] %vm313_vm0, %v2319_v59  ;;  %v2087_v6 = vadd.f32 %v3369_v60, %v4109_v26  ;;  %v3372_v13 = vadd.f32 %v3371_v3, %v3370_v61  ;;  %v3483_v14 = vpop.f32.mrb[103].mxu1 }
 0x1c8   : > { %2654 = vst.msk [vmem:[%s4165_s27 + $0x34] sm:$0xf] %vm2640_vm1, %v3054_v53  ;;  %v2462_v5 = vadd.f32 %v4151_v8, %v2423_v57  ;;  %v2424_v11 = vmul.f32 %v4146_v35, %v2385_v24  ;;  %v3484_v55 = vadd.f32 %v3483_v14, %v3482_v63  ;;  %v367_v57 = vld [vmem:[#allocation2 + $0xa8] sm:$0xff] }
 0x1c9   : > { %v2248_v9 = vadd.f32 %v3481_v62, %v2087_v6  ;;  %v2090_v17 = vadd.f32 %v3372_v13, %v4111_v28 }
 0x1ca   : > { %v2494_v16 = vmax.f32 %v2462_v5, 0.0  ;;  %v2463_v50 = vadd.f32 %v4151_v8, %v2424_v11 }
 0x1cb   : > { %v2320_v54 = vadd.f32 %v2248_v9, %v364_v15  ;;  %v2251_v52 = vadd.f32 %v3484_v55, %v2090_v17  ;;  %v3373_v30 = vpop.f32.mrb[104].mxu0 }
 0x1cc   : > { %v3055_v58 = vpack.c.bf16 %v2494_v16, %v2494_v16  ;;  %v2495_v19 = vmax.f32 %v2463_v50, 0.0  ;;  %v2386_v21 = vld [vmem:[#allocation2 + $0x80] sm:$0xff]  ;;  %v3485_v26 = vpop.f32.mrb[104].mxu1  ;;  %v3374_v25 = vpop.f32.mrb[105].mxu0 }
 0x1cd   : > { %v2425_v56 = vmul.f32 %v4146_v35, %v2386_v21  ;;  %2353 = vst.msk [vmem:[#allocation2 + $0x90] sm:$0xff] %vm313_vm0, %v2320_v54  ;;  %v2321_v33 = vadd.f32 %v2251_v52, %v365_v18  ;;  %v3375_v38 = vadd.f32 %v3374_v25, %v3373_v30  ;;  %v3486_v28 = vpop.f32.mrb[105].mxu1  ;;  %v3376_v34 = vpop.f32.mrb[106].mxu0  ;;  %v369_v25 = vld [vmem:[#allocation2 + $0xb8] sm:$0xff] }
 0x1ce   : > { %2655 = vst.msk [vmem:[%s4165_s27 + $0x38] sm:$0xf] %vm2640_vm1, %v3055_v58  ;;  %v3056_v29 = vpack.c.bf16 %v2495_v19, %v2495_v19  ;;  %v2387_v36 = vld [vmem:[#allocation2 + $0x88] sm:$0xff]  ;;  %v3487_v32 = vadd.f32 %v3486_v28, %v3485_v26  ;;  %v3488_v37 = vpop.f32.mrb[106].mxu1  ;;  %v3377_v39 = vpop.f32.mrb[107].mxu0  ;;  %v368_v19 = vld [vmem:[#allocation2 + $0xb0] sm:$0xff] }
 0x1cf   : > { %v2464_v40 = vadd.f32 %v4151_v8, %v2425_v56  ;;  %v2426_v41 = vmul.f32 %v4146_v35, %v2387_v36  ;;  %2354 = vst.msk [vmem:[#allocation2 + $0x98] sm:$0xff] %vm313_vm0, %v2321_v33  ;;  %v2095_v43 = vadd.f32 %v3375_v38, %v4113_v44  ;;  %v3378_v47 = vadd.f32 %v3377_v39, %v3376_v34  ;;  %v3489_v48 = vpop.f32.mrb[107].mxu1 }
 0x1d0   : > { %2656 = vst.msk [vmem:[%s4165_s27 + $0x3c] sm:$0xf] %vm2640_vm1, %v3056_v29  ;;  %v3490_v49 = vadd.f32 %v3489_v48, %v3488_v37 }
 0x1d1   : > { %v2496_v51 = vmax.f32 %v2464_v40, 0.0  ;;  %v2465_v7 = vadd.f32 %v4151_v8, %v2426_v41  ;;  %v2256_v22 = vadd.f32 %v3487_v32, %v2095_v43  ;;  %v2098_v53 = vadd.f32 %v3378_v47, %v4115_v46 }
 0x1d3   : > { %v3057_v59 = vpack.c.bf16 %v2496_v51, %v2496_v51  ;;  %v2497_v60 = vmax.f32 %v2465_v7, 0.0  ;;  %v2322_v12 = vadd.f32 %v2256_v22, %v366_v10  ;;  %v2259_v61 = vadd.f32 %v3490_v49, %v2098_v53  ;;  %v3379_v24 = vpop.f32.mrb[108].mxu0 }
 0x1d4   : > { %v2388_v62 = vld [vmem:[#allocation2 + $0x90] sm:$0xff]  ;;  %v3491_v44 = vpop.f32.mrb[108].mxu1  ;;  %v3380_v63 = vpop.f32.mrb[109].mxu0 }
 0x1d5   : > { %2657 = vst.msk [vmem:[%s4165_s27 + $0x40] sm:$0xf] %vm2640_vm1, %v3057_v59  ;;  %v3058_v3 = vpack.c.bf16 %v2497_v60, %v2497_v60  ;;  %v2427_v5 = vmul.f32 %v4146_v35, %v2388_v62  ;;  %v2323_v11 = vadd.f32 %v2259_v61, %v367_v57  ;;  %v3381_v6 = vadd.f32 %v3380_v63, %v3379_v24  ;;  %v3492_v46 = vpop.f32.mrb[109].mxu1  ;;  %v3382_v13 = vpop.f32.mrb[110].mxu0  ;;  %v370_v57 = vld [vmem:[#allocation2 + $0xc0] sm:$0xff]  ;;  %v371_v62 = vld [vmem:[#allocation2 + $0xc8] sm:$0xff] }
 0x1d6   : > { %2355 = vst.msk [vmem:[#allocation2 + $0xa0] sm:$0xff] %vm313_vm0, %v2322_v12  ;;  %v2389_v14 = vld [vmem:[#allocation2 + $0x98] sm:$0xff]  ;;  %v3493_v15 = vadd.f32 %v3492_v46, %v3491_v44  ;;  %v3494_v55 = vpop.f32.mrb[110].mxu1  ;;  %v3383_v16 = vpop.f32.mrb[111].mxu0 }
 0x1d7   : > { %2658 = vst.msk [vmem:[%s4165_s27 + $0x44] sm:$0xf] %vm2640_vm1, %v3058_v3  ;;  %v2466_v50 = vadd.f32 %v4151_v8, %v2427_v5  ;;  %v2428_v9 = vmul.f32 %v4146_v35, %v2389_v14  ;;  %v2103_v17 = vadd.f32 %v3381_v6, %v4117_v0  ;;  %v3384_v18 = vadd.f32 %v3383_v16, %v3382_v13  ;;  %v3495_v58 = vpop.f32.mrb[111].mxu1 }
 0x1d8   : > { %2356 = vst.msk [vmem:[#allocation2 + $0xa8] sm:$0xff] %vm313_vm0, %v2323_v11  ;;  %v3496_v54 = vadd.f32 %v3495_v58, %v3494_v55 }
 0x1d9   : > { %v2498_v52 = vmax.f32 %v2466_v50, 0.0  ;;  %v2467_v30 = vadd.f32 %v4151_v8, %v2428_v9  ;;  %v2264_v21 = vadd.f32 %v3493_v15, %v2103_v17  ;;  %v2106_v26 = vadd.f32 %v3384_v18, %v4119_v2 }
 0x1db   : > { %v3059_v29 = vpack.c.bf16 %v2498_v52, %v2498_v52  ;;  %v2499_v56 = vmax.f32 %v2467_v30, 0.0  ;;  %v2324_v33 = vadd.f32 %v2264_v21, %v368_v19  ;;  %v2267_v38 = vadd.f32 %v3496_v54, %v2106_v26  ;;  %v3385_v28 = vpop.f32.mrb[112].mxu0  ;;  %v372_v21 = vld [vmem:[#allocation2 + $0xd0] sm:$0xff] }
 0x1dc   : > { %v3497_v0 = vpop.f32.mrb[112].mxu1  ;;  %v3386_v36 = vpop.f32.mrb[113].mxu0 }
 0x1dd   : > { %v2390_v34 = vld [vmem:[#allocation2 + $0xa0] sm:$0xff]  ;;  %2659 = vst.msk [vmem:[%s4165_s27 + $0x48] sm:$0xf] %vm2640_vm1, %v3059_v29  ;;  %v3060_v32 = vpack.c.bf16 %v2499_v56, %v2499_v56  ;;  %v2325_v39 = vadd.f32 %v2267_v38, %v369_v25  ;;  %v3387_v40 = vadd.f32 %v3386_v36, %v3385_v28  ;;  %v3498_v2 = vpop.f32.mrb[113].mxu1  ;;  %v3388_v41 = vpop.f32.mrb[114].mxu0  ;;  %v373_v38 = vld [vmem:[#allocation2 + $0xd8] sm:$0xff] }
 0x1de   : > { %v2429_v37 = vmul.f32 %v4146_v35, %v2390_v34  ;;  %2357 = vst.msk [vmem:[#allocation2 + $0xb0] sm:$0xff] %vm313_vm0, %v2324_v33  ;;  %v3499_v47 = vadd.f32 %v3498_v2, %v3497_v0  ;;  %v3500_v48 = vpop.f32.mrb[114].mxu1  ;;  %v3389_v10 = vpop.f32.mrb[115].mxu0 }
 0x1df   : > { %v2391_v43 = vld [vmem:[#allocation2 + $0xa8] sm:$0xff]  ;;  %2660 = vst.msk [vmem:[%s4165_s27 + $0x4c] sm:$0xf] %vm2640_vm1, %v3060_v32  ;;  %v2111_v7 = vadd.f32 %v3387_v40, %v4121_v20  ;;  %v3390_v22 = vadd.f32 %v3389_v10, %v3388_v41  ;;  %v3501_v53 = vpop.f32.mrb[115].mxu1 }
 0x1e0   : > { %v2468_v49 = vadd.f32 %v4151_v8, %v2429_v37  ;;  %v2430_v51 = vmul.f32 %v4146_v35, %v2391_v43  ;;  %2358 = vst.msk [vmem:[#allocation2 + $0xb8] sm:$0xff] %vm313_vm0, %v2325_v39  ;;  %v3502_v59 = vadd.f32 %v3501_v53, %v3500_v48 }
 0x1e1   : > { %v2272_v61 = vadd.f32 %v3499_v47, %v2111_v7  ;;  %v2114_v24 = vadd.f32 %v3390_v22, %v4123_v23 }
 0x1e2   : > { %v2500_v60 = vmax.f32 %v2468_v49, 0.0  ;;  %v2469_v12 = vadd.f32 %v4151_v8, %v2430_v51 }
 0x1e3   : > { %v2326_v3 = vadd.f32 %v2272_v61, %v370_v57  ;;  %v2275_v5 = vadd.f32 %v3502_v59, %v2114_v24  ;;  %v3391_v11 = vpop.f32.mrb[116].mxu0 }
 0x1e4   : > { %v3061_v44 = vpack.c.bf16 %v2500_v60, %v2500_v60  ;;  %v2501_v63 = vmax.f32 %v2469_v12, 0.0  ;;  %v3503_v20 = vpop.f32.mrb[116].mxu1  ;;  %v3392_v46 = vpop.f32.mrb[117].mxu0  ;;  %v374_v60 = vld [vmem:[#allocation2 + $0xe0] sm:$0xff] }
 0x1e5   : > { %v2392_v6 = vld [vmem:[#allocation2 + $0xb0] sm:$0xff]  ;;  %2359 = vst.msk [vmem:[#allocation2 + $0xc0] sm:$0xff] %vm313_vm0, %v2326_v3  ;;  %v2327_v15 = vadd.f32 %v2275_v5, %v371_v62  ;;  %v3393_v55 = vadd.f32 %v3392_v46, %v3391_v11  ;;  %v3504_v23 = vpop.f32.mrb[117].mxu1  ;;  %v3394_v16 = vpop.f32.mrb[118].mxu0 }
 0x1e6   : > { %2661 = vst.msk [vmem:[%s4165_s27 + $0x50] sm:$0xf] %vm2640_vm1, %v3061_v44  ;;  %v3062_v13 = vpack.c.bf16 %v2501_v63, %v2501_v63  ;;  %v2431_v14 = vmul.f32 %v4146_v35, %v2392_v6  ;;  %v3505_v9 = vadd.f32 %v3504_v23, %v3503_v20  ;;  %v3506_v17 = vpop.f32.mrb[118].mxu1  ;;  %v3395_v18 = vpop.f32.mrb[119].mxu0  ;;  %v375_v63 = vld [vmem:[#allocation2 + $0xe8] sm:$0xff] }
 0x1e7   : > { %v2393_v50 = vld [vmem:[#allocation2 + $0xb8] sm:$0xff]  ;;  %2360 = vst.msk [vmem:[#allocation2 + $0xc8] sm:$0xff] %vm313_vm0, %v2327_v15  ;;  %v2119_v54 = vadd.f32 %v3393_v55, %v4125_v42  ;;  %v3396_v52 = vadd.f32 %v3395_v18, %v3394_v16  ;;  %v3507_v30 = vpop.f32.mrb[119].mxu1 }
 0x1e8   : > { %2662 = vst.msk [vmem:[%s4165_s27 + $0x54] sm:$0xf] %vm2640_vm1, %v3062_v13  ;;  %v2470_v58 = vadd.f32 %v4151_v8, %v2431_v14  ;;  %v2432_v19 = vmul.f32 %v4146_v35, %v2393_v50  ;;  %v3508_v26 = vadd.f32 %v3507_v30, %v3506_v17 }
 0x1e9   : > { %v2280_v56 = vadd.f32 %v3505_v9, %v2119_v54  ;;  %v2122_v33 = vadd.f32 %v3396_v52, %v4127_v45 }
 0x1ea   : > { %v2502_v25 = vmax.f32 %v2470_v58, 0.0  ;;  %v2471_v29 = vadd.f32 %v4151_v8, %v2432_v19 }
 0x1eb   : > { %v2328_v0 = vadd.f32 %v2280_v56, %v372_v21  ;;  %v2283_v36 = vadd.f32 %v3508_v26, %v2122_v33  ;;  %v3397_v32 = vpop.f32.mrb[120].mxu0  ;;  %v376_v21 = vld [vmem:[#allocation2 + $0xf0] sm:$0xff] }
 0x1ec   : > { %v3063_v28 = vpack.c.bf16 %v2502_v25, %v2502_v25  ;;  %v2503_v34 = vmax.f32 %v2471_v29, 0.0  ;;  %v2394_v37 = vld [vmem:[#allocation2 + $0xc0] sm:$0xff]  ;;  %v3509_v42 = vpop.f32.mrb[120].mxu1  ;;  %v3398_v39 = vpop.f32.mrb[121].mxu0 }
 0x1ed   : > { %v2433_v2 = vmul.f32 %v4146_v35, %v2394_v37  ;;  %2361 = vst.msk [vmem:[#allocation2 + $0xd0] sm:$0xff] %vm313_vm0, %v2328_v0  ;;  %v2329_v41 = vadd.f32 %v2283_v36, %v373_v38  ;;  %v3399_v43 = vadd.f32 %v3398_v39, %v3397_v32  ;;  %v3510_v45 = vpop.f32.mrb[121].mxu1  ;;  %v3400_v47 = vpop.f32.mrb[122].mxu0  ;;  %v377_v38 = vld [vmem:[#allocation2 + $0xf8] sm:$0xff] }
 0x1ee   : > { %2663 = vst.msk [vmem:[%s4165_s27 + $0x58] sm:$0xf] %vm2640_vm1, %v3063_v28  ;;  %v3064_v40 = vpack.c.bf16 %v2503_v34, %v2503_v34  ;;  %v2395_v48 = vld [vmem:[#allocation2 + $0xc8] sm:$0xff]  ;;  %v3511_v10 = vadd.f32 %v3510_v45, %v3509_v42  ;;  %v3512_v49 = vpop.f32.mrb[122].mxu1  ;;  %v3401_v51 = vpop.f32.mrb[123].mxu0 }
 0x1ef   : > { %v2472_v7 = vadd.f32 %v4151_v8, %v2433_v2  ;;  %v2434_v22 = vmul.f32 %v4146_v35, %v2395_v48  ;;  %2362 = vst.msk [vmem:[#allocation2 + $0xd8] sm:$0xff] %vm313_vm0, %v2329_v41  ;;  %v2127_v53 = vadd.f32 %v3399_v43, %v4129_v1  ;;  %v3402_v57 = vadd.f32 %v3401_v51, %v3400_v47  ;;  %v3513_v59 = vpop.f32.mrb[123].mxu1 }
 0x1f0   : > { %2664 = vst.msk [vmem:[%s4165_s27 + $0x5c] sm:$0xf] %vm2640_vm1, %v3064_v40  ;;  %v3514_v12 = vadd.f32 %v3513_v59, %v3512_v49 }
 0x1f1   : > { %v2504_v61 = vmax.f32 %v2472_v7, 0.0  ;;  %v2473_v24 = vadd.f32 %v4151_v8, %v2434_v22  ;;  %v2288_v62 = vadd.f32 %v3511_v10, %v2127_v53  ;;  %v2130_v44 = vadd.f32 %v3402_v57, %v4131_v4 }
 0x1f3   : > { %v3065_v3 = vpack.c.bf16 %v2504_v61, %v2504_v61  ;;  %v2505_v5 = vmax.f32 %v2473_v24, 0.0  ;;  %v2330_v11 = vadd.f32 %v2288_v62, %v374_v60  ;;  %v2291_v6 = vadd.f32 %v3514_v12, %v2130_v44  ;;  %v3403_v20 = vpop.f32.mrb[124].mxu0 }
 0x1f4   : > { %v2396_v46 = vld [vmem:[#allocation2 + $0xd0] sm:$0xff]  ;;  %v3515_v1 = vpop.f32.mrb[124].mxu1  ;;  %v3404_v13 = vpop.f32.mrb[125].mxu0 }
 0x1f5   : > { %2665 = vst.msk [vmem:[%s4165_s27 + $0x60] sm:$0xf] %vm2640_vm1, %v3065_v3  ;;  %v3066_v14 = vpack.c.bf16 %v2505_v5, %v2505_v5  ;;  %v2435_v15 = vmul.f32 %v4146_v35, %v2396_v46  ;;  %v2331_v55 = vadd.f32 %v2291_v6, %v375_v63  ;;  %v3405_v23 = vadd.f32 %v3404_v13, %v3403_v20  ;;  %v3516_v4 = vpop.f32.mrb[125].mxu1  ;;  %v3406_v16 = vpop.f32.mrb[126].mxu0 }
 0x1f6   : > { %2363 = vst.msk [vmem:[#allocation2 + $0xe0] sm:$0xff] %vm313_vm0, %v2330_v11  ;;  %v2397_v50 = vld [vmem:[#allocation2 + $0xd8] sm:$0xff]  ;;  %v3517_v9 = vadd.f32 %v3516_v4, %v3515_v1  ;;  %v3518_v17 = vpop.f32.mrb[126].mxu1  ;;  %v3407_v18 = vpop.f32.mrb[127].mxu0 }
 0x1f7   : > { %2666 = vst.msk [vmem:[%s4165_s27 + $0x64] sm:$0xf] %vm2640_vm1, %v3066_v14  ;;  %v2474_v58 = vadd.f32 %v4151_v8, %v2435_v15  ;;  %v2436_v19 = vmul.f32 %v4146_v35, %v2397_v50  ;;  %v2135_v54 = vadd.f32 %v3405_v23, %v4133_v27  ;;  %v3408_v52 = vadd.f32 %v3407_v18, %v3406_v16  ;;  %v3519_v30 = vpop.f32.mrb[127].mxu1 }
 0x1f8   : > { %2364 = vst.msk [vmem:[#allocation2 + $0xe8] sm:$0xff] %vm313_vm0, %v2331_v55  ;;  %v3520_v26 = vadd.f32 %v3519_v30, %v3518_v17 }
 0x1f9   : > { %v2506_v25 = vmax.f32 %v2474_v58, 0.0  ;;  %v2475_v29 = vadd.f32 %v4151_v8, %v2436_v19  ;;  %v2296_v56 = vadd.f32 %v3517_v9, %v2135_v54  ;;  %v2138_v33 = vadd.f32 %v3408_v52, %v4135_v31 }
 0x1fb   : > { %v3067_v28 = vpack.c.bf16 %v2506_v25, %v2506_v25  ;;  %v2507_v34 = vmax.f32 %v2475_v29, 0.0  ;;  %v2332_v0 = vadd.f32 %v2296_v56, %v376_v21  ;;  %v2299_v36 = vadd.f32 %v3520_v26, %v2138_v33 }
 0x1fd   : > { %v2398_v32 = vld [vmem:[#allocation2 + $0xe0] sm:$0xff]  ;;  %2667 = vst.msk [vmem:[%s4165_s27 + $0x68] sm:$0xf] %vm2640_vm1, %v3067_v28  ;;  %v3068_v27 = vpack.c.bf16 %v2507_v34, %v2507_v34  ;;  %v2333_v42 = vadd.f32 %v2299_v36, %v377_v38 }
 0x1fe   : > { %v2437_v37 = vmul.f32 %v4146_v35, %v2398_v32  ;;  %2365 = vst.msk [vmem:[#allocation2 + $0xf0] sm:$0xff] %vm313_vm0, %v2332_v0 }
 0x1ff   : > { %v2399_v39 = vld [vmem:[#allocation2 + $0xe8] sm:$0xff]  ;;  %2668 = vst.msk [vmem:[%s4165_s27 + $0x6c] sm:$0xf] %vm2640_vm1, %v3068_v27 }
 0x200   : > { %v2476_v31 = vadd.f32 %v4151_v8, %v2437_v37  ;;  %v2438_v40 = vmul.f32 %v4146_v35, %v2399_v39  ;;  %2366 = vst.msk [vmem:[#allocation2 + $0xf8] sm:$0xff] %vm313_vm0, %v2333_v42 }
 0x202   : > { %v2508_v2 = vmax.f32 %v2476_v31, 0.0  ;;  %v2477_v41 = vadd.f32 %v4151_v8, %v2438_v40 }
 0x204   : > { %v3069_v43 = vpack.c.bf16 %v2508_v2, %v2508_v2  ;;  %v2509_v45 = vmax.f32 %v2477_v41, 0.0 }
 0x205   : > { %v2400_v47 = vld [vmem:[#allocation2 + $0xf0] sm:$0xff] }
 0x206   : > { %2669 = vst.msk [vmem:[%s4165_s27 + $0x70] sm:$0xf] %vm2640_vm1, %v3069_v43  ;;  %v3070_v48 = vpack.c.bf16 %v2509_v45, %v2509_v45  ;;  %v2439_v10 = vmul.f32 %v4146_v35, %v2400_v47 }
 0x207   : > { %v2401_v49 = vld [vmem:[#allocation2 + $0xf8] sm:$0xff] }
 0x208   : > { %2670 = vst.msk [vmem:[%s4165_s27 + $0x74] sm:$0xf] %vm2640_vm1, %v3070_v48  ;;  %v2478_v51 = vadd.f32 %v4151_v8, %v2439_v10  ;;  %v2440_v7 = vmul.f32 %v4146_v35, %v2401_v49 }
 0x20a   : > { %v2510_v22 = vmax.f32 %v2478_v51, 0.0  ;;  %v2479_v53 = vadd.f32 %v4151_v8, %v2440_v7 }
 0x20c   : > { %v3071_v57 = vpack.c.bf16 %v2510_v22, %v2510_v22  ;;  %v2511_v59 = vmax.f32 %v2479_v53, 0.0 }
 0x20e   : > { %2671 = vst.msk [vmem:[%s4165_s27 + $0x78] sm:$0xf] %vm2640_vm1, %v3071_v57  ;;  %v3072_v60 = vpack.c.bf16 %v2511_v59, %v2511_v59 }
 0x210   : > { %2672 = vst.msk [vmem:[%s4165_s27 + $0x7c] sm:$0xf] %vm2640_vm1, %v3072_v60 }
 0x211 PF: > { %s14_s17 = sadd.s32 1, %s3632_s17   ;;  %s4359_s15 = smov %s3628_s16 }
 0x212   : > { %p11_p5 = scmp.ge.s32.totalorder %s14_s17, 10   ;;  %s4360_s16 = smov %s4362_s18 }
 0x214   :  { %13 = sbr.rel (!%p11_p5) target bundleno = 2 (0x2), region = 83 }

// kernel: forward.7
= control target key start
LH: loop header
LB: loop body
LE: loop exit
PB: predicated region body
PF: predicated region fallthrough
CT: control target
= control target key end

     0   :  { %s2930_s15 = smov 0   ;;  %s2932_s16 = smov 0   ;;  %s3499_s0 = inlined_call_operand.vmem [shape: bf16[1792,640], index: 0, kind: input, shape index: {}]   ;;  %s3500_s1 = inlined_call_operand.vmem [shape: bf16[640,64], index: 1, kind: input, shape index: {}]   ;;  %s3501_s2 = inlined_call_operand.vmem [shape: f32[1,64], index: 2, kind: input, shape index: {}]   ;;  %s3502_s3 = inlined_call_operand.vmem [shape: f32[1,64], index: 3, kind: input, shape index: {}]   ;;  %s3503_s4 = inlined_call_operand.vmem [shape: bf16[1792,64], index: 4, kind: output, shape index: {}]  }
   0x1   :  { %s2934_s17 = smov 0  }
   0x2 LB: > { %s33_s18 = sadd.s32 1, %s2898_s16  ;;  %p2197_p0 = scmp.ge.s32.totalorder %s2902_s17, 1  ;;  %s2902_s17 = sphi %s2934_s17, %s14_s17   ;;  %s2898_s16 = sphi %s2932_s16, %s3505_s16   ;;  %s2894_s15 = sphi %s2930_s15, %s3504_s15  }
   0x3   : > { %p35_p1 = scmp.ge.s32.totalorder %s33_s18, 7  ;;  %p224_p2 = scmp.lt.s32.totalorder %s2902_s17, 8 }
   0x5   : > { %s3507_s18 = smov (%p35_p1, %s33_s18), 0  ;;  %p225_p3 = pnand %p2197_p0, %p224_p2 }
   0x6   : > { %v2728_v0 = vld [vmem:[%s3500_s1 + $0x40] sm:$0xff] (!%p225_p3)   ;;  %s2198_s21 = sshll.u32 (!%p225_p3), %s2894_s15, 5  ;;  %v2730_v2 = vld [vmem:[%s3500_s1 + $0x48] sm:$0xff] (!%p225_p3)   ;;  %v2732_v4 = vld [vmem:[%s3500_s1 + $0x50] sm:$0xff] (!%p225_p3)   ;;  %vm313_vm0 = vcmask (!%p225_p3), 523264   ;;  %vm2031_vm1 = vcmask (!%p225_p3), 519168  }
   0x7   : > { %228 = sbr.rel (%p225_p3) target bundleno = 432 (0x1b0), region = 36  ;;  %v2729_v1 = vld [vmem:[%s3500_s1] sm:$0xff] (!%p225_p3)   ;;  %2390 = vmatprep.subr.bf16.mxu0 (!%p225_p3), %v2728_v0  ;;  %2686 = vmatprep.subr.bf16.mxu1 (!%p225_p3), %v2728_v0  ;;  %p274_p4 = scmp.lt.s32.totalorder (!%p225_p3), %s2198_s21, 223  ;;  %v2731_v3 = vld [vmem:[%s3500_s1 + $0x8] sm:$0xff] (!%p225_p3)   ;;  %v2733_v5 = vld [vmem:[%s3500_s1 + $0x10] sm:$0xff] (!%p225_p3)  }
   0x8   : > { %2391 = vmatpush3.bf16.msra.mxu0 (!%p225_p3), %v2729_v1  ;;  %2694 = vmatpush3.bf16.msra.mxu1 (!%p225_p3), %v2729_v1  ;;  %v2734_v6 = vld [vmem:[%s3500_s1 + $0x58] sm:$0xff] (!%p225_p3)   ;;  %v2736_v8 = vld [vmem:[%s3500_s1 + $0x60] sm:$0xff] (!%p225_p3)   ;;  %v2738_v10 = vld [vmem:[%s3500_s1 + $0x68] sm:$0xff] (!%p225_p3)  }
   0x9   : > { %2392 = vmatprep.subr.bf16.mxu0 (!%p225_p3), %v2730_v2  ;;  %2687 = vmatprep.subr.bf16.mxu1 (!%p225_p3), %v2730_v2  ;;  %v2735_v7 = vld [vmem:[%s3500_s1 + $0x18] sm:$0xff] (!%p225_p3)   ;;  %v2737_v9 = vld [vmem:[%s3500_s1 + $0x20] sm:$0xff] (!%p225_p3)   ;;  %v2739_v13 = vld [vmem:[%s3500_s1 + $0x28] sm:$0xff] (!%p225_p3)  }
   0xa   : > { %v2740_v14 = vld [vmem:[%s3500_s1 + $0x70] sm:$0xff] (!%p225_p3)   ;;  %v2742_v16 = vld [vmem:[%s3500_s1 + $0x78] sm:$0xff] (!%p225_p3)   ;;  %v2750_v18 = vld [vmem:[%s3500_s1 + $0xc0] sm:$0xff] (!%p225_p3)  }
   0xb   : > { %v2741_v15 = vld [vmem:[%s3500_s1 + $0x30] sm:$0xff] (!%p225_p3)   ;;  %v2743_v17 = vld [vmem:[%s3500_s1 + $0x38] sm:$0xff] (!%p225_p3)   ;;  %v2753_v19 = vld [vmem:[%s3500_s1 + $0x100] sm:$0xff] (!%p225_p3)  }
   0xc   : > { %2393 = vmatpush3.bf16.msra.mxu0 (!%p225_p3), %v2731_v3  ;;  %2695 = vmatpush3.bf16.msra.mxu1 (!%p225_p3), %v2731_v3  ;;  %v2751_v22 = vld [vmem:[%s3500_s1 + $0x80] sm:$0xff] (!%p225_p3)   ;;  %v2752_v23 = vld [vmem:[%s3500_s1 + $0xc8] sm:$0xff] (!%p225_p3)   ;;  %v2761_v29 = vld [vmem:[%s3500_s1 + $0xd0] sm:$0xff] (!%p225_p3)  }
   0xd   : > { %2394 = vmatprep.subr.bf16.mxu0 (!%p225_p3), %v2732_v4  ;;  %2688 = vmatprep.subr.bf16.mxu1 (!%p225_p3), %v2732_v4  ;;  %v2772_v26 = vld [vmem:[%s3500_s1 + $0x108] sm:$0xff] (!%p225_p3)   ;;  %v2762_v31 = vld [vmem:[%s3500_s1 + $0x90] sm:$0xff] (!%p225_p3)   ;;  %v2763_v33 = vld [vmem:[%s3500_s1 + $0xd8] sm:$0xff] (!%p225_p3)  }
   0xe   : > { %s3509_s21 = smov (!%p274_p4, %s2198_s21), 223  ;;  %v2754_v27 = vld [vmem:[%s3500_s1 + $0x88] sm:$0xff]   ;;  %v2764_v35 = vld [vmem:[%s3500_s1 + $0x98] sm:$0xff]   ;;  %v2771_v36 = vld [vmem:[%s3500_s1 + $0xe0] sm:$0xff]  }
   0xf   : > { %s2702_s8 = smul.u32 20, %s3509_s21  ;;  %v2785_v38 = vld [vmem:[%s3500_s1 + $0x110] sm:$0xff]   ;;  %v2773_v40 = vld [vmem:[%s3500_s1 + $0xa0] sm:$0xff]   ;;  %v2774_v41 = vld [vmem:[%s3500_s1 + $0xe8] sm:$0xff]   ;;  %s2201_s22 = sshll.u32 %s3509_s21, 2 }
  0x10   : > { %2395 = vmatpush3.bf16.msra.mxu0 %v2733_v5  ;;  %2696 = vmatpush3.bf16.msra.mxu1 %v2733_v5  ;;  %v2775_v44 = vld [vmem:[%s3500_s1 + $0xa8] sm:$0xff]   ;;  %v2799_v45 = vld [vmem:[%s3500_s1 + $0x118] sm:$0xff]   ;;  %v2782_v48 = vld [vmem:[%s3500_s1 + $0xf0] sm:$0xff]   ;;  %s3302_s24 = scalar_lea.vmem %s3503_s4, %s2201_s22 }
  0x11   : > { %2396 = vmatprep.subr.bf16.mxu0 %v2734_v6  ;;  %2689 = vmatprep.subr.bf16.mxu1 %v2734_v6  ;;  %s2981_s15 = scalar_lea.vmem %s3499_s0, %s2702_s8  ;;  %v2783_v49 = vld [vmem:[%s3500_s1 + $0xb0] sm:$0xff]   ;;  %v2784_v50 = vld [vmem:[%s3500_s1 + $0xf8] sm:$0xff]   ;;  %v2806_v52 = vld [vmem:[%s3500_s1 + $0x120] sm:$0xff]  }
  0x12   : > { %v2746_v11 = vld [vmem:[%s2981_s15 + $0x4] ss:$20 sps:$4 sm:$0xff]   ;;  %v2744_v20 = vld [vmem:[%s2981_s15] ss:$20 sps:$4 sm:$0xff]   ;;  %v2759_v28 = vld [vmem:[%s2981_s15 + $0x28] ss:$20 sps:$4 sm:$0xff]  }
  0x13   : > { %v2749_v12 = vld [vmem:[%s2981_s15 + $0x1e4] ss:$20 sps:$4 sm:$0xff]   ;;  %1242 = vmatprep.mubr.bf16.mxu0 %v2746_v11  ;;  %v2747_v21 = vld [vmem:[%s2981_s15 + $0x1e0] ss:$20 sps:$4 sm:$0xff]   ;;  %v2760_v30 = vld [vmem:[%s2981_s15 + $0x208] ss:$20 sps:$4 sm:$0xff]  }
  0x14   : > { %2397 = vmatpush3.bf16.msra.mxu0 %v2735_v7  ;;  %2697 = vmatpush3.bf16.msra.mxu1 %v2735_v7  ;;  %v2755_v24 = vld [vmem:[%s2981_s15 + $0x2c] ss:$20 sps:$4 sm:$0xff]   ;;  %v2765_v32 = vld [vmem:[%s2981_s15 + $0x54] ss:$20 sps:$4 sm:$0xff]   ;;  %v2769_v37 = vld [vmem:[%s2981_s15 + $0x50] ss:$20 sps:$4 sm:$0xff]  }
  0x15   : > { %2398 = vmatprep.subr.bf16.mxu0 %v2736_v8  ;;  %2690 = vmatprep.subr.bf16.mxu1 %v2736_v8  ;;  %v2757_v25 = vld [vmem:[%s2981_s15 + $0x20c] ss:$20 sps:$4 sm:$0xff]   ;;  %v2767_v34 = vld [vmem:[%s2981_s15 + $0x234] ss:$20 sps:$4 sm:$0xff]   ;;  %v2770_v39 = vld [vmem:[%s2981_s15 + $0x230] ss:$20 sps:$4 sm:$0xff]  }
  0x16   : > { %1338 = vmatprep.mubr.bf16.mxu1 %v2749_v12  ;;  %v2776_v42 = vld [vmem:[%s2981_s15 + $0x7c] ss:$20 sps:$4 sm:$0xff]   ;;  %v2780_v46 = vld [vmem:[%s2981_s15 + $0x78] ss:$20 sps:$4 sm:$0xff]   ;;  %v2792_v56 = vld [vmem:[%s2981_s15 + $0xa0] ss:$20 sps:$4 sm:$0xff]  }
  0x17   : > { %v2778_v43 = vld [vmem:[%s2981_s15 + $0x25c] ss:$20 sps:$4 sm:$0xff]   ;;  %v2781_v47 = vld [vmem:[%s2981_s15 + $0x258] ss:$20 sps:$4 sm:$0xff]   ;;  %v2795_v59 = vld [vmem:[%s2981_s15 + $0x34] ss:$20 sps:$4 sm:$0xff]  }
  0x18   : > { %2399 = vmatpush3.bf16.msra.mxu0 %v2737_v9  ;;  %2698 = vmatpush3.bf16.msra.mxu1 %v2737_v9  ;;  %v2787_v51 = vld [vmem:[%s2981_s15 + $0xa4] ss:$20 sps:$4 sm:$0xff]   ;;  %v2791_v53 = vld [vmem:[%s2981_s15 + $0xc] ss:$20 sps:$4 sm:$0xff]   ;;  %v2789_v55 = vld [vmem:[%s2981_s15 + $0x8] ss:$20 sps:$4 sm:$0xff]  }
  0x19   : > { %2400 = vmatprep.subr.bf16.mxu0 %v2738_v10  ;;  %2691 = vmatprep.subr.bf16.mxu1 %v2738_v10  ;;  %v2786_v54 = vld [vmem:[%s3500_s1 + $0xb8] sm:$0xff]   ;;  %v2819_v57 = vld [vmem:[%s3500_s1 + $0x128] sm:$0xff]   ;;  %v2826_v60 = vld [vmem:[%s3500_s1 + $0x130] sm:$0xff]  }
  0x1a   : > { %v2793_v58 = vld [vmem:[%s2981_s15 + $0xcc] ss:$20 sps:$4 sm:$0xff]   ;;  %v2797_v61 = vld [vmem:[%s2981_s15 + $0xc8] ss:$20 sps:$4 sm:$0xff]   ;;  %v2798_v62 = vld [vmem:[%s2981_s15 + $0x30] ss:$20 sps:$4 sm:$0xff]  }
  0x1b   : > { %v2800_v63 = vld [vmem:[%s2981_s15 + $0xf4] ss:$20 sps:$4 sm:$0xff]   ;;  %v2802_v0 = vld [vmem:[%s2981_s15 + $0x5c] ss:$20 sps:$4 sm:$0xff]   ;;  %v2805_v3 = vld [vmem:[%s2981_s15 + $0x58] ss:$20 sps:$4 sm:$0xff]  }
  0x1c   : > { %2401 = vmatpush3.bf16.msra.mxu0 %v2739_v13  ;;  %2699 = vmatpush3.bf16.msra.mxu1 %v2739_v13  ;;  %v2839_v1 = vld [vmem:[%s3500_s1 + $0x138] sm:$0xff]   ;;  %v2804_v2 = vld [vmem:[%s2981_s15 + $0xf0] ss:$20 sps:$4 sm:$0xff]   ;;  %v2812_v7 = vld [vmem:[%s2981_s15 + $0x80] ss:$20 sps:$4 sm:$0xff]  }
  0x1d   : > { %2402 = vmatprep.subr.bf16.mxu0 %v2740_v14  ;;  %2692 = vmatprep.subr.bf16.mxu1 %v2740_v14  ;;  %v2807_v4 = vld [vmem:[%s2981_s15 + $0x11c] ss:$20 sps:$4 sm:$0xff]   ;;  %v2809_v5 = vld [vmem:[%s2981_s15 + $0x84] ss:$20 sps:$4 sm:$0xff]   ;;  %v2815_v9 = vld [vmem:[%s2981_s15 + $0xac] ss:$20 sps:$4 sm:$0xff]  }
  0x1e   : > { %v2811_v6 = vld [vmem:[%s2981_s15 + $0x118] ss:$20 sps:$4 sm:$0xff]   ;;  %v2817_v10 = vld [vmem:[%s2981_s15 + $0x140] ss:$20 sps:$4 sm:$0xff]   ;;  %v2818_v11 = vld [vmem:[%s2981_s15 + $0xa8] ss:$20 sps:$4 sm:$0xff]  }
  0x1f   : > { %v2813_v8 = vld [vmem:[%s2981_s15 + $0x144] ss:$20 sps:$4 sm:$0xff]   ;;  %v2820_v12 = vld [vmem:[%s2981_s15 + $0x16c] ss:$20 sps:$4 sm:$0xff]   ;;  %v2822_v13 = vld [vmem:[%s2981_s15 + $0xd4] ss:$20 sps:$4 sm:$0xff]  }
  0x20   : > { %2403 = vmatpush3.bf16.msra.mxu0 %v2741_v15  ;;  %2700 = vmatpush3.bf16.msra.mxu1 %v2741_v15  ;;  %v2824_v14 = vld [vmem:[%s2981_s15 + $0x168] ss:$20 sps:$4 sm:$0xff]   ;;  %v2825_v15 = vld [vmem:[%s2981_s15 + $0xd0] ss:$20 sps:$4 sm:$0xff]  }
  0x21   : > { %2404 = vmatprep.subr.bf16.mxu0 %v2742_v16  ;;  %2693 = vmatprep.subr.bf16.mxu1 %v2742_v16  ;;  %v2827_v16 = vld [vmem:[%s2981_s15 + $0x194] ss:$20 sps:$4 sm:$0xff]  }
  0x24   : > { %2405 = vmatpush3.bf16.msra.mxu0 %v2743_v17  ;;  %2701 = vmatpush3.bf16.msra.mxu1 %v2743_v17  ;;  %v2829_v17 = vld [vmem:[%s2981_s15 + $0xfc] ss:$20 sps:$4 sm:$0xff]  }
  0x25   : > { %2502 = vmatprep.subr.bf16.mxu1 %v2750_v18  ;;  %2638 = vmatprep.subr.bf16.mxu0 %v2753_v19  ;;  %v2831_v18 = vld [vmem:[%s2981_s15 + $0x190] ss:$20 sps:$4 sm:$0xff]  }
  0x27   : > { %1243 = vmatmul.mubr.bf16.vlgmr.msra.gmra.mrb[0].mxu0 %v2744_v20  ;;  %1339 = vmatmul.mubr.bf16.vlgmr.msra.gmra.mrb[0].mxu1 %v2747_v21  ;;  %v2833_v20 = vld [vmem:[%s2981_s15 + $0x1bc] ss:$20 sps:$4 sm:$0xff]   ;;  %v2835_v21 = vld [vmem:[%s2981_s15 + $0x124] ss:$20 sps:$4 sm:$0xff]  }
  0x28   : > { %2503 = vmatpush3.bf16.msra.mxu1 %v2751_v22  ;;  %2639 = vmatpush3.bf16.msra.mxu0 %v2753_v19  ;;  %v2832_v19 = vld [vmem:[%s2981_s15 + $0xf8] ss:$20 sps:$4 sm:$0xff]  }
  0x29   : > { %2504 = vmatprep.subr.bf16.mxu1 %v2752_v23  ;;  %1250 = vmatprep.mubr.bf16.mxu0 %v2755_v24  ;;  %v2837_v22 = vld [vmem:[%s2981_s15 + $0x1b8] ss:$20 sps:$4 sm:$0xff]   ;;  %v2838_v23 = vld [vmem:[%s2981_s15 + $0x120] ss:$20 sps:$4 sm:$0xff]  }
  0x2a   : > { %1346 = vmatprep.mubr.bf16.mxu1 %v2757_v25  ;;  %2640 = vmatprep.subr.bf16.mxu0 %v2772_v26  ;;  %v2840_v24 = vld [vmem:[%s2981_s15 + $0x14c] ss:$20 sps:$4 sm:$0xff]   ;;  %v2842_v25 = vld [vmem:[%s2981_s15 + $0x10] ss:$20 sps:$4 sm:$0xff]  }
  0x2c   : > { %2505 = vmatpush3.bf16.msra.mxu1 %v2754_v27  ;;  %2641 = vmatpush3.bf16.msra.mxu0 %v2772_v26  ;;  %v2843_v26 = vld [vmem:[%s2981_s15 + $0x148] ss:$20 sps:$4 sm:$0xff]   ;;  %v2844_v27 = vld [vmem:[%s2981_s15 + $0x38] ss:$20 sps:$4 sm:$0xff]  }
  0x2d   : > { %2506 = vmatprep.subr.bf16.mxu1 %v2761_v29  ;;  %2642 = vmatprep.subr.bf16.mxu0 %v2785_v38  ;;  %v2847_v29 = vld [vmem:[%s2981_s15 + $0x60] ss:$20 sps:$4 sm:$0xff]  }
  0x2f   : > { %1251 = vmatmul.mubr.bf16.gmra.mrb[4].mxu0 %v2759_v28  ;;  %1347 = vmatmul.mubr.bf16.gmra.mrb[4].mxu1 %v2760_v30  ;;  %v2845_v28 = vld [vmem:[%s2981_s15 + $0x174] ss:$20 sps:$4 sm:$0xff]   ;;  %v2848_v30 = vld [vmem:[%s2981_s15 + $0x170] ss:$20 sps:$4 sm:$0xff]  }
  0x30   : > { %2507 = vmatpush3.bf16.msra.mxu1 %v2762_v31  ;;  %1258 = vmatprep.mubr.bf16.mxu0 %v2765_v32  ;;  %v2849_v31 = vld [vmem:[%s2981_s15 + $0x88] ss:$20 sps:$4 sm:$0xff]  }
  0x31   : > { %2508 = vmatprep.subr.bf16.mxu1 %v2763_v33  ;;  %1354 = vmatprep.mubr.bf16.mxu1 %v2767_v34  ;;  %v2850_v32 = vld [vmem:[%s2981_s15 + $0x19c] ss:$20 sps:$4 sm:$0xff]   ;;  %v2853_v34 = vld [vmem:[%s2981_s15 + $0x198] ss:$20 sps:$4 sm:$0xff]  }
  0x32   : > { %2643 = vmatpush3.bf16.msra.mxu0 %v2785_v38  ;;  %v2852_v33 = vld [vmem:[%s2981_s15 + $0xb0] ss:$20 sps:$4 sm:$0xff]   ;;  %v2858_v38 = vld [vmem:[%s2981_s15 + $0x1c0] ss:$20 sps:$4 sm:$0xff]  }
  0x33   : > { %2644 = vmatprep.subr.bf16.mxu0 %v2799_v45 }
  0x34   : > { %2509 = vmatpush3.bf16.msra.mxu1 %v2764_v35  ;;  %v2854_v35 = vld [vmem:[%s2981_s15 + $0xd8] ss:$20 sps:$4 sm:$0xff]  }
  0x35   : > { %2510 = vmatprep.subr.bf16.mxu1 %v2771_v36  ;;  %v2855_v36 = vld [vmem:[%s2981_s15 + $0x1c4] ss:$20 sps:$4 sm:$0xff]  }
  0x36   : > { %2645 = vmatpush3.bf16.msra.mxu0 %v2799_v45  ;;  %v2867_v45 = vld [vmem:[%s2981_s15 + $0x1a0] ss:$20 sps:$4 sm:$0xff]  }
  0x37   : > { %1259 = vmatmul.mubr.bf16.gmra.mrb[8].mxu0 %v2769_v37  ;;  %1355 = vmatmul.mubr.bf16.gmra.mrb[8].mxu1 %v2770_v39  ;;  %v2857_v37 = vld [vmem:[%s2981_s15 + $0x100] ss:$20 sps:$4 sm:$0xff]   ;;  %v2859_v39 = vld [vmem:[%s2981_s15 + $0x128] ss:$20 sps:$4 sm:$0xff]  }
  0x38   : > { %2511 = vmatpush3.bf16.msra.mxu1 %v2773_v40  ;;  %1266 = vmatprep.mubr.bf16.mxu0 %v2776_v42  ;;  %v2860_v40 = vld [vmem:[%s2981_s15 + $0x1ec] ss:$20 sps:$4 sm:$0xff]   ;;  %v2863_v42 = vld [vmem:[%s2981_s15 + $0x1e8] ss:$20 sps:$4 sm:$0xff]  }
  0x39   : > { %2512 = vmatprep.subr.bf16.mxu1 %v2774_v41  ;;  %1362 = vmatprep.mubr.bf16.mxu1 %v2778_v43  ;;  %v2862_v41 = vld [vmem:[%s2981_s15 + $0x150] ss:$20 sps:$4 sm:$0xff]   ;;  %v2864_v43 = vld [vmem:[%s2981_s15 + $0x178] ss:$20 sps:$4 sm:$0xff]  }
  0x3a   : > { %2646 = vmatprep.subr.bf16.mxu0 %v2806_v52 }
  0x3b   : > { %2647 = vmatpush3.bf16.msra.mxu0 %v2806_v52  ;;  %v2875_v52 = vld [vmem:[%s2981_s15 + $0x264] ss:$20 sps:$4 sm:$0xff]  }
  0x3c   : > { %2513 = vmatpush3.bf16.msra.mxu1 %v2775_v44  ;;  %2648 = vmatprep.subr.bf16.mxu0 %v2819_v57  ;;  %v2865_v44 = vld [vmem:[%s2981_s15 + $0x214] ss:$20 sps:$4 sm:$0xff]  }
  0x3d   : > { %2514 = vmatprep.subr.bf16.mxu1 %v2782_v48  ;;  %v2870_v48 = vld [vmem:[%s2981_s15 + $0x23c] ss:$20 sps:$4 sm:$0xff]  }
  0x3f   : > { %1267 = vmatmul.mubr.bf16.gmra.mrb[12].mxu0 %v2780_v46  ;;  %1363 = vmatmul.mubr.bf16.gmra.mrb[12].mxu1 %v2781_v47  ;;  %v2868_v46 = vld [vmem:[%s2981_s15 + $0x210] ss:$20 sps:$4 sm:$0xff]   ;;  %v2869_v47 = vld [vmem:[%s2981_s15 + $0x1c8] ss:$20 sps:$4 sm:$0xff]  }
  0x40   : > { %2515 = vmatpush3.bf16.msra.mxu1 %v2783_v49  ;;  %1274 = vmatprep.mubr.bf16.mxu0 %v2787_v51  ;;  %v2872_v49 = vld [vmem:[%s2981_s15 + $0x1f0] ss:$20 sps:$4 sm:$0xff]   ;;  %v2874_v51 = vld [vmem:[%s2981_s15 + $0x218] ss:$20 sps:$4 sm:$0xff]  }
  0x41   : > { %2516 = vmatprep.subr.bf16.mxu1 %v2784_v50  ;;  %1403 = vmatprep.mubr.bf16.mxu1 %v2791_v53  ;;  %v2873_v50 = vld [vmem:[%s2981_s15 + $0x238] ss:$20 sps:$4 sm:$0xff]   ;;  %v2877_v53 = vld [vmem:[%s2981_s15 + $0x240] ss:$20 sps:$4 sm:$0xff]  }
  0x42   : > { %2649 = vmatpush3.bf16.msra.mxu0 %v2819_v57 }
  0x43   : > { %2650 = vmatprep.subr.bf16.mxu0 %v2826_v60 }
  0x44   : > { %2517 = vmatpush3.bf16.msra.mxu1 %v2786_v54  ;;  %v2878_v54 = vld [vmem:[%s2981_s15 + $0x260] ss:$20 sps:$4 sm:$0xff]  }
  0x46   : > { %2651 = vmatpush3.bf16.msra.mxu0 %v2826_v60 }
  0x47   : > { %1275 = vmatmul.mubr.bf16.gmra.mrb[16].mxu0 %v2792_v56  ;;  %1404 = vmatmul.mubr.bf16.vlgmr.msra.gmra.mrb[16].mxu1 %v2789_v55  ;;  %v2879_v55 = vld [vmem:[%s2981_s15 + $0x268] ss:$20 sps:$4 sm:$0xff]   ;;  %v2904_v56 = vmov 0.0  }
  0x48   : > { %1282 = vmatprep.mubr.bf16.mxu0 %v2793_v58  ;;  %1411 = vmatprep.mubr.bf16.mxu1 %v2795_v59  ;;  %316 = vst.msk [vmem:[#allocation2 + $0x10] sm:$0xff] %vm313_vm0, %v2904_v56  ;;  %314 = vst.msk [vmem:[#allocation2] sm:$0xff] %vm313_vm0, %v2904_v56 }
  0x49   : > { %2652 = vmatprep.subr.bf16.mxu0 %v2839_v1  ;;  %315 = vst.msk [vmem:[#allocation2 + $0x8] sm:$0xff] %vm313_vm0, %v2904_v56  ;;  %317 = vst.msk [vmem:[#allocation2 + $0x18] sm:$0xff] %vm313_vm0, %v2904_v56 }
  0x4a   : > { %2653 = vmatpush3.bf16.msra.mxu0 %v2839_v1  ;;  %318 = vst.msk [vmem:[#allocation2 + $0x20] sm:$0xff] %vm313_vm0, %v2904_v56  ;;  %319 = vst.msk [vmem:[#allocation2 + $0x28] sm:$0xff] %vm313_vm0, %v2904_v56 }
  0x4b   : > { %320 = vst.msk [vmem:[#allocation2 + $0x30] sm:$0xff] %vm313_vm0, %v2904_v56  ;;  %321 = vst.msk [vmem:[#allocation2 + $0x38] sm:$0xff] %vm313_vm0, %v2904_v56 }
  0x4c   : > { %322 = vst.msk [vmem:[#allocation2 + $0x40] sm:$0xff] %vm313_vm0, %v2904_v56  ;;  %323 = vst.msk [vmem:[#allocation2 + $0x48] sm:$0xff] %vm313_vm0, %v2904_v56 }
  0x4d   : > { %324 = vst.msk [vmem:[#allocation2 + $0x50] sm:$0xff] %vm313_vm0, %v2904_v56  ;;  %325 = vst.msk [vmem:[#allocation2 + $0x58] sm:$0xff] %vm313_vm0, %v2904_v56 }
  0x4e   : > { %326 = vst.msk [vmem:[#allocation2 + $0x60] sm:$0xff] %vm313_vm0, %v2904_v56  ;;  %327 = vst.msk [vmem:[#allocation2 + $0x68] sm:$0xff] %vm313_vm0, %v2904_v56 }
  0x4f   : > { %1283 = vmatmul.mubr.bf16.gmra.mrb[20].mxu0 %v2797_v61  ;;  %1412 = vmatmul.mubr.bf16.gmra.mrb[20].mxu1 %v2798_v62  ;;  %328 = vst.msk [vmem:[#allocation2 + $0x70] sm:$0xff] %vm313_vm0, %v2904_v56  ;;  %329 = vst.msk [vmem:[#allocation2 + $0x78] sm:$0xff] %vm313_vm0, %v2904_v56 }
  0x50   : > { %1290 = vmatprep.mubr.bf16.mxu0 %v2800_v63  ;;  %1419 = vmatprep.mubr.bf16.mxu1 %v2802_v0  ;;  %330 = vst.msk [vmem:[#allocation2 + $0x80] sm:$0xff] %vm313_vm0, %v2904_v56  ;;  %331 = vst.msk [vmem:[#allocation2 + $0x88] sm:$0xff] %vm313_vm0, %v2904_v56 }
  0x51   : > { %332 = vst.msk [vmem:[#allocation2 + $0x90] sm:$0xff] %vm313_vm0, %v2904_v56  ;;  %333 = vst.msk [vmem:[#allocation2 + $0x98] sm:$0xff] %vm313_vm0, %v2904_v56 }
  0x52   : > { %334 = vst.msk [vmem:[#allocation2 + $0xa0] sm:$0xff] %vm313_vm0, %v2904_v56  ;;  %335 = vst.msk [vmem:[#allocation2 + $0xa8] sm:$0xff] %vm313_vm0, %v2904_v56 }
  0x53   : > { %336 = vst.msk [vmem:[#allocation2 + $0xb0] sm:$0xff] %vm313_vm0, %v2904_v56  ;;  %337 = vst.msk [vmem:[#allocation2 + $0xb8] sm:$0xff] %vm313_vm0, %v2904_v56 }
  0x54   : > { %338 = vst.msk [vmem:[#allocation2 + $0xc0] sm:$0xff] %vm313_vm0, %v2904_v56  ;;  %339 = vst.msk [vmem:[#allocation2 + $0xc8] sm:$0xff] %vm313_vm0, %v2904_v56 }
  0x55   : > { %340 = vst.msk [vmem:[#allocation2 + $0xd0] sm:$0xff] %vm313_vm0, %v2904_v56  ;;  %341 = vst.msk [vmem:[#allocation2 + $0xd8] sm:$0xff] %vm313_vm0, %v2904_v56 }
  0x56   : > { %342 = vst.msk [vmem:[#allocation2 + $0xe0] sm:$0xff] %vm313_vm0, %v2904_v56  ;;  %343 = vst.msk [vmem:[#allocation2 + $0xe8] sm:$0xff] %vm313_vm0, %v2904_v56 }
  0x57   : > { %1291 = vmatmul.mubr.bf16.gmra.mrb[24].mxu0 %v2804_v2  ;;  %1420 = vmatmul.mubr.bf16.gmra.mrb[24].mxu1 %v2805_v3  ;;  %344 = vst.msk [vmem:[#allocation2 + $0xf0] sm:$0xff] %vm313_vm0, %v2904_v56  ;;  %345 = vst.msk [vmem:[#allocation2 + $0xf8] sm:$0xff] %vm313_vm0, %v2904_v56 }
  0x58   : > { %1298 = vmatprep.mubr.bf16.mxu0 %v2807_v4  ;;  %1427 = vmatprep.mubr.bf16.mxu1 %v2809_v5 }
  0x5f   : > { %1299 = vmatmul.mubr.bf16.gmra.mrb[28].mxu0 %v2811_v6  ;;  %1428 = vmatmul.mubr.bf16.gmra.mrb[28].mxu1 %v2812_v7 }
  0x60   : > { %1306 = vmatprep.mubr.bf16.mxu0 %v2813_v8  ;;  %1435 = vmatprep.mubr.bf16.mxu1 %v2815_v9 }
  0x67   : > { %1307 = vmatmul.mubr.bf16.gmra.mrb[32].mxu0 %v2817_v10  ;;  %1436 = vmatmul.mubr.bf16.gmra.mrb[32].mxu1 %v2818_v11 }
  0x68   : > { %1314 = vmatprep.mubr.bf16.mxu0 %v2820_v12  ;;  %1443 = vmatprep.mubr.bf16.mxu1 %v2822_v13 }
  0x6f   : > { %1315 = vmatmul.mubr.bf16.gmra.mrb[36].mxu0 %v2824_v14  ;;  %1444 = vmatmul.mubr.bf16.gmra.mrb[36].mxu1 %v2825_v15 }
  0x70   : > { %1322 = vmatprep.mubr.bf16.mxu0 %v2827_v16  ;;  %1451 = vmatprep.mubr.bf16.mxu1 %v2829_v17 }
  0x77   : > { %1323 = vmatmul.mubr.bf16.gmra.mrb[40].mxu0 %v2831_v18  ;;  %1452 = vmatmul.mubr.bf16.gmra.mrb[40].mxu1 %v2832_v19 }
  0x78   : > { %1330 = vmatprep.mubr.bf16.mxu0 %v2833_v20  ;;  %1459 = vmatprep.mubr.bf16.mxu1 %v2835_v21 }
  0x7f   : > { %1331 = vmatmul.mubr.bf16.gmra.mrb[44].mxu0 %v2837_v22  ;;  %1460 = vmatmul.mubr.bf16.gmra.mrb[44].mxu1 %v2838_v23 }
  0x80   : > { %1467 = vmatprep.mubr.bf16.mxu1 %v2840_v24  ;;  %2654 = vmatprep.mubr.bf16.mxu0 %v2842_v25 }
  0x87   : > { %1468 = vmatmul.mubr.bf16.gmra.mrb[48].mxu1 %v2843_v26  ;;  %2655 = vmatmul.mubr.bf16.vlgmr.msra.gmra.mrb[48].mxu0 %v2844_v27 }
  0x88   : > { %1475 = vmatprep.mubr.bf16.mxu1 %v2845_v28  ;;  %2658 = vmatprep.mubr.bf16.mxu0 %v2847_v29 }
  0x8f   : > { %1476 = vmatmul.mubr.bf16.gmra.mrb[52].mxu1 %v2848_v30  ;;  %2659 = vmatmul.mubr.bf16.gmra.mrb[52].mxu0 %v2849_v31 }
  0x90   : > { %1483 = vmatprep.mubr.bf16.mxu1 %v2850_v32  ;;  %2662 = vmatprep.mubr.bf16.mxu0 %v2852_v33 }
  0x97   : > { %1484 = vmatmul.mubr.bf16.gmra.mrb[56].mxu1 %v2853_v34  ;;  %2663 = vmatmul.mubr.bf16.gmra.mrb[56].mxu0 %v2854_v35 }
  0x98   : > { %1491 = vmatprep.mubr.bf16.mxu1 %v2855_v36  ;;  %2666 = vmatprep.mubr.bf16.mxu0 %v2857_v37 }
  0x9f   : > { %1492 = vmatmul.mubr.bf16.gmra.mrb[60].mxu1 %v2858_v38  ;;  %2667 = vmatmul.mubr.bf16.gmra.mrb[60].mxu0 %v2859_v39 }
  0xa0   : > { %1499 = vmatprep.mubr.bf16.mxu1 %v2860_v40  ;;  %2670 = vmatprep.mubr.bf16.mxu0 %v2862_v41 }
  0xa7   : > { %1500 = vmatmul.mubr.bf16.gmra.mrb[64].mxu1 %v2863_v42  ;;  %2671 = vmatmul.mubr.bf16.gmra.mrb[64].mxu0 %v2864_v43 }
  0xa8   : > { %1507 = vmatprep.mubr.bf16.mxu1 %v2865_v44  ;;  %2674 = vmatprep.mubr.bf16.mxu0 %v2867_v45 }
  0xaf   : > { %1508 = vmatmul.mubr.bf16.gmra.mrb[68].mxu1 %v2868_v46  ;;  %2675 = vmatmul.mubr.bf16.gmra.mrb[68].mxu0 %v2869_v47 }
  0xb0   : > { %1515 = vmatprep.mubr.bf16.mxu1 %v2870_v48  ;;  %2678 = vmatprep.mubr.bf16.mxu0 %v2872_v49 }
  0xb7   : > { %1516 = vmatmul.mubr.bf16.gmra.mrb[72].mxu1 %v2873_v50  ;;  %2679 = vmatmul.mubr.bf16.gmra.mrb[72].mxu0 %v2874_v51 }
  0xb8   : > { %1523 = vmatprep.mubr.bf16.mxu1 %v2875_v52  ;;  %2682 = vmatprep.mubr.bf16.mxu0 %v2877_v53 }
  0xbf   : > { %1524 = vmatmul.mubr.bf16.gmra.mrb[76].mxu1 %v2878_v54  ;;  %2683 = vmatmul.mubr.bf16.gmra.mrb[76].mxu0 %v2879_v55 }
  0xfa   : > { %v2478_v57 = vpop.f32.mrb[0].mxu1  ;;  %v2406_v58 = vpop.f32.mrb[0].mxu0 }
  0xfb   : > { %v2479_v59 = vpop.f32.mrb[1].mxu1  ;;  %v2407_v60 = vpop.f32.mrb[1].mxu0 }
  0xfc   : > { %v3188_v61 = vadd.f32 %v2479_v59, %v2478_v57  ;;  %v2481_v62 = vpop.f32.mrb[2].mxu1  ;;  %v2408_v63 = vadd.f32 %v2407_v60, %v2406_v58  ;;  %v2409_v0 = vpop.f32.mrb[2].mxu0 }
  0xfd   : > { %v2482_v1 = vpop.f32.mrb[3].mxu1  ;;  %v2410_v2 = vpop.f32.mrb[3].mxu0 }
  0xfe   : > { %v3190_v3 = vadd.f32 %v2482_v1, %v2481_v62  ;;  %v2411_v4 = vadd.f32 %v2410_v2, %v2409_v0 }
 0x102   : > { %v2484_v5 = vpop.f32.mrb[4].mxu1  ;;  %v2412_v6 = vpop.f32.mrb[4].mxu0 }
 0x103   : > { %v2485_v7 = vpop.f32.mrb[5].mxu1  ;;  %v2413_v8 = vpop.f32.mrb[5].mxu0 }
 0x104   : > { %v3192_v9 = vadd.f32 %v2485_v7, %v2484_v5  ;;  %v2487_v10 = vpop.f32.mrb[6].mxu1  ;;  %v2414_v11 = vadd.f32 %v2413_v8, %v2412_v6  ;;  %v2415_v12 = vpop.f32.mrb[6].mxu0 }
 0x105   : > { %v2488_v13 = vpop.f32.mrb[7].mxu1  ;;  %v2416_v14 = vpop.f32.mrb[7].mxu0 }
 0x106   : > { %v3194_v15 = vadd.f32 %v2488_v13, %v2487_v10  ;;  %v2417_v16 = vadd.f32 %v2416_v14, %v2415_v12 }
 0x10a   : > { %v2490_v17 = vpop.f32.mrb[8].mxu1  ;;  %v2418_v18 = vpop.f32.mrb[8].mxu0 }
 0x10b   : > { %v2491_v19 = vpop.f32.mrb[9].mxu1  ;;  %v2419_v20 = vpop.f32.mrb[9].mxu0 }
 0x10c   : > { %v3196_v21 = vadd.f32 %v2491_v19, %v2490_v17  ;;  %v2493_v22 = vpop.f32.mrb[10].mxu1  ;;  %v2420_v23 = vadd.f32 %v2419_v20, %v2418_v18  ;;  %v2421_v24 = vpop.f32.mrb[10].mxu0 }
 0x10d   : > { %v2494_v25 = vpop.f32.mrb[11].mxu1  ;;  %v2422_v26 = vpop.f32.mrb[11].mxu0 }
 0x10e   : > { %v3198_v27 = vadd.f32 %v2494_v25, %v2493_v22  ;;  %v2423_v28 = vadd.f32 %v2422_v26, %v2421_v24 }
 0x112   : > { %v2496_v29 = vpop.f32.mrb[12].mxu1  ;;  %v2424_v30 = vpop.f32.mrb[12].mxu0 }
 0x113   : > { %v2497_v31 = vpop.f32.mrb[13].mxu1  ;;  %v2425_v32 = vpop.f32.mrb[13].mxu0 }
 0x114   : > { %v3200_v33 = vadd.f32 %v2497_v31, %v2496_v29  ;;  %v2499_v34 = vpop.f32.mrb[14].mxu1  ;;  %v2426_v35 = vadd.f32 %v2425_v32, %v2424_v30  ;;  %v2427_v36 = vpop.f32.mrb[14].mxu0 }
 0x115   : > { %v2500_v37 = vpop.f32.mrb[15].mxu1  ;;  %v2428_v38 = vpop.f32.mrb[15].mxu0 }
 0x116   : > { %v3202_v39 = vadd.f32 %v2500_v37, %v2499_v34  ;;  %v2429_v40 = vadd.f32 %v2428_v38, %v2427_v36 }
 0x11a   : > { %v2518_v41 = vpop.f32.mrb[16].mxu1  ;;  %v2430_v42 = vpop.f32.mrb[16].mxu0 }
 0x11b   : > { %v2519_v43 = vpop.f32.mrb[17].mxu1  ;;  %v2431_v44 = vpop.f32.mrb[17].mxu0 }
 0x11c   : > { %v2520_v45 = vadd.f32 %v2519_v43, %v2518_v41  ;;  %v2521_v46 = vpop.f32.mrb[18].mxu1  ;;  %v2432_v47 = vadd.f32 %v2431_v44, %v2430_v42  ;;  %v2433_v48 = vpop.f32.mrb[18].mxu0 }
 0x11d   : > { %v2522_v49 = vpop.f32.mrb[19].mxu1  ;;  %v2434_v50 = vpop.f32.mrb[19].mxu0 }
 0x11e   : > { %v2523_v51 = vadd.f32 %v2522_v49, %v2521_v46  ;;  %v2435_v52 = vadd.f32 %v2434_v50, %v2433_v48  ;;  %v3204_v53 = vadd.f32 %v2520_v45, %v2408_v63 }
 0x120   : > { %v3206_v54 = vadd.f32 %v2523_v51, %v2411_v4 }
 0x122   : > { %v2524_v55 = vpop.f32.mrb[20].mxu1  ;;  %v2436_v56 = vpop.f32.mrb[20].mxu0 }
 0x123   : > { %v2525_v57 = vpop.f32.mrb[21].mxu1  ;;  %v2437_v58 = vpop.f32.mrb[21].mxu0 }
 0x124   : > { %v2526_v59 = vadd.f32 %v2525_v57, %v2524_v55  ;;  %v2527_v60 = vpop.f32.mrb[22].mxu1  ;;  %v2438_v62 = vadd.f32 %v2437_v58, %v2436_v56  ;;  %v2439_v0 = vpop.f32.mrb[22].mxu0 }
 0x125   : > { %v2528_v1 = vpop.f32.mrb[23].mxu1  ;;  %v2440_v2 = vpop.f32.mrb[23].mxu0 }
 0x126   : > { %v2529_v5 = vadd.f32 %v2528_v1, %v2527_v60  ;;  %v2441_v6 = vadd.f32 %v2440_v2, %v2439_v0  ;;  %v3208_v7 = vadd.f32 %v2526_v59, %v2414_v11 }
 0x128   : > { %v3210_v8 = vadd.f32 %v2529_v5, %v2417_v16 }
 0x12a   : > { %v2530_v63 = vpop.f32.mrb[24].mxu1  ;;  %v2442_v10 = vpop.f32.mrb[24].mxu0 }
 0x12b   : > { %v2531_v4 = vpop.f32.mrb[25].mxu1  ;;  %v2443_v12 = vpop.f32.mrb[25].mxu0 }
 0x12c   : > { %v2532_v13 = vadd.f32 %v2531_v4, %v2530_v63  ;;  %v2533_v14 = vpop.f32.mrb[26].mxu1  ;;  %v2444_v17 = vadd.f32 %v2443_v12, %v2442_v10  ;;  %v2445_v18 = vpop.f32.mrb[26].mxu0 }
 0x12d   : > { %v2534_v19 = vpop.f32.mrb[27].mxu1  ;;  %v2446_v20 = vpop.f32.mrb[27].mxu0 }
 0x12e   : > { %v2535_v22 = vadd.f32 %v2534_v19, %v2533_v14  ;;  %v2447_v24 = vadd.f32 %v2446_v20, %v2445_v18  ;;  %v3212_v25 = vadd.f32 %v2532_v13, %v2420_v23 }
 0x130   : > { %v3214_v26 = vadd.f32 %v2535_v22, %v2423_v28 }
 0x132   : > { %v2536_v11 = vpop.f32.mrb[28].mxu1  ;;  %v2448_v29 = vpop.f32.mrb[28].mxu0 }
 0x133   : > { %v2537_v16 = vpop.f32.mrb[29].mxu1  ;;  %v2449_v30 = vpop.f32.mrb[29].mxu0 }
 0x134   : > { %v2538_v31 = vadd.f32 %v2537_v16, %v2536_v11  ;;  %v2539_v32 = vpop.f32.mrb[30].mxu1  ;;  %v2450_v34 = vadd.f32 %v2449_v30, %v2448_v29  ;;  %v2451_v36 = vpop.f32.mrb[30].mxu0 }
 0x135   : > { %v2540_v37 = vpop.f32.mrb[31].mxu1  ;;  %v2452_v38 = vpop.f32.mrb[31].mxu0 }
 0x136   : > { %v2541_v41 = vadd.f32 %v2540_v37, %v2539_v32  ;;  %v2453_v42 = vadd.f32 %v2452_v38, %v2451_v36  ;;  %v3216_v43 = vadd.f32 %v2538_v31, %v2426_v35 }
 0x138   : > { %v3218_v44 = vadd.f32 %v2541_v41, %v2429_v40 }
 0x13a   : > { %v2542_v23 = vpop.f32.mrb[32].mxu1  ;;  %v2454_v45 = vpop.f32.mrb[32].mxu0 }
 0x13b   : > { %v2543_v28 = vpop.f32.mrb[33].mxu1  ;;  %v2455_v46 = vpop.f32.mrb[33].mxu0 }
 0x13c   : > { %v2544_v48 = vadd.f32 %v2543_v28, %v2542_v23  ;;  %v2545_v49 = vpop.f32.mrb[34].mxu1  ;;  %v3220_v50 = vadd.f32 %v2455_v46, %v2454_v45  ;;  %v2457_v51 = vpop.f32.mrb[34].mxu0 }
 0x13d   : > { %v2546_v55 = vpop.f32.mrb[35].mxu1  ;;  %v2458_v56 = vpop.f32.mrb[35].mxu0 }
 0x13e   : > { %v2547_v57 = vadd.f32 %v2546_v55, %v2545_v49  ;;  %v3222_v58 = vadd.f32 %v2458_v56, %v2457_v51  ;;  %v3224_v59 = vadd.f32 %v2544_v48, %v2432_v47 }
 0x140   : > { %v3226_v35 = vadd.f32 %v2547_v57, %v2435_v52 }
 0x142   : > { %v2548_v40 = vpop.f32.mrb[36].mxu1  ;;  %v2460_v60 = vpop.f32.mrb[36].mxu0 }
 0x143   : > { %v2549_v0 = vpop.f32.mrb[37].mxu1  ;;  %v2461_v1 = vpop.f32.mrb[37].mxu0 }
 0x144   : > { %v2550_v2 = vadd.f32 %v2549_v0, %v2548_v40  ;;  %v2551_v5 = vpop.f32.mrb[38].mxu1  ;;  %v3228_v63 = vadd.f32 %v2461_v1, %v2460_v60  ;;  %v2463_v10 = vpop.f32.mrb[38].mxu0  ;;  %v348_v60 = vld [vmem:[#allocation2 + $0x10] sm:$0xff] }
 0x145   : > { %v2552_v4 = vpop.f32.mrb[39].mxu1  ;;  %v2464_v12 = vpop.f32.mrb[39].mxu0 }
 0x146   : > { %v2553_v13 = vadd.f32 %v2552_v4, %v2551_v5  ;;  %v3230_v14 = vadd.f32 %v2464_v12, %v2463_v10  ;;  %v3232_v18 = vadd.f32 %v2550_v2, %v2438_v62  ;;  %v346_v5 = vld [vmem:[#allocation2] sm:$0xff] }
 0x148   : > { %v3234_v47 = vadd.f32 %v2553_v13, %v2441_v6 }
 0x14a   : > { %v2554_v52 = vpop.f32.mrb[40].mxu1  ;;  %v2466_v19 = vpop.f32.mrb[40].mxu0 }
 0x14b   : > { %v2555_v20 = vpop.f32.mrb[41].mxu1  ;;  %v2467_v22 = vpop.f32.mrb[41].mxu0 }
 0x14c   : > { %v2556_v11 = vadd.f32 %v2555_v20, %v2554_v52  ;;  %v2557_v29 = vpop.f32.mrb[42].mxu1  ;;  %v3236_v16 = vadd.f32 %v2467_v22, %v2466_v19  ;;  %v2469_v30 = vpop.f32.mrb[42].mxu0  ;;  %v349_v52 = vld [vmem:[#allocation2 + $0x18] sm:$0xff] }
 0x14d   : > { %v2558_v31 = vpop.f32.mrb[43].mxu1  ;;  %v2470_v32 = vpop.f32.mrb[43].mxu0 }
 0x14e   : > { %v2559_v36 = vadd.f32 %v2558_v31, %v2557_v29  ;;  %v3238_v37 = vadd.f32 %v2470_v32, %v2469_v30  ;;  %v3240_v38 = vadd.f32 %v2556_v11, %v2444_v17 }
 0x150   : > { %v3242_v62 = vadd.f32 %v2559_v36, %v2447_v24 }
 0x152   : > { %v2560_v6 = vpop.f32.mrb[44].mxu1  ;;  %v2472_v41 = vpop.f32.mrb[44].mxu0 }
 0x153   : > { %v2561_v23 = vpop.f32.mrb[45].mxu1  ;;  %v2473_v45 = vpop.f32.mrb[45].mxu0 }
 0x154   : > { %v2562_v28 = vadd.f32 %v2561_v23, %v2560_v6  ;;  %v2563_v46 = vpop.f32.mrb[46].mxu1  ;;  %v3244_v48 = vadd.f32 %v2473_v45, %v2472_v41  ;;  %v2475_v49 = vpop.f32.mrb[46].mxu0  ;;  %v352_v6 = vld [vmem:[#allocation2 + $0x30] sm:$0xff]  ;;  %v350_v23 = vld [vmem:[#allocation2 + $0x20] sm:$0xff] }
 0x155   : > { %v2564_v51 = vpop.f32.mrb[47].mxu1  ;;  %v2476_v55 = vpop.f32.mrb[47].mxu0 }
 0x156   : > { %v2565_v56 = vadd.f32 %v2564_v51, %v2563_v46  ;;  %v3246_v57 = vadd.f32 %v2476_v55, %v2475_v49  ;;  %v3248_v40 = vadd.f32 %v2562_v28, %v2450_v34  ;;  %v3270_v28 = vld [vmem:[%s3501_s2] ss:$0 sm:$0xff]  ;;  %v353_v51 = vld [vmem:[#allocation2 + $0x38] sm:$0xff] }
 0x158   : > { %v3250_v17 = vadd.f32 %v2565_v56, %v2453_v42  ;;  %v347_v42 = vld [vmem:[#allocation2 + $0x8] sm:$0xff] }
 0x15a   : > { %v2566_v24 = vpop.f32.mrb[48].mxu1  ;;  %v2656_v0 = vpop.f32.mrb[48].mxu0 }
 0x15b   : > { %v1575_v1 = vadd.f32 %v2656_v0, %v3208_v7  ;;  %v2567_v2 = vpop.f32.mrb[49].mxu1  ;;  %v1566_v10 = vpop.f32.mrb[49].mxu0  ;;  %v351_v0 = vld [vmem:[#allocation2 + $0x28] sm:$0xff] }
 0x15c   : > { %v2568_v4 = vadd.f32 %v2567_v2, %v2566_v24  ;;  %v1567_v12 = vadd.f32 %v1566_v10, %v3204_v53  ;;  %v2569_v13 = vpop.f32.mrb[50].mxu1  ;;  %v2657_v19 = vpop.f32.mrb[50].mxu0  ;;  %v3277_v2 = vld [vmem:[%s3502_s3] ss:$0 sm:$0xff] }
 0x15d   : > { %v1695_v20 = vadd.f32 %v1575_v1, %v348_v60  ;;  %v1578_v34 = vadd.f32 %v2657_v19, %v3210_v8  ;;  %v2570_v22 = vpop.f32.mrb[51].mxu1  ;;  %v1569_v11 = vpop.f32.mrb[51].mxu0 }
 0x15e   : > { %v1693_v29 = vadd.f32 %v1567_v12, %v346_v5  ;;  %v2571_v30 = vadd.f32 %v2570_v22, %v2569_v13  ;;  %v1570_v31 = vadd.f32 %v1569_v11, %v3206_v54  ;;  %v3257_v7 = vadd.f32 %v2568_v4, %v3220_v50 }
 0x15f   : > { %1728 = vst.msk [vmem:[#allocation2 + $0x10] sm:$0xff] %vm313_vm0, %v1695_v20  ;;  %v1696_v32 = vadd.f32 %v1578_v34, %v349_v52 }
 0x160   : > { %1726 = vst.msk [vmem:[#allocation2] sm:$0xff] %vm313_vm0, %v1693_v29  ;;  %v1694_v53 = vadd.f32 %v1570_v31, %v347_v42  ;;  %v3262_v36 = vadd.f32 %v2571_v30, %v3222_v58  ;;  %v356_v30 = vld [vmem:[#allocation2 + $0x50] sm:$0xff] }
 0x161   : > { %1729 = vst.msk [vmem:[#allocation2 + $0x18] sm:$0xff] %vm313_vm0, %v1696_v32 }
 0x162   : > { %1727 = vst.msk [vmem:[#allocation2 + $0x8] sm:$0xff] %vm313_vm0, %v1694_v53  ;;  %v2572_v8 = vpop.f32.mrb[52].mxu1  ;;  %v2660_v41 = vpop.f32.mrb[52].mxu0 }
 0x163   : > { %v1591_v54 = vadd.f32 %v2660_v41, %v3216_v43  ;;  %v2573_v50 = vpop.f32.mrb[53].mxu1  ;;  %v1582_v45 = vpop.f32.mrb[53].mxu0 }
 0x164   : > { %v2574_v46 = vadd.f32 %v2573_v50, %v2572_v8  ;;  %v1583_v58 = vadd.f32 %v1582_v45, %v3212_v25  ;;  %v2575_v49 = vpop.f32.mrb[54].mxu1  ;;  %v2661_v55 = vpop.f32.mrb[54].mxu0 }
 0x165   : > { %v1699_v56 = vadd.f32 %v1591_v54, %v352_v6  ;;  %v1594_v24 = vadd.f32 %v2661_v55, %v3218_v44  ;;  %v2576_v60 = vpop.f32.mrb[55].mxu1  ;;  %v1585_v43 = vpop.f32.mrb[55].mxu0  ;;  %v354_v6 = vld [vmem:[#allocation2 + $0x40] sm:$0xff] }
 0x166   : > { %v1763_v1 = vld [vmem:[#allocation2 + $0x10] sm:$0xff]  ;;  %v1697_v5 = vadd.f32 %v1583_v58, %v350_v23  ;;  %v2577_v10 = vadd.f32 %v2576_v60, %v2575_v49  ;;  %v1586_v25 = vadd.f32 %v1585_v43, %v3214_v26  ;;  %v3281_v4 = vadd.f32 %v2574_v46, %v3228_v63  ;;  %v357_v58 = vld [vmem:[#allocation2 + $0x58] sm:$0xff] }
 0x167   : > { %v1802_v12 = vmul.f32 %v3270_v28, %v1763_v1  ;;  %v1761_v44 = vld [vmem:[#allocation2] sm:$0xff]  ;;  %1732 = vst.msk [vmem:[#allocation2 + $0x30] sm:$0xff] %vm313_vm0, %v1699_v56  ;;  %v1700_v13 = vadd.f32 %v1594_v24, %v353_v51 }
 0x168   : > { %v1800_v52 = vmul.f32 %v3270_v28, %v1761_v44  ;;  %v1764_v19 = vld [vmem:[#allocation2 + $0x18] sm:$0xff]  ;;  %1730 = vst.msk [vmem:[#allocation2 + $0x20] sm:$0xff] %vm313_vm0, %v1697_v5  ;;  %v1698_v20 = vadd.f32 %v1586_v25, %v351_v0  ;;  %v3288_v34 = vadd.f32 %v2577_v10, %v3230_v14  ;;  %v355_v25 = vld [vmem:[#allocation2 + $0x48] sm:$0xff] }
 0x169   : > { %v1841_v26 = vadd.f32 %v3277_v2, %v1802_v12  ;;  %v1803_v63 = vmul.f32 %v3270_v28, %v1764_v19  ;;  %v1762_v22 = vld [vmem:[#allocation2 + $0x8] sm:$0xff]  ;;  %1733 = vst.msk [vmem:[#allocation2 + $0x38] sm:$0xff] %vm313_vm0, %v1700_v13 }
 0x16a   : > { %v1839_v42 = vadd.f32 %v3277_v2, %v1800_v52  ;;  %v1801_v11 = vmul.f32 %v3270_v28, %v1762_v22  ;;  %1731 = vst.msk [vmem:[#allocation2 + $0x28] sm:$0xff] %vm313_vm0, %v1698_v20  ;;  %v2578_v29 = vpop.f32.mrb[56].mxu1  ;;  %v2664_v31 = vpop.f32.mrb[56].mxu0 }
 0x16b   : > { %v1873_v32 = vmax.f32 %v1841_v26, 0.0  ;;  %v1842_v14 = vadd.f32 %v3277_v2, %v1803_v63  ;;  %v1607_v53 = vadd.f32 %v2664_v31, %v3232_v18  ;;  %v2579_v8 = vpop.f32.mrb[57].mxu1  ;;  %v1598_v41 = vpop.f32.mrb[57].mxu0  ;;  %v360_v31 = vld [vmem:[#allocation2 + $0x70] sm:$0xff] }
 0x16c   : > { %v1871_v54 = vmax.f32 %v1839_v42, 0.0  ;;  %v1840_v50 = vadd.f32 %v3277_v2, %v1801_v11  ;;  %v2580_v23 = vadd.f32 %v2579_v8, %v2578_v29  ;;  %v1599_v45 = vadd.f32 %v1598_v41, %v3224_v59  ;;  %v2581_v46 = vpop.f32.mrb[58].mxu1  ;;  %v2665_v49 = vpop.f32.mrb[58].mxu0 }
 0x16d   : > { %v2360_v51 = vpack.c.bf16 %v1873_v32, %v1873_v32  ;;  %v1874_v18 = vmax.f32 %v1842_v14, 0.0  ;;  %v1703_v55 = vadd.f32 %v1607_v53, %v356_v30  ;;  %v1610_v56 = vadd.f32 %v2665_v49, %v3234_v47  ;;  %v2582_v24 = vpop.f32.mrb[59].mxu1  ;;  %v1601_v60 = vpop.f32.mrb[59].mxu0 }
 0x16e   : > { %v2358_v0 = vpack.c.bf16 %v1871_v54, %v1871_v54  ;;  %v1872_v43 = vmax.f32 %v1840_v50, 0.0  ;;  %v1767_v1 = vld [vmem:[#allocation2 + $0x30] sm:$0xff]  ;;  %v1701_v5 = vadd.f32 %v1599_v45, %v354_v6  ;;  %v2583_v10 = vadd.f32 %v2582_v24, %v2581_v46  ;;  %v358_v6 = vld [vmem:[#allocation2 + $0x60] sm:$0xff] }
 0x16f   : > { %2034 = vst.msk [vmem:[%s3302_s24 + $0x8] sm:$0xf] %vm2031_vm1, %v2360_v51  ;;  %v2361_v59 = vpack.c.bf16 %v1874_v18, %v1874_v18  ;;  %v1806_v12 = vmul.f32 %v3270_v28, %v1767_v1  ;;  %v1765_v44 = vld [vmem:[#allocation2 + $0x20] sm:$0xff]  ;;  %v1704_v47 = vadd.f32 %v1610_v56, %v357_v58  ;;  %v1602_v13 = vadd.f32 %v1601_v60, %v3226_v35  ;;  %v361_v58 = vld [vmem:[#allocation2 + $0x78] sm:$0xff] }
 0x170   : > { %1736 = vst.msk [vmem:[#allocation2 + $0x50] sm:$0xff] %vm313_vm0, %v1703_v55  ;;  %v2359_v52 = vpack.c.bf16 %v1872_v43, %v1872_v43  ;;  %v1804_v19 = vmul.f32 %v3270_v28, %v1765_v44  ;;  %v1768_v20 = vld [vmem:[#allocation2 + $0x38] sm:$0xff]  ;;  %1734 = vst.msk [vmem:[#allocation2 + $0x40] sm:$0xff] %vm313_vm0, %v1701_v5  ;;  %v3317_v26 = vadd.f32 %v2580_v23, %v3236_v16 }
 0x171   : > { %2032 = vst.msk [vmem:[%s3302_s24] sm:$0xf] %vm2031_vm1, %v2358_v0  ;;  %v3320_v63 = vadd.f32 %v2583_v10, %v3238_v37  ;;  %2035 = vst.msk [vmem:[%s3302_s24 + $0xc] sm:$0xf] %vm2031_vm1, %v2361_v59  ;;  %v1845_v22 = vadd.f32 %v3277_v2, %v1806_v12  ;;  %v1807_v35 = vmul.f32 %v3270_v28, %v1768_v20  ;;  %v1766_v42 = vld [vmem:[#allocation2 + $0x28] sm:$0xff] }
 0x172   : > { %1737 = vst.msk [vmem:[#allocation2 + $0x58] sm:$0xff] %vm313_vm0, %v1704_v47  ;;  %v1702_v11 = vadd.f32 %v1602_v13, %v355_v25  ;;  %v1843_v29 = vadd.f32 %v3277_v2, %v1804_v19  ;;  %v1805_v16 = vmul.f32 %v3270_v28, %v1766_v42  ;;  %v2584_v30 = vpop.f32.mrb[60].mxu1  ;;  %v2668_v37 = vpop.f32.mrb[60].mxu0  ;;  %v359_v10 = vld [vmem:[#allocation2 + $0x68] sm:$0xff] }
 0x173   : > { %2033 = vst.msk [vmem:[%s3302_s24 + $0x4] sm:$0xf] %vm2031_vm1, %v2359_v52  ;;  %v1877_v32 = vmax.f32 %v1845_v22, 0.0  ;;  %v1846_v14 = vadd.f32 %v3277_v2, %v1807_v35  ;;  %v1623_v53 = vadd.f32 %v2668_v37, %v3248_v40  ;;  %v2585_v8 = vpop.f32.mrb[61].mxu1  ;;  %v1614_v41 = vpop.f32.mrb[61].mxu0 }
 0x174   : > { %1735 = vst.msk [vmem:[#allocation2 + $0x48] sm:$0xff] %vm313_vm0, %v1702_v11  ;;  %v1875_v54 = vmax.f32 %v1843_v29, 0.0  ;;  %v1844_v50 = vadd.f32 %v3277_v2, %v1805_v16  ;;  %v2586_v23 = vadd.f32 %v2585_v8, %v2584_v30  ;;  %v1615_v45 = vadd.f32 %v1614_v41, %v3240_v38  ;;  %v2587_v46 = vpop.f32.mrb[62].mxu1  ;;  %v2669_v49 = vpop.f32.mrb[62].mxu0 }
 0x175   : > { %v2364_v51 = vpack.c.bf16 %v1877_v32, %v1877_v32  ;;  %v1878_v18 = vmax.f32 %v1846_v14, 0.0  ;;  %v1707_v55 = vadd.f32 %v1623_v53, %v360_v31  ;;  %v1626_v56 = vadd.f32 %v2669_v49, %v3250_v17  ;;  %v2588_v40 = vpop.f32.mrb[63].mxu1  ;;  %v1617_v24 = vpop.f32.mrb[63].mxu0  ;;  %v362_v32 = vld [vmem:[#allocation2 + $0x80] sm:$0xff] }
 0x176   : > { %v2362_v60 = vpack.c.bf16 %v1875_v54, %v1875_v54  ;;  %v1876_v0 = vmax.f32 %v1844_v50, 0.0  ;;  %v1705_v1 = vadd.f32 %v1615_v45, %v358_v6  ;;  %v2589_v5 = vadd.f32 %v2588_v40, %v2587_v46 }
 0x177   : > { %v1771_v43 = vld [vmem:[#allocation2 + $0x50] sm:$0xff]  ;;  %2038 = vst.msk [vmem:[%s3302_s24 + $0x18] sm:$0xf] %vm2031_vm1, %v2364_v51  ;;  %v2365_v38 = vpack.c.bf16 %v1878_v18, %v1878_v18  ;;  %v1769_v59 = vld [vmem:[#allocation2 + $0x40] sm:$0xff]  ;;  %v1708_v17 = vadd.f32 %v1626_v56, %v361_v58  ;;  %v1618_v12 = vadd.f32 %v1617_v24, %v3242_v62  ;;  %v3347_v52 = vadd.f32 %v2586_v23, %v3244_v48  ;;  %v365_v58 = vld [vmem:[#allocation2 + $0x98] sm:$0xff] }
 0x178   : > { %v1810_v25 = vmul.f32 %v3270_v28, %v1771_v43  ;;  %1740 = vst.msk [vmem:[#allocation2 + $0x70] sm:$0xff] %vm313_vm0, %v1707_v55  ;;  %v2363_v44 = vpack.c.bf16 %v1876_v0, %v1876_v0  ;;  %v1808_v47 = vmul.f32 %v3270_v28, %v1769_v59  ;;  %1738 = vst.msk [vmem:[#allocation2 + $0x60] sm:$0xff] %vm313_vm0, %v1705_v1  ;;  %v364_v48 = vld [vmem:[#allocation2 + $0x90] sm:$0xff] }
 0x179   : > { %2036 = vst.msk [vmem:[%s3302_s24 + $0x10] sm:$0xf] %vm2031_vm1, %v2362_v60  ;;  %v1772_v13 = vld [vmem:[#allocation2 + $0x58] sm:$0xff]  ;;  %v3350_v19 = vadd.f32 %v2589_v5, %v3246_v57  ;;  %2039 = vst.msk [vmem:[%s3302_s24 + $0x1c] sm:$0xf] %vm2031_vm1, %v2365_v38  ;;  %v1706_v22 = vadd.f32 %v1618_v12, %v359_v10 }
 0x17a   : > { %v1849_v20 = vadd.f32 %v3277_v2, %v1810_v25  ;;  %v1811_v62 = vmul.f32 %v3270_v28, %v1772_v13  ;;  %1741 = vst.msk [vmem:[#allocation2 + $0x78] sm:$0xff] %vm313_vm0, %v1708_v17  ;;  %v1847_v35 = vadd.f32 %v3277_v2, %v1808_v47  ;;  %v2590_v11 = vpop.f32.mrb[64].mxu1  ;;  %v2672_v29 = vpop.f32.mrb[64].mxu0 }
 0x17b   : > { %2037 = vst.msk [vmem:[%s3302_s24 + $0x14] sm:$0xf] %vm2031_vm1, %v2363_v44  ;;  %v1770_v42 = vld [vmem:[#allocation2 + $0x48] sm:$0xff]  ;;  %v1639_v31 = vadd.f32 %v2672_v29, %v3281_v4  ;;  %v2591_v37 = vpop.f32.mrb[65].mxu1  ;;  %v1630_v14 = vpop.f32.mrb[65].mxu0 }
 0x17c   : > { %v1881_v16 = vmax.f32 %v1849_v20, 0.0  ;;  %v1850_v57 = vadd.f32 %v3277_v2, %v1811_v62  ;;  %v1809_v30 = vmul.f32 %v3270_v28, %v1770_v42  ;;  %1739 = vst.msk [vmem:[#allocation2 + $0x68] sm:$0xff] %vm313_vm0, %v1706_v22  ;;  %v1879_v53 = vmax.f32 %v1847_v35, 0.0  ;;  %v2593_v41 = vpop.f32.mrb[66].mxu1  ;;  %v2673_v54 = vpop.f32.mrb[66].mxu0  ;;  %v368_v20 = vld [vmem:[#allocation2 + $0xb0] sm:$0xff] }
 0x17d   : > { %v2592_v8 = vadd.f32 %v2591_v37, %v2590_v11  ;;  %v1631_v6 = vadd.f32 %v1630_v14, %v3257_v7  ;;  %v1711_v46 = vadd.f32 %v1639_v31, %v364_v48  ;;  %v2594_v49 = vpop.f32.mrb[67].mxu1  ;;  %v1633_v51 = vpop.f32.mrb[67].mxu0  ;;  %v1642_v56 = vadd.f32 %v2673_v54, %v3288_v34  ;;  %v363_v7 = vld [vmem:[#allocation2 + $0x88] sm:$0xff]  ;;  %v366_v11 = vld [vmem:[#allocation2 + $0xa0] sm:$0xff] }
 0x17e   : > { %v2368_v50 = vpack.c.bf16 %v1881_v16, %v1881_v16  ;;  %v1882_v23 = vmax.f32 %v1850_v57, 0.0  ;;  %v1848_v45 = vadd.f32 %v3277_v2, %v1809_v30  ;;  %v2366_v4 = vpack.c.bf16 %v1879_v53, %v1879_v53 }
 0x17f   : > { %v1775_v18 = vld [vmem:[#allocation2 + $0x70] sm:$0xff]  ;;  %v1709_v55 = vadd.f32 %v1631_v6, %v362_v32  ;;  %v2595_v40 = vadd.f32 %v2594_v49, %v2593_v41  ;;  %v1773_v43 = vld [vmem:[#allocation2 + $0x60] sm:$0xff]  ;;  %1744 = vst.msk [vmem:[#allocation2 + $0x90] sm:$0xff] %vm313_vm0, %v1711_v46  ;;  %v1634_v1 = vadd.f32 %v1633_v51, %v3262_v36  ;;  %v1712_v34 = vadd.f32 %v1642_v56, %v365_v58 }
 0x180   : > { %2042 = vst.msk [vmem:[%s3302_s24 + $0x28] sm:$0xf] %vm2031_vm1, %v2368_v50  ;;  %v2369_v24 = vpack.c.bf16 %v1882_v23, %v1882_v23  ;;  %v1880_v60 = vmax.f32 %v1848_v45, 0.0  ;;  %v1814_v0 = vmul.f32 %v3270_v28, %v1775_v18  ;;  %2040 = vst.msk [vmem:[%s3302_s24 + $0x20] sm:$0xf] %vm2031_vm1, %v2366_v4  ;;  %v1812_v5 = vmul.f32 %v3270_v28, %v1773_v43 }
 0x181   : > { %v1776_v10 = vld [vmem:[#allocation2 + $0x78] sm:$0xff]  ;;  %1742 = vst.msk [vmem:[#allocation2 + $0x80] sm:$0xff] %vm313_vm0, %v1709_v55  ;;  %v3377_v38 = vadd.f32 %v2592_v8, %v3188_v61  ;;  %v3380_v25 = vadd.f32 %v2595_v40, %v3190_v3  ;;  %v1710_v12 = vadd.f32 %v1634_v1, %v363_v7  ;;  %1745 = vst.msk [vmem:[#allocation2 + $0x98] sm:$0xff] %vm313_vm0, %v1712_v34 }
 0x182   : > { %2043 = vst.msk [vmem:[%s3302_s24 + $0x2c] sm:$0xf] %vm2031_vm1, %v2369_v24  ;;  %v2367_v59 = vpack.c.bf16 %v1880_v60, %v1880_v60  ;;  %v1853_v36 = vadd.f32 %v3277_v2, %v1814_v0  ;;  %v1815_v17 = vmul.f32 %v3270_v28, %v1776_v10  ;;  %v1851_v44 = vadd.f32 %v3277_v2, %v1812_v5  ;;  %v2596_v13 = vpop.f32.mrb[68].mxu1  ;;  %v2676_v61 = vpop.f32.mrb[68].mxu0  ;;  %v369_v8 = vld [vmem:[#allocation2 + $0xb8] sm:$0xff]  ;;  %v372_v5 = vld [vmem:[#allocation2 + $0xd0] sm:$0xff] }
 0x183   : > { %v1774_v47 = vld [vmem:[#allocation2 + $0x68] sm:$0xff]  ;;  %1743 = vst.msk [vmem:[#allocation2 + $0x88] sm:$0xff] %vm313_vm0, %v1710_v12  ;;  %v1655_v35 = vadd.f32 %v2676_v61, %v3347_v52  ;;  %v2597_v42 = vpop.f32.mrb[69].mxu1  ;;  %v1646_v48 = vpop.f32.mrb[69].mxu0  ;;  %v373_v61 = vld [vmem:[#allocation2 + $0xd8] sm:$0xff] }
 0x184   : > { %2041 = vst.msk [vmem:[%s3302_s24 + $0x24] sm:$0xf] %vm2031_vm1, %v2367_v59  ;;  %v1885_v3 = vmax.f32 %v1853_v36, 0.0  ;;  %v1854_v62 = vadd.f32 %v3277_v2, %v1815_v17  ;;  %v1813_v22 = vmul.f32 %v3270_v28, %v1774_v47  ;;  %v1883_v29 = vmax.f32 %v1851_v44, 0.0  ;;  %v2599_v30 = vpop.f32.mrb[70].mxu1  ;;  %v2677_v31 = vpop.f32.mrb[70].mxu0 }
 0x185   : > { %v2598_v16 = vadd.f32 %v2597_v42, %v2596_v13  ;;  %v1647_v57 = vadd.f32 %v1646_v48, %v3317_v26  ;;  %v1715_v53 = vadd.f32 %v1655_v35, %v368_v20  ;;  %v2600_v6 = vpop.f32.mrb[71].mxu1  ;;  %v1649_v41 = vpop.f32.mrb[71].mxu0  ;;  %v1658_v23 = vadd.f32 %v2677_v31, %v3350_v19  ;;  %v367_v26 = vld [vmem:[#allocation2 + $0xa8] sm:$0xff]  ;;  %v370_v36 = vld [vmem:[#allocation2 + $0xc0] sm:$0xff] }
 0x186   : > { %v2372_v37 = vpack.c.bf16 %v1885_v3, %v1885_v3  ;;  %v1886_v32 = vmax.f32 %v1854_v62, 0.0  ;;  %v1852_v14 = vadd.f32 %v3277_v2, %v1813_v22  ;;  %v2370_v52 = vpack.c.bf16 %v1883_v29, %v1883_v29  ;;  %v1779_v54 = vld [vmem:[#allocation2 + $0x90] sm:$0xff] }
 0x187   : > { %v1713_v50 = vadd.f32 %v1647_v57, %v366_v11  ;;  %v2601_v45 = vadd.f32 %v2600_v6, %v2599_v30  ;;  %v1818_v49 = vmul.f32 %v3270_v28, %v1779_v54  ;;  %1748 = vst.msk [vmem:[#allocation2 + $0xb0] sm:$0xff] %vm313_vm0, %v1715_v53  ;;  %v1650_v4 = vadd.f32 %v1649_v41, %v3320_v63 }
 0x188   : > { %2046 = vst.msk [vmem:[%s3302_s24 + $0x38] sm:$0xf] %vm2031_vm1, %v2372_v37  ;;  %v2373_v46 = vpack.c.bf16 %v1886_v32, %v1886_v32  ;;  %v1884_v58 = vmax.f32 %v1852_v14, 0.0  ;;  %v1777_v51 = vld [vmem:[#allocation2 + $0x80] sm:$0xff]  ;;  %2044 = vst.msk [vmem:[%s3302_s24 + $0x30] sm:$0xf] %vm2031_vm1, %v2370_v52  ;;  %v1716_v19 = vadd.f32 %v1658_v23, %v369_v8  ;;  %v1510_v55 = vadd.f32 %v2598_v16, %v3192_v9 }
 0x189   : > { %v1816_v18 = vmul.f32 %v3270_v28, %v1777_v51  ;;  %1746 = vst.msk [vmem:[#allocation2 + $0xa0] sm:$0xff] %vm313_vm0, %v1713_v50  ;;  %v1513_v56 = vadd.f32 %v2601_v45, %v3194_v15  ;;  %v1857_v7 = vadd.f32 %v3277_v2, %v1818_v49  ;;  %v1780_v24 = vld [vmem:[#allocation2 + $0x98] sm:$0xff]  ;;  %v1714_v60 = vadd.f32 %v1650_v4, %v367_v26  ;;  %v371_v37 = vld [vmem:[#allocation2 + $0xc8] sm:$0xff] }
 0x18a   : > { %2047 = vst.msk [vmem:[%s3302_s24 + $0x3c] sm:$0xf] %vm2031_vm1, %v2373_v46  ;;  %v2371_v40 = vpack.c.bf16 %v1884_v58, %v1884_v58  ;;  %v1819_v0 = vmul.f32 %v3270_v28, %v1780_v24  ;;  %v1778_v43 = vld [vmem:[#allocation2 + $0x88] sm:$0xff]  ;;  %v2602_v1 = vpop.f32.mrb[72].mxu1  ;;  %v2680_v10 = vpop.f32.mrb[72].mxu0 }
 0x18b   : > { %v1855_v63 = vadd.f32 %v3277_v2, %v1816_v18  ;;  %1749 = vst.msk [vmem:[#allocation2 + $0xb8] sm:$0xff] %vm313_vm0, %v1716_v19  ;;  %v1889_v9 = vmax.f32 %v1857_v7, 0.0  ;;  %v1817_v15 = vmul.f32 %v3270_v28, %v1778_v43  ;;  %1747 = vst.msk [vmem:[#allocation2 + $0xa8] sm:$0xff] %vm313_vm0, %v1714_v60  ;;  %v1671_v34 = vadd.f32 %v2680_v10, %v1510_v55  ;;  %v2603_v59 = vpop.f32.mrb[73].mxu1  ;;  %v1662_v17 = vpop.f32.mrb[73].mxu0  ;;  %v374_v18 = vld [vmem:[#allocation2 + $0xe0] sm:$0xff] }
 0x18c   : > { %2045 = vst.msk [vmem:[%s3302_s24 + $0x34] sm:$0xf] %vm2031_vm1, %v2371_v40  ;;  %v1858_v44 = vadd.f32 %v3277_v2, %v1819_v0  ;;  %v2604_v47 = vadd.f32 %v2603_v59, %v2602_v1  ;;  %v1663_v13 = vadd.f32 %v1662_v17, %v3377_v38  ;;  %v2605_v20 = vpop.f32.mrb[74].mxu1  ;;  %v2681_v3 = vpop.f32.mrb[74].mxu0 }
 0x18d   : > { %v1887_v12 = vmax.f32 %v1855_v63, 0.0  ;;  %v2376_v62 = vpack.c.bf16 %v1889_v9, %v1889_v9  ;;  %v1856_v22 = vadd.f32 %v3277_v2, %v1817_v15  ;;  %v1719_v35 = vadd.f32 %v1671_v34, %v372_v5  ;;  %v2606_v11 = vpop.f32.mrb[75].mxu1  ;;  %v1665_v48 = vpop.f32.mrb[75].mxu0 }
 0x18e   : > { %v1674_v42 = vadd.f32 %v2681_v3, %v1513_v56  ;;  %v1890_v16 = vmax.f32 %v1858_v44, 0.0  ;;  %v1783_v57 = vld [vmem:[#allocation2 + $0xb0] sm:$0xff]  ;;  %v1717_v30 = vadd.f32 %v1663_v13, %v370_v36  ;;  %v2607_v31 = vadd.f32 %v2606_v11, %v2605_v20 }
 0x18f   : > { %v2374_v29 = vpack.c.bf16 %v1887_v12, %v1887_v12  ;;  %2050 = vst.msk [vmem:[%s3302_s24 + $0x48] sm:$0xf] %vm2031_vm1, %v2376_v62  ;;  %v1888_v38 = vmax.f32 %v1856_v22, 0.0  ;;  %v1822_v32 = vmul.f32 %v3270_v28, %v1783_v57  ;;  %v1666_v8 = vadd.f32 %v1665_v48, %v3380_v25  ;;  %v376_v12 = vld [vmem:[#allocation2 + $0xf0] sm:$0xff] }
 0x190   : > { %v1781_v14 = vld [vmem:[#allocation2 + $0xa0] sm:$0xff]  ;;  %1752 = vst.msk [vmem:[#allocation2 + $0xd0] sm:$0xff] %vm313_vm0, %v1719_v35  ;;  %v1720_v53 = vadd.f32 %v1674_v42, %v373_v61  ;;  %v2377_v6 = vpack.c.bf16 %v1890_v16, %v1890_v16  ;;  %1750 = vst.msk [vmem:[#allocation2 + $0xc0] sm:$0xff] %vm313_vm0, %v1717_v30  ;;  %v1518_v52 = vadd.f32 %v2604_v47, %v3196_v21  ;;  %v375_v47 = vld [vmem:[#allocation2 + $0xe8] sm:$0xff] }
 0x191   : > { %2048 = vst.msk [vmem:[%s3302_s24 + $0x40] sm:$0xf] %vm2031_vm1, %v2374_v29  ;;  %v1820_v41 = vmul.f32 %v3270_v28, %v1781_v14  ;;  %v1521_v54 = vadd.f32 %v2607_v31, %v3198_v27  ;;  %v2375_v50 = vpack.c.bf16 %v1888_v38, %v1888_v38  ;;  %v1861_v23 = vadd.f32 %v3277_v2, %v1822_v32  ;;  %v377_v16 = vld [vmem:[#allocation2 + $0xf8] sm:$0xff] }
 0x192   : > { %v1784_v45 = vld [vmem:[#allocation2 + $0xb8] sm:$0xff]  ;;  %1753 = vst.msk [vmem:[#allocation2 + $0xd8] sm:$0xff] %vm313_vm0, %v1720_v53  ;;  %v1718_v26 = vadd.f32 %v1666_v8, %v371_v37  ;;  %v1782_v58 = vld [vmem:[#allocation2 + $0xa8] sm:$0xff]  ;;  %v2608_v49 = vpop.f32.mrb[76].mxu1  ;;  %v2684_v51 = vpop.f32.mrb[76].mxu0 }
 0x193   : > { %2051 = vst.msk [vmem:[%s3302_s24 + $0x4c] sm:$0xf] %vm2031_vm1, %v2377_v6  ;;  %v1859_v25 = vadd.f32 %v3277_v2, %v1820_v41  ;;  %v1823_v46 = vmul.f32 %v3270_v28, %v1784_v45  ;;  %2049 = vst.msk [vmem:[%s3302_s24 + $0x44] sm:$0xf] %vm2031_vm1, %v2375_v50  ;;  %v1893_v21 = vmax.f32 %v1861_v23, 0.0  ;;  %v1821_v27 = vmul.f32 %v3270_v28, %v1782_v58  ;;  %v2609_v4 = vpop.f32.mrb[77].mxu1 }
 0x194   : > { %1751 = vst.msk [vmem:[#allocation2 + $0xc8] sm:$0xff] %vm313_vm0, %v1718_v26  ;;  %v1678_v19 = vpop.f32.mrb[77].mxu0  ;;  %v2610_v40 = vadd.f32 %v2609_v4, %v2608_v49  ;;  %v2611_v24 = vpop.f32.mrb[78].mxu1 }
 0x195   : > { %v1891_v55 = vmax.f32 %v1859_v25, 0.0  ;;  %v1862_v56 = vadd.f32 %v3277_v2, %v1823_v46  ;;  %v1679_v7 = vadd.f32 %v1678_v19, %v1518_v52  ;;  %v2685_v60 = vpop.f32.mrb[78].mxu0  ;;  %v2380_v63 = vpack.c.bf16 %v1893_v21, %v1893_v21  ;;  %v2612_v43 = vpop.f32.mrb[79].mxu1 }
 0x196   : > { %v1860_v0 = vadd.f32 %v3277_v2, %v1821_v27  ;;  %v1681_v1 = vpop.f32.mrb[79].mxu0  ;;  %v1526_v15 = vadd.f32 %v2610_v40, %v3200_v33  ;;  %v2613_v44 = vadd.f32 %v2612_v43, %v2611_v24 }
 0x197   : > { %v2378_v5 = vpack.c.bf16 %v1891_v55, %v1891_v55  ;;  %v1894_v10 = vmax.f32 %v1862_v56, 0.0  ;;  %v1787_v9 = vld [vmem:[#allocation2 + $0xd0] sm:$0xff]  ;;  %v1721_v34 = vadd.f32 %v1679_v7, %v374_v18  ;;  %2054 = vst.msk [vmem:[%s3302_s24 + $0x58] sm:$0xf] %vm2031_vm1, %v2380_v63  ;;  %v1785_v17 = vld [vmem:[#allocation2 + $0xc0] sm:$0xff]  ;;  %v1682_v13 = vadd.f32 %v1681_v1, %v1521_v54 }
 0x198   : > { %v1892_v59 = vmax.f32 %v1860_v0, 0.0  ;;  %v1826_v36 = vmul.f32 %v3270_v28, %v1787_v9  ;;  %v1824_v61 = vmul.f32 %v3270_v28, %v1785_v17  ;;  %v1687_v33 = vadd.f32 %v2684_v51, %v1526_v15 }
 0x199   : > { %2052 = vst.msk [vmem:[%s3302_s24 + $0x50] sm:$0xf] %vm2031_vm1, %v2378_v5  ;;  %v2381_v20 = vpack.c.bf16 %v1894_v10, %v1894_v10  ;;  %v1788_v3 = vld [vmem:[#allocation2 + $0xd8] sm:$0xff]  ;;  %v1529_v42 = vadd.f32 %v2613_v44, %v3202_v39  ;;  %v1722_v57 = vadd.f32 %v1682_v13, %v375_v47 }
 0x19a   : > { %1754 = vst.msk [vmem:[#allocation2 + $0xe0] sm:$0xff] %vm313_vm0, %v1721_v34  ;;  %v2379_v62 = vpack.c.bf16 %v1892_v59, %v1892_v59  ;;  %v1865_v22 = vadd.f32 %v3277_v2, %v1826_v36  ;;  %v1827_v35 = vmul.f32 %v3270_v28, %v1788_v3  ;;  %v1863_v11 = vadd.f32 %v3277_v2, %v1824_v61 }
 0x19b   : > { %2055 = vst.msk [vmem:[%s3302_s24 + $0x5c] sm:$0xf] %vm2031_vm1, %v2381_v20  ;;  %v1786_v48 = vld [vmem:[#allocation2 + $0xc8] sm:$0xff]  ;;  %v1723_v29 = vadd.f32 %v1687_v33, %v376_v12  ;;  %v1690_v38 = vadd.f32 %v2685_v60, %v1529_v42 }
 0x19c   : > { %2053 = vst.msk [vmem:[%s3302_s24 + $0x54] sm:$0xf] %vm2031_vm1, %v2379_v62  ;;  %v1897_v30 = vmax.f32 %v1865_v22, 0.0  ;;  %v1866_v31 = vadd.f32 %v3277_v2, %v1827_v35  ;;  %v1825_v37 = vmul.f32 %v3270_v28, %v1786_v48  ;;  %v1895_v39 = vmax.f32 %v1863_v11, 0.0 }
 0x19d   : > { %1756 = vst.msk [vmem:[#allocation2 + $0xf0] sm:$0xff] %vm313_vm0, %v1723_v29  ;;  %1755 = vst.msk [vmem:[#allocation2 + $0xe8] sm:$0xff] %vm313_vm0, %v1722_v57  ;;  %v1724_v8 = vadd.f32 %v1690_v38, %v377_v16 }
 0x19e   : > { %v2384_v32 = vpack.c.bf16 %v1897_v30, %v1897_v30  ;;  %v1898_v14 = vmax.f32 %v1866_v31, 0.0  ;;  %v1864_v53 = vadd.f32 %v3277_v2, %v1825_v37  ;;  %v2382_v6 = vpack.c.bf16 %v1895_v39, %v1895_v39 }
 0x19f   : > { %1757 = vst.msk [vmem:[#allocation2 + $0xf8] sm:$0xff] %vm313_vm0, %v1724_v8 }
 0x1a0   : > { %2058 = vst.msk [vmem:[%s3302_s24 + $0x68] sm:$0xf] %vm2031_vm1, %v2384_v32  ;;  %v2385_v41 = vpack.c.bf16 %v1898_v14, %v1898_v14  ;;  %v1896_v52 = vmax.f32 %v1864_v53, 0.0  ;;  %2056 = vst.msk [vmem:[%s3302_s24 + $0x60] sm:$0xf] %vm2031_vm1, %v2382_v6 }
 0x1a1   : > { %v1789_v54 = vld [vmem:[#allocation2 + $0xe0] sm:$0xff] }
 0x1a2   : > { %v1828_v50 = vmul.f32 %v3270_v28, %v1789_v54  ;;  %2059 = vst.msk [vmem:[%s3302_s24 + $0x6c] sm:$0xf] %vm2031_vm1, %v2385_v41  ;;  %v2383_v23 = vpack.c.bf16 %v1896_v52, %v1896_v52 }
 0x1a4   : > { %v1867_v45 = vadd.f32 %v3277_v2, %v1828_v50  ;;  %2057 = vst.msk [vmem:[%s3302_s24 + $0x64] sm:$0xf] %vm2031_vm1, %v2383_v23  ;;  %v1791_v26 = vld [vmem:[#allocation2 + $0xf0] sm:$0xff]  ;;  %v1790_v25 = vld [vmem:[#allocation2 + $0xe8] sm:$0xff] }
 0x1a5   : > { %v1830_v46 = vmul.f32 %v3270_v28, %v1791_v26  ;;  %v1829_v49 = vmul.f32 %v3270_v28, %v1790_v25 }
 0x1a6   : > { %v1899_v58 = vmax.f32 %v1867_v45, 0.0  ;;  %v1792_v27 = vld [vmem:[#allocation2 + $0xf8] sm:$0xff] }
 0x1a7   : > { %v1869_v51 = vadd.f32 %v3277_v2, %v1830_v46  ;;  %v1868_v4 = vadd.f32 %v3277_v2, %v1829_v49  ;;  %v1831_v18 = vmul.f32 %v3270_v28, %v1792_v27 }
 0x1a8   : > { %v2386_v21 = vpack.c.bf16 %v1899_v58, %v1899_v58 }
 0x1a9   : > { %v1901_v19 = vmax.f32 %v1869_v51, 0.0  ;;  %v1900_v55 = vmax.f32 %v1868_v4, 0.0  ;;  %v1870_v56 = vadd.f32 %v3277_v2, %v1831_v18 }
 0x1aa   : > { %2060 = vst.msk [vmem:[%s3302_s24 + $0x70] sm:$0xf] %vm2031_vm1, %v2386_v21 }
 0x1ab   : > { %v2388_v40 = vpack.c.bf16 %v1901_v19, %v1901_v19  ;;  %v2387_v7 = vpack.c.bf16 %v1900_v55, %v1900_v55  ;;  %v1902_v24 = vmax.f32 %v1870_v56, 0.0 }
 0x1ad   : > { %2062 = vst.msk [vmem:[%s3302_s24 + $0x78] sm:$0xf] %vm2031_vm1, %v2388_v40  ;;  %2061 = vst.msk [vmem:[%s3302_s24 + $0x74] sm:$0xf] %vm2031_vm1, %v2387_v7  ;;  %v2389_v60 = vpack.c.bf16 %v1902_v24, %v1902_v24 }
 0x1af   : > { %2063 = vst.msk [vmem:[%s3302_s24 + $0x7c] sm:$0xf] %vm2031_vm1, %v2389_v60 }
 0x1b0 PF: > { %s14_s17 = sadd.s32 1, %s2902_s17   ;;  %s3504_s15 = smov %s2898_s16 }
 0x1b1   : > { %p11_p5 = scmp.ge.s32.totalorder %s14_s17, 9   ;;  %s3505_s16 = smov %s3507_s18 }
 0x1b3   :  { %13 = sbr.rel (!%p11_p5) target bundleno = 2 (0x2), region = 83 }

// kernel: forward.8
= control target key start
LH: loop header
LB: loop body
LE: loop exit
PB: predicated region body
PF: predicated region fallthrough
CT: control target
= control target key end

     0   :  { %s5498_s0 = inlined_call_operand.vmem [shape: bf16[16,52992], index: 0, kind: input, shape index: {}]   ;;  %s5499_s1 = inlined_call_operand.hbm [shape: bf16[52992,512], index: 1, kind: input, shape index: {}]   ;;  %s5500_s2 = inlined_call_operand.vmem [shape: f32[1,512], index: 2, kind: input, shape index: {}]   ;;  %s5501_s3 = inlined_call_operand.vmem [shape: f32[1,512], index: 3, kind: input, shape index: {}]   ;;  %s5502_s4 = inlined_call_operand.vmem [shape: bf16[16,512], index: 4, kind: output, shape index: {}]  }
   0x1   :  { %5507 = sst [smem:[#allocation13_spill]] %s5498_s0 }
   0x2   :  { %9 = vsyncpa [#allocation5], 0 }
   0x3   :  { %11 = vsyncpa [#allocation5 + $0x1], 0  ;;  %s4816_s15 = smov 0   ;;  %s4818_s16 = smov 0  }
   0x4   :  { %s4820_s17 = smov 0   ;;  %s4822_s18 = smov 0  }
   0x5   :  { %s4824_s19 = smov 0   ;;  %s4826_s20 = smov 0  }
   0x6   :  { %s4828_s21 = smov 0   ;;  %s4830_s22 = smov 0  }
   0x7   :  { %s4832_s23 = smov 0   ;;  %s4834_s24 = smov 0  }
   0x8   :  { %s4836_s25 = smov 0   ;;  %s4838_s26 = smov 0  }
   0x9 LB: > { %5508 = sst [smem:[#allocation8_spill]] %s4763_s21  ;;  %s3499_s27 = sadd.s32 4294967295, %s4783_s26   ;;  %s4783_s26 = sphi %s4838_s26, %s17_s26   ;;  %s4779_s25 = sphi %s4836_s25, %s5523_s25   ;;  %s4775_s24 = sphi %s4834_s24, %s5530_s24   ;;  %s4771_s23 = sphi %s4832_s23, %s5521_s23   ;;  %s4767_s22 = sphi %s4830_s22, %s5529_s22   ;;  %s4763_s21 = sphi %s4828_s21, %s5520_s21   ;;  %s4759_s20 = sphi %s4826_s20, %s5519_s20   ;;  %s4755_s19 = sphi %s4824_s19, %s5528_s19   ;;  %s4751_s18 = sphi %s4822_s18, %s5527_s18   ;;  %s4747_s17 = sphi %s4820_s17, %s5526_s17   ;;  %s4743_s16 = sphi %s4818_s16, %s5525_s16   ;;  %s4739_s15 = sphi %s4816_s15, %s5524_s15  }
   0xa   : > { %5509 = sst [smem:[#allocation9_spill]] %s4779_s25  ;;  %s29_s28 = sadd.s32 1, %s4775_s24 }
   0xb   : > { %p30_p0 = scmp.ge.s32.totalorder %s29_s28, 18  ;;  %s32_s29 = sadd.s32 1, %s4779_s25 }
   0xc   : > { %s45_s30 = sadd.s32 1, %s4763_s21  ;;  %p52_p1 = scmp.ne.s32.totalorder %s4763_s21, %s4759_s20 }
   0xd   : > { %s5532_s28 = smov (%p30_p0, %s29_s28), 0  ;;  %s5534_s29 = smov (!%p30_p0, %s32_s29), %s4779_s25 }
   0xe   : > { %5510 = sst [smem:[#allocation10_spill]] %s5532_s28  ;;  %s41_s5 = ssub.s32 %s4775_s24, %s5532_s28 }
   0xf   : > { %p53_p2 = scmp.eq.s32.totalorder %s4783_s26, 0  ;;  %p34_p3 = scmp.ge.s32.totalorder %s5534_s29, 2 }
  0x10   : > { %p43_p4 = scmp.eq.s32.totalorder %s41_s5, 0  ;;  %s73_s7 = sadd.s32 1, %s4755_s19 }
  0x11   : > { %p4888_p5 = por %p53_p2, %p52_p1  ;;  %s5536_s29 = smov (%p34_p3, %s5534_s29), 0 }
  0x12   : > { %5512 = sst [smem:[#allocation11_spill]] %s5536_s29  ;;  %s69_s9 = ssub.s32 %s4779_s25, %s5536_s29 }
  0x13   : > { %s4896_s8 = scalar_select %p43_p4, %s4763_s21, %s45_s30  }
  0x14   : > { %p80_p6 = scmp.ne.s32.totalorder %s4755_s19, %s4751_s18  ;;  %s70_s10 = sor.u32 %s69_s9, %s41_s5 }
  0x15   : > { %5513 = sst [smem:[#allocation12_spill]] %s4896_s8  ;;  %p86_p7 = scmp.ne.s32.totalorder %s4751_s18, %s4747_s17 }
  0x16   : > { %p71_p8 = scmp.eq.s32.totalorder %s70_s10, 0  ;;  %p4904_p9 = por %p80_p6, %p53_p2 }
  0x17   : > { %p87_p10 = scmp.eq.s32.totalorder %s3499_s27, 0  ;;  %p151_p11 = scmp.eq.s32.totalorder %s69_s9, 0 }
  0x18   : > { %s4911_s12 = scalar_select %p71_p8, %s4755_s19, %s73_s7  }
  0x19   : > { %p4913_p12 = por %p87_p10, %p86_p7  ;;  %s153_s14 = sadd.s32 1, %s4743_s16 }
  0x1a   : > { %s4919_s30 = scalar_select %p151_p11, %s4743_s16, %s153_s14  }
  0x1b   : > { %p163_p13 = scmp.ne.s32.totalorder %s4743_s16, %s4739_s15  ;;  %p164_p0 = scmp.eq.s32.totalorder %s3499_s27, 35 }
  0x1c   : > { %p3502_p2 = scmp.ge.s32.totalorder %s4783_s26, 36 }
  0x1d   : > { %p4925_p1 = por %p164_p0, %p163_p13 }
  0x1e   : > { %186 = sbr.rel (%p3502_p2) target bundleno = 88 (0x58), region = 16 }
  0x1f   : > { %s5516_s17 = scalar_select %p4925_p1, 1, 0 }
  0x25   : > { %189 = sbr.rel (!%p4888_p5) target bundleno = 58 (0x3a), region = 20  ;;  %s191_s5 = sand.u32 (%p4888_p5), 1, %s4763_s21  }
  0x26   : > { %s3915_s7 = smul.u32 (%p4888_p5), 92, %s4775_s24  ;;  %s5517_s0 = sld [smem:[#allocation13_spill]] (%p4888_p5) }
  0x27   : > { %s3964_s9 = smul.u32 (%p4888_p5), 184, %s191_s5 }
  0x29   : > { %s4942_s27 = scalar_lea.vmem (%p4888_p5), [#allocation3], %s3964_s9 }
  0x2c   : > { %s4937_s29 = scalar_lea.vmem %s5517_s0, %s3915_s7 }
  0x2d   : > { %v214_v0 = vld [vmem:[%s4937_s29] sm:$0xff]  ;;  %v216_v1 = vld [vmem:[%s4937_s29 + $0x8] sm:$0xff]  ;;  %v218_v2 = vld [vmem:[%s4937_s29 + $0x10] sm:$0xff] }
  0x2e   : > { %215 = vst [vmem:[%s4942_s27] sm:$0xff] %v214_v0  ;;  %217 = vst [vmem:[%s4942_s27 + $0x8] sm:$0xff] %v216_v1  ;;  %v220_v3 = vld [vmem:[%s4937_s29 + $0x18] sm:$0xff]  ;;  %v222_v4 = vld [vmem:[%s4937_s29 + $0x20] sm:$0xff] }
  0x2f   : > { %219 = vst [vmem:[%s4942_s27 + $0x10] sm:$0xff] %v218_v2  ;;  %v224_v5 = vld [vmem:[%s4937_s29 + $0x28] sm:$0xff]  ;;  %221 = vst [vmem:[%s4942_s27 + $0x18] sm:$0xff] %v220_v3  ;;  %v226_v6 = vld [vmem:[%s4937_s29 + $0x30] sm:$0xff] }
  0x30   : > { %223 = vst [vmem:[%s4942_s27 + $0x20] sm:$0xff] %v222_v4  ;;  %225 = vst [vmem:[%s4942_s27 + $0x28] sm:$0xff] %v224_v5  ;;  %v228_v7 = vld [vmem:[%s4937_s29 + $0x38] sm:$0xff]  ;;  %v230_v8 = vld [vmem:[%s4937_s29 + $0x40] sm:$0xff] }
  0x31   : > { %227 = vst [vmem:[%s4942_s27 + $0x30] sm:$0xff] %v226_v6  ;;  %229 = vst [vmem:[%s4942_s27 + $0x38] sm:$0xff] %v228_v7  ;;  %v232_v9 = vld [vmem:[%s4937_s29 + $0x48] sm:$0xff]  ;;  %v234_v10 = vld [vmem:[%s4937_s29 + $0x50] sm:$0xff] }
  0x32   : > { %231 = vst [vmem:[%s4942_s27 + $0x40] sm:$0xff] %v230_v8  ;;  %v236_v11 = vld [vmem:[%s4937_s29 + $0x678] sm:$0xff]  ;;  %233 = vst [vmem:[%s4942_s27 + $0x48] sm:$0xff] %v232_v9  ;;  %v238_v12 = vld [vmem:[%s4937_s29 + $0x680] sm:$0xff] }
  0x33   : > { %235 = vst [vmem:[%s4942_s27 + $0x50] sm:$0xff] %v234_v10  ;;  %237 = vst [vmem:[%s4942_s27 + $0x5c] sm:$0xff] %v236_v11  ;;  %v240_v13 = vld [vmem:[%s4937_s29 + $0x688] sm:$0xff]  ;;  %v242_v14 = vld [vmem:[%s4937_s29 + $0x690] sm:$0xff] }
  0x34   : > { %239 = vst [vmem:[%s4942_s27 + $0x64] sm:$0xff] %v238_v12  ;;  %241 = vst [vmem:[%s4942_s27 + $0x6c] sm:$0xff] %v240_v13  ;;  %v244_v15 = vld [vmem:[%s4937_s29 + $0x698] sm:$0xff]  ;;  %v246_v16 = vld [vmem:[%s4937_s29 + $0x6a0] sm:$0xff] }
  0x35   : > { %243 = vst [vmem:[%s4942_s27 + $0x74] sm:$0xff] %v242_v14  ;;  %v248_v17 = vld [vmem:[%s4937_s29 + $0x6a8] sm:$0xff]  ;;  %245 = vst [vmem:[%s4942_s27 + $0x7c] sm:$0xff] %v244_v15  ;;  %v250_v18 = vld [vmem:[%s4937_s29 + $0x6b0] sm:$0xff] }
  0x36   : > { %247 = vst [vmem:[%s4942_s27 + $0x84] sm:$0xff] %v246_v16  ;;  %249 = vst [vmem:[%s4942_s27 + $0x8c] sm:$0xff] %v248_v17  ;;  %v252_v19 = vld [vmem:[%s4937_s29 + $0x6b8] sm:$0xff]  ;;  %v254_v20 = vld [vmem:[%s4937_s29 + $0x6c0] sm:$0xff] }
  0x37   : > { %251 = vst [vmem:[%s4942_s27 + $0x94] sm:$0xff] %v250_v18  ;;  %253 = vst [vmem:[%s4942_s27 + $0x9c] sm:$0xff] %v252_v19  ;;  %v256_v21 = vld [vmem:[%s4937_s29 + $0x6c8] sm:$0xff]  ;;  %v3504_v22 = vld [vmem:[%s4937_s29 + $0x58] sm:$0xf] }
  0x38   : > { %255 = vst [vmem:[%s4942_s27 + $0xa4] sm:$0xff] %v254_v20  ;;  %v3506_v23 = vld [vmem:[%s4937_s29 + $0x6d0] sm:$0xf]  ;;  %257 = vst [vmem:[%s4942_s27 + $0xac] sm:$0xff] %v256_v21 }
  0x39   : > { %3505 = vst [vmem:[%s4942_s27 + $0x58] sm:$0xf] %v3504_v22  ;;  %3507 = vst [vmem:[%s4942_s27 + $0xb4] sm:$0xf] %v3506_v23 }
  0x3a PF: > { %s275_s6 = sand.u32 1, %s4755_s19   ;;  %s3508_s5 = sshll.u32 %s4779_s25, 1 }
  0x3b   : > { %s3965_s7 = smul.u32 2944, %s275_s6  ;;  %s4999_s27 = scalar_lea.sflag [#allocation5], %s275_s6 }
  0x3c   : > { %s3916_s9 = smul.u32 1472, %s4775_s24 }
  0x3d   : > { %s279_s14 = scalar_lea.vmem [#allocation4], %s3965_s7 }
  0x3e   : > { %s286_s10 = sadd.s32 %s3916_s9, %s3508_s5  ;;  %s289_s0 = sshll.u32 %s279_s14, 4  ;;  %s4992_s0 = int_to_ptr.vmem [resolvable:$true] %s289_s0 }
  0x3f   : > { %s3510_s28 = sshll.u32 %s286_s10, 6  ;;  %s4661_s9 = scalar_lea.hbm %s5499_s1, 1695744 }
  0x40   : > { %s4997_s21 = scalar_lea.hbm %s5499_s1, %s3510_s28 }
  0x41   : > { %s4657_s25 = scalar_lea.hbm %s4997_s21, 47104  ;;  %p4662_p6 = scmp.lt.u32.totalorder %s4997_s21, %s5499_s1 }
  0x42   : > { %p4658_p3 = scmp.ne.s32.totalorder %s4997_s21, %s4657_s25  ;;  %p4663_p7 = scmp.lt.u32.totalorder %s4661_s9, %s4657_s25 }
  0x43   : > { %p4665_p10 = scmp.lt.u32.totalorder %s4657_s25, %s4997_s21 }
  0x44   : > { %p4659_p4 = pnand %p4658_p3, %p4904_p9  ;;  %p4664_p8 = por %p4663_p7, %p4662_p6 }
  0x46   : > { %p4660_p5 = pneg %p4659_p4  ;;  %p4666_p11 = por %p4665_p10, %p4664_p8 }
  0x48   : > { %p4667_p13 = pnand %p4666_p11, %p4660_p5 }
  0x4a   : > { %4670 = shalt.err (!%p4667_p13)
}
  0x4b   : > { %s4671_s28 = scalar_lea.vmem %s4992_s0, 47104  ;;  %s4785_s8 = smov [#allocation4]  }
  0x4c   : > { %p4672_p0 = scmp.ne.s32.totalorder %s4992_s0, %s4671_s28  ;;  %s4675_s6 = sshll.u32 %s4785_s8, 4  ;;  %s4676_s6 = int_to_ptr.vmem [resolvable:$false] %s4675_s6 }
  0x4d   : > { %s4677_s29 = scalar_lea.vmem %s4676_s6, 94208  ;;  %p4678_p4 = scmp.lt.s32.totalorder %s4992_s0, %s4676_s6 }
  0x4e   : > { %p4673_p2 = pnand %p4672_p0, %p4904_p9  ;;  %p4679_p1 = scmp.lt.s32.totalorder %s4677_s29, %s4671_s28 }
  0x50   : > { %p4674_p3 = pneg %p4673_p2  ;;  %p4680_p6 = por %p4679_p1, %p4678_p4 }
  0x52   : > { %p4681_p7 = pnand %p4680_p6, %p4674_p3 }
  0x54   : > { %4684 = shalt.err (!%p4681_p7)
}
  0x55   : > { %s4786_s25 = smov 256   ;;  %s4787_s5 = smov 128  }
  0x56   : > { %s4788_s7 = smov 8  }
  0x57   : > { %3968 = dma.hbm_to_vmem [thread:$0]  (%p4904_p9), %s4997_s21, 47104, %s4992_s0, %s4999_s27, %s4786_s25, %s4787_s5, %s4788_s7  }
  0x58 PF: > { %p3511_p5 = scmp.ge.s32.totalorder %s4783_s26, 1  ;;  %p313_p8 = scmp.lt.s32.totalorder %s4783_s26, 37 }
  0x5a   : > { %p314_p10 = pnand %p3511_p5, %p313_p8 }
  0x5b   : > { %s320_s9 = sand.u32 (!%p314_p10), 1, %s4759_s20   ;;  %s326_s10 = sand.u32 (!%p314_p10), 1, %s4751_s18  }
  0x5c   : > { %317 = sbr.rel (%p314_p10) target bundleno = 742 (0x2e6), region = 58  ;;  %s327_s6 = scalar_lea.sflag (!%p314_p10), [#allocation5], %s326_s10 }
  0x5d   : > { %s3966_s14 = smul.u32 (!%p314_p10), 184, %s320_s9 }
  0x5e   : > { %s3967_s28 = smul.u32 (!%p314_p10), 2944, %s326_s10 }
  0x5f   : > { %s5027_s8 = scalar_lea.vmem (!%p314_p10), [#allocation3], %s3966_s14 }
  0x60   : > { %s5029_s29 = scalar_lea.vmem (!%p314_p10), [#allocation4], %s3967_s28 }
  0x63   : > { %4734 = dma.done.wait (%p4913_p12), %s327_s6, 47104  }
  0x64   : > { %4736 = vsyncadd (%p4913_p12), %s327_s6, 4294920192  ;;  %s363_s0 = sand.u32 1, %s4739_s15   ;;  %s3513_s21 = sshll.u32 %s4771_s23, 1 }
  0x65   : > { %s3512_s11 = sshll.u32 %s363_s0, 4  ;;  %p371_p9 = scmp.lt.s32.totalorder %s3513_s21, 3 }
  0x66   : > { %s5047_s13 = scalar_lea.vmem [#allocation6], %s3512_s11  ;;  %p3515_p12 = scmp.ne.s32.totalorder %s4767_s22, 0 }
  0x67   : > { %s5538_s21 = smov (!%p371_p9, %s3513_s21), 3  ;;  %v4789_v24 = vmov (!%p3515_p12), 0.0  }
  0x68   : > { %s373_s25 = scalar_lea.vmem %s5500_s2, %s5538_s21  ;;  %s378_s9 = scalar_lea.vmem %s5501_s3, %s5538_s21  ;;  %387 = vst [vmem:[#allocation2] sm:$0xff] (!%p3515_p12), %v4789_v24  ;;  %388 = vst [vmem:[#allocation2 + $0x8] sm:$0xff] (!%p3515_p12), %v4789_v24 }
  0x69   : > { %386 = sbr.rel (%p3515_p12) target bundleno = 112 (0x70), region = 70  ;;  %389 = vst [vmem:[#allocation2 + $0x10] sm:$0xff] (!%p3515_p12), %v4789_v24  ;;  %390 = vst [vmem:[#allocation2 + $0x18] sm:$0xff] (!%p3515_p12), %v4789_v24 }
  0x70 PF: > { %v4071_v25 = vld [vmem:[%s5029_s29 + $0x4] ss:$8 sps:$4 sm:$0xff]   ;;  %v4075_v27 = vld [vmem:[%s5029_s29] ss:$8 sps:$4 sm:$0xff]   ;;  %v4077_v29 = vld [vmem:[%s5029_s29 + $0x14] ss:$8 sps:$4 sm:$0xff]  }
  0x71   : > { %v4073_v26 = vld [vmem:[%s5029_s29 + $0x604] ss:$8 sps:$4 sm:$0xff]   ;;  %2743 = vmatprep.subr.bf16.mxu1 %v4071_v25  ;;  %v4076_v28 = vld [vmem:[%s5029_s29 + $0x600] ss:$8 sps:$4 sm:$0xff]   ;;  %v4079_v30 = vld [vmem:[%s5029_s29 + $0x614] ss:$8 sps:$4 sm:$0xff]  }
  0x72   : > { %3001 = vmatprep.subr.bf16.mxu0 %v4073_v26  ;;  %2744 = vmatpush1.bf16.msra.mxu1 %v4075_v27  ;;  %v4081_v31 = vld [vmem:[%s5029_s29 + $0x10] ss:$8 sps:$4 sm:$0xff]   ;;  %v4083_v33 = vld [vmem:[%s5029_s29 + $0x24] ss:$8 sps:$4 sm:$0xff]   ;;  %v4087_v35 = vld [vmem:[%s5029_s29 + $0x20] ss:$8 sps:$4 sm:$0xff]  }
  0x73   : > { %3002 = vmatpush1.bf16.msra.mxu0 %v4076_v28  ;;  %2745 = vmatprep.subr.bf16.mxu1 %v4077_v29  ;;  %v4082_v32 = vld [vmem:[%s5029_s29 + $0x610] ss:$8 sps:$4 sm:$0xff]   ;;  %v4085_v34 = vld [vmem:[%s5029_s29 + $0x624] ss:$8 sps:$4 sm:$0xff]   ;;  %v4088_v36 = vld [vmem:[%s5029_s29 + $0x620] ss:$8 sps:$4 sm:$0xff]  }
  0x74   : > { %3003 = vmatprep.subr.bf16.mxu0 %v4079_v30  ;;  %v4089_v37 = vld [vmem:[%s5029_s29 + $0x34] ss:$8 sps:$4 sm:$0xff]   ;;  %v4093_v39 = vld [vmem:[%s5029_s29 + $0x30] ss:$8 sps:$4 sm:$0xff]   ;;  %v4095_v41 = vld [vmem:[%s5029_s29 + $0x44] ss:$8 sps:$4 sm:$0xff]  }
  0x75   : > { %v4091_v38 = vld [vmem:[%s5029_s29 + $0x634] ss:$8 sps:$4 sm:$0xff]   ;;  %v4094_v40 = vld [vmem:[%s5029_s29 + $0x630] ss:$8 sps:$4 sm:$0xff]   ;;  %v4097_v42 = vld [vmem:[%s5029_s29 + $0x644] ss:$8 sps:$4 sm:$0xff]  }
  0x76   : > { %2746 = vmatpush1.bf16.msra.mxu1 %v4081_v31  ;;  %v4099_v43 = vld [vmem:[%s5029_s29 + $0x40] ss:$8 sps:$4 sm:$0xff]   ;;  %v4101_v45 = vld [vmem:[%s5029_s29 + $0x54] ss:$8 sps:$4 sm:$0xff]   ;;  %v4105_v47 = vld [vmem:[%s5029_s29 + $0x50] ss:$8 sps:$4 sm:$0xff]  }
  0x77   : > { %3004 = vmatpush1.bf16.msra.mxu0 %v4082_v32  ;;  %2747 = vmatprep.subr.bf16.mxu1 %v4083_v33  ;;  %v4100_v44 = vld [vmem:[%s5029_s29 + $0x640] ss:$8 sps:$4 sm:$0xff]   ;;  %v4103_v46 = vld [vmem:[%s5029_s29 + $0x654] ss:$8 sps:$4 sm:$0xff]   ;;  %v4106_v48 = vld [vmem:[%s5029_s29 + $0x650] ss:$8 sps:$4 sm:$0xff]  }
  0x78   : > { %3005 = vmatprep.subr.bf16.mxu0 %v4085_v34  ;;  %v4107_v49 = vld [vmem:[%s5029_s29 + $0x64] ss:$8 sps:$4 sm:$0xff]   ;;  %v4111_v51 = vld [vmem:[%s5029_s29 + $0x60] ss:$8 sps:$4 sm:$0xff]   ;;  %v4113_v53 = vld [vmem:[%s5029_s29 + $0x74] ss:$8 sps:$4 sm:$0xff]  }
  0x79   : > { %v4109_v50 = vld [vmem:[%s5029_s29 + $0x664] ss:$8 sps:$4 sm:$0xff]   ;;  %v4112_v52 = vld [vmem:[%s5029_s29 + $0x660] ss:$8 sps:$4 sm:$0xff]   ;;  %v4115_v54 = vld [vmem:[%s5029_s29 + $0x674] ss:$8 sps:$4 sm:$0xff]  }
  0x7a   : > { %2748 = vmatpush1.bf16.msra.mxu1 %v4087_v35  ;;  %v4117_v55 = vld [vmem:[%s5029_s29 + $0x70] ss:$8 sps:$4 sm:$0xff]   ;;  %v4119_v57 = vld [vmem:[%s5029_s29 + $0x84] ss:$8 sps:$4 sm:$0xff]   ;;  %v4123_v59 = vld [vmem:[%s5029_s29 + $0x80] ss:$8 sps:$4 sm:$0xff]  }
  0x7b   : > { %3006 = vmatpush1.bf16.msra.mxu0 %v4088_v36  ;;  %2749 = vmatprep.subr.bf16.mxu1 %v4089_v37  ;;  %v4118_v56 = vld [vmem:[%s5029_s29 + $0x670] ss:$8 sps:$4 sm:$0xff]   ;;  %v4121_v58 = vld [vmem:[%s5029_s29 + $0x684] ss:$8 sps:$4 sm:$0xff]   ;;  %v4124_v60 = vld [vmem:[%s5029_s29 + $0x680] ss:$8 sps:$4 sm:$0xff]  }
  0x7c   : > { %3007 = vmatprep.subr.bf16.mxu0 %v4091_v38  ;;  %v4125_v61 = vld [vmem:[%s5029_s29 + $0x94] ss:$8 sps:$4 sm:$0xff]   ;;  %v4129_v63 = vld [vmem:[%s5029_s29 + $0x90] ss:$8 sps:$4 sm:$0xff]   ;;  %v4131_v1 = vld [vmem:[%s5029_s29 + $0xa4] ss:$8 sps:$4 sm:$0xff]  }
  0x7d   : > { %v4127_v62 = vld [vmem:[%s5029_s29 + $0x694] ss:$8 sps:$4 sm:$0xff]   ;;  %v4130_v0 = vld [vmem:[%s5029_s29 + $0x690] ss:$8 sps:$4 sm:$0xff]   ;;  %v4133_v2 = vld [vmem:[%s5029_s29 + $0x6a4] ss:$8 sps:$4 sm:$0xff]  }
  0x7e   : > { %2750 = vmatpush1.bf16.msra.mxu1 %v4093_v39  ;;  %v4135_v3 = vld [vmem:[%s5029_s29 + $0xa0] ss:$8 sps:$4 sm:$0xff]   ;;  %v4137_v5 = vld [vmem:[%s5029_s29 + $0xb4] ss:$8 sps:$4 sm:$0xff]   ;;  %v4141_v7 = vld [vmem:[%s5029_s29 + $0xb0] ss:$8 sps:$4 sm:$0xff]  }
  0x7f   : > { %3008 = vmatpush1.bf16.msra.mxu0 %v4094_v40  ;;  %2751 = vmatprep.subr.bf16.mxu1 %v4095_v41  ;;  %v4136_v4 = vld [vmem:[%s5029_s29 + $0x6a0] ss:$8 sps:$4 sm:$0xff]   ;;  %v4139_v6 = vld [vmem:[%s5029_s29 + $0x6b4] ss:$8 sps:$4 sm:$0xff]   ;;  %v4142_v8 = vld [vmem:[%s5029_s29 + $0x6b0] ss:$8 sps:$4 sm:$0xff]  }
  0x80   : > { %3009 = vmatprep.subr.bf16.mxu0 %v4097_v42  ;;  %v4169_v9 = vld [vmem:[%s5027_s8 + $0x4] ss:$92 sps:$4 sm:$0xff]   ;;  %v4175_v12 = vld [vmem:[%s5027_s8 + $0x34] ss:$92 sps:$4 sm:$0xff]   ;;  %p3907_p1 = scmp.ne.s32.totalorder %s4767_s22, 17 }
  0x81   : > { %v4143_v10 = vld [vmem:[%s5029_s29 + $0xc4] ss:$8 sps:$4 sm:$0xff]   ;;  %2775 = vmatprep.mubr.bf16.mxu1 %v4169_v9  ;;  %v4147_v13 = vld [vmem:[%s5029_s29 + $0xc0] ss:$8 sps:$4 sm:$0xff]   ;;  %v4149_v15 = vld [vmem:[%s5029_s29 + $0xd4] ss:$8 sps:$4 sm:$0xff]   ;;  %3033 = vmatprep.mubr.bf16.mxu0 %v4175_v12 }
  0x82   : > { %2752 = vmatpush1.bf16.msra.mxu1 %v4099_v43  ;;  %v4145_v11 = vld [vmem:[%s5029_s29 + $0x6c4] ss:$8 sps:$4 sm:$0xff]   ;;  %v4148_v14 = vld [vmem:[%s5029_s29 + $0x6c0] ss:$8 sps:$4 sm:$0xff]   ;;  %v4151_v16 = vld [vmem:[%s5029_s29 + $0x6d4] ss:$8 sps:$4 sm:$0xff]  }
  0x83   : > { %3010 = vmatpush1.bf16.msra.mxu0 %v4100_v44  ;;  %2753 = vmatprep.subr.bf16.mxu1 %v4101_v45  ;;  %v4153_v17 = vld [vmem:[%s5029_s29 + $0xd0] ss:$8 sps:$4 sm:$0xff]   ;;  %v4155_v19 = vld [vmem:[%s5029_s29 + $0xe4] ss:$8 sps:$4 sm:$0xff]   ;;  %v4159_v21 = vld [vmem:[%s5029_s29 + $0xe0] ss:$8 sps:$4 sm:$0xff]  }
  0x84   : > { %3011 = vmatprep.subr.bf16.mxu0 %v4103_v46  ;;  %v4154_v18 = vld [vmem:[%s5029_s29 + $0x6d0] ss:$8 sps:$4 sm:$0xff]   ;;  %v4157_v20 = vld [vmem:[%s5029_s29 + $0x6e4] ss:$8 sps:$4 sm:$0xff]   ;;  %v4160_v22 = vld [vmem:[%s5029_s29 + $0x6e0] ss:$8 sps:$4 sm:$0xff]  }
  0x85   : > { %v4161_v23 = vld [vmem:[%s5029_s29 + $0xf4] ss:$8 sps:$4 sm:$0xff]   ;;  %v4165_v25 = vld [vmem:[%s5029_s29 + $0xf0] ss:$8 sps:$4 sm:$0xff]   ;;  %v4172_v27 = vld [vmem:[%s5029_s29 + $0x104] ss:$8 sps:$4 sm:$0xff]  }
  0x86   : > { %2754 = vmatpush1.bf16.msra.mxu1 %v4105_v47  ;;  %v4163_v24 = vld [vmem:[%s5029_s29 + $0x6f4] ss:$8 sps:$4 sm:$0xff]   ;;  %v4166_v26 = vld [vmem:[%s5029_s29 + $0x6f0] ss:$8 sps:$4 sm:$0xff]   ;;  %v4178_v28 = vld [vmem:[%s5029_s29 + $0x704] ss:$8 sps:$4 sm:$0xff]  }
  0x87   : > { %3012 = vmatpush1.bf16.msra.mxu0 %v4106_v48  ;;  %2755 = vmatprep.subr.bf16.mxu1 %v4107_v49  ;;  %v4167_v29 = vld [vmem:[%s5027_s8] ss:$92 sps:$4 sm:$0xff]   ;;  %v4173_v31 = vld [vmem:[%s5027_s8 + $0x30] ss:$92 sps:$4 sm:$0xff]  }
  0x88   : > { %3013 = vmatprep.subr.bf16.mxu0 %v4109_v50  ;;  %v4170_v30 = vld [vmem:[%s5029_s29 + $0x100] ss:$8 sps:$4 sm:$0xff]   ;;  %v4181_v33 = vld [vmem:[%s5029_s29 + $0x114] ss:$8 sps:$4 sm:$0xff]   ;;  %v4179_v35 = vld [vmem:[%s5029_s29 + $0x110] ss:$8 sps:$4 sm:$0xff]  }
  0x89   : > { %v4176_v32 = vld [vmem:[%s5029_s29 + $0x700] ss:$8 sps:$4 sm:$0xff]   ;;  %v4184_v34 = vld [vmem:[%s5029_s29 + $0x714] ss:$8 sps:$4 sm:$0xff]   ;;  %v4182_v36 = vld [vmem:[%s5029_s29 + $0x710] ss:$8 sps:$4 sm:$0xff]  }
  0x8a   : > { %2756 = vmatpush1.bf16.msra.mxu1 %v4111_v51  ;;  %v4187_v37 = vld [vmem:[%s5029_s29 + $0x124] ss:$8 sps:$4 sm:$0xff]   ;;  %v4185_v39 = vld [vmem:[%s5029_s29 + $0x120] ss:$8 sps:$4 sm:$0xff]   ;;  %v4193_v41 = vld [vmem:[%s5029_s29 + $0x134] ss:$8 sps:$4 sm:$0xff]  }
  0x8b   : > { %3014 = vmatpush1.bf16.msra.mxu0 %v4112_v52  ;;  %2757 = vmatprep.subr.bf16.mxu1 %v4113_v53  ;;  %v4190_v38 = vld [vmem:[%s5029_s29 + $0x724] ss:$8 sps:$4 sm:$0xff]   ;;  %v4188_v40 = vld [vmem:[%s5029_s29 + $0x720] ss:$8 sps:$4 sm:$0xff]   ;;  %v4196_v42 = vld [vmem:[%s5029_s29 + $0x734] ss:$8 sps:$4 sm:$0xff]  }
  0x8c   : > { %3015 = vmatprep.subr.bf16.mxu0 %v4115_v54  ;;  %v4191_v43 = vld [vmem:[%s5029_s29 + $0x130] ss:$8 sps:$4 sm:$0xff]   ;;  %v4199_v45 = vld [vmem:[%s5029_s29 + $0x144] ss:$8 sps:$4 sm:$0xff]   ;;  %v4197_v47 = vld [vmem:[%s5029_s29 + $0x140] ss:$8 sps:$4 sm:$0xff]  }
  0x8d   : > { %v4194_v44 = vld [vmem:[%s5029_s29 + $0x730] ss:$8 sps:$4 sm:$0xff]   ;;  %v4202_v46 = vld [vmem:[%s5029_s29 + $0x744] ss:$8 sps:$4 sm:$0xff]   ;;  %v4200_v48 = vld [vmem:[%s5029_s29 + $0x740] ss:$8 sps:$4 sm:$0xff]  }
  0x8e   : > { %2758 = vmatpush1.bf16.msra.mxu1 %v4117_v55  ;;  %v4205_v49 = vld [vmem:[%s5029_s29 + $0x154] ss:$8 sps:$4 sm:$0xff]   ;;  %v4203_v51 = vld [vmem:[%s5029_s29 + $0x150] ss:$8 sps:$4 sm:$0xff]   ;;  %v4211_v53 = vld [vmem:[%s5029_s29 + $0x164] ss:$8 sps:$4 sm:$0xff]  }
  0x8f   : > { %3016 = vmatpush1.bf16.msra.mxu0 %v4118_v56  ;;  %2759 = vmatprep.subr.bf16.mxu1 %v4119_v57  ;;  %v4208_v50 = vld [vmem:[%s5029_s29 + $0x754] ss:$8 sps:$4 sm:$0xff]   ;;  %v4206_v52 = vld [vmem:[%s5029_s29 + $0x750] ss:$8 sps:$4 sm:$0xff]   ;;  %v4214_v54 = vld [vmem:[%s5029_s29 + $0x764] ss:$8 sps:$4 sm:$0xff]  }
  0x90   : > { %3017 = vmatprep.subr.bf16.mxu0 %v4121_v58  ;;  %v4209_v55 = vld [vmem:[%s5029_s29 + $0x160] ss:$8 sps:$4 sm:$0xff]   ;;  %v4217_v57 = vld [vmem:[%s5029_s29 + $0x174] ss:$8 sps:$4 sm:$0xff]  }
  0x91   : > { %v4212_v56 = vld [vmem:[%s5029_s29 + $0x760] ss:$8 sps:$4 sm:$0xff]   ;;  %v4220_v58 = vld [vmem:[%s5029_s29 + $0x774] ss:$8 sps:$4 sm:$0xff]  }
  0x92   : > { %2760 = vmatpush1.bf16.msra.mxu1 %v4123_v59  ;;  %v4271_v59 = vld [vmem:[%s5027_s8 + $0xc] ss:$92 sps:$4 sm:$0xff]   ;;  %v4233_v9 = vld [vmem:[%s5029_s29 + $0x1a0] ss:$8 sps:$4 sm:$0xff]  }
  0x93   : > { %3018 = vmatpush1.bf16.msra.mxu0 %v4124_v60  ;;  %2761 = vmatprep.subr.bf16.mxu1 %v4125_v61  ;;  %v4215_v60 = vld [vmem:[%s5029_s29 + $0x170] ss:$8 sps:$4 sm:$0xff]   ;;  %v4244_v12 = vld [vmem:[%s5029_s29 + $0x7b4] ss:$8 sps:$4 sm:$0xff]  }
  0x94   : > { %3019 = vmatprep.subr.bf16.mxu0 %v4127_v62  ;;  %v4218_v61 = vld [vmem:[%s5029_s29 + $0x770] ss:$8 sps:$4 sm:$0xff]   ;;  %v4277_v62 = vld [vmem:[%s5027_s8 + $0x3c] ss:$92 sps:$4 sm:$0xff]  }
  0x96   : > { %2762 = vmatpush1.bf16.msra.mxu1 %v4129_v63  ;;  %v4223_v63 = vld [vmem:[%s5029_s29 + $0x184] ss:$8 sps:$4 sm:$0xff]  }
  0x97   : > { %3020 = vmatpush1.bf16.msra.mxu0 %v4130_v0  ;;  %2763 = vmatprep.subr.bf16.mxu1 %v4131_v1  ;;  %v4226_v0 = vld [vmem:[%s5029_s29 + $0x784] ss:$8 sps:$4 sm:$0xff]   ;;  %v4221_v1 = vld [vmem:[%s5029_s29 + $0x180] ss:$8 sps:$4 sm:$0xff]  }
  0x98   : > { %3021 = vmatprep.subr.bf16.mxu0 %v4133_v2  ;;  %v4224_v2 = vld [vmem:[%s5029_s29 + $0x780] ss:$8 sps:$4 sm:$0xff]  }
  0x9a   : > { %2764 = vmatpush1.bf16.msra.mxu1 %v4135_v3  ;;  %v4229_v3 = vld [vmem:[%s5029_s29 + $0x194] ss:$8 sps:$4 sm:$0xff]  }
  0x9b   : > { %3022 = vmatpush1.bf16.msra.mxu0 %v4136_v4  ;;  %2765 = vmatprep.subr.bf16.mxu1 %v4137_v5  ;;  %v4232_v4 = vld [vmem:[%s5029_s29 + $0x794] ss:$8 sps:$4 sm:$0xff]   ;;  %v4227_v5 = vld [vmem:[%s5029_s29 + $0x190] ss:$8 sps:$4 sm:$0xff]  }
  0x9c   : > { %3023 = vmatprep.subr.bf16.mxu0 %v4139_v6  ;;  %v4230_v6 = vld [vmem:[%s5029_s29 + $0x790] ss:$8 sps:$4 sm:$0xff]  }
  0x9e   : > { %2766 = vmatpush1.bf16.msra.mxu1 %v4141_v7  ;;  %v4235_v7 = vld [vmem:[%s5029_s29 + $0x1a4] ss:$8 sps:$4 sm:$0xff]  }
  0x9f   : > { %3024 = vmatpush1.bf16.msra.mxu0 %v4142_v8  ;;  %2767 = vmatprep.subr.bf16.mxu1 %v4143_v10  ;;  %v4238_v8 = vld [vmem:[%s5029_s29 + $0x7a4] ss:$8 sps:$4 sm:$0xff]   ;;  %v4236_v10 = vld [vmem:[%s5029_s29 + $0x7a0] ss:$8 sps:$4 sm:$0xff]  }
  0xa0   : > { %3025 = vmatprep.subr.bf16.mxu0 %v4145_v11  ;;  %v4241_v11 = vld [vmem:[%s5029_s29 + $0x1b4] ss:$8 sps:$4 sm:$0xff]  }
  0xa2   : > { %2768 = vmatpush1.bf16.msra.mxu1 %v4147_v13  ;;  %v4239_v13 = vld [vmem:[%s5029_s29 + $0x1b0] ss:$8 sps:$4 sm:$0xff]  }
  0xa3   : > { %3026 = vmatpush1.bf16.msra.mxu0 %v4148_v14  ;;  %2769 = vmatprep.subr.bf16.mxu1 %v4149_v15  ;;  %v4242_v14 = vld [vmem:[%s5029_s29 + $0x7b0] ss:$8 sps:$4 sm:$0xff]   ;;  %v4247_v15 = vld [vmem:[%s5029_s29 + $0x1c4] ss:$8 sps:$4 sm:$0xff]  }
  0xa4   : > { %3027 = vmatprep.subr.bf16.mxu0 %v4151_v16  ;;  %v4250_v16 = vld [vmem:[%s5029_s29 + $0x7c4] ss:$8 sps:$4 sm:$0xff]  }
  0xa6   : > { %2770 = vmatpush1.bf16.msra.mxu1 %v4153_v17  ;;  %v4245_v17 = vld [vmem:[%s5029_s29 + $0x1c0] ss:$8 sps:$4 sm:$0xff]  }
  0xa7   : > { %3028 = vmatpush1.bf16.msra.mxu0 %v4154_v18  ;;  %2771 = vmatprep.subr.bf16.mxu1 %v4155_v19  ;;  %v4248_v18 = vld [vmem:[%s5029_s29 + $0x7c0] ss:$8 sps:$4 sm:$0xff]   ;;  %v4253_v19 = vld [vmem:[%s5029_s29 + $0x1d4] ss:$8 sps:$4 sm:$0xff]  }
  0xa8   : > { %3029 = vmatprep.subr.bf16.mxu0 %v4157_v20  ;;  %v4256_v20 = vld [vmem:[%s5029_s29 + $0x7d4] ss:$8 sps:$4 sm:$0xff]  }
  0xaa   : > { %2772 = vmatpush1.bf16.msra.mxu1 %v4159_v21  ;;  %v4251_v21 = vld [vmem:[%s5029_s29 + $0x1d0] ss:$8 sps:$4 sm:$0xff]  }
  0xab   : > { %3030 = vmatpush1.bf16.msra.mxu0 %v4160_v22  ;;  %2773 = vmatprep.subr.bf16.mxu1 %v4161_v23  ;;  %v4254_v22 = vld [vmem:[%s5029_s29 + $0x7d0] ss:$8 sps:$4 sm:$0xff]   ;;  %v4259_v23 = vld [vmem:[%s5029_s29 + $0x1e4] ss:$8 sps:$4 sm:$0xff]  }
  0xac   : > { %3031 = vmatprep.subr.bf16.mxu0 %v4163_v24  ;;  %v4262_v24 = vld [vmem:[%s5029_s29 + $0x7e4] ss:$8 sps:$4 sm:$0xff]  }
  0xae   : > { %2774 = vmatpush1.bf16.msra.mxu1 %v4165_v25  ;;  %v4257_v25 = vld [vmem:[%s5029_s29 + $0x1e0] ss:$8 sps:$4 sm:$0xff]  }
  0xaf   : > { %3032 = vmatpush1.bf16.msra.mxu0 %v4166_v26  ;;  %2786 = vmatprep.subr.bf16.mxu1 %v4172_v27  ;;  %v4260_v26 = vld [vmem:[%s5029_s29 + $0x7e0] ss:$8 sps:$4 sm:$0xff]   ;;  %v4265_v27 = vld [vmem:[%s5029_s29 + $0x1f4] ss:$8 sps:$4 sm:$0xff]  }
  0xb0   : > { %3044 = vmatprep.subr.bf16.mxu0 %v4178_v28  ;;  %v4268_v28 = vld [vmem:[%s5029_s29 + $0x7f4] ss:$8 sps:$4 sm:$0xff]  }
  0xb1   : > { %2776 = vmatmul.mubr.bf16.vlgmr.msra.gmra.mrb[0].mxu1 %v4167_v29  ;;  %v4263_v29 = vld [vmem:[%s5029_s29 + $0x1f0] ss:$8 sps:$4 sm:$0xff]  }
  0xb2   : > { %3034 = vmatmul.mubr.bf16.vlgmr.msra.gmra.mrb[0].mxu0 %v4173_v31  ;;  %2787 = vmatpush1.bf16.msra.mxu1 %v4170_v30  ;;  %v4266_v30 = vld [vmem:[%s5029_s29 + $0x7f0] ss:$8 sps:$4 sm:$0xff]   ;;  %v4274_v31 = vld [vmem:[%s5029_s29 + $0x204] ss:$8 sps:$4 sm:$0xff]  }
  0xb3   : > { %3045 = vmatpush1.bf16.msra.mxu0 %v4176_v32  ;;  %2788 = vmatprep.subr.bf16.mxu1 %v4181_v33  ;;  %v4280_v32 = vld [vmem:[%s5029_s29 + $0x804] ss:$8 sps:$4 sm:$0xff]  }
  0xb4   : > { %3046 = vmatprep.subr.bf16.mxu0 %v4184_v34  ;;  %2818 = vmatprep.mubr.bf16.mxu1 %v4271_v59  ;;  %v4269_v33 = vld [vmem:[%s5027_s8 + $0x8] ss:$92 sps:$4 sm:$0xff]   ;;  %v4272_v34 = vld [vmem:[%s5029_s29 + $0x200] ss:$8 sps:$4 sm:$0xff]  }
  0xb5   : > { %3076 = vmatprep.mubr.bf16.mxu0 %v4277_v62  ;;  %v4313_v59 = vld [vmem:[%s5029_s29 + $0x264] ss:$8 sps:$4 sm:$0xff]   ;;  %v4314_v62 = vld [vmem:[%s5029_s29 + $0x860] ss:$8 sps:$4 sm:$0xff]  }
  0xb6   : > { %2789 = vmatpush1.bf16.msra.mxu1 %v4179_v35  ;;  %v4275_v35 = vld [vmem:[%s5027_s8 + $0x38] ss:$92 sps:$4 sm:$0xff]  }
  0xb7   : > { %3047 = vmatpush1.bf16.msra.mxu0 %v4182_v36  ;;  %2790 = vmatprep.subr.bf16.mxu1 %v4187_v37  ;;  %v4278_v36 = vld [vmem:[%s5029_s29 + $0x800] ss:$8 sps:$4 sm:$0xff]   ;;  %v4283_v37 = vld [vmem:[%s5029_s29 + $0x214] ss:$8 sps:$4 sm:$0xff]  }
  0xb8   : > { %3048 = vmatprep.subr.bf16.mxu0 %v4190_v38  ;;  %v4286_v38 = vld [vmem:[%s5029_s29 + $0x814] ss:$8 sps:$4 sm:$0xff]  }
  0xba   : > { %2791 = vmatpush1.bf16.msra.mxu1 %v4185_v39  ;;  %v4281_v39 = vld [vmem:[%s5029_s29 + $0x210] ss:$8 sps:$4 sm:$0xff]  }
  0xbb   : > { %3049 = vmatpush1.bf16.msra.mxu0 %v4188_v40  ;;  %2792 = vmatprep.subr.bf16.mxu1 %v4193_v41  ;;  %v4284_v40 = vld [vmem:[%s5029_s29 + $0x810] ss:$8 sps:$4 sm:$0xff]   ;;  %v4289_v41 = vld [vmem:[%s5029_s29 + $0x224] ss:$8 sps:$4 sm:$0xff]  }
  0xbc   : > { %3050 = vmatprep.subr.bf16.mxu0 %v4196_v42  ;;  %v4292_v42 = vld [vmem:[%s5029_s29 + $0x824] ss:$8 sps:$4 sm:$0xff]  }
  0xbe   : > { %2793 = vmatpush1.bf16.msra.mxu1 %v4191_v43  ;;  %v4287_v43 = vld [vmem:[%s5029_s29 + $0x220] ss:$8 sps:$4 sm:$0xff]  }
  0xbf   : > { %3051 = vmatpush1.bf16.msra.mxu0 %v4194_v44  ;;  %2794 = vmatprep.subr.bf16.mxu1 %v4199_v45  ;;  %v4373_v44 = vld [vmem:[%s5027_s8 + $0x14] ss:$92 sps:$4 sm:$0xff]  }
  0xc0   : > { %3052 = vmatprep.subr.bf16.mxu0 %v4202_v46  ;;  %v4290_v45 = vld [vmem:[%s5029_s29 + $0x820] ss:$8 sps:$4 sm:$0xff]   ;;  %v4295_v46 = vld [vmem:[%s5029_s29 + $0x234] ss:$8 sps:$4 sm:$0xff]  }
  0xc2   : > { %2795 = vmatpush1.bf16.msra.mxu1 %v4197_v47  ;;  %v4298_v47 = vld [vmem:[%s5029_s29 + $0x834] ss:$8 sps:$4 sm:$0xff]  }
  0xc3   : > { %3053 = vmatpush1.bf16.msra.mxu0 %v4200_v48  ;;  %2796 = vmatprep.subr.bf16.mxu1 %v4205_v49  ;;  %v4379_v48 = vld [vmem:[%s5027_s8 + $0x44] ss:$92 sps:$4 sm:$0xff]  }
  0xc4   : > { %3054 = vmatprep.subr.bf16.mxu0 %v4208_v50  ;;  %v4293_v49 = vld [vmem:[%s5029_s29 + $0x230] ss:$8 sps:$4 sm:$0xff]  }
  0xc5   : > { %v4296_v50 = vld [vmem:[%s5029_s29 + $0x830] ss:$8 sps:$4 sm:$0xff]  }
  0xc6   : > { %2797 = vmatpush1.bf16.msra.mxu1 %v4203_v51  ;;  %v4301_v51 = vld [vmem:[%s5029_s29 + $0x244] ss:$8 sps:$4 sm:$0xff]  }
  0xc7   : > { %3055 = vmatpush1.bf16.msra.mxu0 %v4206_v52  ;;  %2798 = vmatprep.subr.bf16.mxu1 %v4211_v53  ;;  %v4304_v52 = vld [vmem:[%s5029_s29 + $0x844] ss:$8 sps:$4 sm:$0xff]   ;;  %v4299_v53 = vld [vmem:[%s5029_s29 + $0x240] ss:$8 sps:$4 sm:$0xff]  }
  0xc8   : > { %3056 = vmatprep.subr.bf16.mxu0 %v4214_v54  ;;  %v4302_v54 = vld [vmem:[%s5029_s29 + $0x840] ss:$8 sps:$4 sm:$0xff]  }
  0xca   : > { %2799 = vmatpush1.bf16.msra.mxu1 %v4209_v55  ;;  %v4307_v55 = vld [vmem:[%s5029_s29 + $0x254] ss:$8 sps:$4 sm:$0xff]  }
  0xcb   : > { %3057 = vmatpush1.bf16.msra.mxu0 %v4212_v56  ;;  %2800 = vmatprep.subr.bf16.mxu1 %v4217_v57  ;;  %v4310_v56 = vld [vmem:[%s5029_s29 + $0x854] ss:$8 sps:$4 sm:$0xff]   ;;  %v4305_v57 = vld [vmem:[%s5029_s29 + $0x250] ss:$8 sps:$4 sm:$0xff]  }
  0xcc   : > { %3058 = vmatprep.subr.bf16.mxu0 %v4220_v58  ;;  %v4308_v58 = vld [vmem:[%s5029_s29 + $0x850] ss:$8 sps:$4 sm:$0xff]  }
  0xce   : > { %2801 = vmatpush1.bf16.msra.mxu1 %v4215_v60  ;;  %v4316_v60 = vld [vmem:[%s5029_s29 + $0x864] ss:$8 sps:$4 sm:$0xff]  }
  0xcf   : > { %3059 = vmatpush1.bf16.msra.mxu0 %v4218_v61  ;;  %2802 = vmatprep.subr.bf16.mxu1 %v4223_v63  ;;  %v4311_v61 = vld [vmem:[%s5029_s29 + $0x260] ss:$8 sps:$4 sm:$0xff]   ;;  %v4319_v63 = vld [vmem:[%s5029_s29 + $0x274] ss:$8 sps:$4 sm:$0xff]  }
  0xd0   : > { %3060 = vmatprep.subr.bf16.mxu0 %v4226_v0  ;;  %v4322_v0 = vld [vmem:[%s5029_s29 + $0x874] ss:$8 sps:$4 sm:$0xff]  }
  0xd2   : > { %2803 = vmatpush1.bf16.msra.mxu1 %v4221_v1  ;;  %v4317_v1 = vld [vmem:[%s5029_s29 + $0x270] ss:$8 sps:$4 sm:$0xff]  }
  0xd3   : > { %3061 = vmatpush1.bf16.msra.mxu0 %v4224_v2  ;;  %2804 = vmatprep.subr.bf16.mxu1 %v4229_v3  ;;  %v4320_v2 = vld [vmem:[%s5029_s29 + $0x870] ss:$8 sps:$4 sm:$0xff]   ;;  %v4325_v3 = vld [vmem:[%s5029_s29 + $0x284] ss:$8 sps:$4 sm:$0xff]  }
  0xd4   : > { %3062 = vmatprep.subr.bf16.mxu0 %v4232_v4  ;;  %v4328_v4 = vld [vmem:[%s5029_s29 + $0x884] ss:$8 sps:$4 sm:$0xff]  }
  0xd6   : > { %2805 = vmatpush1.bf16.msra.mxu1 %v4227_v5  ;;  %v4323_v5 = vld [vmem:[%s5029_s29 + $0x280] ss:$8 sps:$4 sm:$0xff]  }
  0xd7   : > { %3063 = vmatpush1.bf16.msra.mxu0 %v4230_v6  ;;  %2806 = vmatprep.subr.bf16.mxu1 %v4235_v7  ;;  %v4326_v6 = vld [vmem:[%s5029_s29 + $0x880] ss:$8 sps:$4 sm:$0xff]   ;;  %v4331_v7 = vld [vmem:[%s5029_s29 + $0x294] ss:$8 sps:$4 sm:$0xff]  }
  0xd8   : > { %3064 = vmatprep.subr.bf16.mxu0 %v4238_v8  ;;  %v4334_v8 = vld [vmem:[%s5029_s29 + $0x894] ss:$8 sps:$4 sm:$0xff]  }
  0xda   : > { %2807 = vmatpush1.bf16.msra.mxu1 %v4233_v9  ;;  %v4329_v9 = vld [vmem:[%s5029_s29 + $0x290] ss:$8 sps:$4 sm:$0xff]  }
  0xdb   : > { %3065 = vmatpush1.bf16.msra.mxu0 %v4236_v10  ;;  %2808 = vmatprep.subr.bf16.mxu1 %v4241_v11  ;;  %v4332_v10 = vld [vmem:[%s5029_s29 + $0x890] ss:$8 sps:$4 sm:$0xff]   ;;  %v4337_v11 = vld [vmem:[%s5029_s29 + $0x2a4] ss:$8 sps:$4 sm:$0xff]  }
  0xdc   : > { %3066 = vmatprep.subr.bf16.mxu0 %v4244_v12  ;;  %v4340_v12 = vld [vmem:[%s5029_s29 + $0x8a4] ss:$8 sps:$4 sm:$0xff]  }
  0xde   : > { %2809 = vmatpush1.bf16.msra.mxu1 %v4239_v13  ;;  %v4335_v13 = vld [vmem:[%s5029_s29 + $0x2a0] ss:$8 sps:$4 sm:$0xff]  }
  0xdf   : > { %3067 = vmatpush1.bf16.msra.mxu0 %v4242_v14  ;;  %2810 = vmatprep.subr.bf16.mxu1 %v4247_v15  ;;  %v4338_v14 = vld [vmem:[%s5029_s29 + $0x8a0] ss:$8 sps:$4 sm:$0xff]   ;;  %v4343_v15 = vld [vmem:[%s5029_s29 + $0x2b4] ss:$8 sps:$4 sm:$0xff]  }
  0xe0   : > { %3068 = vmatprep.subr.bf16.mxu0 %v4250_v16  ;;  %v4346_v16 = vld [vmem:[%s5029_s29 + $0x8b4] ss:$8 sps:$4 sm:$0xff]  }
  0xe2   : > { %2811 = vmatpush1.bf16.msra.mxu1 %v4245_v17  ;;  %v4341_v17 = vld [vmem:[%s5029_s29 + $0x2b0] ss:$8 sps:$4 sm:$0xff]  }
  0xe3   : > { %3069 = vmatpush1.bf16.msra.mxu0 %v4248_v18  ;;  %2812 = vmatprep.subr.bf16.mxu1 %v4253_v19  ;;  %v4344_v18 = vld [vmem:[%s5029_s29 + $0x8b0] ss:$8 sps:$4 sm:$0xff]   ;;  %v4349_v19 = vld [vmem:[%s5029_s29 + $0x2c4] ss:$8 sps:$4 sm:$0xff]  }
  0xe4   : > { %3070 = vmatprep.subr.bf16.mxu0 %v4256_v20  ;;  %v4352_v20 = vld [vmem:[%s5029_s29 + $0x8c4] ss:$8 sps:$4 sm:$0xff]  }
  0xe6   : > { %2813 = vmatpush1.bf16.msra.mxu1 %v4251_v21  ;;  %v4347_v21 = vld [vmem:[%s5029_s29 + $0x2c0] ss:$8 sps:$4 sm:$0xff]  }
  0xe7   : > { %3071 = vmatpush1.bf16.msra.mxu0 %v4254_v22  ;;  %2814 = vmatprep.subr.bf16.mxu1 %v4259_v23  ;;  %v4350_v22 = vld [vmem:[%s5029_s29 + $0x8c0] ss:$8 sps:$4 sm:$0xff]   ;;  %v4355_v23 = vld [vmem:[%s5029_s29 + $0x2d4] ss:$8 sps:$4 sm:$0xff]  }
  0xe8   : > { %3072 = vmatprep.subr.bf16.mxu0 %v4262_v24  ;;  %v4358_v24 = vld [vmem:[%s5029_s29 + $0x8d4] ss:$8 sps:$4 sm:$0xff]  }
  0xea   : > { %2815 = vmatpush1.bf16.msra.mxu1 %v4257_v25  ;;  %v4353_v25 = vld [vmem:[%s5029_s29 + $0x2d0] ss:$8 sps:$4 sm:$0xff]  }
  0xeb   : > { %3073 = vmatpush1.bf16.msra.mxu0 %v4260_v26  ;;  %2816 = vmatprep.subr.bf16.mxu1 %v4265_v27  ;;  %v4356_v26 = vld [vmem:[%s5029_s29 + $0x8d0] ss:$8 sps:$4 sm:$0xff]   ;;  %v4361_v27 = vld [vmem:[%s5029_s29 + $0x2e4] ss:$8 sps:$4 sm:$0xff]  }
  0xec   : > { %3074 = vmatprep.subr.bf16.mxu0 %v4268_v28  ;;  %v4364_v28 = vld [vmem:[%s5029_s29 + $0x8e4] ss:$8 sps:$4 sm:$0xff]  }
  0xee   : > { %2817 = vmatpush1.bf16.msra.mxu1 %v4263_v29  ;;  %v4359_v29 = vld [vmem:[%s5029_s29 + $0x2e0] ss:$8 sps:$4 sm:$0xff]  }
  0xef   : > { %3075 = vmatpush1.bf16.msra.mxu0 %v4266_v30  ;;  %2829 = vmatprep.subr.bf16.mxu1 %v4274_v31  ;;  %v4362_v30 = vld [vmem:[%s5029_s29 + $0x8e0] ss:$8 sps:$4 sm:$0xff]   ;;  %v4367_v31 = vld [vmem:[%s5029_s29 + $0x2f4] ss:$8 sps:$4 sm:$0xff]  }
  0xf0   : > { %3087 = vmatprep.subr.bf16.mxu0 %v4280_v32  ;;  %v4370_v32 = vld [vmem:[%s5029_s29 + $0x8f4] ss:$8 sps:$4 sm:$0xff]  }
  0xf1   : > { %2819 = vmatmul.mubr.bf16.vlgmr.msra.gmra.mrb[0].mxu1 %v4269_v33  ;;  %v4365_v33 = vld [vmem:[%s5029_s29 + $0x2f0] ss:$8 sps:$4 sm:$0xff]  }
  0xf2   : > { %3077 = vmatmul.mubr.bf16.vlgmr.msra.gmra.mrb[0].mxu0 %v4275_v35  ;;  %2830 = vmatpush1.bf16.msra.mxu1 %v4272_v34  ;;  %v4368_v34 = vld [vmem:[%s5029_s29 + $0x8f0] ss:$8 sps:$4 sm:$0xff]   ;;  %v4376_v35 = vld [vmem:[%s5029_s29 + $0x304] ss:$8 sps:$4 sm:$0xff]  }
  0xf3   : > { %3088 = vmatpush1.bf16.msra.mxu0 %v4278_v36  ;;  %2831 = vmatprep.subr.bf16.mxu1 %v4283_v37  ;;  %v4382_v36 = vld [vmem:[%s5029_s29 + $0x904] ss:$8 sps:$4 sm:$0xff]   ;;  %v4371_v37 = vld [vmem:[%s5027_s8 + $0x10] ss:$92 sps:$4 sm:$0xff]  }
  0xf4   : > { %3089 = vmatprep.subr.bf16.mxu0 %v4286_v38  ;;  %2861 = vmatprep.mubr.bf16.mxu1 %v4373_v44  ;;  %v4374_v38 = vld [vmem:[%s5029_s29 + $0x300] ss:$8 sps:$4 sm:$0xff]   ;;  %v4481_v44 = vld [vmem:[%s5027_s8 + $0x4c] ss:$92 sps:$4 sm:$0xff]  }
  0xf5   : > { %3119 = vmatprep.mubr.bf16.mxu0 %v4379_v48  ;;  %v4394_v48 = vld [vmem:[%s5029_s29 + $0x924] ss:$8 sps:$4 sm:$0xff]  }
  0xf6   : > { %2832 = vmatpush1.bf16.msra.mxu1 %v4281_v39  ;;  %v4377_v39 = vld [vmem:[%s5027_s8 + $0x40] ss:$92 sps:$4 sm:$0xff]  }
  0xf7   : > { %3090 = vmatpush1.bf16.msra.mxu0 %v4284_v40  ;;  %2833 = vmatprep.subr.bf16.mxu1 %v4289_v41  ;;  %v4380_v40 = vld [vmem:[%s5029_s29 + $0x900] ss:$8 sps:$4 sm:$0xff]   ;;  %v4385_v41 = vld [vmem:[%s5029_s29 + $0x314] ss:$8 sps:$4 sm:$0xff]  }
  0xf8   : > { %3091 = vmatprep.subr.bf16.mxu0 %v4292_v42  ;;  %v4388_v42 = vld [vmem:[%s5029_s29 + $0x914] ss:$8 sps:$4 sm:$0xff]  }
  0xfa   : > { %2834 = vmatpush1.bf16.msra.mxu1 %v4287_v43  ;;  %v4475_v43 = vld [vmem:[%s5027_s8 + $0x1c] ss:$92 sps:$4 sm:$0xff]  }
  0xfb   : > { %3092 = vmatpush1.bf16.msra.mxu0 %v4290_v45  ;;  %2835 = vmatprep.subr.bf16.mxu1 %v4295_v46  ;;  %v4383_v45 = vld [vmem:[%s5029_s29 + $0x310] ss:$8 sps:$4 sm:$0xff]  }
  0xfc   : > { %3093 = vmatprep.subr.bf16.mxu0 %v4298_v47  ;;  %v4386_v46 = vld [vmem:[%s5029_s29 + $0x910] ss:$8 sps:$4 sm:$0xff]   ;;  %v4391_v47 = vld [vmem:[%s5029_s29 + $0x324] ss:$8 sps:$4 sm:$0xff]  }
  0xfe   : > { %2836 = vmatpush1.bf16.msra.mxu1 %v4293_v49  ;;  %v4389_v49 = vld [vmem:[%s5029_s29 + $0x320] ss:$8 sps:$4 sm:$0xff]  }
  0xff   : > { %3094 = vmatpush1.bf16.msra.mxu0 %v4296_v50  ;;  %2837 = vmatprep.subr.bf16.mxu1 %v4301_v51  ;;  %v4392_v50 = vld [vmem:[%s5029_s29 + $0x920] ss:$8 sps:$4 sm:$0xff]   ;;  %v4397_v51 = vld [vmem:[%s5029_s29 + $0x334] ss:$8 sps:$4 sm:$0xff]  }
 0x100   : > { %3095 = vmatprep.subr.bf16.mxu0 %v4304_v52  ;;  %v4400_v52 = vld [vmem:[%s5029_s29 + $0x934] ss:$8 sps:$4 sm:$0xff]  }
 0x102   : > { %2838 = vmatpush1.bf16.msra.mxu1 %v4299_v53  ;;  %v4395_v53 = vld [vmem:[%s5029_s29 + $0x330] ss:$8 sps:$4 sm:$0xff]  }
 0x103   : > { %3096 = vmatpush1.bf16.msra.mxu0 %v4302_v54  ;;  %2839 = vmatprep.subr.bf16.mxu1 %v4307_v55  ;;  %v4398_v54 = vld [vmem:[%s5029_s29 + $0x930] ss:$8 sps:$4 sm:$0xff]   ;;  %v4403_v55 = vld [vmem:[%s5029_s29 + $0x344] ss:$8 sps:$4 sm:$0xff]  }
 0x104   : > { %3097 = vmatprep.subr.bf16.mxu0 %v4310_v56  ;;  %v4406_v56 = vld [vmem:[%s5029_s29 + $0x944] ss:$8 sps:$4 sm:$0xff]  }
 0x106   : > { %2840 = vmatpush1.bf16.msra.mxu1 %v4305_v57  ;;  %v4401_v57 = vld [vmem:[%s5029_s29 + $0x340] ss:$8 sps:$4 sm:$0xff]  }
 0x107   : > { %3098 = vmatpush1.bf16.msra.mxu0 %v4308_v58  ;;  %2841 = vmatprep.subr.bf16.mxu1 %v4313_v59  ;;  %v4404_v58 = vld [vmem:[%s5029_s29 + $0x940] ss:$8 sps:$4 sm:$0xff]   ;;  %v4409_v59 = vld [vmem:[%s5029_s29 + $0x354] ss:$8 sps:$4 sm:$0xff]  }
 0x108   : > { %3099 = vmatprep.subr.bf16.mxu0 %v4316_v60  ;;  %v4412_v60 = vld [vmem:[%s5029_s29 + $0x954] ss:$8 sps:$4 sm:$0xff]  }
 0x10a   : > { %2842 = vmatpush1.bf16.msra.mxu1 %v4311_v61  ;;  %v4407_v61 = vld [vmem:[%s5029_s29 + $0x350] ss:$8 sps:$4 sm:$0xff]  }
 0x10b   : > { %3100 = vmatpush1.bf16.msra.mxu0 %v4314_v62  ;;  %2843 = vmatprep.subr.bf16.mxu1 %v4319_v63  ;;  %v4410_v62 = vld [vmem:[%s5029_s29 + $0x950] ss:$8 sps:$4 sm:$0xff]   ;;  %v4415_v63 = vld [vmem:[%s5029_s29 + $0x364] ss:$8 sps:$4 sm:$0xff]  }
 0x10c   : > { %3101 = vmatprep.subr.bf16.mxu0 %v4322_v0  ;;  %v4418_v0 = vld [vmem:[%s5029_s29 + $0x964] ss:$8 sps:$4 sm:$0xff]  }
 0x10e   : > { %2844 = vmatpush1.bf16.msra.mxu1 %v4317_v1  ;;  %v4413_v1 = vld [vmem:[%s5029_s29 + $0x360] ss:$8 sps:$4 sm:$0xff]  }
 0x10f   : > { %3102 = vmatpush1.bf16.msra.mxu0 %v4320_v2  ;;  %2845 = vmatprep.subr.bf16.mxu1 %v4325_v3  ;;  %v4416_v2 = vld [vmem:[%s5029_s29 + $0x960] ss:$8 sps:$4 sm:$0xff]   ;;  %v4421_v3 = vld [vmem:[%s5029_s29 + $0x374] ss:$8 sps:$4 sm:$0xff]  }
 0x110   : > { %3103 = vmatprep.subr.bf16.mxu0 %v4328_v4  ;;  %v4424_v4 = vld [vmem:[%s5029_s29 + $0x974] ss:$8 sps:$4 sm:$0xff]  }
 0x112   : > { %2846 = vmatpush1.bf16.msra.mxu1 %v4323_v5  ;;  %v4419_v5 = vld [vmem:[%s5029_s29 + $0x370] ss:$8 sps:$4 sm:$0xff]  }
 0x113   : > { %3104 = vmatpush1.bf16.msra.mxu0 %v4326_v6  ;;  %2847 = vmatprep.subr.bf16.mxu1 %v4331_v7  ;;  %v4422_v6 = vld [vmem:[%s5029_s29 + $0x970] ss:$8 sps:$4 sm:$0xff]   ;;  %v4427_v7 = vld [vmem:[%s5029_s29 + $0x384] ss:$8 sps:$4 sm:$0xff]  }
 0x114   : > { %3105 = vmatprep.subr.bf16.mxu0 %v4334_v8  ;;  %v4430_v8 = vld [vmem:[%s5029_s29 + $0x984] ss:$8 sps:$4 sm:$0xff]  }
 0x116   : > { %2848 = vmatpush1.bf16.msra.mxu1 %v4329_v9  ;;  %v4425_v9 = vld [vmem:[%s5029_s29 + $0x380] ss:$8 sps:$4 sm:$0xff]  }
 0x117   : > { %3106 = vmatpush1.bf16.msra.mxu0 %v4332_v10  ;;  %2849 = vmatprep.subr.bf16.mxu1 %v4337_v11  ;;  %v4428_v10 = vld [vmem:[%s5029_s29 + $0x980] ss:$8 sps:$4 sm:$0xff]   ;;  %v4433_v11 = vld [vmem:[%s5029_s29 + $0x394] ss:$8 sps:$4 sm:$0xff]  }
 0x118   : > { %3107 = vmatprep.subr.bf16.mxu0 %v4340_v12  ;;  %v4436_v12 = vld [vmem:[%s5029_s29 + $0x994] ss:$8 sps:$4 sm:$0xff]  }
 0x11a   : > { %2850 = vmatpush1.bf16.msra.mxu1 %v4335_v13  ;;  %v4431_v13 = vld [vmem:[%s5029_s29 + $0x390] ss:$8 sps:$4 sm:$0xff]  }
 0x11b   : > { %3108 = vmatpush1.bf16.msra.mxu0 %v4338_v14  ;;  %2851 = vmatprep.subr.bf16.mxu1 %v4343_v15  ;;  %v4434_v14 = vld [vmem:[%s5029_s29 + $0x990] ss:$8 sps:$4 sm:$0xff]   ;;  %v4439_v15 = vld [vmem:[%s5029_s29 + $0x3a4] ss:$8 sps:$4 sm:$0xff]  }
 0x11c   : > { %3109 = vmatprep.subr.bf16.mxu0 %v4346_v16  ;;  %v4442_v16 = vld [vmem:[%s5029_s29 + $0x9a4] ss:$8 sps:$4 sm:$0xff]  }
 0x11e   : > { %2852 = vmatpush1.bf16.msra.mxu1 %v4341_v17  ;;  %v4437_v17 = vld [vmem:[%s5029_s29 + $0x3a0] ss:$8 sps:$4 sm:$0xff]  }
 0x11f   : > { %3110 = vmatpush1.bf16.msra.mxu0 %v4344_v18  ;;  %2853 = vmatprep.subr.bf16.mxu1 %v4349_v19  ;;  %v4440_v18 = vld [vmem:[%s5029_s29 + $0x9a0] ss:$8 sps:$4 sm:$0xff]   ;;  %v4445_v19 = vld [vmem:[%s5029_s29 + $0x3b4] ss:$8 sps:$4 sm:$0xff]  }
 0x120   : > { %3111 = vmatprep.subr.bf16.mxu0 %v4352_v20  ;;  %v4448_v20 = vld [vmem:[%s5029_s29 + $0x9b4] ss:$8 sps:$4 sm:$0xff]  }
 0x122   : > { %2854 = vmatpush1.bf16.msra.mxu1 %v4347_v21  ;;  %v4443_v21 = vld [vmem:[%s5029_s29 + $0x3b0] ss:$8 sps:$4 sm:$0xff]  }
 0x123   : > { %3112 = vmatpush1.bf16.msra.mxu0 %v4350_v22  ;;  %2855 = vmatprep.subr.bf16.mxu1 %v4355_v23  ;;  %v4446_v22 = vld [vmem:[%s5029_s29 + $0x9b0] ss:$8 sps:$4 sm:$0xff]   ;;  %v4451_v23 = vld [vmem:[%s5029_s29 + $0x3c4] ss:$8 sps:$4 sm:$0xff]  }
 0x124   : > { %3113 = vmatprep.subr.bf16.mxu0 %v4358_v24  ;;  %v4454_v24 = vld [vmem:[%s5029_s29 + $0x9c4] ss:$8 sps:$4 sm:$0xff]  }
 0x126   : > { %2856 = vmatpush1.bf16.msra.mxu1 %v4353_v25  ;;  %v4449_v25 = vld [vmem:[%s5029_s29 + $0x3c0] ss:$8 sps:$4 sm:$0xff]  }
 0x127   : > { %3114 = vmatpush1.bf16.msra.mxu0 %v4356_v26  ;;  %2857 = vmatprep.subr.bf16.mxu1 %v4361_v27  ;;  %v4452_v26 = vld [vmem:[%s5029_s29 + $0x9c0] ss:$8 sps:$4 sm:$0xff]   ;;  %v4457_v27 = vld [vmem:[%s5029_s29 + $0x3d4] ss:$8 sps:$4 sm:$0xff]  }
 0x128   : > { %3115 = vmatprep.subr.bf16.mxu0 %v4364_v28  ;;  %v4460_v28 = vld [vmem:[%s5029_s29 + $0x9d4] ss:$8 sps:$4 sm:$0xff]  }
 0x12a   : > { %2858 = vmatpush1.bf16.msra.mxu1 %v4359_v29  ;;  %v4455_v29 = vld [vmem:[%s5029_s29 + $0x3d0] ss:$8 sps:$4 sm:$0xff]  }
 0x12b   : > { %3116 = vmatpush1.bf16.msra.mxu0 %v4362_v30  ;;  %2859 = vmatprep.subr.bf16.mxu1 %v4367_v31  ;;  %v4458_v30 = vld [vmem:[%s5029_s29 + $0x9d0] ss:$8 sps:$4 sm:$0xff]   ;;  %v4463_v31 = vld [vmem:[%s5029_s29 + $0x3e4] ss:$8 sps:$4 sm:$0xff]  }
 0x12c   : > { %3117 = vmatprep.subr.bf16.mxu0 %v4370_v32  ;;  %v4466_v32 = vld [vmem:[%s5029_s29 + $0x9e4] ss:$8 sps:$4 sm:$0xff]  }
 0x12e   : > { %2860 = vmatpush1.bf16.msra.mxu1 %v4365_v33  ;;  %v4461_v33 = vld [vmem:[%s5029_s29 + $0x3e0] ss:$8 sps:$4 sm:$0xff]  }
 0x12f   : > { %3118 = vmatpush1.bf16.msra.mxu0 %v4368_v34  ;;  %2872 = vmatprep.subr.bf16.mxu1 %v4376_v35  ;;  %v4464_v34 = vld [vmem:[%s5029_s29 + $0x9e0] ss:$8 sps:$4 sm:$0xff]   ;;  %v4469_v35 = vld [vmem:[%s5029_s29 + $0x3f4] ss:$8 sps:$4 sm:$0xff]  }
 0x130   : > { %3130 = vmatprep.subr.bf16.mxu0 %v4382_v36  ;;  %v4472_v36 = vld [vmem:[%s5029_s29 + $0x9f4] ss:$8 sps:$4 sm:$0xff]  }
 0x131   : > { %2862 = vmatmul.mubr.bf16.vlgmr.msra.gmra.mrb[0].mxu1 %v4371_v37  ;;  %v4467_v37 = vld [vmem:[%s5029_s29 + $0x3f0] ss:$8 sps:$4 sm:$0xff]  }
 0x132   : > { %3120 = vmatmul.mubr.bf16.vlgmr.msra.gmra.mrb[0].mxu0 %v4377_v39  ;;  %2873 = vmatpush1.bf16.msra.mxu1 %v4374_v38  ;;  %v4470_v38 = vld [vmem:[%s5029_s29 + $0x9f0] ss:$8 sps:$4 sm:$0xff]   ;;  %v4478_v39 = vld [vmem:[%s5029_s29 + $0x404] ss:$8 sps:$4 sm:$0xff]  }
 0x133   : > { %3131 = vmatpush1.bf16.msra.mxu0 %v4380_v40  ;;  %2874 = vmatprep.subr.bf16.mxu1 %v4385_v41  ;;  %v4473_v40 = vld [vmem:[%s5027_s8 + $0x18] ss:$92 sps:$4 sm:$0xff]  }
 0x134   : > { %3132 = vmatprep.subr.bf16.mxu0 %v4388_v42  ;;  %2904 = vmatprep.mubr.bf16.mxu1 %v4475_v43  ;;  %v4484_v41 = vld [vmem:[%s5029_s29 + $0xa04] ss:$8 sps:$4 sm:$0xff]   ;;  %v4476_v42 = vld [vmem:[%s5029_s29 + $0x400] ss:$8 sps:$4 sm:$0xff]  }
 0x135   : > { %3162 = vmatprep.mubr.bf16.mxu0 %v4481_v44  ;;  %v4479_v43 = vld [vmem:[%s5027_s8 + $0x48] ss:$92 sps:$4 sm:$0xff]   ;;  %v4482_v44 = vld [vmem:[%s5029_s29 + $0xa00] ss:$8 sps:$4 sm:$0xff]  }
 0x136   : > { %2875 = vmatpush1.bf16.msra.mxu1 %v4383_v45  ;;  %v4487_v45 = vld [vmem:[%s5029_s29 + $0x414] ss:$8 sps:$4 sm:$0xff]  }
 0x137   : > { %3133 = vmatpush1.bf16.msra.mxu0 %v4386_v46  ;;  %2876 = vmatprep.subr.bf16.mxu1 %v4391_v47  ;;  %v4490_v46 = vld [vmem:[%s5029_s29 + $0xa14] ss:$8 sps:$4 sm:$0xff]  }
 0x138   : > { %3134 = vmatprep.subr.bf16.mxu0 %v4394_v48  ;;  %v4577_v47 = vld [vmem:[%s5027_s8 + $0x24] ss:$92 sps:$4 sm:$0xff]   ;;  %v4583_v48 = vld [vmem:[%s5027_s8 + $0x54] ss:$92 sps:$4 sm:$0xff]  }
 0x13a   : > { %2877 = vmatpush1.bf16.msra.mxu1 %v4389_v49  ;;  %v4485_v49 = vld [vmem:[%s5029_s29 + $0x410] ss:$8 sps:$4 sm:$0xff]  }
 0x13b   : > { %3135 = vmatpush1.bf16.msra.mxu0 %v4392_v50  ;;  %2878 = vmatprep.subr.bf16.mxu1 %v4397_v51  ;;  %v4488_v50 = vld [vmem:[%s5029_s29 + $0xa10] ss:$8 sps:$4 sm:$0xff]   ;;  %v4493_v51 = vld [vmem:[%s5029_s29 + $0x424] ss:$8 sps:$4 sm:$0xff]  }
 0x13c   : > { %3136 = vmatprep.subr.bf16.mxu0 %v4400_v52  ;;  %v4496_v52 = vld [vmem:[%s5029_s29 + $0xa24] ss:$8 sps:$4 sm:$0xff]  }
 0x13e   : > { %2879 = vmatpush1.bf16.msra.mxu1 %v4395_v53  ;;  %v4491_v53 = vld [vmem:[%s5029_s29 + $0x420] ss:$8 sps:$4 sm:$0xff]  }
 0x13f   : > { %3137 = vmatpush1.bf16.msra.mxu0 %v4398_v54  ;;  %2880 = vmatprep.subr.bf16.mxu1 %v4403_v55  ;;  %v4494_v54 = vld [vmem:[%s5029_s29 + $0xa20] ss:$8 sps:$4 sm:$0xff]   ;;  %v4499_v55 = vld [vmem:[%s5029_s29 + $0x434] ss:$8 sps:$4 sm:$0xff]  }
 0x140   : > { %3138 = vmatprep.subr.bf16.mxu0 %v4406_v56  ;;  %v4502_v56 = vld [vmem:[%s5029_s29 + $0xa34] ss:$8 sps:$4 sm:$0xff]  }
 0x142   : > { %2881 = vmatpush1.bf16.msra.mxu1 %v4401_v57  ;;  %v4497_v57 = vld [vmem:[%s5029_s29 + $0x430] ss:$8 sps:$4 sm:$0xff]  }
 0x143   : > { %3139 = vmatpush1.bf16.msra.mxu0 %v4404_v58  ;;  %2882 = vmatprep.subr.bf16.mxu1 %v4409_v59  ;;  %v4500_v58 = vld [vmem:[%s5029_s29 + $0xa30] ss:$8 sps:$4 sm:$0xff]   ;;  %v4505_v59 = vld [vmem:[%s5029_s29 + $0x444] ss:$8 sps:$4 sm:$0xff]  }
 0x144   : > { %3140 = vmatprep.subr.bf16.mxu0 %v4412_v60  ;;  %v4508_v60 = vld [vmem:[%s5029_s29 + $0xa44] ss:$8 sps:$4 sm:$0xff]  }
 0x146   : > { %2883 = vmatpush1.bf16.msra.mxu1 %v4407_v61  ;;  %v4503_v61 = vld [vmem:[%s5029_s29 + $0x440] ss:$8 sps:$4 sm:$0xff]  }
 0x147   : > { %3141 = vmatpush1.bf16.msra.mxu0 %v4410_v62  ;;  %2884 = vmatprep.subr.bf16.mxu1 %v4415_v63  ;;  %v4506_v62 = vld [vmem:[%s5029_s29 + $0xa40] ss:$8 sps:$4 sm:$0xff]   ;;  %v4511_v63 = vld [vmem:[%s5029_s29 + $0x454] ss:$8 sps:$4 sm:$0xff]  }
 0x148   : > { %3142 = vmatprep.subr.bf16.mxu0 %v4418_v0  ;;  %v4514_v0 = vld [vmem:[%s5029_s29 + $0xa54] ss:$8 sps:$4 sm:$0xff]  }
 0x14a   : > { %2885 = vmatpush1.bf16.msra.mxu1 %v4413_v1  ;;  %v4509_v1 = vld [vmem:[%s5029_s29 + $0x450] ss:$8 sps:$4 sm:$0xff]  }
 0x14b   : > { %3143 = vmatpush1.bf16.msra.mxu0 %v4416_v2  ;;  %2886 = vmatprep.subr.bf16.mxu1 %v4421_v3  ;;  %v4512_v2 = vld [vmem:[%s5029_s29 + $0xa50] ss:$8 sps:$4 sm:$0xff]   ;;  %v4517_v3 = vld [vmem:[%s5029_s29 + $0x464] ss:$8 sps:$4 sm:$0xff]  }
 0x14c   : > { %3144 = vmatprep.subr.bf16.mxu0 %v4424_v4  ;;  %v4520_v4 = vld [vmem:[%s5029_s29 + $0xa64] ss:$8 sps:$4 sm:$0xff]  }
 0x14e   : > { %2887 = vmatpush1.bf16.msra.mxu1 %v4419_v5  ;;  %v4515_v5 = vld [vmem:[%s5029_s29 + $0x460] ss:$8 sps:$4 sm:$0xff]  }
 0x14f   : > { %3145 = vmatpush1.bf16.msra.mxu0 %v4422_v6  ;;  %2888 = vmatprep.subr.bf16.mxu1 %v4427_v7  ;;  %v4518_v6 = vld [vmem:[%s5029_s29 + $0xa60] ss:$8 sps:$4 sm:$0xff]   ;;  %v4523_v7 = vld [vmem:[%s5029_s29 + $0x474] ss:$8 sps:$4 sm:$0xff]  }
 0x150   : > { %3146 = vmatprep.subr.bf16.mxu0 %v4430_v8  ;;  %v4526_v8 = vld [vmem:[%s5029_s29 + $0xa74] ss:$8 sps:$4 sm:$0xff]  }
 0x152   : > { %2889 = vmatpush1.bf16.msra.mxu1 %v4425_v9  ;;  %v4521_v9 = vld [vmem:[%s5029_s29 + $0x470] ss:$8 sps:$4 sm:$0xff]  }
 0x153   : > { %3147 = vmatpush1.bf16.msra.mxu0 %v4428_v10  ;;  %2890 = vmatprep.subr.bf16.mxu1 %v4433_v11  ;;  %v4524_v10 = vld [vmem:[%s5029_s29 + $0xa70] ss:$8 sps:$4 sm:$0xff]   ;;  %v4529_v11 = vld [vmem:[%s5029_s29 + $0x484] ss:$8 sps:$4 sm:$0xff]  }
 0x154   : > { %3148 = vmatprep.subr.bf16.mxu0 %v4436_v12  ;;  %v4532_v12 = vld [vmem:[%s5029_s29 + $0xa84] ss:$8 sps:$4 sm:$0xff]  }
 0x156   : > { %2891 = vmatpush1.bf16.msra.mxu1 %v4431_v13  ;;  %v4527_v13 = vld [vmem:[%s5029_s29 + $0x480] ss:$8 sps:$4 sm:$0xff]  }
 0x157   : > { %3149 = vmatpush1.bf16.msra.mxu0 %v4434_v14  ;;  %2892 = vmatprep.subr.bf16.mxu1 %v4439_v15  ;;  %v4530_v14 = vld [vmem:[%s5029_s29 + $0xa80] ss:$8 sps:$4 sm:$0xff]   ;;  %v4535_v15 = vld [vmem:[%s5029_s29 + $0x494] ss:$8 sps:$4 sm:$0xff]  }
 0x158   : > { %3150 = vmatprep.subr.bf16.mxu0 %v4442_v16  ;;  %v4538_v16 = vld [vmem:[%s5029_s29 + $0xa94] ss:$8 sps:$4 sm:$0xff]  }
 0x15a   : > { %2893 = vmatpush1.bf16.msra.mxu1 %v4437_v17  ;;  %v4533_v17 = vld [vmem:[%s5029_s29 + $0x490] ss:$8 sps:$4 sm:$0xff]  }
 0x15b   : > { %3151 = vmatpush1.bf16.msra.mxu0 %v4440_v18  ;;  %2894 = vmatprep.subr.bf16.mxu1 %v4445_v19  ;;  %v4536_v18 = vld [vmem:[%s5029_s29 + $0xa90] ss:$8 sps:$4 sm:$0xff]   ;;  %v4541_v19 = vld [vmem:[%s5029_s29 + $0x4a4] ss:$8 sps:$4 sm:$0xff]  }
 0x15c   : > { %3152 = vmatprep.subr.bf16.mxu0 %v4448_v20  ;;  %v4544_v20 = vld [vmem:[%s5029_s29 + $0xaa4] ss:$8 sps:$4 sm:$0xff]  }
 0x15e   : > { %2895 = vmatpush1.bf16.msra.mxu1 %v4443_v21  ;;  %v4539_v21 = vld [vmem:[%s5029_s29 + $0x4a0] ss:$8 sps:$4 sm:$0xff]  }
 0x15f   : > { %3153 = vmatpush1.bf16.msra.mxu0 %v4446_v22  ;;  %2896 = vmatprep.subr.bf16.mxu1 %v4451_v23  ;;  %v4542_v22 = vld [vmem:[%s5029_s29 + $0xaa0] ss:$8 sps:$4 sm:$0xff]   ;;  %v4547_v23 = vld [vmem:[%s5029_s29 + $0x4b4] ss:$8 sps:$4 sm:$0xff]  }
 0x160   : > { %3154 = vmatprep.subr.bf16.mxu0 %v4454_v24  ;;  %v4550_v24 = vld [vmem:[%s5029_s29 + $0xab4] ss:$8 sps:$4 sm:$0xff]  }
 0x162   : > { %2897 = vmatpush1.bf16.msra.mxu1 %v4449_v25  ;;  %v4545_v25 = vld [vmem:[%s5029_s29 + $0x4b0] ss:$8 sps:$4 sm:$0xff]  }
 0x163   : > { %3155 = vmatpush1.bf16.msra.mxu0 %v4452_v26  ;;  %2898 = vmatprep.subr.bf16.mxu1 %v4457_v27  ;;  %v4548_v26 = vld [vmem:[%s5029_s29 + $0xab0] ss:$8 sps:$4 sm:$0xff]   ;;  %v4553_v27 = vld [vmem:[%s5029_s29 + $0x4c4] ss:$8 sps:$4 sm:$0xff]  }
 0x164   : > { %3156 = vmatprep.subr.bf16.mxu0 %v4460_v28  ;;  %v4556_v28 = vld [vmem:[%s5029_s29 + $0xac4] ss:$8 sps:$4 sm:$0xff]  }
 0x166   : > { %2899 = vmatpush1.bf16.msra.mxu1 %v4455_v29  ;;  %v4551_v29 = vld [vmem:[%s5029_s29 + $0x4c0] ss:$8 sps:$4 sm:$0xff]  }
 0x167   : > { %3157 = vmatpush1.bf16.msra.mxu0 %v4458_v30  ;;  %2900 = vmatprep.subr.bf16.mxu1 %v4463_v31  ;;  %v4554_v30 = vld [vmem:[%s5029_s29 + $0xac0] ss:$8 sps:$4 sm:$0xff]   ;;  %v4559_v31 = vld [vmem:[%s5029_s29 + $0x4d4] ss:$8 sps:$4 sm:$0xff]  }
 0x168   : > { %3158 = vmatprep.subr.bf16.mxu0 %v4466_v32  ;;  %v4562_v32 = vld [vmem:[%s5029_s29 + $0xad4] ss:$8 sps:$4 sm:$0xff]  }
 0x16a   : > { %2901 = vmatpush1.bf16.msra.mxu1 %v4461_v33  ;;  %v4557_v33 = vld [vmem:[%s5029_s29 + $0x4d0] ss:$8 sps:$4 sm:$0xff]  }
 0x16b   : > { %3159 = vmatpush1.bf16.msra.mxu0 %v4464_v34  ;;  %2902 = vmatprep.subr.bf16.mxu1 %v4469_v35  ;;  %v4560_v34 = vld [vmem:[%s5029_s29 + $0xad0] ss:$8 sps:$4 sm:$0xff]   ;;  %v4565_v35 = vld [vmem:[%s5029_s29 + $0x4e4] ss:$8 sps:$4 sm:$0xff]  }
 0x16c   : > { %3160 = vmatprep.subr.bf16.mxu0 %v4472_v36  ;;  %v4568_v36 = vld [vmem:[%s5029_s29 + $0xae4] ss:$8 sps:$4 sm:$0xff]  }
 0x16e   : > { %2903 = vmatpush1.bf16.msra.mxu1 %v4467_v37  ;;  %v4563_v37 = vld [vmem:[%s5029_s29 + $0x4e0] ss:$8 sps:$4 sm:$0xff]  }
 0x16f   : > { %3161 = vmatpush1.bf16.msra.mxu0 %v4470_v38  ;;  %2915 = vmatprep.subr.bf16.mxu1 %v4478_v39  ;;  %v4566_v38 = vld [vmem:[%s5029_s29 + $0xae0] ss:$8 sps:$4 sm:$0xff]   ;;  %v4571_v39 = vld [vmem:[%s5029_s29 + $0x4f4] ss:$8 sps:$4 sm:$0xff]  }
 0x170   : > { %3173 = vmatprep.subr.bf16.mxu0 %v4484_v41  ;;  %v4569_v41 = vld [vmem:[%s5029_s29 + $0x4f0] ss:$8 sps:$4 sm:$0xff]  }
 0x171   : > { %2905 = vmatmul.mubr.bf16.vlgmr.msra.gmra.mrb[0].mxu1 %v4473_v40  ;;  %v4574_v40 = vld [vmem:[%s5029_s29 + $0xaf4] ss:$8 sps:$4 sm:$0xff]  }
 0x172   : > { %3163 = vmatmul.mubr.bf16.vlgmr.msra.gmra.mrb[0].mxu0 %v4479_v43  ;;  %2916 = vmatpush1.bf16.msra.mxu1 %v4476_v42  ;;  %v4572_v42 = vld [vmem:[%s5029_s29 + $0xaf0] ss:$8 sps:$4 sm:$0xff]   ;;  %v4580_v43 = vld [vmem:[%s5029_s29 + $0x504] ss:$8 sps:$4 sm:$0xff]  }
 0x173   : > { %3174 = vmatpush1.bf16.msra.mxu0 %v4482_v44  ;;  %2917 = vmatprep.subr.bf16.mxu1 %v4487_v45  ;;  %v4586_v44 = vld [vmem:[%s5029_s29 + $0xb04] ss:$8 sps:$4 sm:$0xff]  }
 0x174   : > { %3175 = vmatprep.subr.bf16.mxu0 %v4490_v46  ;;  %2947 = vmatprep.mubr.bf16.mxu1 %v4577_v47  ;;  %v4575_v45 = vld [vmem:[%s5027_s8 + $0x20] ss:$92 sps:$4 sm:$0xff]   ;;  %v4581_v46 = vld [vmem:[%s5027_s8 + $0x50] ss:$92 sps:$4 sm:$0xff]  }
 0x175   : > { %3205 = vmatprep.mubr.bf16.mxu0 %v4583_v48  ;;  %v4578_v47 = vld [vmem:[%s5029_s29 + $0x500] ss:$8 sps:$4 sm:$0xff]  }
 0x176   : > { %2918 = vmatpush1.bf16.msra.mxu1 %v4485_v49  ;;  %v4584_v48 = vld [vmem:[%s5029_s29 + $0xb00] ss:$8 sps:$4 sm:$0xff]   ;;  %v4589_v49 = vld [vmem:[%s5029_s29 + $0x514] ss:$8 sps:$4 sm:$0xff]  }
 0x177   : > { %3176 = vmatpush1.bf16.msra.mxu0 %v4488_v50  ;;  %2919 = vmatprep.subr.bf16.mxu1 %v4493_v51  ;;  %v4592_v50 = vld [vmem:[%s5029_s29 + $0xb14] ss:$8 sps:$4 sm:$0xff]  }
 0x178   : > { %3177 = vmatprep.subr.bf16.mxu0 %v4496_v52  ;;  %v4656_v51 = vld [vmem:[%s5027_s8 + $0x2c] ss:$92 sps:$4 sm:$0xff]  }
 0x179   : > { %v4587_v52 = vld [vmem:[%s5029_s29 + $0x510] ss:$8 sps:$4 sm:$0xff]  }
 0x17a   : > { %2920 = vmatpush1.bf16.msra.mxu1 %v4491_v53  ;;  %v4590_v53 = vld [vmem:[%s5029_s29 + $0xb10] ss:$8 sps:$4 sm:$0xff]  }
 0x17b   : > { %3178 = vmatpush1.bf16.msra.mxu0 %v4494_v54  ;;  %2921 = vmatprep.subr.bf16.mxu1 %v4499_v55  ;;  %v4595_v54 = vld [vmem:[%s5029_s29 + $0x524] ss:$8 sps:$4 sm:$0xff]  }
 0x17c   : > { %3179 = vmatprep.subr.bf16.mxu0 %v4502_v56  ;;  %v4598_v55 = vld [vmem:[%s5029_s29 + $0xb24] ss:$8 sps:$4 sm:$0xff]   ;;  %v4790_v56 = vmov 0  }
 0x17e   : > { %2922 = vmatpush1.bf16.msra.mxu1 %v4497_v57  ;;  %v4593_v57 = vld [vmem:[%s5029_s29 + $0x520] ss:$8 sps:$4 sm:$0xff]  }
 0x17f   : > { %3180 = vmatpush1.bf16.msra.mxu0 %v4500_v58  ;;  %2923 = vmatprep.subr.bf16.mxu1 %v4505_v59  ;;  %v4596_v58 = vld [vmem:[%s5029_s29 + $0xb20] ss:$8 sps:$4 sm:$0xff]   ;;  %v4601_v59 = vld [vmem:[%s5029_s29 + $0x534] ss:$8 sps:$4 sm:$0xff]  }
 0x180   : > { %3181 = vmatprep.subr.bf16.mxu0 %v4508_v60  ;;  %v4604_v60 = vld [vmem:[%s5029_s29 + $0xb34] ss:$8 sps:$4 sm:$0xff]  }
 0x182   : > { %2924 = vmatpush1.bf16.msra.mxu1 %v4503_v61  ;;  %v4599_v61 = vld [vmem:[%s5029_s29 + $0x530] ss:$8 sps:$4 sm:$0xff]  }
 0x183   : > { %3182 = vmatpush1.bf16.msra.mxu0 %v4506_v62  ;;  %2925 = vmatprep.subr.bf16.mxu1 %v4511_v63  ;;  %v4602_v62 = vld [vmem:[%s5029_s29 + $0xb30] ss:$8 sps:$4 sm:$0xff]   ;;  %v4607_v63 = vld [vmem:[%s5029_s29 + $0x544] ss:$8 sps:$4 sm:$0xff]  }
 0x184   : > { %3183 = vmatprep.subr.bf16.mxu0 %v4514_v0  ;;  %v4610_v0 = vld [vmem:[%s5029_s29 + $0xb44] ss:$8 sps:$4 sm:$0xff]  }
 0x186   : > { %2926 = vmatpush1.bf16.msra.mxu1 %v4509_v1  ;;  %v4605_v1 = vld [vmem:[%s5029_s29 + $0x540] ss:$8 sps:$4 sm:$0xff]  }
 0x187   : > { %3184 = vmatpush1.bf16.msra.mxu0 %v4512_v2  ;;  %2927 = vmatprep.subr.bf16.mxu1 %v4517_v3  ;;  %v4608_v2 = vld [vmem:[%s5029_s29 + $0xb40] ss:$8 sps:$4 sm:$0xff]   ;;  %v4613_v3 = vld [vmem:[%s5029_s29 + $0x554] ss:$8 sps:$4 sm:$0xff]  }
 0x188   : > { %3185 = vmatprep.subr.bf16.mxu0 %v4520_v4  ;;  %v4616_v4 = vld [vmem:[%s5029_s29 + $0xb54] ss:$8 sps:$4 sm:$0xff]  }
 0x18a   : > { %2928 = vmatpush1.bf16.msra.mxu1 %v4515_v5  ;;  %v4611_v5 = vld [vmem:[%s5029_s29 + $0x550] ss:$8 sps:$4 sm:$0xff]  }
 0x18b   : > { %3186 = vmatpush1.bf16.msra.mxu0 %v4518_v6  ;;  %2929 = vmatprep.subr.bf16.mxu1 %v4523_v7  ;;  %v4614_v6 = vld [vmem:[%s5029_s29 + $0xb50] ss:$8 sps:$4 sm:$0xff]   ;;  %v4619_v7 = vld [vmem:[%s5029_s29 + $0x564] ss:$8 sps:$4 sm:$0xff]  }
 0x18c   : > { %3187 = vmatprep.subr.bf16.mxu0 %v4526_v8  ;;  %v4622_v8 = vld [vmem:[%s5029_s29 + $0xb64] ss:$8 sps:$4 sm:$0xff]  }
 0x18e   : > { %2930 = vmatpush1.bf16.msra.mxu1 %v4521_v9  ;;  %v4617_v9 = vld [vmem:[%s5029_s29 + $0x560] ss:$8 sps:$4 sm:$0xff]  }
 0x18f   : > { %3188 = vmatpush1.bf16.msra.mxu0 %v4524_v10  ;;  %2931 = vmatprep.subr.bf16.mxu1 %v4529_v11  ;;  %v4620_v10 = vld [vmem:[%s5029_s29 + $0xb60] ss:$8 sps:$4 sm:$0xff]   ;;  %v4625_v11 = vld [vmem:[%s5029_s29 + $0x574] ss:$8 sps:$4 sm:$0xff]  }
 0x190   : > { %3189 = vmatprep.subr.bf16.mxu0 %v4532_v12  ;;  %v4628_v12 = vld [vmem:[%s5029_s29 + $0xb74] ss:$8 sps:$4 sm:$0xff]  }
 0x192   : > { %2932 = vmatpush1.bf16.msra.mxu1 %v4527_v13  ;;  %v4623_v13 = vld [vmem:[%s5029_s29 + $0x570] ss:$8 sps:$4 sm:$0xff]  }
 0x193   : > { %3190 = vmatpush1.bf16.msra.mxu0 %v4530_v14  ;;  %2933 = vmatprep.subr.bf16.mxu1 %v4535_v15  ;;  %v4626_v14 = vld [vmem:[%s5029_s29 + $0xb70] ss:$8 sps:$4 sm:$0xff]   ;;  %v4631_v15 = vld [vmem:[%s5029_s29 + $0x584] ss:$8 sps:$4 sm:$0xff]  }
 0x194   : > { %3191 = vmatprep.subr.bf16.mxu0 %v4538_v16  ;;  %v4632_v16 = vld [vmem:[%s5027_s8 + $0x58] ss:$92 sps:$4 sm:$0xff]  }
 0x196   : > { %2934 = vmatpush1.bf16.msra.mxu1 %v4533_v17  ;;  %v4629_v17 = vld [vmem:[%s5029_s29 + $0x580] ss:$8 sps:$4 sm:$0xff]  }
 0x197   : > { %3192 = vmatpush1.bf16.msra.mxu0 %v4536_v18  ;;  %2935 = vmatprep.subr.bf16.mxu1 %v4541_v19  ;;  %v4635_v18 = vld [vmem:[%s5029_s29 + $0x594] ss:$8 sps:$4 sm:$0xff]   ;;  %v4633_v19 = vld [vmem:[%s5029_s29 + $0x590] ss:$8 sps:$4 sm:$0xff]  }
 0x198   : > { %3193 = vmatprep.subr.bf16.mxu0 %v4544_v20  ;;  %v4638_v20 = vld [vmem:[%s5029_s29 + $0x5a4] ss:$8 sps:$4 sm:$0xff]  }
 0x19a   : > { %2936 = vmatpush1.bf16.msra.mxu1 %v4539_v21  ;;  %v4636_v21 = vld [vmem:[%s5029_s29 + $0x5a0] ss:$8 sps:$4 sm:$0xff]  }
 0x19b   : > { %3194 = vmatpush1.bf16.msra.mxu0 %v4542_v22  ;;  %2937 = vmatprep.subr.bf16.mxu1 %v4547_v23  ;;  %v4641_v22 = vld [vmem:[%s5029_s29 + $0x5b4] ss:$8 sps:$4 sm:$0xff]   ;;  %v4639_v23 = vld [vmem:[%s5029_s29 + $0x5b0] ss:$8 sps:$4 sm:$0xff]  }
 0x19c   : > { %3195 = vmatprep.subr.bf16.mxu0 %v4550_v24  ;;  %v4644_v24 = vld [vmem:[%s5029_s29 + $0x5c4] ss:$8 sps:$4 sm:$0xff]  }
 0x19e   : > { %2938 = vmatpush1.bf16.msra.mxu1 %v4545_v25  ;;  %v4642_v25 = vld [vmem:[%s5029_s29 + $0x5c0] ss:$8 sps:$4 sm:$0xff]  }
 0x19f   : > { %3196 = vmatpush1.bf16.msra.mxu0 %v4548_v26  ;;  %2939 = vmatprep.subr.bf16.mxu1 %v4553_v27  ;;  %v4647_v26 = vld [vmem:[%s5029_s29 + $0x5d4] ss:$8 sps:$4 sm:$0xff]   ;;  %v4645_v27 = vld [vmem:[%s5029_s29 + $0x5d0] ss:$8 sps:$4 sm:$0xff]  }
 0x1a0   : > { %3197 = vmatprep.subr.bf16.mxu0 %v4556_v28  ;;  %v4650_v28 = vld [vmem:[%s5029_s29 + $0x5e4] ss:$8 sps:$4 sm:$0xff]  }
 0x1a2   : > { %2940 = vmatpush1.bf16.msra.mxu1 %v4551_v29  ;;  %v4648_v29 = vld [vmem:[%s5029_s29 + $0x5e0] ss:$8 sps:$4 sm:$0xff]  }
 0x1a3   : > { %3198 = vmatpush1.bf16.msra.mxu0 %v4554_v30  ;;  %2941 = vmatprep.subr.bf16.mxu1 %v4559_v31  ;;  %v4653_v30 = vld [vmem:[%s5029_s29 + $0x5f4] ss:$8 sps:$4 sm:$0xff]   ;;  %v4651_v31 = vld [vmem:[%s5029_s29 + $0x5f0] ss:$8 sps:$4 sm:$0xff]  }
 0x1a4   : > { %3199 = vmatprep.subr.bf16.mxu0 %v4562_v32  ;;  %v4654_v32 = vld [vmem:[%s5027_s8 + $0x28] ss:$92 sps:$4 sm:$0xff]  }
 0x1a6   : > { %2942 = vmatpush1.bf16.msra.mxu1 %v4557_v33 }
 0x1a7   : > { %3200 = vmatpush1.bf16.msra.mxu0 %v4560_v34  ;;  %2943 = vmatprep.subr.bf16.mxu1 %v4565_v35 }
 0x1a8   : > { %3201 = vmatprep.subr.bf16.mxu0 %v4568_v36 }
 0x1aa   : > { %2944 = vmatpush1.bf16.msra.mxu1 %v4563_v37  ;;  %v391_v37 = vld [vmem:[#allocation2] sm:$0xff] }
 0x1ab   : > { %3202 = vmatpush1.bf16.msra.mxu0 %v4566_v38  ;;  %2945 = vmatprep.subr.bf16.mxu1 %v4571_v39 }
 0x1ac   : > { %3203 = vmatprep.subr.bf16.mxu0 %v4574_v40  ;;  %v392_v40 = vld [vmem:[#allocation2 + $0x8] sm:$0xff] }
 0x1ae   : > { %2946 = vmatpush1.bf16.msra.mxu1 %v4569_v41 }
 0x1af   : > { %3204 = vmatpush1.bf16.msra.mxu0 %v4572_v42  ;;  %2958 = vmatprep.subr.bf16.mxu1 %v4580_v43  ;;  %v393_v43 = vld [vmem:[#allocation2 + $0x10] sm:$0xff] }
 0x1b0   : > { %3216 = vmatprep.subr.bf16.mxu0 %v4586_v44 }
 0x1b1   : > { %2948 = vmatmul.mubr.bf16.vlgmr.msra.gmra.mrb[0].mxu1 %v4575_v45 }
 0x1b2   : > { %3206 = vmatmul.mubr.bf16.vlgmr.msra.gmra.mrb[0].mxu0 %v4581_v46  ;;  %2959 = vmatpush1.bf16.msra.mxu1 %v4578_v47  ;;  %v394_v47 = vld [vmem:[#allocation2 + $0x18] sm:$0xff] }
 0x1b3   : > { %3217 = vmatpush1.bf16.msra.mxu0 %v4584_v48  ;;  %2960 = vmatprep.subr.bf16.mxu1 %v4589_v49 }
 0x1b4   : > { %3218 = vmatprep.subr.bf16.mxu0 %v4592_v50  ;;  %3248 = vmatprep.mubr.bf16.mxu0 %v4790_v56  ;;  %v3291_v56 = vld [vmem:[%s378_s9] sm:$0x3] (!%p3907_p1) }
 0x1b5   : > { %2990 = vmatprep.mubr.bf16.mxu1 %v4656_v51 }
 0x1b6   : > { %2961 = vmatpush1.bf16.msra.mxu1 %v4587_v52 }
 0x1b7   : > { %3219 = vmatpush1.bf16.msra.mxu0 %v4590_v53  ;;  %2962 = vmatprep.subr.bf16.mxu1 %v4595_v54  ;;  %v3277_v53 = vlaneseq (!%p3907_p1) }
 0x1b8   : > { %3220 = vmatprep.subr.bf16.mxu0 %v4598_v55  ;;  %v3275_v55 = vld [vmem:[%s373_s25] sm:$0x3] (!%p3907_p1) }
 0x1b9   : > { %v3278_v54 = vshrl.u32 (!%p3907_p1), %v3277_v53, 7 }
 0x1ba   : > { %2963 = vmatpush1.bf16.msra.mxu1 %v4593_v57 }
 0x1bb   : > { %3221 = vmatpush1.bf16.msra.mxu0 %v4596_v58  ;;  %2964 = vmatprep.subr.bf16.mxu1 %v4601_v59  ;;  %v3279_v58 = vsub.s32 (!%p3907_p1), 0, %v3278_v54  ;;  %v3283_v59 = vsub.s32 (!%p3907_p1), 1, %v3278_v54 }
 0x1bc   : > { %3222 = vmatprep.subr.bf16.mxu0 %v4604_v60 }
 0x1be   : > { %2965 = vmatpush1.bf16.msra.mxu1 %v4599_v61 }
 0x1bf   : > { %3223 = vmatpush1.bf16.msra.mxu0 %v4602_v62  ;;  %2966 = vmatprep.subr.bf16.mxu1 %v4607_v63  ;;  %v3280_v63 = vrot.slane (!%p3907_p1), %v3275_v55, %v3279_v58 }
 0x1c0   : > { %3224 = vmatprep.subr.bf16.mxu0 %v4610_v0  ;;  %v3284_v0 = vrot.slane (!%p3907_p1), %v3275_v55, %v3283_v59 }
 0x1c2   : > { %2967 = vmatpush1.bf16.msra.mxu1 %v4605_v1  ;;  %v3296_v1 = vrot.slane (!%p3907_p1), %v3291_v56, %v3279_v58 }
 0x1c3   : > { %3225 = vmatpush1.bf16.msra.mxu0 %v4608_v2  ;;  %2968 = vmatprep.subr.bf16.mxu1 %v4613_v3  ;;  %v3300_v2 = vrot.slane (!%p3907_p1), %v3291_v56, %v3283_v59 }
 0x1c4   : > { %3226 = vmatprep.subr.bf16.mxu0 %v4616_v4 }
 0x1c6   : > { %2969 = vmatpush1.bf16.msra.mxu1 %v4611_v5 }
 0x1c7   : > { %3227 = vmatpush1.bf16.msra.mxu0 %v4614_v6  ;;  %2970 = vmatprep.subr.bf16.mxu1 %v4619_v7 }
 0x1c8   : > { %3228 = vmatprep.subr.bf16.mxu0 %v4622_v8 }
 0x1ca   : > { %2971 = vmatpush1.bf16.msra.mxu1 %v4617_v9 }
 0x1cb   : > { %3229 = vmatpush1.bf16.msra.mxu0 %v4620_v10  ;;  %2972 = vmatprep.subr.bf16.mxu1 %v4625_v11 }
 0x1cc   : > { %3230 = vmatprep.subr.bf16.mxu0 %v4628_v12 }
 0x1ce   : > { %2973 = vmatpush1.bf16.msra.mxu1 %v4623_v13 }
 0x1cf   : > { %3231 = vmatpush1.bf16.msra.mxu0 %v4626_v14  ;;  %2974 = vmatprep.subr.bf16.mxu1 %v4631_v15 }
 0x1d2   : > { %3249 = vmatmul.mubr.bf16.vlgmr.msra.gmra.mrb[0].mxu0 %v4632_v16  ;;  %2975 = vmatpush1.bf16.msra.mxu1 %v4629_v17 }
 0x1d3   : > { %2976 = vmatprep.subr.bf16.mxu1 %v4635_v18 }
 0x1d6   : > { %2977 = vmatpush1.bf16.msra.mxu1 %v4633_v19 }
 0x1d7   : > { %2978 = vmatprep.subr.bf16.mxu1 %v4638_v20 }
 0x1da   : > { %2979 = vmatpush1.bf16.msra.mxu1 %v4636_v21 }
 0x1db   : > { %2980 = vmatprep.subr.bf16.mxu1 %v4641_v22 }
 0x1de   : > { %2981 = vmatpush1.bf16.msra.mxu1 %v4639_v23 }
 0x1df   : > { %2982 = vmatprep.subr.bf16.mxu1 %v4644_v24 }
 0x1e2   : > { %2983 = vmatpush1.bf16.msra.mxu1 %v4642_v25 }
 0x1e3   : > { %2984 = vmatprep.subr.bf16.mxu1 %v4647_v26 }
 0x1e6   : > { %2985 = vmatpush1.bf16.msra.mxu1 %v4645_v27 }
 0x1e7   : > { %2986 = vmatprep.subr.bf16.mxu1 %v4650_v28 }
 0x1ea   : > { %2987 = vmatpush1.bf16.msra.mxu1 %v4648_v29 }
 0x1eb   : > { %2988 = vmatprep.subr.bf16.mxu1 %v4653_v30 }
 0x1ee   : > { %2989 = vmatpush1.bf16.msra.mxu1 %v4651_v31 }
 0x1f1   : > { %2991 = vmatmul.mubr.bf16.vlgmr.msra.gmra.mrb[0].mxu1 %v4654_v32 }
 0x2a5   : > { %v3250_v33 = vpop.f32.mrb[0].mxu0 }
 0x2a6   : > { %v3252_v34 = vpop.f32.mrb[1].mxu0 }
 0x2a7   : > { %v3254_v35 = vpop.f32.mrb[2].mxu0 }
 0x2a8   : > { %v3256_v36 = vpop.f32.mrb[3].mxu0 }
 0x2c4   : > { %v2992_v38 = vpop.f32.mrb[0].mxu1 }
 0x2c5   : > { %v3920_v39 = vadd.f32 %v3250_v33, %v2992_v38  ;;  %v2994_v41 = vpop.f32.mrb[1].mxu1 }
 0x2c6   : > { %v3921_v42 = vadd.f32 %v3252_v34, %v2994_v41  ;;  %v2996_v44 = vpop.f32.mrb[2].mxu1  ;;  %3270 = sbr.rel (%p3907_p1) target bundleno = 733 (0x2dd), region = 74 }
 0x2c7   : > { %v3259_v45 = vadd.f32 %v3920_v39, %v391_v37  ;;  %v3922_v46 = vadd.f32 %v3254_v35, %v2996_v44  ;;  %v2998_v48 = vpop.f32.mrb[3].mxu1 }
 0x2c8   : > { %v3260_v49 = vadd.f32 %v3921_v42, %v392_v40  ;;  %v3923_v50 = vadd.f32 %v3256_v36, %v2998_v48 }
 0x2c9   : > { %3263 = vst [vmem:[#allocation2] sm:$0xff] %v3259_v45  ;;  %v3261_v51 = vadd.f32 %v3922_v46, %v393_v43 }
 0x2ca   : > { %3264 = vst [vmem:[#allocation2 + $0x8] sm:$0xff] %v3260_v49  ;;  %v3262_v52 = vadd.f32 %v3923_v50, %v394_v47 }
 0x2cb   : > { %3265 = vst [vmem:[#allocation2 + $0x10] sm:$0xff] %v3261_v51 }
 0x2cc   : > { %3266 = vst [vmem:[#allocation2 + $0x18] sm:$0xff] %v3262_v52 }
 0x2d0   : > { %v3271_v57 = vld [vmem:[#allocation2] sm:$0xff] }
 0x2d1   : > { %v3272_v60 = vld [vmem:[#allocation2 + $0x8] sm:$0xff]  ;;  %v3287_v3 = vmul.f32 %v3280_v63, %v3271_v57 }
 0x2d2   : > { %v3273_v61 = vld [vmem:[#allocation2 + $0x10] sm:$0xff]  ;;  %v3288_v4 = vmul.f32 %v3284_v0, %v3272_v60 }
 0x2d3   : > { %v3274_v62 = vld [vmem:[#allocation2 + $0x18] sm:$0xff]  ;;  %v3289_v5 = vmul.f32 %v3280_v63, %v3273_v61  ;;  %v3303_v7 = vadd.f32 %v3296_v1, %v3287_v3 }
 0x2d4   : > { %v3290_v6 = vmul.f32 %v3284_v0, %v3274_v62  ;;  %v3304_v8 = vadd.f32 %v3300_v2, %v3288_v4 }
 0x2d5   : > { %v3305_v9 = vadd.f32 %v3296_v1, %v3289_v5  ;;  %v3307_v11 = vmax.f32 %v3303_v7, 0.0 }
 0x2d6   : > { %v3306_v10 = vadd.f32 %v3300_v2, %v3290_v6  ;;  %v3308_v12 = vmax.f32 %v3304_v8, 0.0 }
 0x2d7   : > { %v3309_v13 = vmax.f32 %v3305_v9, 0.0 }
 0x2d8   : > { %v3310_v14 = vmax.f32 %v3306_v10, 0.0  ;;  %v3917_v15 = vpack.c.bf16 %v3308_v12, %v3307_v11 }
 0x2da   : > { %v3918_v16 = vpack.c.bf16 %v3310_v14, %v3309_v13  ;;  %3323 = vst [vmem:[%s5047_s13] sm:$0xff] %v3917_v15 }
 0x2dc   : > { %3324 = vst [vmem:[%s5047_s13 + $0x8] sm:$0xff] %v3918_v16 }
 0x2dd PF: > { %p5518_p11 = scmp.ne.s32.totalorder %s5516_s17, 0 }
 0x2de   : > { %s3919_s22 = sshll.u32 (%p5518_p11), %s4771_s23, 3 }
 0x2df   : > { %3331 = sbr.rel (!%p5518_p11) target bundleno = 742 (0x2e6), region = 78  ;;  %s3337_s29 = scalar_lea.vmem (%p5518_p11), %s5502_s4, %s3919_s22 }
 0x2e1   : > { %v3367_v17 = vld [vmem:[%s5047_s13] sm:$0xff] (%p5518_p11) }
 0x2e2   : > { %3368 = vst [vmem:[%s3337_s29] sm:$0xff] (%p5518_p11), %v3367_v17 }
 0x2e3   : > { %v3369_v18 = vld [vmem:[%s5047_s13 + $0x8] sm:$0xff] (%p5518_p11) }
 0x2e4   : > { %3370 = vst [vmem:[%s3337_s29 + $0x10] sm:$0xff] (%p5518_p11), %v3369_v18 }
 0x2e6 PF: > { %s17_s26 = sadd.s32 1, %s4783_s26   ;;  %s5519_s20 = sld [smem:[#allocation8_spill]] }
 0x2e7   : > { %p14_p13 = scmp.ge.s32.totalorder %s17_s26, 38   ;;  %s5520_s21 = sld [smem:[#allocation12_spill]] }
 0x2e8   : > { %s5521_s23 = sld [smem:[#allocation9_spill]]  ;;  %s5522_s0 = sld [smem:[#allocation10_spill]] }
 0x2e9   : > { %s5523_s25 = sld [smem:[#allocation11_spill]]  ;;  %s5524_s15 = smov %s4743_s16 }
 0x2ea   : > { %s5525_s16 = smov %s4919_s30  ;;  %s5526_s17 = smov %s4751_s18 }
 0x2eb   : > { %s5527_s18 = smov %s4755_s19  ;;  %s5528_s19 = smov %s4911_s12 }
 0x2ec   : > { %s5529_s22 = smov %s4775_s24  ;;  %16 = sbr.rel (!%p14_p13) target bundleno = 9 (0x9), region = 168 }
 0x2ee   : > { %s5530_s24 = smov %s5522_s0 }
 0x2f3   :  { %3386 = vsyncpa [#allocation5], 1 }
 0x2f4   :  { %3388 = vsyncpa [#allocation5 + $0x1], 1 }

// kernel: forward.9
= control target key start
LH: loop header
LB: loop body
LE: loop exit
PB: predicated region body
PF: predicated region fallthrough
CT: control target
= control target key end

     0   :  { %vm1131_vm0 = vmmov 0   ;;  %vm757_vm1 = vcmask 523264   ;;  %vm823_vm3 = vcmask 7168   ;;  %vm854_vm4 = vcmask 15360   ;;  %s1464_s1 = inlined_call_operand.vmem [shape: bf16[512,256], index: 1, kind: input, shape index: {}]   ;;  %s1465_s0 = inlined_call_operand.vmem [shape: bf16[16,512], index: 0, kind: input, shape index: {}]   ;;  %s1466_s3 = inlined_call_operand.vmem [shape: bf16[256,64], index: 3, kind: input, shape index: {}]   ;;  %s1467_s5 = inlined_call_operand.vmem [shape: bf16[64,128], index: 5, kind: input, shape index: {}]   ;;  %s1468_s2 = inlined_call_operand.vmem [shape: f32[1,256], index: 2, kind: input, shape index: {}]   ;;  %s1469_s4 = inlined_call_operand.vmem [shape: f32[1,64], index: 4, kind: input, shape index: {}]   ;;  %s1470_s6 = inlined_call_operand.vmem [shape: f32[1,128], index: 6, kind: input, shape index: {}]   ;;  %s1471_s7 = inlined_call_operand.vmem [shape: f32[16,2], index: 7, kind: output, shape index: {}]  }
   0x1   :  { %v1008_v0 = vld [vmem:[%s1464_s1 + $0x4] ss:$8 sps:$4 sm:$0xff]   ;;  %v1012_v2 = vld [vmem:[%s1464_s1] ss:$8 sps:$4 sm:$0xff]   ;;  %v1014_v4 = vld [vmem:[%s1464_s1 + $0x14] ss:$8 sps:$4 sm:$0xff]  }
   0x2   :  { %v1010_v1 = vld [vmem:[%s1464_s1 + $0x104] ss:$8 sps:$4 sm:$0xff]   ;;  %447 = vmatprep.subr.bf16.mxu1 %v1008_v0  ;;  %v1013_v3 = vld [vmem:[%s1464_s1 + $0x100] ss:$8 sps:$4 sm:$0xff]   ;;  %v1016_v5 = vld [vmem:[%s1464_s1 + $0x114] ss:$8 sps:$4 sm:$0xff]  }
   0x3   :  { %490 = vmatprep.subr.bf16.mxu0 %v1010_v1  ;;  %448 = vmatpush1.bf16.msra.mxu1 %v1012_v2  ;;  %v1018_v6 = vld [vmem:[%s1464_s1 + $0x10] ss:$8 sps:$4 sm:$0xff]   ;;  %v1020_v8 = vld [vmem:[%s1464_s1 + $0x24] ss:$8 sps:$4 sm:$0xff]   ;;  %v1024_v10 = vld [vmem:[%s1464_s1 + $0x20] ss:$8 sps:$4 sm:$0xff]  }
   0x4   :  { %491 = vmatpush1.bf16.msra.mxu0 %v1013_v3  ;;  %449 = vmatprep.subr.bf16.mxu1 %v1014_v4  ;;  %v1019_v7 = vld [vmem:[%s1464_s1 + $0x110] ss:$8 sps:$4 sm:$0xff]   ;;  %v1022_v9 = vld [vmem:[%s1464_s1 + $0x124] ss:$8 sps:$4 sm:$0xff]   ;;  %v1025_v11 = vld [vmem:[%s1464_s1 + $0x120] ss:$8 sps:$4 sm:$0xff]  }
   0x5   :  { %492 = vmatprep.subr.bf16.mxu0 %v1016_v5  ;;  %v1026_v12 = vld [vmem:[%s1464_s1 + $0x34] ss:$8 sps:$4 sm:$0xff]   ;;  %v1030_v14 = vld [vmem:[%s1464_s1 + $0x30] ss:$8 sps:$4 sm:$0xff]   ;;  %v1032_v16 = vld [vmem:[%s1464_s1 + $0x44] ss:$8 sps:$4 sm:$0xff]  }
   0x6   :  { %v1028_v13 = vld [vmem:[%s1464_s1 + $0x134] ss:$8 sps:$4 sm:$0xff]   ;;  %v1031_v15 = vld [vmem:[%s1464_s1 + $0x130] ss:$8 sps:$4 sm:$0xff]   ;;  %v1034_v17 = vld [vmem:[%s1464_s1 + $0x144] ss:$8 sps:$4 sm:$0xff]  }
   0x7   :  { %450 = vmatpush1.bf16.msra.mxu1 %v1018_v6  ;;  %v1036_v18 = vld [vmem:[%s1464_s1 + $0x40] ss:$8 sps:$4 sm:$0xff]   ;;  %v1038_v20 = vld [vmem:[%s1464_s1 + $0x54] ss:$8 sps:$4 sm:$0xff]   ;;  %v1042_v22 = vld [vmem:[%s1464_s1 + $0x50] ss:$8 sps:$4 sm:$0xff]  }
   0x8   :  { %493 = vmatpush1.bf16.msra.mxu0 %v1019_v7  ;;  %451 = vmatprep.subr.bf16.mxu1 %v1020_v8  ;;  %v1037_v19 = vld [vmem:[%s1464_s1 + $0x140] ss:$8 sps:$4 sm:$0xff]   ;;  %v1040_v21 = vld [vmem:[%s1464_s1 + $0x154] ss:$8 sps:$4 sm:$0xff]   ;;  %v1043_v23 = vld [vmem:[%s1464_s1 + $0x150] ss:$8 sps:$4 sm:$0xff]  }
   0x9   :  { %494 = vmatprep.subr.bf16.mxu0 %v1022_v9  ;;  %v1044_v24 = vld [vmem:[%s1464_s1 + $0x64] ss:$8 sps:$4 sm:$0xff]   ;;  %v1048_v26 = vld [vmem:[%s1464_s1 + $0x60] ss:$8 sps:$4 sm:$0xff]   ;;  %v1050_v28 = vld [vmem:[%s1464_s1 + $0x74] ss:$8 sps:$4 sm:$0xff]  }
   0xa   :  { %v1046_v25 = vld [vmem:[%s1464_s1 + $0x164] ss:$8 sps:$4 sm:$0xff]   ;;  %v1049_v27 = vld [vmem:[%s1464_s1 + $0x160] ss:$8 sps:$4 sm:$0xff]   ;;  %v1052_v29 = vld [vmem:[%s1464_s1 + $0x174] ss:$8 sps:$4 sm:$0xff]  }
   0xb   :  { %452 = vmatpush1.bf16.msra.mxu1 %v1024_v10  ;;  %v1054_v30 = vld [vmem:[%s1464_s1 + $0x70] ss:$8 sps:$4 sm:$0xff]   ;;  %v1056_v32 = vld [vmem:[%s1464_s1 + $0x84] ss:$8 sps:$4 sm:$0xff]   ;;  %v1060_v34 = vld [vmem:[%s1464_s1 + $0x80] ss:$8 sps:$4 sm:$0xff]  }
   0xc   :  { %495 = vmatpush1.bf16.msra.mxu0 %v1025_v11  ;;  %453 = vmatprep.subr.bf16.mxu1 %v1026_v12  ;;  %v1055_v31 = vld [vmem:[%s1464_s1 + $0x170] ss:$8 sps:$4 sm:$0xff]   ;;  %v1058_v33 = vld [vmem:[%s1464_s1 + $0x184] ss:$8 sps:$4 sm:$0xff]   ;;  %v1061_v35 = vld [vmem:[%s1464_s1 + $0x180] ss:$8 sps:$4 sm:$0xff]  }
   0xd   :  { %496 = vmatprep.subr.bf16.mxu0 %v1028_v13  ;;  %v1062_v36 = vld [vmem:[%s1464_s1 + $0x94] ss:$8 sps:$4 sm:$0xff]   ;;  %v1066_v38 = vld [vmem:[%s1464_s1 + $0x90] ss:$8 sps:$4 sm:$0xff]   ;;  %v1068_v40 = vld [vmem:[%s1464_s1 + $0xa4] ss:$8 sps:$4 sm:$0xff]  }
   0xe   :  { %v1064_v37 = vld [vmem:[%s1464_s1 + $0x194] ss:$8 sps:$4 sm:$0xff]   ;;  %v1067_v39 = vld [vmem:[%s1464_s1 + $0x190] ss:$8 sps:$4 sm:$0xff]   ;;  %v1070_v41 = vld [vmem:[%s1464_s1 + $0x1a4] ss:$8 sps:$4 sm:$0xff]  }
   0xf   :  { %454 = vmatpush1.bf16.msra.mxu1 %v1030_v14  ;;  %v1072_v42 = vld [vmem:[%s1464_s1 + $0xa0] ss:$8 sps:$4 sm:$0xff]   ;;  %v1074_v44 = vld [vmem:[%s1464_s1 + $0xb4] ss:$8 sps:$4 sm:$0xff]   ;;  %v1078_v46 = vld [vmem:[%s1464_s1 + $0xb0] ss:$8 sps:$4 sm:$0xff]  }
  0x10   :  { %497 = vmatpush1.bf16.msra.mxu0 %v1031_v15  ;;  %455 = vmatprep.subr.bf16.mxu1 %v1032_v16  ;;  %v1073_v43 = vld [vmem:[%s1464_s1 + $0x1a0] ss:$8 sps:$4 sm:$0xff]   ;;  %v1076_v45 = vld [vmem:[%s1464_s1 + $0x1b4] ss:$8 sps:$4 sm:$0xff]   ;;  %v1079_v47 = vld [vmem:[%s1464_s1 + $0x1b0] ss:$8 sps:$4 sm:$0xff]  }
  0x11   :  { %498 = vmatprep.subr.bf16.mxu0 %v1034_v17  ;;  %v1080_v48 = vld [vmem:[%s1464_s1 + $0xc4] ss:$8 sps:$4 sm:$0xff]   ;;  %v1084_v52 = vld [vmem:[%s1464_s1 + $0xc0] ss:$8 sps:$4 sm:$0xff]   ;;  %v1086_v54 = vld [vmem:[%s1464_s1 + $0xd4] ss:$8 sps:$4 sm:$0xff]  }
  0x12   :  { %v1106_v49 = vld [vmem:[%s1465_s0 + $0x4] ss:$16 sps:$4 sm:$0xff]   ;;  %v1109_v51 = vld [vmem:[%s1465_s0 + $0xc] ss:$16 sps:$4 sm:$0xff]   ;;  %v1085_v53 = vld [vmem:[%s1464_s1 + $0x1c0] ss:$8 sps:$4 sm:$0xff]  }
  0x13   :  { %456 = vmatpush1.bf16.msra.mxu1 %v1036_v18  ;;  %v1082_v50 = vld [vmem:[%s1464_s1 + $0x1c4] ss:$8 sps:$4 sm:$0xff]   ;;  %479 = vmatprep.mubr.bf16.mxu1 %v1106_v49  ;;  %v1088_v55 = vld [vmem:[%s1464_s1 + $0x1d4] ss:$8 sps:$4 sm:$0xff]   ;;  %v1090_v56 = vld [vmem:[%s1464_s1 + $0xd0] ss:$8 sps:$4 sm:$0xff]  }
  0x14   :  { %499 = vmatpush1.bf16.msra.mxu0 %v1037_v19  ;;  %457 = vmatprep.subr.bf16.mxu1 %v1038_v20  ;;  %v1091_v57 = vld [vmem:[%s1464_s1 + $0x1d0] ss:$8 sps:$4 sm:$0xff]   ;;  %v1092_v58 = vld [vmem:[%s1464_s1 + $0xe4] ss:$8 sps:$4 sm:$0xff]   ;;  %v1096_v60 = vld [vmem:[%s1464_s1 + $0xe0] ss:$8 sps:$4 sm:$0xff]  }
  0x15   :  { %500 = vmatprep.subr.bf16.mxu0 %v1040_v21  ;;  %522 = vmatprep.mubr.bf16.mxu0 %v1109_v51  ;;  %v1094_v59 = vld [vmem:[%s1464_s1 + $0x1e4] ss:$8 sps:$4 sm:$0xff]   ;;  %v1097_v61 = vld [vmem:[%s1464_s1 + $0x1e0] ss:$8 sps:$4 sm:$0xff]   ;;  %v1098_v62 = vld [vmem:[%s1464_s1 + $0xf4] ss:$8 sps:$4 sm:$0xff]  }
  0x16   :  { %v1100_v63 = vld [vmem:[%s1464_s1 + $0x1f4] ss:$8 sps:$4 sm:$0xff]   ;;  %v1102_v0 = vld [vmem:[%s1464_s1 + $0xf0] ss:$8 sps:$4 sm:$0xff]   ;;  %v1110_v2 = vld [vmem:[%s1466_s3 + $0x40] sm:$0xff]   ;;  %v1130_v20 = vmov 0.0  }
  0x17   :  { %458 = vmatpush1.bf16.msra.mxu1 %v1042_v22  ;;  %v1103_v1 = vld [vmem:[%s1464_s1 + $0x1f0] ss:$8 sps:$4 sm:$0xff]   ;;  %v1111_v5 = vld [vmem:[%s1466_s3] sm:$0xff]   ;;  %v1112_v6 = vld [vmem:[%s1466_s3 + $0x48] sm:$0xff]   ;;  %v97_v22 = vlaneseq }
  0x18   :  { %501 = vmatpush1.bf16.msra.mxu0 %v1043_v23  ;;  %459 = vmatprep.subr.bf16.mxu1 %v1044_v24  ;;  %v1104_v3 = vld [vmem:[%s1465_s0] ss:$16 sps:$4 sm:$0xff]   ;;  %v1107_v4 = vld [vmem:[%s1465_s0 + $0x8] ss:$16 sps:$4 sm:$0xff]  }
  0x19   :  { %502 = vmatprep.subr.bf16.mxu0 %v1046_v25  ;;  %v1113_v7 = vld [vmem:[%s1466_s3 + $0x8] sm:$0xff]   ;;  %v1114_v8 = vld [vmem:[%s1466_s3 + $0x50] sm:$0xff]   ;;  %v1116_v10 = vld [vmem:[%s1466_s3 + $0x58] sm:$0xff]   ;;  %v1431_v23 = vshrl.u32 %v97_v22, 7 }
  0x1a   :  { %v1115_v9 = vld [vmem:[%s1466_s3 + $0x10] sm:$0xff]   ;;  %v1117_v11 = vld [vmem:[%s1466_s3 + $0x18] sm:$0xff]   ;;  %v1118_v12 = vld [vmem:[%s1466_s3 + $0x60] sm:$0xff]  }
  0x1b   :  { %460 = vmatpush1.bf16.msra.mxu1 %v1048_v26  ;;  %v1119_v13 = vld [vmem:[%s1466_s3 + $0x20] sm:$0xff]   ;;  %v1120_v14 = vld [vmem:[%s1466_s3 + $0x68] sm:$0xff]   ;;  %v1122_v16 = vld [vmem:[%s1466_s3 + $0x70] sm:$0xff]   ;;  %v99_v24 = vsub.s32 0, %v1431_v23  ;;  %v103_v26 = vsub.s32 1, %v1431_v23  ;;  %vm807_vm2 = vcmp.lt.s32.totalorder %v1431_v23, 2 }
  0x1c   :  { %503 = vmatpush1.bf16.msra.mxu0 %v1049_v27  ;;  %461 = vmatprep.subr.bf16.mxu1 %v1050_v28  ;;  %v1121_v15 = vld [vmem:[%s1466_s3 + $0x28] sm:$0xff]   ;;  %v1123_v17 = vld [vmem:[%s1466_s3 + $0x30] sm:$0xff]   ;;  %v1124_v18 = vld [vmem:[%s1466_s3 + $0x78] sm:$0xff]  }
  0x1d   :  { %504 = vmatprep.subr.bf16.mxu0 %v1052_v29  ;;  %v1125_v19 = vld [vmem:[%s1466_s3 + $0x38] sm:$0xff]   ;;  %v1126_v21 = vld [vmem:[%s1467_s5] sm:$0xff]   ;;  %v1127_v51 = vld [vmem:[%s1467_s5 + $0x8] sm:$0xff]  }
  0x1e   :  { %v95_v25 = vld [vmem:[%s1468_s2] sm:$0x3] }
  0x1f   :  { %462 = vmatpush1.bf16.msra.mxu1 %v1054_v30  ;;  %v100_v27 = vrot.slane %v95_v25, %v99_v24  ;;  %v104_v28 = vrot.slane %v95_v25, %v103_v26 }
  0x20   :  { %505 = vmatpush1.bf16.msra.mxu0 %v1055_v31  ;;  %463 = vmatprep.subr.bf16.mxu1 %v1056_v32 }
  0x21   :  { %506 = vmatprep.subr.bf16.mxu0 %v1058_v33 }
  0x23   :  { %464 = vmatpush1.bf16.msra.mxu1 %v1060_v34 }
  0x24   :  { %507 = vmatpush1.bf16.msra.mxu0 %v1061_v35  ;;  %465 = vmatprep.subr.bf16.mxu1 %v1062_v36 }
  0x25   :  { %508 = vmatprep.subr.bf16.mxu0 %v1064_v37 }
  0x27   :  { %466 = vmatpush1.bf16.msra.mxu1 %v1066_v38 }
  0x28   :  { %509 = vmatpush1.bf16.msra.mxu0 %v1067_v39  ;;  %467 = vmatprep.subr.bf16.mxu1 %v1068_v40 }
  0x29   :  { %510 = vmatprep.subr.bf16.mxu0 %v1070_v41 }
  0x2b   :  { %468 = vmatpush1.bf16.msra.mxu1 %v1072_v42 }
  0x2c   :  { %511 = vmatpush1.bf16.msra.mxu0 %v1073_v43  ;;  %469 = vmatprep.subr.bf16.mxu1 %v1074_v44 }
  0x2d   :  { %512 = vmatprep.subr.bf16.mxu0 %v1076_v45 }
  0x2f   :  { %470 = vmatpush1.bf16.msra.mxu1 %v1078_v46 }
  0x30   :  { %513 = vmatpush1.bf16.msra.mxu0 %v1079_v47  ;;  %471 = vmatprep.subr.bf16.mxu1 %v1080_v48 }
  0x31   :  { %514 = vmatprep.subr.bf16.mxu0 %v1082_v50 }
  0x33   :  { %472 = vmatpush1.bf16.msra.mxu1 %v1084_v52  ;;  %v1128_v52 = vld [vmem:[%s1467_s5 + $0x10] sm:$0xff]  }
  0x34   :  { %515 = vmatpush1.bf16.msra.mxu0 %v1085_v53  ;;  %473 = vmatprep.subr.bf16.mxu1 %v1086_v54  ;;  %v1129_v53 = vld [vmem:[%s1467_s5 + $0x18] sm:$0xff]  }
  0x35   :  { %516 = vmatprep.subr.bf16.mxu0 %v1088_v55  ;;  %v929_v55 = vld [vmem:[%s1469_s4] ss:$0 sm:$0xff]  ;;  %s1133_s4 = smov 126  }
  0x37   :  { %474 = vmatpush1.bf16.msra.mxu1 %v1090_v56 }
  0x38   :  { %517 = vmatpush1.bf16.msra.mxu0 %v1091_v57  ;;  %475 = vmatprep.subr.bf16.mxu1 %v1092_v58 }
  0x39   :  { %518 = vmatprep.subr.bf16.mxu0 %v1094_v59 }
  0x3b   :  { %476 = vmatpush1.bf16.msra.mxu1 %v1096_v60 }
  0x3c   :  { %519 = vmatpush1.bf16.msra.mxu0 %v1097_v61  ;;  %477 = vmatprep.subr.bf16.mxu1 %v1098_v62 }
  0x3d   :  { %520 = vmatprep.subr.bf16.mxu0 %v1100_v63 }
  0x3f   :  { %478 = vmatpush1.bf16.msra.mxu1 %v1102_v0 }
  0x40   :  { %521 = vmatpush1.bf16.msra.mxu0 %v1103_v1  ;;  %980 = vmatprep.subr.bf16.mxu1 %v1130_v20 }
  0x41   :  { %953 = vmatprep.subr.bf16.mxu0 %v1110_v2  ;;  %v1132_v2 = vmov 2  }
  0x42   :  { %480 = vmatmul.mubr.bf16.vlgmr.msra.gmra.mrb[0].mxu1 %v1104_v3  ;;  %1007 = vset.pattern.permute.xlu0 %v1132_v2  ;;  %v946_v3 = vld [vmem:[%s1470_s6] ss:$0 sm:$0xff] }
  0x43   :  { %523 = vmatmul.mubr.bf16.vlgmr.msra.gmra.mrb[0].mxu0 %v1107_v4  ;;  %981 = vmatpush3.bf16.msra.mxu1 %v1126_v21 }
  0x44   :  { %954 = vmatpush3.bf16.msra.mxu0 %v1111_v5  ;;  %982 = vmatprep.subr.bf16.mxu1 %v1130_v20 }
  0x45   :  { %955 = vmatprep.subr.bf16.mxu0 %v1112_v6  ;;  %988 = vmatprep.mubr.msk.bf16.mxu1 %vm1131_vm0, %v1130_v20 }
  0x46   :  { %1006 = vset.pattern.permute.xlu1 %v1132_v2 }
  0x47   :  { %983 = vmatpush3.bf16.msra.mxu1 %v1127_v51 }
  0x48   :  { %956 = vmatpush3.bf16.msra.mxu0 %v1113_v7  ;;  %984 = vmatprep.subr.bf16.mxu1 %v1130_v20 }
  0x49   :  { %957 = vmatprep.subr.bf16.mxu0 %v1114_v8  ;;  %v952_v8 = vsel %vm807_vm2, 1.0, %v1130_v20 }
  0x4b   :  { %985 = vmatpush3.bf16.msra.mxu1 %v1128_v52 }
  0x4c   :  { %958 = vmatpush3.bf16.msra.mxu0 %v1115_v9  ;;  %986 = vmatprep.subr.bf16.mxu1 %v1130_v20 }
  0x4d   :  { %959 = vmatprep.subr.bf16.mxu0 %v1116_v10 }
  0x4f   :  { %987 = vmatpush3.bf16.msra.mxu1 %v1129_v53 }
  0x50   :  { %960 = vmatpush3.bf16.msra.mxu0 %v1117_v11 }
  0x51   :  { %961 = vmatprep.subr.bf16.mxu0 %v1118_v12 }
  0x54   :  { %962 = vmatpush3.bf16.msra.mxu0 %v1119_v13 }
  0x55   :  { %963 = vmatprep.subr.bf16.mxu0 %v1120_v14 }
  0x58   :  { %964 = vmatpush3.bf16.msra.mxu0 %v1121_v15 }
  0x59   :  { %965 = vmatprep.subr.bf16.mxu0 %v1122_v16 }
  0x5c   :  { %966 = vmatpush3.bf16.msra.mxu0 %v1123_v17 }
  0x5d   :  { %967 = vmatprep.subr.bf16.mxu0 %v1124_v18 }
  0x60   :  { %968 = vmatpush3.bf16.msra.mxu0 %v1125_v19 }
 0x115   :  { %v481_v29 = vpop.f32.mrb[0].mxu1 }
 0x116   :  { %v524_v30 = vpop.f32.mrb[0].mxu0  ;;  %v482_v31 = vadd.f32 %v481_v29, %v100_v27  ;;  %v483_v32 = vpop.f32.mrb[1].mxu1 }
 0x117   :  { %v526_v33 = vpop.f32.mrb[1].mxu0  ;;  %v484_v34 = vadd.f32 %v483_v32, %v104_v28  ;;  %v485_v35 = vpop.f32.mrb[2].mxu1 }
 0x118   :  { %v528_v36 = vpop.f32.mrb[2].mxu0  ;;  %v525_v37 = vadd.f32 %v524_v30, %v482_v31  ;;  %v486_v38 = vadd.f32 %v485_v35, %v100_v27  ;;  %v487_v39 = vpop.f32.mrb[3].mxu1 }
 0x119   :  { %v530_v40 = vpop.f32.mrb[3].mxu0  ;;  %v527_v41 = vadd.f32 %v526_v33, %v484_v34  ;;  %v488_v42 = vadd.f32 %v487_v39, %v104_v28 }
 0x11a   :  { %v529_v43 = vadd.f32 %v528_v36, %v486_v38  ;;  %v533_v45 = vmax.f32 %v525_v37, 0.0 }
 0x11b   :  { %v531_v44 = vadd.f32 %v530_v40, %v488_v42  ;;  %v534_v47 = vmax.f32 %v527_v41, 0.0 }
 0x11c   :  { %v535_v46 = vmax.f32 %v529_v43, 0.0 }
 0x11d   :  { %v536_v48 = vmax.f32 %v531_v44, 0.0 }
 0x11e   :  { %v537_v49 = vpack.c.bf16 %v535_v46, %v533_v45 }
 0x11f   :  { %v538_v50 = vpack.c.bf16 %v536_v48, %v534_v47 }
 0x121   :  { %706 = vmatprep.mubr.bf16.mxu0 %v538_v50 }
 0x122   :  { %707 = vmatmul.mubr.bf16.vlgmr.msra.gmra.mrb[4].mxu0 %v537_v49 }
 0x1f5   :  { %v969_v54 = vpop.f32.mrb[4].mxu0 }
 0x1f6   :  { %v970_v56 = vpop.f32.mrb[5].mxu0 }
 0x1f7   :  { %v971_v57 = vadd.f32 %v970_v56, %v969_v54  ;;  %v972_v58 = vpop.f32.mrb[6].mxu0 }
 0x1f8   :  { %v973_v59 = vpop.f32.mrb[7].mxu0 }
 0x1f9   :  { %v709_v60 = vadd.f32 %v971_v57, %v929_v55  ;;  %v974_v61 = vadd.f32 %v973_v59, %v972_v58 }
 0x1fb   :  { %v712_v62 = vadd.f32 %v974_v61, %v929_v55  ;;  %v715_v63 = vmax.f32 %v709_v60, 0.0 }
 0x1fd   :  { %v716_v0 = vmax.f32 %v712_v62, 0.0 }
 0x1ff   :  { %v717_v1 = vpack.c.bf16 %v716_v0, %v715_v63 }
 0x201   :  { %989 = vmatmul.mubr.msk.bf16.vlgmr.msra.gmra.mrb[4].mxu1 %vm757_vm1, %v717_v1 }
 0x2d4   :  { %v795_v4 = vpop.f32.mrb[4].mxu1 }
 0x2d5   :  { %v796_v5 = vadd.f32 %v946_v3, %v795_v4  ;;  %v990_v6 = vpop.f32.mrb[5].mxu1 }
 0x2d6   :  { %v798_v7 = vpop.f32.mrb[6].mxu1 }
 0x2d7   :  { %v802_v9 = vmax.f32 %v796_v5, 0.0  ;;  %v799_v10 = vadd.f32 %v946_v3, %v798_v7  ;;  %v991_v11 = vpop.f32.mrb[7].mxu1 }
 0x2d9   :  { %v803_v12 = vmax.f32 %v799_v10, 0.0  ;;  %v813_v13 = vmul.f32 %v952_v8, %v802_v9 }
 0x2db   :  { %817 = vrot.lane.b32.xlu0 %v813_v13, %s1133_s4  ;;  %v814_v14 = vmul.f32 0.0, %v803_v12 }
 0x2df   :  { %819 = vrot.lane.b32.xlu0 %v814_v14, %s1133_s4 }
 0x2e3   :  { %846 = vperm.xlu0 %1007, %v803_v12  }
 0x34d   :  { %v818_v15 = vpop.permute.xlu0 %817 }
 0x34e   :  { %v824_v17 = vsel %vm823_vm3, %v818_v15, 0.0 }
 0x351   :  { %v820_v16 = vpop.permute.xlu0 %819 }
 0x352   :  { %v825_v18 = vsel %vm823_vm3, %v820_v16, 0.0 }
 0x353   :  { %v826_v19 = vadd.f32 %v825_v18, %v824_v17 }
 0x355   :  { %827 = vadd.xlane.f32.xlu1 %v826_v19 }
 0x362   :  { %v847_v27 = vpop.permute.xlu0 %846 }
 0x363   :  { %v850_v29 = vadd.f32 %v847_v27, %v803_v12 }
 0x366   :  { %841 = vperm.xlu1 %1006, %v802_v9  }
 0x3e2   :  { %v828_v21 = vpop.xlane.xlu1 %827 }
 0x3e3   :  { %v829_v20 = vrot.slane %v828_v21, 4 }
 0x3e5   :  { %v830_v22 = vadd.f32 %v829_v20, %v828_v21 }
 0x3e6   :  { %v842_v28 = vpop.permute.xlu1 %841 }
 0x3e7   :  { %v831_v23 = vrot.slane %v830_v22, 2  ;;  %v849_v30 = vadd.f32 %v842_v28, %v802_v9 }
 0x3e9   :  { %v832_v24 = vadd.f32 %v831_v23, %v830_v22 }
 0x3eb   :  { %v833_v25 = vrot.slane %v832_v24, 1 }
 0x3ed   :  { %v834_v26 = vadd.f32 %v833_v25, %v832_v24 }
 0x3ef   :  { %1000 = vpush %v834_v26 }
 0x420   :  { %s1001_s6 = spop %1000 }
 0x421   :  { %s838_s15 = smul.f32 0.5, %s1001_s6 }
 0x423   :  { %v851_v31 = vstv %s838_s15 }
 0x424   :  { %v852_v32 = vsub.f32 %v849_v30, %v851_v31  ;;  %v853_v33 = vsub.f32 %v850_v29, %v851_v31 }
 0x426   :  { %855 = vst.msk [vmem:[%s1471_s7] sm:$0xff] %vm854_vm4, %v852_v32  ;;  %856 = vst.msk [vmem:[%s1471_s7 + $0x8] sm:$0xff] %vm854_vm4, %v853_v33 }

</bundles_post_ra>
